<compile_context>
chip_gen: v6e
topology: v6e:2x2x1
jax: 0.10.0
libtpu: 0.0.40
codegen_flags: <defaults>
</compile_context>

<pallas_src>
import functools

import numpy as np
import jax
import jax.numpy as jnp
from jax.experimental import pallas as pl
from jax.experimental.pallas import tpu as pltpu

LANE = 128                          # output-channel (lane) padding granularity
VMEM_LIMIT = 32 * 1024 * 1024       # explicit scoped-VMEM bound (safe on v5e/v6e/v7x)


def _round_up(x, m):
    return (x + m - 1) // m * m


# ---------------------------------------------------------------------------
# Pallas kernels
# ---------------------------------------------------------------------------

def _mm_bias_relu_kernel(x_ref, w_ref, b_ref, o_ref, *, apply_relu):
    # x: (TM, K) bf16 (K unpadded), w: (K, Np) bf16, b: (1, Np) f32, o: (TM, Np) f32
    acc = jnp.dot(x_ref[...], w_ref[...], preferred_element_type=jnp.float32)
    acc = acc + b_ref[...]
    if apply_relu:
        acc = jnp.maximum(acc, 0.0)
    o_ref[...] = acc


def _conv_taps_kernel(x_ref, w_ref, b_ref, o_ref, *, tap_starts, m2):
    # Fused patch-extraction + matmul + bias + ReLU for a KxK / stride-1 conv.
    #   x_ref: (L, Cin) bf16   -- one image, zero-padded spatially, row-flattened
    #   w_ref: (T, Cin, Np) bf16 -- one (Cin, Np) weight matrix per tap
    #   b_ref: (1, Np) f32
    #   o_ref: (M2, Np) f32 with M2 = OH * Wp (junk columns sliced off in glue)
    acc = jnp.zeros(o_ref.shape, jnp.float32)
    for t, start in enumerate(tap_starts):          # unrolled: K*K taps
        patch = x_ref[start:start + m2, :]          # shifted slab, stays in VMEM
        acc = acc + jnp.dot(patch, w_ref[t], preferred_element_type=jnp.float32)
    o_ref[...] = jnp.maximum(acc + b_ref[...], 0.0)


def _maxpool3x3_kernel(x_ref, o_ref):
    # Separable 3x3 / stride-1 max pool in bf16: row pass (kw) then column pass (kh).
    #   x_ref: (H+2, W+2, C) padded with -inf; o_ref: (H, W, C)
    oh, ow, _ = o_ref.shape
    row = jnp.maximum(jnp.maximum(x_ref[:, 0:ow, :], x_ref[:, 1:ow + 1, :]),
                      x_ref[:, 2:ow + 2, :])
    o_ref[...] = jnp.maximum(jnp.maximum(row[0:oh], row[1:oh + 1]), row[2:oh + 2])


# ---------------------------------------------------------------------------
# Cached pallas_call builders (keyed by static shapes -> stable compile cache)
# ---------------------------------------------------------------------------

@functools.lru_cache(maxsize=None)
def _get_mm_call(Mp, K, Np, TM, apply_relu):
    kernel = functools.partial(_mm_bias_relu_kernel, apply_relu=apply_relu)
    cost = pl.CostEstimate(
        flops=2 * Mp * K * Np,
        transcendentals=0,
        bytes_accessed=Mp * K * 2 + K * Np * 2 + Np * 4 + Mp * Np * 4)
    return pl.pallas_call(
        kernel,
        out_shape=jax.ShapeDtypeStruct((Mp, Np), jnp.float32),
        grid_spec=pltpu.PrefetchScalarGridSpec(
            num_scalar_prefetch=0,
            grid=(Mp // TM,),
            in_specs=[
                pl.BlockSpec((TM, K), lambda i: (i, 0)),   # activations: K unpadded
                pl.BlockSpec((K, Np), lambda i: (0, 0)),   # weight, constant block
                pl.BlockSpec((1, Np), lambda i: (0, 0)),   # bias, constant block
            ],
            out_specs=pl.BlockSpec((TM, Np), lambda i: (i, 0)),
        ),
        compiler_params=pltpu.CompilerParams(
            dimension_semantics=("parallel",),
            vmem_limit_bytes=VMEM_LIMIT),
        cost_estimate=cost,
    )


@functools.lru_cache(maxsize=None)
def _get_conv_call(N, L, Cin, T, Np, M2, tap_starts):
    kernel = functools.partial(_conv_taps_kernel, tap_starts=tap_starts, m2=M2)
    cost = pl.CostEstimate(
        flops=2 * N * M2 * Cin * Np * T,
        transcendentals=0,
        bytes_accessed=N * L * Cin * 2 + T * Cin * Np * 2 + Np * 4 + N * M2 * Np * 4)
    return pl.pallas_call(
        kernel,
        out_shape=jax.ShapeDtypeStruct((N, M2, Np), jnp.float32),
        grid_spec=pltpu.PrefetchScalarGridSpec(
            num_scalar_prefetch=0,
            grid=(N,),                                   # one image per grid step
            in_specs=[
                pl.BlockSpec((None, L, Cin), lambda n: (n, 0, 0)),
                pl.BlockSpec((T, Cin, Np), lambda n: (0, 0, 0)),
                pl.BlockSpec((1, Np), lambda n: (0, 0)),
            ],
            out_specs=pl.BlockSpec((None, M2, Np), lambda n: (n, 0, 0)),
        ),
        compiler_params=pltpu.CompilerParams(
            dimension_semantics=("parallel",),
            vmem_limit_bytes=VMEM_LIMIT),
        cost_estimate=cost,
    )


@functools.lru_cache(maxsize=None)
def _get_maxpool_call(N, H, W, C):
    return pl.pallas_call(
        _maxpool3x3_kernel,
        out_shape=jax.ShapeDtypeStruct((N, H, W, C), jnp.bfloat16),
        grid_spec=pltpu.PrefetchScalarGridSpec(
            num_scalar_prefetch=0,
            grid=(N,),
            in_specs=[pl.BlockSpec((None, H + 2, W + 2, C), lambda n: (n, 0, 0, 0))],
            out_specs=pl.BlockSpec((None, H, W, C), lambda n: (n, 0, 0, 0)),
        ),
        compiler_params=pltpu.CompilerParams(
            dimension_semantics=("parallel",),
            vmem_limit_bytes=VMEM_LIMIT),
    )


# ---------------------------------------------------------------------------
# Op wrappers
# ---------------------------------------------------------------------------

def matmul_bias_act(x, wp, bp, n_out, relu=True):
    """x:(M,K) @ wp:(K,Np) bf16 + bp:(1,Np) f32, optional ReLU.  K is NOT padded."""
    M, K = x.shape
    _, Np = wp.shape
    # TM: multiple of 16 (bf16 packs 2 rows/sublane); 256 feeds the 256-wide MXUs
    # on v6e/v7x and (for M=512 here) keeps the grid >= 2 so both v7x TCs get work.
    TM = min(256, _round_up(M, 16))
    Mp = _round_up(M, TM)
    xp = x.astype(jnp.bfloat16)
    if Mp != M:
        xp = jnp.pad(xp, ((0, Mp - M), (0, 0)))        # pad M only, never K
    out = _get_mm_call(Mp, K, Np, TM, bool(relu))(xp, wp, bp)
    return out[:M, :n_out]


def conv2d_kxk(x, w_taps, bp, cout, ksize, pad):
    """Stride-1 'same' KxK conv + bias + ReLU (NHWC, bf16 input).  Patch
    extraction is fused into the kernel; no HBM im2col intermediate."""
    N, H, W, Cin = x.shape
    OH, OW = H, W
    Hp, Wp = H + 2 * pad, W + 2 * pad
    # Zero-pad the halo plus ONE extra bottom row so every per-tap flattened slab
    # of OH*Wp rows stays in-bounds, then flatten the spatial dims.
    xp = jnp.pad(x, ((0, 0), (pad, pad + 1), (pad, pad), (0, 0)))
    L = (Hp + 1) * Wp
    x_flat = xp.reshape(N, L, Cin)
    M2 = OH * Wp
    T, _, Np = w_taps.shape
    tap_starts = tuple(kh * Wp + kw for kh in range(ksize) for kw in range(ksize))
    out = _get_conv_call(N, L, Cin, T, Np, M2, tap_starts)(x_flat, w_taps, bp)
    # Drop the (Wp-OW) junk columns and padded output channels (cheap fused slice).
    return out.reshape(N, OH, Wp, Np)[:, :, :OW, :cout]


def maxpool3x3_s1_p1(x):
    """3x3 / stride 1 / pad 1 max pool in bf16 (exact: max commutes with the cast)."""
    N, H, W, C = x.shape
    xp = jnp.pad(x, ((0, 0), (1, 1), (1, 1), (0, 0)), constant_values=-jnp.inf)
    return _get_maxpool_call(N, H, W, C)(xp)


# ---------------------------------------------------------------------------
# Parameter init & preparation (pre-transpose / pre-pad / pre-cast weights once)
# ---------------------------------------------------------------------------

def _prep_1x1_weights(w_list, b_list):
    """1x1 conv weights (Cout,Cin,1,1), fused along Cout -> (Cin, Np) bf16 matmul
    weight (K unpadded, N padded to the lane width) and (1, Np) f32 bias."""
    wmats = [w.reshape(w.shape[0], w.shape[1]).T for w in w_list]   # (Cin, Cout)
    wmat = jnp.concatenate(wmats, axis=1)
    bias = jnp.concatenate(b_list)
    _, Nn = wmat.shape
    Np = _round_up(Nn, LANE)
    wp = jnp.pad(wmat, ((0, 0), (0, Np - Nn))).astype(jnp.bfloat16)
    bp = jnp.pad(bias, (0, Np - Nn)).astype(jnp.float32).reshape(1, Np)
    return wp, bp


def _prep_tap_weights(w, b):
    """(Cout,Cin,KH,KW) -> per-tap matmul weights (KH*KW, Cin, Np) bf16 + (1,Np) bias."""
    cout, cin, kh, kw = w.shape
    wt = jnp.transpose(w, (2, 3, 1, 0)).reshape(kh * kw, cin, cout)
    Np = _round_up(cout, LANE)
    wp = jnp.pad(wt, ((0, 0), (0, 0), (0, Np - cout))).astype(jnp.bfloat16)
    bp = jnp.pad(b, (0, Np - cout)).astype(jnp.float32).reshape(1, Np)
    return wp, bp


def init_inception_params(key, in_c, c1, c2, c3, c4):
    ks = jax.random.split(key, 6)

    def conv_p(k, cout, cin, kh, kw):
        bound = 1.0 / np.sqrt(cin * kh * kw)
        k1, k2 = jax.random.split(k)
        w = jax.random.uniform(k1, (cout, cin, kh, kw), jnp.float32, -bound, bound)
        b = jax.random.uniform(k2, (cout,), jnp.float32, -bound, bound)
        return w, b

    w_p1, b_p1 = conv_p(ks[0], c1, in_c, 1, 1)
    w_p21, b_p21 = conv_p(ks[1], c2[0], in_c, 1, 1)
    w_p22, b_p22 = conv_p(ks[2], c2[1], c2[0], 3, 3)
    w_p31, b_p31 = conv_p(ks[3], c3[0], in_c, 1, 1)
    w_p32, b_p32 = conv_p(ks[4], c3[1], c3[0], 5, 5)
    w_p4, b_p4 = conv_p(ks[5], c4, in_c, 1, 1)

    # Fuse the three 1x1 branch stems (p1, p2_1, p3_1) into one matmul weight.
    stem_w, stem_b = _prep_1x1_weights([w_p1, w_p21, w_p31], [b_p1, b_p21, b_p31])
    p2_w, p2_b = _prep_tap_weights(w_p22, b_p22)
    p3_w, p3_b = _prep_tap_weights(w_p32, b_p32)
    p4_w, p4_b = _prep_1x1_weights([w_p4], [b_p4])

    arrays = dict(stem_w=stem_w, stem_b=stem_b,
                  p2_w=p2_w, p2_b=p2_b,
                  p3_w=p3_w, p3_b=p3_b,
                  p4_w=p4_w, p4_b=p4_b)
    cfg = (c1, c2[0], c2[1], c3[0], c3[1], c4)   # static channel config
    return arrays, cfg


# ---------------------------------------------------------------------------
# Inception forward (matches the PyTorch module semantics, NCHW in/out)
# ---------------------------------------------------------------------------

def inception_forward(x_nchw, params, *, cfg):
    c1, c2_0, c2_1, c3_0, c3_1, c4 = cfg
    # NCHW -> NHWC once; cast to bf16 once (MXU operand dtype; bf16 pooling is exact).
    x = jnp.transpose(x_nchw, (0, 2, 3, 1)).astype(jnp.bfloat16)
    N, H, W, Cin = x.shape
    M = N * H * W

    # Fused 1x1 conv stems for branches p1 / p2 / p3 (single MXU call + ReLU).
    stem = matmul_bias_act(x.reshape(M, Cin), params['stem_w'], params['stem_b'],
                           c1 + c2_0 + c3_0, relu=True)
    p1 = stem[:, :c1].reshape(N, H, W, c1)
    p2a = stem[:, c1:c1 + c2_0].reshape(N, H, W, c2_0).astype(jnp.bfloat16)
    p3a = stem[:, c1 + c2_0:].reshape(N, H, W, c3_0).astype(jnp.bfloat16)

    # Branch 2: 3x3 conv (pad 1) + ReLU, patch extraction fused in-kernel.
    p2 = conv2d_kxk(p2a, params['p2_w'], params['p2_b'], c2_1, ksize=3, pad=1)
    # Branch 3: 5x5 conv (pad 2) + ReLU.
    p3 = conv2d_kxk(p3a, params['p3_w'], params['p3_b'], c3_1, ksize=5, pad=2)
    # Branch 4: maxpool 3x3/s1/p1 (bf16, separable) then fused 1x1 conv + ReLU.
    pm = maxpool3x3_s1_p1(x)
    p4 = matmul_bias_act(pm.reshape(M, Cin), params['p4_w'], params['p4_b'],
                         c4, relu=True).reshape(N, H, W, c4)

    out = jnp.concatenate([p1, p2, p3, p4], axis=-1)              # channel concat
    return jnp.transpose(out, (0, 3, 1, 2))                       # NHWC -> NCHW


if __name__ == "__main__":
    key = jax.random.PRNGKey(0)
    pkey, xkey = jax.random.split(key)

    # Small shapes consistent with the module: batch=2, in_c=4, 16x16 spatial.
    in_c, c1, c2, c3, c4 = 4, 16, (16, 32), (8, 16), 16
    params, cfg = init_inception_params(pkey, in_c, c1, c2, c3, c4)
    x = jax.random.normal(xkey, (2, in_c, 16, 16), jnp.float32)   # NCHW, like PyTorch

    fwd = jax.jit(functools.partial(inception_forward, cfg=cfg))
    out = jax.block_until_ready(fwd(x, params))

    expected_c = c1 + c2[1] + c3[1] + c4
    assert out.shape == (2, expected_c, 16, 16), out.shape
    assert out.dtype == jnp.float32
    assert bool(jnp.all(jnp.isfinite(out)))
    print("KERNEL_OK")
</pallas_src>

<mosaic_0001>
module attributes {stable_mosaic.version = 11 : i64} {
  func.func @_mm_bias_relu_kernel(%arg0: i32, %arg1: memref<256x4xbf16, #tpu.memory_space<vmem>>, %arg2: memref<4x128xbf16, #tpu.memory_space<vmem>>, %arg3: memref<1x128xf32, #tpu.memory_space<vmem>>, %arg4: memref<256x128xf32, #tpu.memory_space<vmem>>) attributes {dimension_semantics = [#tpu.dimension_semantics<parallel>], iteration_bounds = array<i64: 2>, scalar_prefetch = 0 : i64, scratch_operands = 0 : i64, tpu.core_type = #tpu.core_type<tc>, window_params = [{transform_indices = @transform_0, window_bounds = array<i64: 256, 4>}, {pipeline_mode = #tpu.pipeline_mode<synchronous>, transform_indices = @transform_1, window_bounds = array<i64: 4, 128>}, {pipeline_mode = #tpu.pipeline_mode<synchronous>, transform_indices = @transform_2, window_bounds = array<i64: 1, 128>}, {transform_indices = @transform_3, window_bounds = array<i64: 256, 128>}]} {
    %c0 = arith.constant 0 : index
    %c0_0 = arith.constant 0 : index
    %0 = vector.load %arg1[%c0, %c0_0] : memref<256x4xbf16, #tpu.memory_space<vmem>>, vector<256x4xbf16>
    %c0_1 = arith.constant 0 : index
    %c0_2 = arith.constant 0 : index
    %1 = vector.load %arg2[%c0_1, %c0_2] : memref<4x128xbf16, #tpu.memory_space<vmem>>, vector<4x128xbf16>
    %cst = arith.constant dense<0.000000e+00> : vector<256x128xf32>
    %2 = tpu.matmul %0, %1, %cst {dimension_numbers = #tpu.dot_dimension_numbers<[1], [0], [0], [1], [0, 0, 1, 1], [], []>} : vector<256x4xbf16>, vector<4x128xbf16>, vector<256x128xf32> -> vector<256x128xf32>
    %c0_3 = arith.constant 0 : index
    %c0_4 = arith.constant 0 : index
    %3 = vector.load %arg3[%c0_3, %c0_4] : memref<1x128xf32, #tpu.memory_space<vmem>>, vector<1x128xf32>
    %4 = vector.broadcast %3 : vector<1x128xf32> to vector<256x128xf32>
    %5 = arith.addf %2, %4 : vector<256x128xf32>
    %cst_5 = arith.constant 0.000000e+00 : f32
    %6 = vector.broadcast %cst_5 : f32 to vector<256x128xf32>
    %7 = arith.maximumf %5, %6 : vector<256x128xf32>
    %c0_6 = arith.constant 0 : index
    %c0_7 = arith.constant 0 : index
    %8 = vector.load %arg4[%c0_6, %c0_7] : memref<256x128xf32, #tpu.memory_space<vmem>>, vector<256x128xf32>
    tpu.vector_store %arg4[%c0_6, %c0_7], %7 {strides = array<i32>} : memref<256x128xf32, #tpu.memory_space<vmem>>, vector<256x128xf32>,
    return
  }
  func.func @transform_0(%arg0: i32) -> (i32, i32) {
    %c0_i32 = arith.constant 0 : i32
    %c0_i32_0 = arith.constant 0 : i32
    return %arg0, %c0_i32 : i32, i32
  }
  func.func @transform_1(%arg0: i32) -> (i32, i32) {
    %c0_i32 = arith.constant 0 : i32
    %c0_i32_0 = arith.constant 0 : i32
    %c0_i32_1 = arith.constant 0 : i32
    return %c0_i32, %c0_i32_0 : i32, i32
  }
  func.func @transform_2(%arg0: i32) -> (i32, i32) {
    %c0_i32 = arith.constant 0 : i32
    %c0_i32_0 = arith.constant 0 : i32
    %c0_i32_1 = arith.constant 0 : i32
    return %c0_i32, %c0_i32_0 : i32, i32
  }
  func.func @transform_3(%arg0: i32) -> (i32, i32) {
    %c0_i32 = arith.constant 0 : i32
    %c0_i32_0 = arith.constant 0 : i32
    return %arg0, %c0_i32 : i32, i32
  }
}

module attributes {stable_mosaic.version = 11 : i64} {
  func.func @_conv_taps_kernel(%arg0: i32, %arg1: memref<1x342x16xbf16, #tpu.memory_space<vmem>>, %arg2: memref<9x16x128xbf16, #tpu.memory_space<vmem>>, %arg3: memref<1x128xf32, #tpu.memory_space<vmem>>, %arg4: memref<1x288x128xf32, #tpu.memory_space<vmem>>) attributes {dimension_semantics = [#tpu.dimension_semantics<parallel>], iteration_bounds = array<i64: 2>, scalar_prefetch = 0 : i64, scratch_operands = 0 : i64, tpu.core_type = #tpu.core_type<tc>, window_params = [{transform_indices = @transform_0, window_bounds = array<i64: 1, 342, 16>}, {pipeline_mode = #tpu.pipeline_mode<synchronous>, transform_indices = @transform_1, window_bounds = array<i64: 9, 16, 128>}, {pipeline_mode = #tpu.pipeline_mode<synchronous>, transform_indices = @transform_2, window_bounds = array<i64: 1, 128>}, {transform_indices = @transform_3, window_bounds = array<i64: 1, 288, 128>}]} {
    %cst = arith.constant 0.000000e+00 : f32
    %0 = vector.broadcast %cst : f32 to vector<288x128xf32>
    %c0 = arith.constant 0 : index
    %c0_0 = arith.constant 0 : index
    %c0_1 = arith.constant 0 : index
    %1 = vector.load %arg1[%c0, %c0_0, %c0_1] : memref<1x342x16xbf16, #tpu.memory_space<vmem>>, vector<1x288x16xbf16>
    %2 = vector.shape_cast %1 : vector<1x288x16xbf16> to vector<288x16xbf16>
    %c0_2 = arith.constant 0 : index
    %c0_3 = arith.constant 0 : index
    %c0_4 = arith.constant 0 : index
    %3 = vector.load %arg2[%c0_2, %c0_3, %c0_4] : memref<9x16x128xbf16, #tpu.memory_space<vmem>>, vector<1x16x128xbf16>
    %4 = vector.shape_cast %3 : vector<1x16x128xbf16> to vector<16x128xbf16>
    %cst_5 = arith.constant dense<0.000000e+00> : vector<288x128xf32>
    %5 = tpu.matmul %2, %4, %cst_5 {dimension_numbers = #tpu.dot_dimension_numbers<[1], [0], [0], [1], [0, 0, 1, 1], [], []>} : vector<288x16xbf16>, vector<16x128xbf16>, vector<288x128xf32> -> vector<288x128xf32>
    %6 = arith.addf %0, %5 : vector<288x128xf32>
    %c0_6 = arith.constant 0 : index
    %c1 = arith.constant 1 : index
    %c0_7 = arith.constant 0 : index
    %7 = vector.load %arg1[%c0_6, %c1, %c0_7] : memref<1x342x16xbf16, #tpu.memory_space<vmem>>, vector<1x288x16xbf16>
    %8 = vector.shape_cast %7 : vector<1x288x16xbf16> to vector<288x16xbf16>
    %c1_8 = arith.constant 1 : index
    %c0_9 = arith.constant 0 : index
    %c0_10 = arith.constant 0 : index
    %9 = vector.load %arg2[%c1_8, %c0_9, %c0_10] : memref<9x16x128xbf16, #tpu.memory_space<vmem>>, vector<1x16x128xbf16>
    %10 = vector.shape_cast %9 : vector<1x16x128xbf16> to vector<16x128xbf16>
    %cst_11 = arith.constant dense<0.000000e+00> : vector<288x128xf32>
    %11 = tpu.matmul %8, %10, %cst_11 {dimension_numbers = #tpu.dot_dimension_numbers<[1], [0], [0], [1], [0, 0, 1, 1], [], []>} : vector<288x16xbf16>, vector<16x128xbf16>, vector<288x128xf32> -> vector<288x128xf32>
    %12 = arith.addf %6, %11 : vector<288x128xf32>
    %c0_12 = arith.constant 0 : index
    %c2 = arith.constant 2 : index
    %c0_13 = arith.constant 0 : index
    %13 = vector.load %arg1[%c0_12, %c2, %c0_13] : memref<1x342x16xbf16, #tpu.memory_space<vmem>>, vector<1x288x16xbf16>
    %14 = vector.shape_cast %13 : vector<1x288x16xbf16> to vector<288x16xbf16>
    %c2_14 = arith.constant 2 : index
    %c0_15 = arith.constant 0 : index
    %c0_16 = arith.constant 0 : index
    %15 = vector.load %arg2[%c2_14, %c0_15, %c0_16] : memref<9x16x128xbf16, #tpu.memory_space<vmem>>, vector<1x16x128xbf16>
    %16 = vector.shape_cast %15 : vector<1x16x128xbf16> to vector<16x128xbf16>
    %cst_17 = arith.constant dense<0.000000e+00> : vector<288x128xf32>
    %17 = tpu.matmul %14, %16, %cst_17 {dimension_numbers = #tpu.dot_dimension_numbers<[1], [0], [0], [1], [0, 0, 1, 1], [], []>} : vector<288x16xbf16>, vector<16x128xbf16>, vector<288x128xf32> -> vector<288x128xf32>
    %18 = arith.addf %12, %17 : vector<288x128xf32>
    %c0_18 = arith.constant 0 : index
    %c18 = arith.constant 18 : index
    %c0_19 = arith.constant 0 : index
    %19 = vector.load %arg1[%c0_18, %c18, %c0_19] : memref<1x342x16xbf16, #tpu.memory_space<vmem>>, vector<1x288x16xbf16>
    %20 = vector.shape_cast %19 : vector<1x288x16xbf16> to vector<288x16xbf16>
    %c3 = arith.constant 3 : index
    %c0_20 = arith.constant 0 : index
    %c0_21 = arith.constant 0 : index
    %21 = vector.load %arg2[%c3, %c0_20, %c0_21] : memref<9x16x128xbf16, #tpu.memory_space<vmem>>, vector<1x16x128xbf16>
    %22 = vector.shape_cast %21 : vector<1x16x128xbf16> to vector<16x128xbf16>
    %cst_22 = arith.constant dense<0.000000e+00> : vector<288x128xf32>
    %23 = tpu.matmul %20, %22, %cst_22 {dimension_numbers = #tpu.dot_dimension_numbers<[1], [0], [0], [1], [0, 0, 1, 1], [], []>} : vector<288x16xbf16>, vector<16x128xbf16>, vector<288x128xf32> -> vector<288x128xf32>
    %24 = arith.addf %18, %23 : vector<288x128xf32>
    %c0_23 = arith.constant 0 : index
    %c19 = arith.constant 19 : index
    %c0_24 = arith.constant 0 : index
    %25 = vector.load %arg1[%c0_23, %c19, %c0_24] : memref<1x342x16xbf16, #tpu.memory_space<vmem>>, vector<1x288x16xbf16>
    %26 = vector.shape_cast %25 : vector<1x288x16xbf16> to vector<288x16xbf16>
    %c4 = arith.constant 4 : index
    %c0_25 = arith.constant 0 : index
    %c0_26 = arith.constant 0 : index
    %27 = vector.load %arg2[%c4, %c0_25, %c0_26] : memref<9x16x128xbf16, #tpu.memory_space<vmem>>, vector<1x16x128xbf16>
    %28 = vector.shape_cast %27 : vector<1x16x128xbf16> to vector<16x128xbf16>
    %cst_27 = arith.constant dense<0.000000e+00> : vector<288x128xf32>
    %29 = tpu.matmul %26, %28, %cst_27 {dimension_numbers = #tpu.dot_dimension_numbers<[1], [0], [0], [1], [0, 0, 1, 1], [], []>} : vector<288x16xbf16>, vector<16x128xbf16>, vector<288x128xf32> -> vector<288x128xf32>
    %30 = arith.addf %24, %29 : vector<288x128xf32>
    %c0_28 = arith.constant 0 : index
    %c20 = arith.constant 20 : index
    %c0_29 = arith.constant 0 : index
    %31 = vector.load %arg1[%c0_28, %c20, %c0_29] : memref<1x342x16xbf16, #tpu.memory_space<vmem>>, vector<1x288x16xbf16>
    %32 = vector.shape_cast %31 : vector<1x288x16xbf16> to vector<288x16xbf16>
    %c5 = arith.constant 5 : index
    %c0_30 = arith.constant 0 : index
    %c0_31 = arith.constant 0 : index
    %33 = vector.load %arg2[%c5, %c0_30, %c0_31] : memref<9x16x128xbf16, #tpu.memory_space<vmem>>, vector<1x16x128xbf16>
    %34 = vector.shape_cast %33 : vector<1x16x128xbf16> to vector<16x128xbf16>
    %cst_32 = arith.constant dense<0.000000e+00> : vector<288x128xf32>
    %35 = tpu.matmul %32, %34, %cst_32 {dimension_numbers = #tpu.dot_dimension_numbers<[1], [0], [0], [1], [0, 0, 1, 1], [], []>} : vector<288x16xbf16>, vector<16x128xbf16>, vector<288x128xf32> -> vector<288x128xf32>
    %36 = arith.addf %30, %35 : vector<288x128xf32>
    %c0_33 = arith.constant 0 : index
    %c36 = arith.constant 36 : index
    %c0_34 = arith.constant 0 : index
    %37 = vector.load %arg1[%c0_33, %c36, %c0_34] : memref<1x342x16xbf16, #tpu.memory_space<vmem>>, vector<1x288x16xbf16>
    %38 = vector.shape_cast %37 : vector<1x288x16xbf16> to vector<288x16xbf16>
    %c6 = arith.constant 6 : index
    %c0_35 = arith.constant 0 : index
    %c0_36 = arith.constant 0 : index
    %39 = vector.load %arg2[%c6, %c0_35, %c0_36] : memref<9x16x128xbf16, #tpu.memory_space<vmem>>, vector<1x16x128xbf16>
    %40 = vector.shape_cast %39 : vector<1x16x128xbf16> to vector<16x128xbf16>
    %cst_37 = arith.constant dense<0.000000e+00> : vector<288x128xf32>
    %41 = tpu.matmul %38, %40, %cst_37 {dimension_numbers = #tpu.dot_dimension_numbers<[1], [0], [0], [1], [0, 0, 1, 1], [], []>} : vector<288x16xbf16>, vector<16x128xbf16>, vector<288x128xf32> -> vector<288x128xf32>
    %42 = arith.addf %36, %41 : vector<288x128xf32>
    %c0_38 = arith.constant 0 : index
    %c37 = arith.constant 37 : index
    %c0_39 = arith.constant 0 : index
    %43 = vector.load %arg1[%c0_38, %c37, %c0_39] : memref<1x342x16xbf16, #tpu.memory_space<vmem>>, vector<1x288x16xbf16>
    %44 = vector.shape_cast %43 : vector<1x288x16xbf16> to vector<288x16xbf16>
    %c7 = arith.constant 7 : index
    %c0_40 = arith.constant 0 : index
    %c0_41 = arith.constant 0 : index
    %45 = vector.load %arg2[%c7, %c0_40, %c0_41] : memref<9x16x128xbf16, #tpu.memory_space<vmem>>, vector<1x16x128xbf16>
    %46 = vector.shape_cast %45 : vector<1x16x128xbf16> to vector<16x128xbf16>
    %cst_42 = arith.constant dense<0.000000e+00> : vector<288x128xf32>
    %47 = tpu.matmul %44, %46, %cst_42 {dimension_numbers = #tpu.dot_dimension_numbers<[1], [0], [0], [1], [0, 0, 1, 1], [], []>} : vector<288x16xbf16>, vector<16x128xbf16>, vector<288x128xf32> -> vector<288x128xf32>
    %48 = arith.addf %42, %47 : vector<288x128xf32>
    %c0_43 = arith.constant 0 : index
    %c38 = arith.constant 38 : index
    %c0_44 = arith.constant 0 : index
    %49 = vector.load %arg1[%c0_43, %c38, %c0_44] : memref<1x342x16xbf16, #tpu.memory_space<vmem>>, vector<1x288x16xbf16>
    %50 = vector.shape_cast %49 : vector<1x288x16xbf16> to vector<288x16xbf16>
    %c8 = arith.constant 8 : index
    %c0_45 = arith.constant 0 : index
    %c0_46 = arith.constant 0 : index
    %51 = vector.load %arg2[%c8, %c0_45, %c0_46] : memref<9x16x128xbf16, #tpu.memory_space<vmem>>, vector<1x16x128xbf16>
    %52 = vector.shape_cast %51 : vector<1x16x128xbf16> to vector<16x128xbf16>
    %cst_47 = arith.constant dense<0.000000e+00> : vector<288x128xf32>
    %53 = tpu.matmul %50, %52, %cst_47 {dimension_numbers = #tpu.dot_dimension_numbers<[1], [0], [0], [1], [0, 0, 1, 1], [], []>} : vector<288x16xbf16>, vector<16x128xbf16>, vector<288x128xf32> -> vector<288x128xf32>
    %54 = arith.addf %48, %53 : vector<288x128xf32>
    %c0_48 = arith.constant 0 : index
    %c0_49 = arith.constant 0 : index
    %55 = vector.load %arg3[%c0_48, %c0_49] : memref<1x128xf32, #tpu.memory_space<vmem>>, vector<1x128xf32>
    %56 = vector.broadcast %55 : vector<1x128xf32> to vector<288x128xf32>
    %57 = arith.addf %54, %56 : vector<288x128xf32>
    %cst_50 = arith.constant 0.000000e+00 : f32
    %58 = vector.broadcast %cst_50 : f32 to vector<288x128xf32>
    %59 = arith.maximumf %57, %58 : vector<288x128xf32>
    %c0_51 = arith.constant 0 : index
    %c0_52 = arith.constant 0 : index
    %c0_53 = arith.constant 0 : index
    %60 = vector.load %arg4[%c0_51, %c0_52, %c0_53] : memref<1x288x128xf32, #tpu.memory_space<vmem>>, vector<1x288x128xf32>
    %61 = vector.shape_cast %60 : vector<1x288x128xf32> to vector<288x128xf32>
    %62 = vector.shape_cast %59 : vector<288x128xf32> to vector<1x288x128xf32>
    tpu.vector_store %arg4[%c0_51, %c0_52, %c0_53], %62 {strides = array<i32>} : memref<1x288x128xf32, #tpu.memory_space<vmem>>, vector<1x288x128xf32>,
    return
  }
  func.func @transform_0(%arg0: i32) -> (i32, i32, i32) {
    %c0_i32 = arith.constant 0 : i32
    %c0_i32_0 = arith.constant 0 : i32
    %c0_i32_1 = arith.constant 0 : i32
    return %arg0, %c0_i32, %c0_i32_0 : i32, i32, i32
  }
  func.func @transform_1(%arg0: i32) -> (i32, i32, i32) {
    %c0_i32 = arith.constant 0 : i32
    %c0_i32_0 = arith.constant 0 : i32
    %c0_i32_1 = arith.constant 0 : i32
    %c0_i32_2 = arith.constant 0 : i32
    return %c0_i32, %c0_i32_0, %c0_i32_1 : i32, i32, i32
  }
  func.func @transform_2(%arg0: i32) -> (i32, i32) {
    %c0_i32 = arith.constant 0 : i32
    %c0_i32_0 = arith.constant 0 : i32
    %c0_i32_1 = arith.constant 0 : i32
    return %c0_i32, %c0_i32_0 : i32, i32
  }
  func.func @transform_3(%arg0: i32) -> (i32, i32, i32) {
    %c0_i32 = arith.constant 0 : i32
    %c0_i32_0 = arith.constant 0 : i32
    %c0_i32_1 = arith.constant 0 : i32
    return %arg0, %c0_i32, %c0_i32_0 : i32, i32, i32
  }
}

module attributes {stable_mosaic.version = 11 : i64} {
  func.func @_conv_taps_kernel(%arg0: i32, %arg1: memref<1x420x8xbf16, #tpu.memory_space<vmem>>, %arg2: memref<25x8x128xbf16, #tpu.memory_space<vmem>>, %arg3: memref<1x128xf32, #tpu.memory_space<vmem>>, %arg4: memref<1x320x128xf32, #tpu.memory_space<vmem>>) attributes {dimension_semantics = [#tpu.dimension_semantics<parallel>], iteration_bounds = array<i64: 2>, scalar_prefetch = 0 : i64, scratch_operands = 0 : i64, tpu.core_type = #tpu.core_type<tc>, window_params = [{transform_indices = @transform_0, window_bounds = array<i64: 1, 420, 8>}, {pipeline_mode = #tpu.pipeline_mode<synchronous>, transform_indices = @transform_1, window_bounds = array<i64: 25, 8, 128>}, {pipeline_mode = #tpu.pipeline_mode<synchronous>, transform_indices = @transform_2, window_bounds = array<i64: 1, 128>}, {transform_indices = @transform_3, window_bounds = array<i64: 1, 320, 128>}]} {
    %cst = arith.constant 0.000000e+00 : f32
    %0 = vector.broadcast %cst : f32 to vector<320x128xf32>
    %c0 = arith.constant 0 : index
    %c0_0 = arith.constant 0 : index
    %c0_1 = arith.constant 0 : index
    %1 = vector.load %arg1[%c0, %c0_0, %c0_1] : memref<1x420x8xbf16, #tpu.memory_space<vmem>>, vector<1x320x8xbf16>
    %2 = vector.shape_cast %1 : vector<1x320x8xbf16> to vector<320x8xbf16>
    %c0_2 = arith.constant 0 : index
    %c0_3 = arith.constant 0 : index
    %c0_4 = arith.constant 0 : index
    %3 = vector.load %arg2[%c0_2, %c0_3, %c0_4] : memref<25x8x128xbf16, #tpu.memory_space<vmem>>, vector<1x8x128xbf16>
    %4 = vector.shape_cast %3 : vector<1x8x128xbf16> to vector<8x128xbf16>
    %cst_5 = arith.constant dense<0.000000e+00> : vector<320x128xf32>
    %5 = tpu.matmul %2, %4, %cst_5 {dimension_numbers = #tpu.dot_dimension_numbers<[1], [0], [0], [1], [0, 0, 1, 1], [], []>} : vector<320x8xbf16>, vector<8x128xbf16>, vector<320x128xf32> -> vector<320x128xf32>
    %6 = arith.addf %0, %5 : vector<320x128xf32>
    %c0_6 = arith.constant 0 : index
    %c1 = arith.constant 1 : index
    %c0_7 = arith.constant 0 : index
    %7 = vector.load %arg1[%c0_6, %c1, %c0_7] : memref<1x420x8xbf16, #tpu.memory_space<vmem>>, vector<1x320x8xbf16>
    %8 = vector.shape_cast %7 : vector<1x320x8xbf16> to vector<320x8xbf16>
    %c1_8 = arith.constant 1 : index
    %c0_9 = arith.constant 0 : index
    %c0_10 = arith.constant 0 : index
    %9 = vector.load %arg2[%c1_8, %c0_9, %c0_10] : memref<25x8x128xbf16, #tpu.memory_space<vmem>>, vector<1x8x128xbf16>
    %10 = vector.shape_cast %9 : vector<1x8x128xbf16> to vector<8x128xbf16>
    %cst_11 = arith.constant dense<0.000000e+00> : vector<320x128xf32>
    %11 = tpu.matmul %8, %10, %cst_11 {dimension_numbers = #tpu.dot_dimension_numbers<[1], [0], [0], [1], [0, 0, 1, 1], [], []>} : vector<320x8xbf16>, vector<8x128xbf16>, vector<320x128xf32> -> vector<320x128xf32>
    %12 = arith.addf %6, %11 : vector<320x128xf32>
    %c0_12 = arith.constant 0 : index
    %c2 = arith.constant 2 : index
    %c0_13 = arith.constant 0 : index
    %13 = vector.load %arg1[%c0_12, %c2, %c0_13] : memref<1x420x8xbf16, #tpu.memory_space<vmem>>, vector<1x320x8xbf16>
    %14 = vector.shape_cast %13 : vector<1x320x8xbf16> to vector<320x8xbf16>
    %c2_14 = arith.constant 2 : index
    %c0_15 = arith.constant 0 : index
    %c0_16 = arith.constant 0 : index
    %15 = vector.load %arg2[%c2_14, %c0_15, %c0_16] : memref<25x8x128xbf16, #tpu.memory_space<vmem>>, vector<1x8x128xbf16>
    %16 = vector.shape_cast %15 : vector<1x8x128xbf16> to vector<8x128xbf16>
    %cst_17 = arith.constant dense<0.000000e+00> : vector<320x128xf32>
    %17 = tpu.matmul %14, %16, %cst_17 {dimension_numbers = #tpu.dot_dimension_numbers<[1], [0], [0], [1], [0, 0, 1, 1], [], []>} : vector<320x8xbf16>, vector<8x128xbf16>, vector<320x128xf32> -> vector<320x128xf32>
    %18 = arith.addf %12, %17 : vector<320x128xf32>
    %c0_18 = arith.constant 0 : index
    %c3 = arith.constant 3 : index
    %c0_19 = arith.constant 0 : index
    %19 = vector.load %arg1[%c0_18, %c3, %c0_19] : memref<1x420x8xbf16, #tpu.memory_space<vmem>>, vector<1x320x8xbf16>
    %20 = vector.shape_cast %19 : vector<1x320x8xbf16> to vector<320x8xbf16>
    %c3_20 = arith.constant 3 : index
    %c0_21 = arith.constant 0 : index
    %c0_22 = arith.constant 0 : index
    %21 = vector.load %arg2[%c3_20, %c0_21, %c0_22] : memref<25x8x128xbf16, #tpu.memory_space<vmem>>, vector<1x8x128xbf16>
    %22 = vector.shape_cast %21 : vector<1x8x128xbf16> to vector<8x128xbf16>
    %cst_23 = arith.constant dense<0.000000e+00> : vector<320x128xf32>
    %23 = tpu.matmul %20, %22, %cst_23 {dimension_numbers = #tpu.dot_dimension_numbers<[1], [0], [0], [1], [0, 0, 1, 1], [], []>} : vector<320x8xbf16>, vector<8x128xbf16>, vector<320x128xf32> -> vector<320x128xf32>
    %24 = arith.addf %18, %23 : vector<320x128xf32>
    %c0_24 = arith.constant 0 : index
    %c4 = arith.constant 4 : index
    %c0_25 = arith.constant 0 : index
    %25 = vector.load %arg1[%c0_24, %c4, %c0_25] : memref<1x420x8xbf16, #tpu.memory_space<vmem>>, vector<1x320x8xbf16>
    %26 = vector.shape_cast %25 : vector<1x320x8xbf16> to vector<320x8xbf16>
    %c4_26 = arith.constant 4 : index
    %c0_27 = arith.constant 0 : index
    %c0_28 = arith.constant 0 : index
    %27 = vector.load %arg2[%c4_26, %c0_27, %c0_28] : memref<25x8x128xbf16, #tpu.memory_space<vmem>>, vector<1x8x128xbf16>
    %28 = vector.shape_cast %27 : vector<1x8x128xbf16> to vector<8x128xbf16>
    %cst_29 = arith.constant dense<0.000000e+00> : vector<320x128xf32>
    %29 = tpu.matmul %26, %28, %cst_29 {dimension_numbers = #tpu.dot_dimension_numbers<[1], [0], [0], [1], [0, 0, 1, 1], [], []>} : vector<320x8xbf16>, vector<8x128xbf16>, vector<320x128xf32> -> vector<320x128xf32>
    %30 = arith.addf %24, %29 : vector<320x128xf32>
    %c0_30 = arith.constant 0 : index
    %c20 = arith.constant 20 : index
    %c0_31 = arith.constant 0 : index
    %31 = vector.load %arg1[%c0_30, %c20, %c0_31] : memref<1x420x8xbf16, #tpu.memory_space<vmem>>, vector<1x320x8xbf16>
    %32 = vector.shape_cast %31 : vector<1x320x8xbf16> to vector<320x8xbf16>
    %c5 = arith.constant 5 : index
    %c0_32 = arith.constant 0 : index
    %c0_33 = arith.constant 0 : index
    %33 = vector.load %arg2[%c5, %c0_32, %c0_33] : memref<25x8x128xbf16, #tpu.memory_space<vmem>>, vector<1x8x128xbf16>
    %34 = vector.shape_cast %33 : vector<1x8x128xbf16> to vector<8x128xbf16>
    %cst_34 = arith.constant dense<0.000000e+00> : vector<320x128xf32>
    %35 = tpu.matmul %32, %34, %cst_34 {dimension_numbers = #tpu.dot_dimension_numbers<[1], [0], [0], [1], [0, 0, 1, 1], [], []>} : vector<320x8xbf16>, vector<8x128xbf16>, vector<320x128xf32> -> vector<320x128xf32>
    %36 = arith.addf %30, %35 : vector<320x128xf32>
    %c0_35 = arith.constant 0 : index
    %c21 = arith.constant 21 : index
    %c0_36 = arith.constant 0 : index
    %37 = vector.load %arg1[%c0_35, %c21, %c0_36] : memref<1x420x8xbf16, #tpu.memory_space<vmem>>, vector<1x320x8xbf16>
    %38 = vector.shape_cast %37 : vector<1x320x8xbf16> to vector<320x8xbf16>
    %c6 = arith.constant 6 : index
    %c0_37 = arith.constant 0 : index
    %c0_38 = arith.constant 0 : index
    %39 = vector.load %arg2[%c6, %c0_37, %c0_38] : memref<25x8x128xbf16, #tpu.memory_space<vmem>>, vector<1x8x128xbf16>
    %40 = vector.shape_cast %39 : vector<1x8x128xbf16> to vector<8x128xbf16>
    %cst_39 = arith.constant dense<0.000000e+00> : vector<320x128xf32>
    %41 = tpu.matmul %38, %40, %cst_39 {dimension_numbers = #tpu.dot_dimension_numbers<[1], [0], [0], [1], [0, 0, 1, 1], [], []>} : vector<320x8xbf16>, vector<8x128xbf16>, vector<320x128xf32> -> vector<320x128xf32>
    %42 = arith.addf %36, %41 : vector<320x128xf32>
    %c0_40 = arith.constant 0 : index
    %c22 = arith.constant 22 : index
    %c0_41 = arith.constant 0 : index
    %43 = vector.load %arg1[%c0_40, %c22, %c0_41] : memref<1x420x8xbf16, #tpu.memory_space<vmem>>, vector<1x320x8xbf16>
    %44 = vector.shape_cast %43 : vector<1x320x8xbf16> to vector<320x8xbf16>
    %c7 = arith.constant 7 : index
    %c0_42 = arith.constant 0 : index
    %c0_43 = arith.constant 0 : index
    %45 = vector.load %arg2[%c7, %c0_42, %c0_43] : memref<25x8x128xbf16, #tpu.memory_space<vmem>>, vector<1x8x128xbf16>
    %46 = vector.shape_cast %45 : vector<1x8x128xbf16> to vector<8x128xbf16>
    %cst_44 = arith.constant dense<0.000000e+00> : vector<320x128xf32>
    %47 = tpu.matmul %44, %46, %cst_44 {dimension_numbers = #tpu.dot_dimension_numbers<[1], [0], [0], [1], [0, 0, 1, 1], [], []>} : vector<320x8xbf16>, vector<8x128xbf16>, vector<320x128xf32> -> vector<320x128xf32>
    %48 = arith.addf %42, %47 : vector<320x128xf32>
    %c0_45 = arith.constant 0 : index
    %c23 = arith.constant 23 : index
    %c0_46 = arith.constant 0 : index
    %49 = vector.load %arg1[%c0_45, %c23, %c0_46] : memref<1x420x8xbf16, #tpu.memory_space<vmem>>, vector<1x320x8xbf16>
    %50 = vector.shape_cast %49 : vector<1x320x8xbf16> to vector<320x8xbf16>
    %c8 = arith.constant 8 : index
    %c0_47 = arith.constant 0 : index
    %c0_48 = arith.constant 0 : index
    %51 = vector.load %arg2[%c8, %c0_47, %c0_48] : memref<25x8x128xbf16, #tpu.memory_space<vmem>>, vector<1x8x128xbf16>
    %52 = vector.shape_cast %51 : vector<1x8x128xbf16> to vector<8x128xbf16>
    %cst_49 = arith.constant dense<0.000000e+00> : vector<320x128xf32>
    %53 = tpu.matmul %50, %52, %cst_49 {dimension_numbers = #tpu.dot_dimension_numbers<[1], [0], [0], [1], [0, 0, 1, 1], [], []>} : vector<320x8xbf16>, vector<8x128xbf16>, vector<320x128xf32> -> vector<320x128xf32>
    %54 = arith.addf %48, %53 : vector<320x128xf32>
    %c0_50 = arith.constant 0 : index
    %c24 = arith.constant 24 : index
    %c0_51 = arith.constant 0 : index
    %55 = vector.load %arg1[%c0_50, %c24, %c0_51] : memref<1x420x8xbf16, #tpu.memory_space<vmem>>, vector<1x320x8xbf16>
    %56 = vector.shape_cast %55 : vector<1x320x8xbf16> to vector<320x8xbf16>
    %c9 = arith.constant 9 : index
    %c0_52 = arith.constant 0 : index
    %c0_53 = arith.constant 0 : index
    %57 = vector.load %arg2[%c9, %c0_52, %c0_53] : memref<25x8x128xbf16, #tpu.memory_space<vmem>>, vector<1x8x128xbf16>
    %58 = vector.shape_cast %57 : vector<1x8x128xbf16> to vector<8x128xbf16>
    %cst_54 = arith.constant dense<0.000000e+00> : vector<320x128xf32>
    %59 = tpu.matmul %56, %58, %cst_54 {dimension_numbers = #tpu.dot_dimension_numbers<[1], [0], [0], [1], [0, 0, 1, 1], [], []>} : vector<320x8xbf16>, vector<8x128xbf16>, vector<320x128xf32> -> vector<320x128xf32>
    %60 = arith.addf %54, %59 : vector<320x128xf32>
    %c0_55 = arith.constant 0 : index
    %c40 = arith.constant 40 : index
    %c0_56 = arith.constant 0 : index
    %61 = vector.load %arg1[%c0_55, %c40, %c0_56] : memref<1x420x8xbf16, #tpu.memory_space<vmem>>, vector<1x320x8xbf16>
    %62 = vector.shape_cast %61 : vector<1x320x8xbf16> to vector<320x8xbf16>
    %c10 = arith.constant 10 : index
    %c0_57 = arith.constant 0 : index
    %c0_58 = arith.constant 0 : index
    %63 = vector.load %arg2[%c10, %c0_57, %c0_58] : memref<25x8x128xbf16, #tpu.memory_space<vmem>>, vector<1x8x128xbf16>
    %64 = vector.shape_cast %63 : vector<1x8x128xbf16> to vector<8x128xbf16>
    %cst_59 = arith.constant dense<0.000000e+00> : vector<320x128xf32>
    %65 = tpu.matmul %62, %64, %cst_59 {dimension_numbers = #tpu.dot_dimension_numbers<[1], [0], [0], [1], [0, 0, 1, 1], [], []>} : vector<320x8xbf16>, vector<8x128xbf16>, vector<320x128xf32> -> vector<320x128xf32>
    %66 = arith.addf %60, %65 : vector<320x128xf32>
    %c0_60 = arith.constant 0 : index
    %c41 = arith.constant 41 : index
    %c0_61 = arith.constant 0 : index
    %67 = vector.load %arg1[%c0_60, %c41, %c0_61] : memref<1x420x8xbf16, #tpu.memory_space<vmem>>, vector<1x320x8xbf16>
    %68 = vector.shape_cast %67 : vector<1x320x8xbf16> to vector<320x8xbf16>
    %c11 = arith.constant 11 : index
    %c0_62 = arith.constant 0 : index
    %c0_63 = arith.constant 0 : index
    %69 = vector.load %arg2[%c11, %c0_62, %c0_63] : memref<25x8x128xbf16, #tpu.memory_space<vmem>>, vector<1x8x128xbf16>
    %70 = vector.shape_cast %69 : vector<1x8x128xbf16> to vector<8x128xbf16>
    %cst_64 = arith.constant dense<0.000000e+00> : vector<320x128xf32>
    %71 = tpu.matmul %68, %70, %cst_64 {dimension_numbers = #tpu.dot_dimension_numbers<[1], [0], [0], [1], [0, 0, 1, 1], [], []>} : vector<320x8xbf16>, vector<8x128xbf16>, vector<320x128xf32> -> vector<320x128xf32>
    %72 = arith.addf %66, %71 : vector<320x128xf32>
    %c0_65 = arith.constant 0 : index
    %c42 = arith.constant 42 : index
    %c0_66 = arith.constant 0 : index
    %73 = vector.load %arg1[%c0_65, %c42, %c0_66] : memref<1x420x8xbf16, #tpu.memory_space<vmem>>, vector<1x320x8xbf16>
    %74 = vector.shape_cast %73 : vector<1x320x8xbf16> to vector<320x8xbf16>
    %c12 = arith.constant 12 : index
    %c0_67 = arith.constant 0 : index
    %c0_68 = arith.constant 0 : index
    %75 = vector.load %arg2[%c12, %c0_67, %c0_68] : memref<25x8x128xbf16, #tpu.memory_space<vmem>>, vector<1x8x128xbf16>
    %76 = vector.shape_cast %75 : vector<1x8x128xbf16> to vector<8x128xbf16>
    %cst_69 = arith.constant dense<0.000000e+00> : vector<320x128xf32>
    %77 = tpu.matmul %74, %76, %cst_69 {dimension_numbers = #tpu.dot_dimension_numbers<[1], [0], [0], [1], [0, 0, 1, 1], [], []>} : vector<320x8xbf16>, vector<8x128xbf16>, vector<320x128xf32> -> vector<320x128xf32>
    %78 = arith.addf %72, %77 : vector<320x128xf32>
    %c0_70 = arith.constant 0 : index
    %c43 = arith.constant 43 : index
    %c0_71 = arith.constant 0 : index
    %79 = vector.load %arg1[%c0_70, %c43, %c0_71] : memref<1x420x8xbf16, #tpu.memory_space<vmem>>, vector<1x320x8xbf16>
    %80 = vector.shape_cast %79 : vector<1x320x8xbf16> to vector<320x8xbf16>
    %c13 = arith.constant 13 : index
    %c0_72 = arith.constant 0 : index
    %c0_73 = arith.constant 0 : index
    %81 = vector.load %arg2[%c13, %c0_72, %c0_73] : memref<25x8x128xbf16, #tpu.memory_space<vmem>>, vector<1x8x128xbf16>
    %82 = vector.shape_cast %81 : vector<1x8x128xbf16> to vector<8x128xbf16>
    %cst_74 = arith.constant dense<0.000000e+00> : vector<320x128xf32>
    %83 = tpu.matmul %80, %82, %cst_74 {dimension_numbers = #tpu.dot_dimension_numbers<[1], [0], [0], [1], [0, 0, 1, 1], [], []>} : vector<320x8xbf16>, vector<8x128xbf16>, vector<320x128xf32> -> vector<320x128xf32>
    %84 = arith.addf %78, %83 : vector<320x128xf32>
    %c0_75 = arith.constant 0 : index
    %c44 = arith.constant 44 : index
    %c0_76 = arith.constant 0 : index
    %85 = vector.load %arg1[%c0_75, %c44, %c0_76] : memref<1x420x8xbf16, #tpu.memory_space<vmem>>, vector<1x320x8xbf16>
    %86 = vector.shape_cast %85 : vector<1x320x8xbf16> to vector<320x8xbf16>
    %c14 = arith.constant 14 : index
    %c0_77 = arith.constant 0 : index
    %c0_78 = arith.constant 0 : index
    %87 = vector.load %arg2[%c14, %c0_77, %c0_78] : memref<25x8x128xbf16, #tpu.memory_space<vmem>>, vector<1x8x128xbf16>
    %88 = vector.shape_cast %87 : vector<1x8x128xbf16> to vector<8x128xbf16>
    %cst_79 = arith.constant dense<0.000000e+00> : vector<320x128xf32>
    %89 = tpu.matmul %86, %88, %cst_79 {dimension_numbers = #tpu.dot_dimension_numbers<[1], [0], [0], [1], [0, 0, 1, 1], [], []>} : vector<320x8xbf16>, vector<8x128xbf16>, vector<320x128xf32> -> vector<320x128xf32>
    %90 = arith.addf %84, %89 : vector<320x128xf32>
    %c0_80 = arith.constant 0 : index
    %c60 = arith.constant 60 : index
    %c0_81 = arith.constant 0 : index
    %91 = vector.load %arg1[%c0_80, %c60, %c0_81] : memref<1x420x8xbf16, #tpu.memory_space<vmem>>, vector<1x320x8xbf16>
    %92 = vector.shape_cast %91 : vector<1x320x8xbf16> to vector<320x8xbf16>
    %c15 = arith.constant 15 : index
    %c0_82 = arith.constant 0 : index
    %c0_83 = arith.constant 0 : index
    %93 = vector.load %arg2[%c15, %c0_82, %c0_83] : memref<25x8x128xbf16, #tpu.memory_space<vmem>>, vector<1x8x128xbf16>
    %94 = vector.shape_cast %93 : vector<1x8x128xbf16> to vector<8x128xbf16>
    %cst_84 = arith.constant dense<0.000000e+00> : vector<320x128xf32>
    %95 = tpu.matmul %92, %94, %cst_84 {dimension_numbers = #tpu.dot_dimension_numbers<[1], [0], [0], [1], [0, 0, 1, 1], [], []>} : vector<320x8xbf16>, vector<8x128xbf16>, vector<320x128xf32> -> vector<320x128xf32>
    %96 = arith.addf %90, %95 : vector<320x128xf32>
    %c0_85 = arith.constant 0 : index
    %c61 = arith.constant 61 : index
    %c0_86 = arith.constant 0 : index
    %97 = vector.load %arg1[%c0_85, %c61, %c0_86] : memref<1x420x8xbf16, #tpu.memory_space<vmem>>, vector<1x320x8xbf16>
    %98 = vector.shape_cast %97 : vector<1x320x8xbf16> to vector<320x8xbf16>
    %c16 = arith.constant 16 : index
    %c0_87 = arith.constant 0 : index
    %c0_88 = arith.constant 0 : index
    %99 = vector.load %arg2[%c16, %c0_87, %c0_88] : memref<25x8x128xbf16, #tpu.memory_space<vmem>>, vector<1x8x128xbf16>
    %100 = vector.shape_cast %99 : vector<1x8x128xbf16> to vector<8x128xbf16>
    %cst_89 = arith.constant dense<0.000000e+00> : vector<320x128xf32>
    %101 = tpu.matmul %98, %100, %cst_89 {dimension_numbers = #tpu.dot_dimension_numbers<[1], [0], [0], [1], [0, 0, 1, 1], [], []>} : vector<320x8xbf16>, vector<8x128xbf16>, vector<320x128xf32> -> vector<320x128xf32>
    %102 = arith.addf %96, %101 : vector<320x128xf32>
    %c0_90 = arith.constant 0 : index
    %c62 = arith.constant 62 : index
    %c0_91 = arith.constant 0 : index
    %103 = vector.load %arg1[%c0_90, %c62, %c0_91] : memref<1x420x8xbf16, #tpu.memory_space<vmem>>, vector<1x320x8xbf16>
    %104 = vector.shape_cast %103 : vector<1x320x8xbf16> to vector<320x8xbf16>
    %c17 = arith.constant 17 : index
    %c0_92 = arith.constant 0 : index
    %c0_93 = arith.constant 0 : index
    %105 = vector.load %arg2[%c17, %c0_92, %c0_93] : memref<25x8x128xbf16, #tpu.memory_space<vmem>>, vector<1x8x128xbf16>
    %106 = vector.shape_cast %105 : vector<1x8x128xbf16> to vector<8x128xbf16>
    %cst_94 = arith.constant dense<0.000000e+00> : vector<320x128xf32>
    %107 = tpu.matmul %104, %106, %cst_94 {dimension_numbers = #tpu.dot_dimension_numbers<[1], [0], [0], [1], [0, 0, 1, 1], [], []>} : vector<320x8xbf16>, vector<8x128xbf16>, vector<320x128xf32> -> vector<320x128xf32>
    %108 = arith.addf %102, %107 : vector<320x128xf32>
    %c0_95 = arith.constant 0 : index
    %c63 = arith.constant 63 : index
    %c0_96 = arith.constant 0 : index
    %109 = vector.load %arg1[%c0_95, %c63, %c0_96] : memref<1x420x8xbf16, #tpu.memory_space<vmem>>, vector<1x320x8xbf16>
    %110 = vector.shape_cast %109 : vector<1x320x8xbf16> to vector<320x8xbf16>
    %c18 = arith.constant 18 : index
    %c0_97 = arith.constant 0 : index
    %c0_98 = arith.constant 0 : index
    %111 = vector.load %arg2[%c18, %c0_97, %c0_98] : memref<25x8x128xbf16, #tpu.memory_space<vmem>>, vector<1x8x128xbf16>
    %112 = vector.shape_cast %111 : vector<1x8x128xbf16> to vector<8x128xbf16>
    %cst_99 = arith.constant dense<0.000000e+00> : vector<320x128xf32>
    %113 = tpu.matmul %110, %112, %cst_99 {dimension_numbers = #tpu.dot_dimension_numbers<[1], [0], [0], [1], [0, 0, 1, 1], [], []>} : vector<320x8xbf16>, vector<8x128xbf16>, vector<320x128xf32> -> vector<320x128xf32>
    %114 = arith.addf %108, %113 : vector<320x128xf32>
    %c0_100 = arith.constant 0 : index
    %c64 = arith.constant 64 : index
    %c0_101 = arith.constant 0 : index
    %115 = vector.load %arg1[%c0_100, %c64, %c0_101] : memref<1x420x8xbf16, #tpu.memory_space<vmem>>, vector<1x320x8xbf16>
    %116 = vector.shape_cast %115 : vector<1x320x8xbf16> to vector<320x8xbf16>
    %c19 = arith.constant 19 : index
    %c0_102 = arith.constant 0 : index
    %c0_103 = arith.constant 0 : index
    %117 = vector.load %arg2[%c19, %c0_102, %c0_103] : memref<25x8x128xbf16, #tpu.memory_space<vmem>>, vector<1x8x128xbf16>
    %118 = vector.shape_cast %117 : vector<1x8x128xbf16> to vector<8x128xbf16>
    %cst_104 = arith.constant dense<0.000000e+00> : vector<320x128xf32>
    %119 = tpu.matmul %116, %118, %cst_104 {dimension_numbers = #tpu.dot_dimension_numbers<[1], [0], [0], [1], [0, 0, 1, 1], [], []>} : vector<320x8xbf16>, vector<8x128xbf16>, vector<320x128xf32> -> vector<320x128xf32>
    %120 = arith.addf %114, %119 : vector<320x128xf32>
    %c0_105 = arith.constant 0 : index
    %c80 = arith.constant 80 : index
    %c0_106 = arith.constant 0 : index
    %121 = vector.load %arg1[%c0_105, %c80, %c0_106] : memref<1x420x8xbf16, #tpu.memory_space<vmem>>, vector<1x320x8xbf16>
    %122 = vector.shape_cast %121 : vector<1x320x8xbf16> to vector<320x8xbf16>
    %c20_107 = arith.constant 20 : index
    %c0_108 = arith.constant 0 : index
    %c0_109 = arith.constant 0 : index
    %123 = vector.load %arg2[%c20_107, %c0_108, %c0_109] : memref<25x8x128xbf16, #tpu.memory_space<vmem>>, vector<1x8x128xbf16>
    %124 = vector.shape_cast %123 : vector<1x8x128xbf16> to vector<8x128xbf16>
    %cst_110 = arith.constant dense<0.000000e+00> : vector<320x128xf32>
    %125 = tpu.matmul %122, %124, %cst_110 {dimension_numbers = #tpu.dot_dimension_numbers<[1], [0], [0], [1], [0, 0, 1, 1], [], []>} : vector<320x8xbf16>, vector<8x128xbf16>, vector<320x128xf32> -> vector<320x128xf32>
    %126 = arith.addf %120, %125 : vector<320x128xf32>
    %c0_111 = arith.constant 0 : index
    %c81 = arith.constant 81 : index
    %c0_112 = arith.constant 0 : index
    %127 = vector.load %arg1[%c0_111, %c81, %c0_112] : memref<1x420x8xbf16, #tpu.memory_space<vmem>>, vector<1x320x8xbf16>
    %128 = vector.shape_cast %127 : vector<1x320x8xbf16> to vector<320x8xbf16>
    %c21_113 = arith.constant 21 : index
    %c0_114 = arith.constant 0 : index
    %c0_115 = arith.constant 0 : index
    %129 = vector.load %arg2[%c21_113, %c0_114, %c0_115] : memref<25x8x128xbf16, #tpu.memory_space<vmem>>, vector<1x8x128xbf16>
    %130 = vector.shape_cast %129 : vector<1x8x128xbf16> to vector<8x128xbf16>
    %cst_116 = arith.constant dense<0.000000e+00> : vector<320x128xf32>
    %131 = tpu.matmul %128, %130, %cst_116 {dimension_numbers = #tpu.dot_dimension_numbers<[1], [0], [0], [1], [0, 0, 1, 1], [], []>} : vector<320x8xbf16>, vector<8x128xbf16>, vector<320x128xf32> -> vector<320x128xf32>
    %132 = arith.addf %126, %131 : vector<320x128xf32>
    %c0_117 = arith.constant 0 : index
    %c82 = arith.constant 82 : index
    %c0_118 = arith.constant 0 : index
    %133 = vector.load %arg1[%c0_117, %c82, %c0_118] : memref<1x420x8xbf16, #tpu.memory_space<vmem>>, vector<1x320x8xbf16>
    %134 = vector.shape_cast %133 : vector<1x320x8xbf16> to vector<320x8xbf16>
    %c22_119 = arith.constant 22 : index
    %c0_120 = arith.constant 0 : index
    %c0_121 = arith.constant 0 : index
    %135 = vector.load %arg2[%c22_119, %c0_120, %c0_121] : memref<25x8x128xbf16, #tpu.memory_space<vmem>>, vector<1x8x128xbf16>
    %136 = vector.shape_cast %135 : vector<1x8x128xbf16> to vector<8x128xbf16>
    %cst_122 = arith.constant dense<0.000000e+00> : vector<320x128xf32>
    %137 = tpu.matmul %134, %136, %cst_122 {dimension_numbers = #tpu.dot_dimension_numbers<[1], [0], [0], [1], [0, 0, 1, 1], [], []>} : vector<320x8xbf16>, vector<8x128xbf16>, vector<320x128xf32> -> vector<320x128xf32>
    %138 = arith.addf %132, %137 : vector<320x128xf32>
    %c0_123 = arith.constant 0 : index
    %c83 = arith.constant 83 : index
    %c0_124 = arith.constant 0 : index
    %139 = vector.load %arg1[%c0_123, %c83, %c0_124] : memref<1x420x8xbf16, #tpu.memory_space<vmem>>, vector<1x320x8xbf16>
    %140 = vector.shape_cast %139 : vector<1x320x8xbf16> to vector<320x8xbf16>
    %c23_125 = arith.constant 23 : index
    %c0_126 = arith.constant 0 : index
    %c0_127 = arith.constant 0 : index
    %141 = vector.load %arg2[%c23_125, %c0_126, %c0_127] : memref<25x8x128xbf16, #tpu.memory_space<vmem>>, vector<1x8x128xbf16>
    %142 = vector.shape_cast %141 : vector<1x8x128xbf16> to vector<8x128xbf16>
    %cst_128 = arith.constant dense<0.000000e+00> : vector<320x128xf32>
    %143 = tpu.matmul %140, %142, %cst_128 {dimension_numbers = #tpu.dot_dimension_numbers<[1], [0], [0], [1], [0, 0, 1, 1], [], []>} : vector<320x8xbf16>, vector<8x128xbf16>, vector<320x128xf32> -> vector<320x128xf32>
    %144 = arith.addf %138, %143 : vector<320x128xf32>
    %c0_129 = arith.constant 0 : index
    %c84 = arith.constant 84 : index
    %c0_130 = arith.constant 0 : index
    %145 = vector.load %arg1[%c0_129, %c84, %c0_130] : memref<1x420x8xbf16, #tpu.memory_space<vmem>>, vector<1x320x8xbf16>
    %146 = vector.shape_cast %145 : vector<1x320x8xbf16> to vector<320x8xbf16>
    %c24_131 = arith.constant 24 : index
    %c0_132 = arith.constant 0 : index
    %c0_133 = arith.constant 0 : index
    %147 = vector.load %arg2[%c24_131, %c0_132, %c0_133] : memref<25x8x128xbf16, #tpu.memory_space<vmem>>, vector<1x8x128xbf16>
    %148 = vector.shape_cast %147 : vector<1x8x128xbf16> to vector<8x128xbf16>
    %cst_134 = arith.constant dense<0.000000e+00> : vector<320x128xf32>
    %149 = tpu.matmul %146, %148, %cst_134 {dimension_numbers = #tpu.dot_dimension_numbers<[1], [0], [0], [1], [0, 0, 1, 1], [], []>} : vector<320x8xbf16>, vector<8x128xbf16>, vector<320x128xf32> -> vector<320x128xf32>
    %150 = arith.addf %144, %149 : vector<320x128xf32>
    %c0_135 = arith.constant 0 : index
    %c0_136 = arith.constant 0 : index
    %151 = vector.load %arg3[%c0_135, %c0_136] : memref<1x128xf32, #tpu.memory_space<vmem>>, vector<1x128xf32>
    %152 = vector.broadcast %151 : vector<1x128xf32> to vector<320x128xf32>
    %153 = arith.addf %150, %152 : vector<320x128xf32>
    %cst_137 = arith.constant 0.000000e+00 : f32
    %154 = vector.broadcast %cst_137 : f32 to vector<320x128xf32>
    %155 = arith.maximumf %153, %154 : vector<320x128xf32>
    %c0_138 = arith.constant 0 : index
    %c0_139 = arith.constant 0 : index
    %c0_140 = arith.constant 0 : index
    %156 = vector.load %arg4[%c0_138, %c0_139, %c0_140] : memref<1x320x128xf32, #tpu.memory_space<vmem>>, vector<1x320x128xf32>
    %157 = vector.shape_cast %156 : vector<1x320x128xf32> to vector<320x128xf32>
    %158 = vector.shape_cast %155 : vector<320x128xf32> to vector<1x320x128xf32>
    tpu.vector_store %arg4[%c0_138, %c0_139, %c0_140], %158 {strides = array<i32>} : memref<1x320x128xf32, #tpu.memory_space<vmem>>, vector<1x320x128xf32>,
    return
  }
  func.func @transform_0(%arg0: i32) -> (i32, i32, i32) {
    %c0_i32 = arith.constant 0 : i32
    %c0_i32_0 = arith.constant 0 : i32
    %c0_i32_1 = arith.constant 0 : i32
    return %arg0, %c0_i32, %c0_i32_0 : i32, i32, i32
  }
  func.func @transform_1(%arg0: i32) -> (i32, i32, i32) {
    %c0_i32 = arith.constant 0 : i32
    %c0_i32_0 = arith.constant 0 : i32
    %c0_i32_1 = arith.constant 0 : i32
    %c0_i32_2 = arith.constant 0 : i32
    return %c0_i32, %c0_i32_0, %c0_i32_1 : i32, i32, i32
  }
  func.func @transform_2(%arg0: i32) -> (i32, i32) {
    %c0_i32 = arith.constant 0 : i32
    %c0_i32_0 = arith.constant 0 : i32
    %c0_i32_1 = arith.constant 0 : i32
    return %c0_i32, %c0_i32_0 : i32, i32
  }
  func.func @transform_3(%arg0: i32) -> (i32, i32, i32) {
    %c0_i32 = arith.constant 0 : i32
    %c0_i32_0 = arith.constant 0 : i32
    %c0_i32_1 = arith.constant 0 : i32
    return %arg0, %c0_i32, %c0_i32_0 : i32, i32, i32
  }
}

module attributes {stable_mosaic.version = 11 : i64} {
  func.func @_maxpool3x3_kernel(%arg0: i32, %arg1: memref<1x18x18x4xbf16, #tpu.memory_space<vmem>>, %arg2: memref<1x16x16x4xbf16, #tpu.memory_space<vmem>>) attributes {dimension_semantics = [#tpu.dimension_semantics<parallel>], iteration_bounds = array<i64: 2>, scalar_prefetch = 0 : i64, scratch_operands = 0 : i64, tpu.core_type = #tpu.core_type<tc>, window_params = [{transform_indices = @transform_0, window_bounds = array<i64: 1, 18, 18, 4>}, {transform_indices = @transform_1, window_bounds = array<i64: 1, 16, 16, 4>}]} {
    %c0 = arith.constant 0 : index
    %c0_0 = arith.constant 0 : index
    %c0_1 = arith.constant 0 : index
    %c0_2 = arith.constant 0 : index
    %0 = vector.load %arg1[%c0, %c0_0, %c0_1, %c0_2] : memref<1x18x18x4xbf16, #tpu.memory_space<vmem>>, vector<1x18x16x4xbf16>
    %1 = vector.shape_cast %0 : vector<1x18x16x4xbf16> to vector<18x16x4xbf16>
    %c0_3 = arith.constant 0 : index
    %c0_4 = arith.constant 0 : index
    %c1 = arith.constant 1 : index
    %c0_5 = arith.constant 0 : index
    %2 = vector.load %arg1[%c0_3, %c0_4, %c1, %c0_5] : memref<1x18x18x4xbf16, #tpu.memory_space<vmem>>, vector<1x18x16x4xbf16>
    %3 = vector.shape_cast %2 : vector<1x18x16x4xbf16> to vector<18x16x4xbf16>
    %4 = arith.maximumf %1, %3 : vector<18x16x4xbf16>
    %c0_6 = arith.constant 0 : index
    %c0_7 = arith.constant 0 : index
    %c2 = arith.constant 2 : index
    %c0_8 = arith.constant 0 : index
    %5 = vector.load %arg1[%c0_6, %c0_7, %c2, %c0_8] : memref<1x18x18x4xbf16, #tpu.memory_space<vmem>>, vector<1x18x16x4xbf16>
    %6 = vector.shape_cast %5 : vector<1x18x16x4xbf16> to vector<18x16x4xbf16>
    %7 = arith.maximumf %4, %6 : vector<18x16x4xbf16>
    %8 = vector.extract_strided_slice %7 {offsets = [0, 0, 0], sizes = [16, 16, 4], strides = [1, 1, 1]} : vector<18x16x4xbf16> to vector<16x16x4xbf16>
    %9 = vector.extract_strided_slice %7 {offsets = [1, 0, 0], sizes = [16, 16, 4], strides = [1, 1, 1]} : vector<18x16x4xbf16> to vector<16x16x4xbf16>
    %10 = arith.maximumf %8, %9 : vector<16x16x4xbf16>
    %11 = vector.extract_strided_slice %7 {offsets = [2, 0, 0], sizes = [16, 16, 4], strides = [1, 1, 1]} : vector<18x16x4xbf16> to vector<16x16x4xbf16>
    %12 = arith.maximumf %10, %11 : vector<16x16x4xbf16>
    %c0_9 = arith.constant 0 : index
    %c0_10 = arith.constant 0 : index
    %c0_11 = arith.constant 0 : index
    %c0_12 = arith.constant 0 : index
    %13 = vector.load %arg2[%c0_9, %c0_10, %c0_11, %c0_12] : memref<1x16x16x4xbf16, #tpu.memory_space<vmem>>, vector<1x16x16x4xbf16>
    %14 = vector.shape_cast %13 : vector<1x16x16x4xbf16> to vector<16x16x4xbf16>
    %15 = vector.shape_cast %12 : vector<16x16x4xbf16> to vector<1x16x16x4xbf16>
    tpu.vector_store %arg2[%c0_9, %c0_10, %c0_11, %c0_12], %15 {strides = array<i32>} : memref<1x16x16x4xbf16, #tpu.memory_space<vmem>>, vector<1x16x16x4xbf16>,
    return
  }
  func.func @transform_0(%arg0: i32) -> (i32, i32, i32, i32) {
    %c0_i32 = arith.constant 0 : i32
    %c0_i32_0 = arith.constant 0 : i32
    %c0_i32_1 = arith.constant 0 : i32
    %c0_i32_2 = arith.constant 0 : i32
    return %arg0, %c0_i32, %c0_i32_0, %c0_i32_1 : i32, i32, i32, i32
  }
  func.func @transform_1(%arg0: i32) -> (i32, i32, i32, i32) {
    %c0_i32 = arith.constant 0 : i32
    %c0_i32_0 = arith.constant 0 : i32
    %c0_i32_1 = arith.constant 0 : i32
    %c0_i32_2 = arith.constant 0 : i32
    return %arg0, %c0_i32, %c0_i32_0, %c0_i32_1 : i32, i32, i32, i32
  }
}

</mosaic_0001>

<bundles_post_ra>
// kernel: inception_forward.5
= control target key start
LH: loop header
LB: loop body
LE: loop exit
PB: predicated region body
PF: predicated region fallthrough
CT: control target
= control target key end

     0   :  { %s780_s12 = smov 0   ;;  %s909_s0 = inlined_call_operand.vmem [shape: bf16[512,4], index: 0, kind: input, shape index: {}]   ;;  %s910_s1 = inlined_call_operand.vmem [shape: bf16[4,128], index: 1, kind: input, shape index: {}]   ;;  %s911_s2 = inlined_call_operand.vmem [shape: f32[1,128], index: 2, kind: input, shape index: {}]   ;;  %s912_s3 = inlined_call_operand.vmem [shape: f32[512,128], index: 3, kind: output, shape index: {}]  }
   0x1 LB: > { %s629_s13 = sadd.s32 4294967295, %s758_s12   ;;  %p633_p0 = scmp.ge.s32.totalorder %s758_s12, 1  ;;  %s758_s12 = sphi %s780_s12, %s13_s12  }
   0x2   : > { %p138_p1 = scmp.lt.s32.totalorder %s758_s12, 3 }
   0x4   : > { %p139_p2 = pnand %p633_p0, %p138_p1 }
   0x5   : > { %s634_s16 = sshll.u32 (!%p139_p2), %s629_s13, 5 }
   0x6   : > { %142 = sbr.rel (%p139_p2) target bundleno = 245 (0xf5), region = 32  ;;  %p163_p3 = scmp.lt.s32.totalorder (!%p139_p2), %s634_s16, 63 }
   0xb   : > { %v207_v0 = vld [vmem:[%s910_s1] sm:$0x3]  ;;  %vm344_vm0 = vcmask 1041408   ;;  %s914_s16 = smov (!%p163_p3, %s634_s16), 63  ;;  %vm295_vm1 = vcmask 31744  }
   0xc   : > { %726 = vmatprep.subr.msk.bf16.mxu0 %vm344_vm0, %v207_v0  ;;  %727 = vmatprep.subr.msk.bf16.mxu1 %vm344_vm0, %v207_v0  ;;  %v346_v1 = vsel %vm344_vm0, %v207_v0, 0  ;;  %s635_s17 = sshll.u32 %s914_s16, 2  ;;  %v834_v18 = vld [vmem:[%s911_s2] ss:$0 sm:$0xff]  ;;  %s637_s23 = sshll.u32 %s914_s16, 3 }
   0xd   : > { %691 = vmatpush3.bf16.msra.mxu0 %v346_v1  ;;  %725 = vmatpush3.bf16.msra.mxu1 %v346_v1  ;;  %s797_s20 = scalar_lea.vmem %s909_s0, %s635_s17  ;;  %s841_s26 = scalar_lea.vmem %s912_s3, %s637_s23 }
   0xe   : > { %v736_v2 = vld [vmem:[%s797_s20] sm:$0xff]   ;;  %v738_v4 = vld [vmem:[%s797_s20 + $0x8] sm:$0xff]   ;;  %v740_v6 = vld [vmem:[%s797_s20 + $0x10] sm:$0xff]  }
   0xf   : > { %v737_v3 = vld [vmem:[%s797_s20 + $0x40] sm:$0xff]   ;;  %692 = vmatprep.mubr.msk.bf16.mxu0 %vm295_vm1, %v736_v2  ;;  %v739_v5 = vld [vmem:[%s797_s20 + $0x48] sm:$0xff]   ;;  %v741_v7 = vld [vmem:[%s797_s20 + $0x50] sm:$0xff]  }
  0x10   : > { %708 = vmatprep.mubr.msk.bf16.mxu1 %vm295_vm1, %v737_v3  ;;  %693 = vmatmul.mubr.msk.bf16.vlgmr.msra.gmra.mxu0 %vm295_vm1, %v738_v4  ;;  %v742_v8 = vld [vmem:[%s797_s20 + $0x18] sm:$0xff]   ;;  %v744_v10 = vld [vmem:[%s797_s20 + $0x20] sm:$0xff]   ;;  %v746_v12 = vld [vmem:[%s797_s20 + $0x28] sm:$0xff]  }
  0x11   : > { %709 = vmatmul.mubr.msk.bf16.vlgmr.msra.gmra.mxu1 %vm295_vm1, %v739_v5  ;;  %696 = vmatprep.mubr.msk.bf16.mxu0 %vm295_vm1, %v740_v6  ;;  %v743_v9 = vld [vmem:[%s797_s20 + $0x58] sm:$0xff]   ;;  %v745_v11 = vld [vmem:[%s797_s20 + $0x60] sm:$0xff]   ;;  %v747_v13 = vld [vmem:[%s797_s20 + $0x68] sm:$0xff]  }
  0x12   : > { %712 = vmatprep.mubr.msk.bf16.mxu1 %vm295_vm1, %v741_v7  ;;  %v748_v14 = vld [vmem:[%s797_s20 + $0x30] sm:$0xff]   ;;  %v750_v16 = vld [vmem:[%s797_s20 + $0x38] sm:$0xff]  }
  0x13   : > { %v749_v15 = vld [vmem:[%s797_s20 + $0x70] sm:$0xff]   ;;  %v751_v17 = vld [vmem:[%s797_s20 + $0x78] sm:$0xff]  }
  0x18   : > { %697 = vmatmul.mubr.msk.bf16.gmra.mxu0 %vm295_vm1, %v742_v8 }
  0x19   : > { %713 = vmatmul.mubr.msk.bf16.gmra.mxu1 %vm295_vm1, %v743_v9  ;;  %700 = vmatprep.mubr.msk.bf16.mxu0 %vm295_vm1, %v744_v10 }
  0x1a   : > { %716 = vmatprep.mubr.msk.bf16.mxu1 %vm295_vm1, %v745_v11 }
  0x20   : > { %701 = vmatmul.mubr.msk.bf16.gmra.mxu0 %vm295_vm1, %v746_v12 }
  0x21   : > { %717 = vmatmul.mubr.msk.bf16.gmra.mxu1 %vm295_vm1, %v747_v13  ;;  %704 = vmatprep.mubr.msk.bf16.mxu0 %vm295_vm1, %v748_v14 }
  0x22   : > { %720 = vmatprep.mubr.msk.bf16.mxu1 %vm295_vm1, %v749_v15 }
  0x28   : > { %705 = vmatmul.mubr.msk.bf16.gmra.mxu0 %vm295_vm1, %v750_v16 }
  0x29   : > { %721 = vmatmul.mubr.msk.bf16.gmra.mxu1 %vm295_vm1, %v751_v17 }
  0xd0   : > { %v694_v19 = vpop.f32.mrf.mxu0 }
  0xd1   : > { %v391_v20 = vadd.f32 %v694_v19, %v834_v18  ;;  %v710_v21 = vpop.f32.mrf.mxu1 }
  0xd2   : > { %v455_v22 = vadd.f32 %v710_v21, %v834_v18  ;;  %v382_v23 = vpop.f32.mrf.mxu0 }
  0xd3   : > { %v511_v24 = vmax.f32 %v391_v20, 0.0  ;;  %v383_v25 = vadd.f32 %v834_v18, %v382_v23  ;;  %v446_v26 = vpop.f32.mrf.mxu1 }
  0xd4   : > { %v527_v27 = vmax.f32 %v455_v22, 0.0  ;;  %v447_v28 = vadd.f32 %v834_v18, %v446_v26  ;;  %v695_v29 = vpop.f32.mrf.mxu0 }
  0xd5   : > { %543 = vst [vmem:[%s841_s26 + $0x10] sm:$0xff] %v511_v24  ;;  %v509_v30 = vmax.f32 %v383_v25, 0.0  ;;  %v394_v31 = vadd.f32 %v695_v29, %v834_v18  ;;  %v711_v32 = vpop.f32.mrf.mxu1 }
  0xd6   : > { %559 = vst [vmem:[%s841_s26 + $0x90] sm:$0xff] %v527_v27  ;;  %v525_v33 = vmax.f32 %v447_v28, 0.0  ;;  %v458_v34 = vadd.f32 %v711_v32, %v834_v18  ;;  %v385_v35 = vpop.f32.mrf.mxu0 }
  0xd7   : > { %541 = vst [vmem:[%s841_s26] sm:$0xff] %v509_v30  ;;  %v512_v36 = vmax.f32 %v394_v31, 0.0  ;;  %v386_v37 = vadd.f32 %v834_v18, %v385_v35  ;;  %v449_v38 = vpop.f32.mrf.mxu1 }
  0xd8   : > { %557 = vst [vmem:[%s841_s26 + $0x80] sm:$0xff] %v525_v33  ;;  %v528_v39 = vmax.f32 %v458_v34, 0.0  ;;  %v450_v40 = vadd.f32 %v834_v18, %v449_v38  ;;  %v698_v41 = vpop.f32.mrf.mxu0 }
  0xd9   : > { %544 = vst [vmem:[%s841_s26 + $0x18] sm:$0xff] %v512_v36  ;;  %v510_v42 = vmax.f32 %v386_v37, 0.0  ;;  %v407_v43 = vadd.f32 %v698_v41, %v834_v18  ;;  %v714_v44 = vpop.f32.mrf.mxu1 }
  0xda   : > { %560 = vst [vmem:[%s841_s26 + $0x98] sm:$0xff] %v528_v39  ;;  %v526_v45 = vmax.f32 %v450_v40, 0.0  ;;  %v471_v46 = vadd.f32 %v714_v44, %v834_v18  ;;  %v398_v47 = vpop.f32.mrf.mxu0 }
  0xdb   : > { %542 = vst [vmem:[%s841_s26 + $0x8] sm:$0xff] %v510_v42  ;;  %v515_v48 = vmax.f32 %v407_v43, 0.0  ;;  %v399_v49 = vadd.f32 %v834_v18, %v398_v47  ;;  %v462_v50 = vpop.f32.mrf.mxu1 }
  0xdc   : > { %558 = vst [vmem:[%s841_s26 + $0x88] sm:$0xff] %v526_v45  ;;  %v531_v51 = vmax.f32 %v471_v46, 0.0  ;;  %v463_v52 = vadd.f32 %v834_v18, %v462_v50  ;;  %v699_v53 = vpop.f32.mrf.mxu0 }
  0xdd   : > { %547 = vst [vmem:[%s841_s26 + $0x30] sm:$0xff] %v515_v48  ;;  %v513_v54 = vmax.f32 %v399_v49, 0.0  ;;  %v410_v55 = vadd.f32 %v699_v53, %v834_v18  ;;  %v715_v56 = vpop.f32.mrf.mxu1 }
  0xde   : > { %563 = vst [vmem:[%s841_s26 + $0xb0] sm:$0xff] %v531_v51  ;;  %v529_v57 = vmax.f32 %v463_v52, 0.0  ;;  %v474_v58 = vadd.f32 %v715_v56, %v834_v18  ;;  %v401_v59 = vpop.f32.mrf.mxu0 }
  0xdf   : > { %545 = vst [vmem:[%s841_s26 + $0x20] sm:$0xff] %v513_v54  ;;  %v516_v60 = vmax.f32 %v410_v55, 0.0  ;;  %v402_v61 = vadd.f32 %v834_v18, %v401_v59  ;;  %v465_v62 = vpop.f32.mrf.mxu1 }
  0xe0   : > { %561 = vst [vmem:[%s841_s26 + $0xa0] sm:$0xff] %v529_v57  ;;  %v532_v63 = vmax.f32 %v474_v58, 0.0  ;;  %v466_v0 = vadd.f32 %v834_v18, %v465_v62  ;;  %v702_v1 = vpop.f32.mrf.mxu0 }
  0xe1   : > { %548 = vst [vmem:[%s841_s26 + $0x38] sm:$0xff] %v516_v60  ;;  %v514_v2 = vmax.f32 %v402_v61, 0.0  ;;  %v423_v3 = vadd.f32 %v702_v1, %v834_v18  ;;  %v718_v4 = vpop.f32.mrf.mxu1 }
  0xe2   : > { %564 = vst [vmem:[%s841_s26 + $0xb8] sm:$0xff] %v532_v63  ;;  %v530_v5 = vmax.f32 %v466_v0, 0.0  ;;  %v487_v6 = vadd.f32 %v718_v4, %v834_v18  ;;  %v414_v7 = vpop.f32.mrf.mxu0 }
  0xe3   : > { %546 = vst [vmem:[%s841_s26 + $0x28] sm:$0xff] %v514_v2  ;;  %v519_v8 = vmax.f32 %v423_v3, 0.0  ;;  %v415_v9 = vadd.f32 %v834_v18, %v414_v7  ;;  %v478_v10 = vpop.f32.mrf.mxu1 }
  0xe4   : > { %562 = vst [vmem:[%s841_s26 + $0xa8] sm:$0xff] %v530_v5  ;;  %v535_v11 = vmax.f32 %v487_v6, 0.0  ;;  %v479_v12 = vadd.f32 %v834_v18, %v478_v10  ;;  %v703_v13 = vpop.f32.mrf.mxu0 }
  0xe5   : > { %551 = vst [vmem:[%s841_s26 + $0x50] sm:$0xff] %v519_v8  ;;  %v517_v14 = vmax.f32 %v415_v9, 0.0  ;;  %v426_v15 = vadd.f32 %v703_v13, %v834_v18  ;;  %v719_v16 = vpop.f32.mrf.mxu1 }
  0xe6   : > { %567 = vst [vmem:[%s841_s26 + $0xd0] sm:$0xff] %v535_v11  ;;  %v533_v17 = vmax.f32 %v479_v12, 0.0  ;;  %v490_v19 = vadd.f32 %v719_v16, %v834_v18  ;;  %v417_v20 = vpop.f32.mrf.mxu0 }
  0xe7   : > { %549 = vst [vmem:[%s841_s26 + $0x40] sm:$0xff] %v517_v14  ;;  %v520_v21 = vmax.f32 %v426_v15, 0.0  ;;  %v418_v22 = vadd.f32 %v834_v18, %v417_v20  ;;  %v481_v23 = vpop.f32.mrf.mxu1 }
  0xe8   : > { %565 = vst [vmem:[%s841_s26 + $0xc0] sm:$0xff] %v533_v17  ;;  %v536_v24 = vmax.f32 %v490_v19, 0.0  ;;  %v482_v25 = vadd.f32 %v834_v18, %v481_v23  ;;  %v706_v26 = vpop.f32.mrf.mxu0 }
  0xe9   : > { %552 = vst [vmem:[%s841_s26 + $0x58] sm:$0xff] %v520_v21  ;;  %v518_v27 = vmax.f32 %v418_v22, 0.0  ;;  %v439_v28 = vadd.f32 %v706_v26, %v834_v18  ;;  %v722_v29 = vpop.f32.mrf.mxu1 }
  0xea   : > { %568 = vst [vmem:[%s841_s26 + $0xd8] sm:$0xff] %v536_v24  ;;  %v534_v30 = vmax.f32 %v482_v25, 0.0  ;;  %v503_v31 = vadd.f32 %v722_v29, %v834_v18  ;;  %v430_v32 = vpop.f32.mrf.mxu0 }
  0xeb   : > { %550 = vst [vmem:[%s841_s26 + $0x48] sm:$0xff] %v518_v27  ;;  %v523_v33 = vmax.f32 %v439_v28, 0.0  ;;  %v431_v34 = vadd.f32 %v834_v18, %v430_v32  ;;  %v494_v35 = vpop.f32.mrf.mxu1 }
  0xec   : > { %566 = vst [vmem:[%s841_s26 + $0xc8] sm:$0xff] %v534_v30  ;;  %v539_v36 = vmax.f32 %v503_v31, 0.0  ;;  %v495_v37 = vadd.f32 %v834_v18, %v494_v35  ;;  %v707_v38 = vpop.f32.mrf.mxu0 }
  0xed   : > { %555 = vst [vmem:[%s841_s26 + $0x70] sm:$0xff] %v523_v33  ;;  %v521_v39 = vmax.f32 %v431_v34, 0.0  ;;  %v442_v40 = vadd.f32 %v707_v38, %v834_v18  ;;  %v723_v41 = vpop.f32.mrf.mxu1 }
  0xee   : > { %571 = vst [vmem:[%s841_s26 + $0xf0] sm:$0xff] %v539_v36  ;;  %v537_v42 = vmax.f32 %v495_v37, 0.0  ;;  %v506_v43 = vadd.f32 %v723_v41, %v834_v18  ;;  %v433_v44 = vpop.f32.mrf.mxu0 }
  0xef   : > { %553 = vst [vmem:[%s841_s26 + $0x60] sm:$0xff] %v521_v39  ;;  %v524_v45 = vmax.f32 %v442_v40, 0.0  ;;  %v434_v46 = vadd.f32 %v834_v18, %v433_v44  ;;  %v497_v47 = vpop.f32.mrf.mxu1 }
  0xf0   : > { %569 = vst [vmem:[%s841_s26 + $0xe0] sm:$0xff] %v537_v42  ;;  %v540_v48 = vmax.f32 %v506_v43, 0.0  ;;  %v498_v49 = vadd.f32 %v834_v18, %v497_v47 }
  0xf1   : > { %556 = vst [vmem:[%s841_s26 + $0x78] sm:$0xff] %v524_v45  ;;  %v522_v50 = vmax.f32 %v434_v46, 0.0 }
  0xf2   : > { %572 = vst [vmem:[%s841_s26 + $0xf8] sm:$0xff] %v540_v48  ;;  %v538_v51 = vmax.f32 %v498_v49, 0.0 }
  0xf3   : > { %554 = vst [vmem:[%s841_s26 + $0x68] sm:$0xff] %v522_v50 }
  0xf4   : > { %570 = vst [vmem:[%s841_s26 + $0xe8] sm:$0xff] %v538_v51 }
  0xf5 PF: > { %s13_s12 = sadd.s32 1, %s758_s12  }
  0xf6   : > { %p10_p4 = scmp.ge.s32.totalorder %s13_s12, 4  }
  0xf8   :  { %12 = sbr.rel (!%p10_p4) target bundleno = 1 (0x1), region = 62 }

// kernel: inception_forward.6
= control target key start
LH: loop header
LB: loop body
LE: loop exit
PB: predicated region body
PF: predicated region fallthrough
CT: control target
= control target key end

     0   :  { %s4708_s12 = smov 0   ;;  %s6085_s0 = inlined_call_operand.vmem [shape: bf16[2,342,16], index: 0, kind: input, shape index: {}]   ;;  %s6086_s1 = inlined_call_operand.vmem [shape: bf16[9,16,128], index: 1, kind: input, shape index: {}]   ;;  %s6087_s2 = inlined_call_operand.vmem [shape: f32[1,128], index: 2, kind: input, shape index: {}]   ;;  %s6088_s3 = inlined_call_operand.vmem [shape: f32[2,288,128], index: 3, kind: output, shape index: {}]  }
   0x1 LB: > { %s3825_s13 = sadd.s32 4294967295, %s4686_s12   ;;  %p3829_p0 = scmp.ge.s32.totalorder %s4686_s12, 1  ;;  %s4686_s12 = sphi %s4708_s12, %s13_s12  }
   0x2   : > { %p137_p1 = scmp.lt.s32.totalorder %s4686_s12, 3 }
   0x4   : > { %p138_p2 = pnand %p3829_p0, %p137_p1 }
   0x6   : > { %141 = sbr.rel (%p138_p2) target bundleno = 554 (0x22a), region = 32 }
   0xb   : > { %v4609_v0 = vld [vmem:[%s6086_s1 + $0x8] sm:$0xff]   ;;  %p161_p3 = scmp.lt.s32.totalorder %s3825_s13, 1  ;;  %v4722_v1 = vld [vmem:[%s6086_s1 + $0x10] sm:$0xff]   ;;  %v4729_v2 = vld [vmem:[%s6086_s1] sm:$0xff]   ;;  %vm307_vm0 = vsmask.f32 7424 }
   0xc   : > { %4255 = vmatprep.subr.bf16.mxu0 %v4609_v0  ;;  %4597 = vmatprep.subr.bf16.mxu1 %v4609_v0  ;;  %vm462_vm1 = vcmask 130048   ;;  %v4778_v26 = vld [vmem:[%s6086_s1 + $0x20] sm:$0xff]   ;;  %v4795_v37 = vld [vmem:[%s6086_s1 + $0x18] sm:$0xff]   ;;  %vm920_vm2 = vcmask 1046528   ;;  %vm2132_vm3 = vcmask 1045504   ;;  %vm3344_vm5 = vcmask 1044480  }
   0xd   : > { %s6128_s13 = smov (!%p161_p3, %s3825_s13), 1  ;;  %4256 = vmatpush3.bf16.msra.mxu0 %v4609_v0  ;;  %4598 = vmatpush3.bf16.msra.mxu1 %v4609_v0  ;;  %vm1681_vm4 = vsmask.f32 6400  ;;  %vm2893_vm6 = vsmask.f32 5376 }
   0xe   : > { %s4599_s20 = smul.u32 172, %s6128_s13  ;;  %4331 = vmatprep.subr.bf16.mxu0 %v4722_v1  ;;  %4293 = vmatprep.subr.bf16.mxu1 %v4729_v2 }
   0xf   : > { %s4600_s9 = smul.u32 288, %s6128_s13 }
  0x10   : > { %s4737_s23 = scalar_lea.vmem %s6085_s0, %s4599_s20 }
  0x11   : > { %v172_v3 = vld [vmem:[%s4737_s23] sm:$0xf]  ;;  %v4741_v4 = vld [vmem:[%s4737_s23 + $0x4] sm:$0xf]  ;;  %v4747_v6 = vld [vmem:[%s4737_s23 + $0x8] sm:$0xff]   ;;  %s5976_s13 = scalar_lea.vmem %s6088_s3, %s4600_s9 }
  0x12   : > { %v4744_v5 = vcombine.low %v172_v3, %v4741_v4  ;;  %v316_v9 = vshll.u32 %v4747_v6, 16  ;;  %v320_v10 = vshrl.u32 %v4747_v6, 16  ;;  %v4754_v11 = vld [vmem:[%s4737_s23 + $0x50] sm:$0xff]   ;;  %v4757_v12 = vld [vmem:[%s4737_s23 + $0x58] sm:$0xff]   ;;  %v4768_v21 = vld [vmem:[%s4737_s23 + $0x60] sm:$0xff]  }
  0x13   : > { %v4760_v13 = vld [vmem:[%s4737_s23 + $0x10] sm:$0xff]   ;;  %v388_v16 = vshll.u32 %v4754_v11, 16  ;;  %v392_v17 = vshrl.u32 %v4754_v11, 16  ;;  %v396_v18 = vshll.u32 %v4757_v12, 16  ;;  %v400_v19 = vshrl.u32 %v4757_v12, 16  ;;  %v4773_v25 = vld [vmem:[%s4737_s23 + $0x18] sm:$0xff]  }
  0x14   : > { %v309_v7 = vshrl.u32 %v4744_v5, 16  ;;  %v311_v8 = vshll.u32 %v4744_v5, 16  ;;  %v318_v15 = vrot.slane %v316_v9, 1  ;;  %v324_v20 = vshll.u32 %v4760_v13, 16  ;;  %v4786_v34 = vld [vmem:[%s4737_s23 + $0x68] sm:$0xff]   ;;  %v4790_v36 = vld [vmem:[%s4737_s23 + $0x20] sm:$0xff]  }
  0x15   : > { %v4770_v24 = vrot.slane %v388_v16, 1  ;;  %v398_v27 = vrot.slane %v396_v18, 1  ;;  %v404_v29 = vshll.u32 %v4768_v21, 16  ;;  %v328_v30 = vshrl.u32 %v4760_v13, 16  ;;  %v4800_v42 = vld [vmem:[%s4737_s23 + $0x70] sm:$0xff]   ;;  %v4807_v47 = vld [vmem:[%s4737_s23 + $0x28] sm:$0xff]  }
  0x16   : > { %v313_v14 = vrot.slane %v311_v8, 1  ;;  %v322_v23 = vor.u32 %v320_v10, %v318_v15  ;;  %v326_v28 = vrot.slane %v324_v20, 1  ;;  %v332_v33 = vshll.u32 %v4773_v25, 16  ;;  %v4823_v59 = vld [vmem:[%s4737_s23 + $0x78] sm:$0xff]   ;;  %v4835_v8 = vld [vmem:[%s4737_s23 + $0x80] sm:$0xff]  }
  0x17   : > { %v394_v32 = vor.u32 %v392_v17, %v4770_v24  ;;  %v408_v35 = vshrl.u32 %v4768_v21, 16  ;;  %v402_v38 = vor.u32 %v400_v19, %v398_v27  ;;  %v406_v40 = vrot.slane %v404_v29, 1  ;;  %v4844_v20 = vld [vmem:[%s4737_s23 + $0x38] sm:$0xff]  }
  0x18   : > { %v314_v22 = vor.u32 %v313_v14, %v309_v7  ;;  %v327_v39 = vsel %vm307_vm0, %v322_v23, %v326_v28  ;;  %v330_v41 = vor.u32 %v328_v30, %v326_v28  ;;  %v334_v44 = vrot.slane %v332_v33, 1  ;;  %v4832_v7 = vld [vmem:[%s4737_s23 + $0x30] sm:$0xff]   ;;  %v4849_v23 = vld [vmem:[%s4737_s23 + $0x88] sm:$0xff]  }
  0x19   : > { %v399_v43 = vsel %vm307_vm0, %v394_v32, %v398_v27  ;;  %v412_v45 = vshll.u32 %v4786_v34, 16  ;;  %v336_v46 = vshrl.u32 %v4773_v25, 16  ;;  %v407_v48 = vsel %vm307_vm0, %v402_v38, %v406_v40  ;;  %v4861_v38 = vld [vmem:[%s4737_s23 + $0x48] sm:$0xff]  }
  0x1a   : > { %v319_v31 = vsel %vm307_vm0, %v314_v22, %v318_v15  ;;  %4277 = vmatprep.mubr.msk.bf16.mxu1 %vm462_vm1, %v399_v43  ;;  %v410_v49 = vor.u32 %v408_v35, %v406_v40  ;;  %v340_v50 = vshll.u32 %v4790_v36, 16  ;;  %v416_v51 = vshrl.u32 %v4786_v34, 16  ;;  %v4858_v35 = vld [vmem:[%s4737_s23 + $0x40] sm:$0xff]  }
  0x1b   : > { %4257 = vmatprep.mubr.msk.bf16.mxu0 %vm462_vm1, %v319_v31  ;;  %4278 = vmatmul.mubr.msk.bf16.vlgmr.msra.gmra.mxu1 %vm462_vm1, %v407_v48  ;;  %v335_v52 = vsel %vm307_vm0, %v330_v41, %v334_v44  ;;  %v414_v53 = vrot.slane %v412_v45, 1  ;;  %v338_v54 = vor.u32 %v336_v46, %v334_v44  ;;  %v420_v55 = vshll.u32 %v4800_v42, 16  ;;  %v4629_v41 = vld [vmem:[%s4737_s23 + $0x90] ss:$0 sps:$4 sm:$0x11]  }
  0x1c   : > { %4258 = vmatmul.mubr.msk.bf16.vlgmr.msra.gmra.mxu0 %vm462_vm1, %v327_v39  ;;  %4294 = vmatpush3.bf16.msra.mxu1 %v4729_v2  ;;  %v342_v56 = vrot.slane %v340_v50, 1  ;;  %v344_v57 = vshrl.u32 %v4790_v36, 16  ;;  %v348_v58 = vshll.u32 %v4807_v47, 16  ;;  %v424_v63 = vshrl.u32 %v4800_v42, 16 }
  0x1d   : > { %4332 = vmatpush3.bf16.msra.mxu0 %v4722_v1  ;;  %4261 = vmatprep.mubr.msk.bf16.mxu0 %vm462_vm1, %v335_v52  ;;  %v415_v60 = vsel %vm307_vm0, %v410_v49, %v414_v53  ;;  %v418_v61 = vor.u32 %v416_v51, %v414_v53  ;;  %v422_v62 = vrot.slane %v420_v55, 1  ;;  %v428_v3 = vshll.u32 %v4823_v59, 16 }
  0x1e   : > { %4407 = vmatprep.subr.bf16.mxu0 %v4778_v26  ;;  %4369 = vmatprep.subr.bf16.mxu1 %v4795_v37  ;;  %v343_v0 = vsel %vm307_vm0, %v338_v54, %v342_v56  ;;  %v346_v1 = vor.u32 %v344_v57, %v342_v56  ;;  %v350_v2 = vrot.slane %v348_v58, 1  ;;  %v352_v14 = vshrl.u32 %v4807_v47, 16 }
  0x1f   : > { %4281 = vmatprep.mubr.msk.bf16.mxu1 %vm462_vm1, %v415_v60  ;;  %v423_v9 = vsel %vm307_vm0, %v418_v61, %v422_v62  ;;  %v426_v10 = vor.u32 %v424_v63, %v422_v62  ;;  %v432_v15 = vshrl.u32 %v4823_v59, 16  ;;  %v430_v17 = vrot.slane %v428_v3, 1  ;;  %v913_v60 = vld [vmem:[%s4737_s23] sm:$0xe] }
  0x20   : > { %v351_v16 = vsel %vm307_vm0, %v346_v1, %v350_v2  ;;  %v356_v18 = vshll.u32 %v4832_v7, 16  ;;  %v436_v19 = vshll.u32 %v4835_v8, 16  ;;  %v360_v22 = vshrl.u32 %v4832_v7, 16 }
  0x21   : > { %v431_v27 = vsel %vm307_vm0, %v426_v10, %v430_v17  ;;  %v354_v28 = vor.u32 %v352_v14, %v350_v2  ;;  %v364_v31 = vshll.u32 %v4844_v20, 16  ;;  %v440_v32 = vshrl.u32 %v4835_v8, 16 }
  0x22   : > { %v358_v29 = vrot.slane %v356_v18, 1  ;;  %v438_v30 = vrot.slane %v436_v19, 1  ;;  %v444_v33 = vshll.u32 %v4849_v23, 16  ;;  %v434_v39 = vor.u32 %v432_v15, %v430_v17 }
  0x23   : > { %4282 = vmatmul.mubr.msk.bf16.gmra.mxu1 %vm462_vm1, %v423_v9  ;;  %v366_v43 = vrot.slane %v364_v31, 1  ;;  %v372_v46 = vshll.u32 %v4858_v35, 16  ;;  %v368_v49 = vshrl.u32 %v4844_v20, 16  ;;  %v376_v51 = vshrl.u32 %v4858_v35, 16 }
  0x24   : > { %4262 = vmatmul.mubr.msk.bf16.gmra.mxu0 %vm462_vm1, %v343_v0  ;;  %4285 = vmatprep.mubr.msk.bf16.mxu1 %vm462_vm1, %v431_v27  ;;  %v362_v40 = vor.u32 %v360_v22, %v358_v29  ;;  %v442_v44 = vor.u32 %v440_v32, %v438_v30  ;;  %v446_v45 = vrot.slane %v444_v33, 1  ;;  %v359_v48 = vsel %vm307_vm0, %v354_v28, %v358_v29  ;;  %v4903_v27 = vld [vmem:[%s6086_s1 + $0x28] sm:$0xff]  }
  0x25   : > { %4265 = vmatprep.mubr.msk.bf16.mxu0 %vm462_vm1, %v351_v16  ;;  %v380_v52 = vshll.u32 %v4861_v38, 16  ;;  %v439_v53 = vsel %vm307_vm0, %v434_v39, %v438_v30  ;;  %v448_v54 = vshrl.u32 %v4849_v23, 16  ;;  %v452_v55 = vshll.u32 %v4629_v41, 16  ;;  %v4919_v30 = vld [vmem:[%s6086_s1 + $0x30] sm:$0xff]   ;;  %v2125_v39 = vld [vmem:[%s4737_s23 + $0x8] sm:$0xc] }
  0x26   : > { %v367_v50 = vsel %vm307_vm0, %v362_v40, %v366_v43  ;;  %v447_v56 = vsel %vm307_vm0, %v442_v44, %v446_v45  ;;  %v374_v57 = vrot.slane %v372_v46, 1  ;;  %v370_v58 = vor.u32 %v368_v49, %v366_v43  ;;  %v4956_v40 = vld [vmem:[%s4737_s23 + $0x10] sm:$0xff]   ;;  %v4961_v44 = vld [vmem:[%s4737_s23 + $0x18] sm:$0xff]   ;;  %v4971_v49 = vld [vmem:[%s4737_s23 + $0x28] sm:$0xff]  }
  0x27   : > { %v382_v62 = vrot.slane %v380_v52, 1  ;;  %v450_v63 = vor.u32 %v448_v54, %v446_v45  ;;  %v454_v0 = vrot.slane %v452_v55, 1  ;;  %v384_v2 = vshrl.u32 %v4861_v38, 16  ;;  %v4965_v45 = vld [vmem:[%s4737_s23 + $0x20] sm:$0xff]  }
  0x28   : > { %v378_v61 = vor.u32 %v376_v51, %v374_v57  ;;  %v375_v1 = vsel %vm307_vm0, %v370_v58, %v374_v57  ;;  %v3893_v9 = vcombine.low %v913_v60, %v4741_v4  ;;  %v954_v14 = vrot.slane %v4849_v23, 1 }
  0x29   : > { %v455_v10 = vsel %vm307_vm0, %v450_v63, %v454_v0  ;;  %v386_v15 = vor.u32 %v384_v2, %v382_v62  ;;  %v956_v16 = vrot.slane %v4629_v41, 1  ;;  %v922_v18 = vrot.slane %v4747_v6, 1  ;;  %v5007_v0 = vld [vmem:[%s4737_s23 + $0x48] sm:$0xff]  }
  0x2a   : > { %v383_v3 = vsel %vm307_vm0, %v378_v61, %v382_v62  ;;  %v921_v17 = vrot.slane %v3893_v9, 1  ;;  %v926_v28 = vrot.slane %v4773_v25, 1  ;;  %v936_v33 = vrot.slane %v4858_v35, 1  ;;  %v4999_v61 = vld [vmem:[%s4737_s23 + $0x40] sm:$0xff]  }
  0x2b   : > { %4286 = vmatmul.mubr.msk.bf16.gmra.mxu1 %vm462_vm1, %v439_v53  ;;  %v4894_v4 = vsel %vm920_vm2, %v954_v14, %v956_v16  ;;  %v391_v19 = vsel %vm307_vm0, %v386_v15, %v4770_v24  ;;  %v2138_v51 = vrot.slane %v4965_v45, 2  ;;  %v940_v52 = vrot.slane %v4754_v11, 1  ;;  %v4980_v53 = vld [vmem:[%s4737_s23 + $0x30] sm:$0xff]  }
  0x2c   : > { %4266 = vmatmul.mubr.msk.bf16.gmra.mxu0 %vm462_vm1, %v359_v48  ;;  %4289 = vmatprep.mubr.msk.bf16.mxu1 %vm462_vm1, %v447_v56  ;;  %v923_v22 = vsel %vm920_vm2, %v921_v17, %v922_v18  ;;  %v2136_v48 = vrot.slane %v4961_v44, 2  ;;  %v942_v55 = vrot.slane %v4757_v12, 1  ;;  %v4989_v56 = vld [vmem:[%s4737_s23 + $0x38] sm:$0xff]   ;;  %v2140_v58 = vrot.slane %v4971_v49, 2 }
  0x2d   : > { %4269 = vmatprep.mubr.msk.bf16.mxu0 %vm462_vm1, %v367_v50  ;;  %v2142_v60 = vrot.slane %v4980_v53, 2  ;;  %v2148_v9 = vrot.slane %v5007_v0, 2  ;;  %v944_v15 = vrot.slane %v4768_v21, 1  ;;  %v946_v17 = vrot.slane %v4786_v34, 1 }
  0x2e   : > { %v4992_v57 = vsel %vm2132_vm3, %v2136_v48, %v2138_v51  ;;  %v5002_v62 = vsel %vm2132_vm3, %v2138_v51, %v2140_v58 }
  0x33   : > { %4290 = vmatmul.mubr.msk.bf16.gmra.mxu1 %vm462_vm1, %v455_v10 }
  0x34   : > { %4270 = vmatmul.mubr.msk.bf16.gmra.mxu0 %vm462_vm1, %v375_v1  ;;  %4295 = vmatprep.mubr.msk.bf16.mxu1 %vm462_vm1, %v4744_v5  ;;  %v924_v5 = vrot.slane %v4760_v13, 1  ;;  %v5010_v1 = vsel %vm2132_vm3, %v2140_v58, %v2142_v60 }
  0x35   : > { %4273 = vmatprep.mubr.msk.bf16.mxu0 %vm462_vm1, %v383_v3  ;;  %v2146_v3 = vrot.slane %v4999_v61, 2 }
  0x36   : > { %v925_v24 = vsel %vm920_vm2, %v922_v18, %v924_v5  ;;  %v927_v29 = vsel %vm920_vm2, %v924_v5, %v926_v28  ;;  %v5033_v18 = vld [vmem:[%s4737_s23 + $0x50] sm:$0xff]   ;;  %v947_v5 = vsel %vm920_vm2, %v944_v15, %v946_v17 }
  0x37   : > { %v5025_v16 = vsel %vm2132_vm3, %v2146_v3, %v2148_v9 }
  0x3b   : > { %4296 = vmatmul.mubr.msk.bf16.vlgmr.msra.gmra.mxu1 %vm462_vm1, %v4747_v6  ;;  %v928_v6 = vrot.slane %v4790_v36, 1 }
  0x3c   : > { %4274 = vmatmul.mubr.msk.bf16.gmra.mxu0 %vm462_vm1, %v391_v19  ;;  %4370 = vmatpush3.bf16.msra.mxu1 %v4795_v37  ;;  %v945_v19 = vsel %vm920_vm2, %v942_v55, %v944_v15 }
  0x3d   : > { %4333 = vmatprep.mubr.msk.bf16.mxu0 %vm462_vm1, %v923_v22  ;;  %4299 = vmatprep.mubr.msk.bf16.mxu1 %vm462_vm1, %v4760_v13  ;;  %v930_v13 = vrot.slane %v4807_v47, 1  ;;  %v929_v37 = vsel %vm920_vm2, %v926_v28, %v928_v6  ;;  %v5037_v22 = vld [vmem:[%s4737_s23 + $0x58] sm:$0xff]   ;;  %v2150_v28 = vrot.slane %v5033_v18, 2 }
  0x3e   : > { %4445 = vmatprep.subr.bf16.mxu1 %v4903_v27 }
  0x3f   : > { %v931_v31 = vsel %vm920_vm2, %v928_v6, %v930_v13  ;;  %v950_v6 = vrot.slane %v4823_v59, 1 }
  0x43   : > { %4300 = vmatmul.mubr.msk.bf16.gmra.mxu1 %vm462_vm1, %v4773_v25  ;;  %v932_v25 = vrot.slane %v4832_v7, 1 }
  0x44   : > { %4334 = vmatmul.mubr.msk.bf16.vlgmr.msra.gmra.mxu0 %vm462_vm1, %v925_v24  ;;  %4303 = vmatprep.mubr.msk.bf16.mxu1 %vm462_vm1, %v4790_v36  ;;  %v5044_v24 = vsel %vm2132_vm3, %v2148_v9, %v2150_v28 }
  0x45   : > { %4408 = vmatpush3.bf16.msra.mxu0 %v4778_v26  ;;  %4337 = vmatprep.mubr.msk.bf16.mxu0 %vm462_vm1, %v927_v29  ;;  %v934_v26 = vrot.slane %v4844_v20, 1  ;;  %v933_v36 = vsel %vm920_vm2, %v930_v13, %v932_v25  ;;  %v1231_v13 = vld [vmem:[%s4737_s23 + $0x8] sm:$0xe] }
  0x46   : > { %4483 = vmatprep.subr.bf16.mxu0 %v4919_v30 }
  0x47   : > { %v935_v32 = vsel %vm920_vm2, %v932_v25, %v934_v26  ;;  %v937_v43 = vsel %vm920_vm2, %v934_v26, %v936_v33  ;;  %v5062_v25 = vld [vmem:[%s4737_s23 + $0x68] sm:$0xff]  }
  0x4b   : > { %4304 = vmatmul.mubr.msk.bf16.gmra.mxu1 %vm462_vm1, %v4807_v47  ;;  %v938_v47 = vrot.slane %v4861_v38, 1 }
  0x4c   : > { %4338 = vmatmul.mubr.msk.bf16.gmra.mxu0 %vm462_vm1, %v929_v37  ;;  %4307 = vmatprep.mubr.msk.bf16.mxu1 %vm462_vm1, %v4832_v7  ;;  %v4953_v7 = vld [vmem:[%s4737_s23 + $0xc] sm:$0xf]  ;;  %v5058_v37 = vld [vmem:[%s4737_s23 + $0x60] sm:$0xff]  }
  0x4d   : > { %4341 = vmatprep.mubr.msk.bf16.mxu0 %vm462_vm1, %v931_v31  ;;  %v3977_v41 = vcombine.low %v2125_v39, %v4953_v7  ;;  %v941_v63 = vsel %vm920_vm2, %v938_v47, %v940_v52 }
  0x4f   : > { %v2133_v46 = vrot.slane %v3977_v41, 2  ;;  %v1691_v41 = vshrl.u32 %v4956_v40, 16 }
  0x51   : > { %v1693_v58 = vrot.slane %v1691_v41, 1  ;;  %v1721_v41 = vshll.u32 %v4971_v49, 16 }
  0x53   : > { %4308 = vmatmul.mubr.msk.bf16.gmra.mxu1 %vm462_vm1, %v4844_v20  ;;  %v939_v20 = vsel %vm920_vm2, %v936_v33, %v938_v47  ;;  %v952_v33 = vrot.slane %v4835_v8, 1 }
  0x54   : > { %4342 = vmatmul.mubr.msk.bf16.gmra.mxu0 %vm462_vm1, %v933_v36  ;;  %4311 = vmatprep.mubr.msk.bf16.mxu1 %vm462_vm1, %v4858_v35  ;;  %v2134_v35 = vrot.slane %v4956_v40, 2  ;;  %v2154_v36 = vrot.slane %v5058_v37, 2 }
  0x55   : > { %4345 = vmatprep.mubr.msk.bf16.mxu0 %vm462_vm1, %v935_v32  ;;  %v3915_v32 = vcombine.low %v1231_v13, %v4953_v7  ;;  %v955_v51 = vsel %vm920_vm2, %v952_v33, %v954_v14  ;;  %v1700_v14 = vshrl.u32 %v4961_v44, 16  ;;  %v5118_v13 = vld [vmem:[%s4737_s23 + $0x88] sm:$0xff]  }
  0x56   : > { %v4974_v50 = vsel %vm2132_vm3, %v2133_v46, %v2134_v35  ;;  %v4983_v54 = vsel %vm2132_vm3, %v2134_v35, %v2136_v48  ;;  %v1365_v46 = vrot.slane %v4956_v40, 1  ;;  %v5085_v35 = vld [vmem:[%s4737_s23 + $0x70] sm:$0xff]   ;;  %v953_v48 = vsel %vm920_vm2, %v950_v6, %v952_v33 }
  0x57   : > { %v1683_v39 = vshrl.u32 %v3915_v32, 16  ;;  %v1686_v7 = vshll.u32 %v3915_v32, 16 }
  0x5b   : > { %4312 = vmatmul.mubr.msk.bf16.gmra.mxu1 %vm462_vm1, %v4861_v38  ;;  %v2144_v38 = vrot.slane %v4989_v56, 2 }
  0x5c   : > { %4346 = vmatmul.mubr.msk.bf16.gmra.mxu0 %vm462_vm1, %v937_v43  ;;  %4315 = vmatprep.mubr.msk.bf16.mxu1 %vm462_vm1, %v4754_v11  ;;  %v943_v11 = vsel %vm920_vm2, %v940_v52, %v942_v55  ;;  %v1694_v43 = vshll.u32 %v4956_v40, 16  ;;  %v5092_v52 = vld [vmem:[%s4737_s23 + $0x78] sm:$0xff]   ;;  %v1688_v55 = vrot.slane %v1686_v7, 2  ;;  %v1718_v7 = vshrl.u32 %v4971_v49, 16 }
  0x5d   : > { %4349 = vmatprep.mubr.msk.bf16.mxu0 %vm462_vm1, %v939_v20  ;;  %v5014_v2 = vsel %vm2132_vm3, %v2142_v60, %v2144_v38  ;;  %v5020_v10 = vsel %vm2132_vm3, %v2144_v38, %v2146_v3  ;;  %v1364_v20 = vrot.slane %v3915_v32, 1  ;;  %v2158_v38 = vrot.slane %v5085_v35, 2 }
  0x5e   : > { %v1696_v60 = vrot.slane %v1694_v43, 2 }
  0x5f   : > { %v1366_v40 = vsel %vm920_vm2, %v1364_v20, %v1365_v46  ;;  %v1727_v20 = vshrl.u32 %v4980_v53, 16 }
  0x60   : > { %v1697_v15 = vor.u32 %v1696_v60, %v1693_v58  ;;  %v1720_v58 = vrot.slane %v1718_v7, 1  ;;  %v1723_v60 = vrot.slane %v1721_v41, 2 }
  0x63   : > { %4316 = vmatmul.mubr.msk.bf16.gmra.mxu1 %vm462_vm1, %v4757_v12  ;;  %v2152_v12 = vrot.slane %v5037_v22, 2 }
  0x64   : > { %4350 = vmatmul.mubr.msk.bf16.gmra.mxu0 %vm462_vm1, %v941_v63  ;;  %4319 = vmatprep.mubr.msk.bf16.mxu1 %vm462_vm1, %v4768_v21  ;;  %v948_v21 = vrot.slane %v4800_v42, 1 }
  0x65   : > { %4353 = vmatprep.mubr.msk.bf16.mxu0 %vm462_vm1, %v943_v11  ;;  %v5049_v29 = vsel %vm2132_vm3, %v2150_v28, %v2152_v12  ;;  %v1703_v11 = vshll.u32 %v4961_v44, 16  ;;  %v1369_v28 = vrot.slane %v4965_v45, 1 }
  0x66   : > { %v949_v31 = vsel %vm920_vm2, %v946_v17, %v948_v21  ;;  %v951_v26 = vsel %vm920_vm2, %v948_v21, %v950_v6  ;;  %v1709_v17 = vshrl.u32 %v4965_v45, 16  ;;  %v1702_v21 = vrot.slane %v1700_v14, 1 }
  0x67   : > { %v1705_v6 = vrot.slane %v1703_v11, 2 }
  0x6b   : > { %4320 = vmatmul.mubr.msk.bf16.gmra.mxu1 %vm462_vm1, %v4786_v34  ;;  %v2156_v34 = vrot.slane %v5062_v25, 2 }
  0x6c   : > { %4354 = vmatmul.mubr.msk.bf16.gmra.mxu0 %vm462_vm1, %v945_v19  ;;  %4323 = vmatprep.mubr.msk.bf16.mxu1 %vm462_vm1, %v4800_v42  ;;  %v5070_v42 = vsel %vm2132_vm3, %v2152_v12, %v2154_v36  ;;  %v1712_v19 = vshll.u32 %v4965_v45, 16  ;;  %v5115_v12 = vld [vmem:[%s4737_s23 + $0x80] sm:$0xff]   ;;  %v5130_v45 = vld [vmem:[%s6086_s1 + $0x38] sm:$0xff]  }
  0x6d   : > { %4357 = vmatprep.mubr.msk.bf16.mxu0 %vm462_vm1, %v947_v5  ;;  %v5075_v47 = vsel %vm2132_vm3, %v2154_v36, %v2156_v34  ;;  %v5099_v63 = vsel %vm2132_vm3, %v2156_v34, %v2158_v38  ;;  %v1367_v5 = vrot.slane %v4961_v44, 1  ;;  %v2162_v36 = vrot.slane %v5115_v12, 2 }
  0x6e   : > { %v2164_v34 = vrot.slane %v5118_v13, 2 }
  0x6f   : > { %v1368_v32 = vsel %vm920_vm2, %v1365_v46, %v1367_v5  ;;  %v1370_v44 = vsel %vm920_vm2, %v1367_v5, %v1369_v28  ;;  %v1730_v46 = vshll.u32 %v4980_v53, 16  ;;  %v1739_v5 = vshll.u32 %v4989_v56, 16 }
  0x73   : > { %4324 = vmatmul.mubr.msk.bf16.gmra.mxu1 %vm462_vm1, %v4823_v59  ;;  %v1685_v59 = vrot.slane %v1683_v39, 1  ;;  %v1706_v39 = vor.u32 %v1705_v6, %v1702_v21  ;;  %v1745_v6 = vshrl.u32 %v4999_v61, 16 }
  0x74   : > { %4358 = vmatmul.mubr.msk.bf16.gmra.mxu0 %vm462_vm1, %v949_v31  ;;  %4327 = vmatprep.mubr.msk.bf16.mxu1 %vm462_vm1, %v4835_v8  ;;  %v2160_v8 = vrot.slane %v5092_v52, 2  ;;  %v1711_v31 = vrot.slane %v1709_v17, 1  ;;  %v1724_v17 = vor.u32 %v1723_v60, %v1720_v58  ;;  %v5199_v58 = vld [vmem:[%s4737_s23 + $0x14] sm:$0xf]  ;;  %v3337_v60 = vld [vmem:[%s4737_s23 + $0x10] sm:$0x8] }
  0x75   : > { %4361 = vmatprep.mubr.msk.bf16.mxu0 %vm462_vm1, %v951_v26  ;;  %v1689_v9 = vor.u32 %v1688_v55, %v1685_v59  ;;  %v1714_v26 = vrot.slane %v1712_v19, 2  ;;  %v5149_v59 = vld [vmem:[%s4737_s23 + $0x90] sm:$0xff]   ;;  %v1707_v55 = vsel %vm1681_vm4, %v1697_v15, %v1706_v39  ;;  %v1736_v19 = vshrl.u32 %v4989_v56, 16 }
  0x76   : > { %v5105_v3 = vsel %vm2132_vm3, %v2158_v38, %v2160_v8  ;;  %v5133_v33 = vsel %vm2132_vm3, %v2160_v8, %v2162_v36  ;;  %v5154_v38 = vld [vmem:[%s4737_s23 + $0x98] ss:$0 sps:$4 sm:$0x33]  }
  0x77   : > { %v1715_v43 = vor.u32 %v1714_v26, %v1711_v31  ;;  %v2168_v11 = vrot.slane %v5154_v38, 2  ;;  %v1377_v31 = vrot.slane %v4999_v61, 1 }
  0x79   : > { %v1716_v8 = vsel %vm1681_vm4, %v1706_v39, %v1715_v43  ;;  %v1725_v26 = vsel %vm1681_vm4, %v1715_v43, %v1724_v17  ;;  %v1757_v43 = vshll.u32 %v5007_v0, 16 }
  0x7b   : > { %4328 = vmatmul.mubr.msk.bf16.gmra.mxu1 %vm462_vm1, %v4849_v23  ;;  %v1698_v23 = vsel %vm1681_vm4, %v1689_v9, %v1697_v15 }
  0x7c   : > { %4362 = vmatmul.mubr.msk.bf16.gmra.mxu0 %vm462_vm1, %v953_v48  ;;  %4371 = vmatprep.mubr.msk.bf16.mxu1 %vm462_vm1, %v1366_v40  ;;  %v1371_v48 = vrot.slane %v4971_v49, 1  ;;  %v1729_v40 = vrot.slane %v1727_v20, 1  ;;  %v5160_v49 = vld [vmem:[%s6086_s1 + $0x40] sm:$0xff]  }
  0x7d   : > { %4365 = vmatprep.mubr.msk.bf16.mxu0 %vm462_vm1, %v955_v51  ;;  %v1373_v51 = vrot.slane %v4980_v53, 1  ;;  %v2166_v53 = vrot.slane %v5149_v59, 2 }
  0x7e   : > { %v1372_v14 = vsel %vm920_vm2, %v1369_v28, %v1371_v48 }
  0x7f   : > { %v1374_v9 = vsel %vm920_vm2, %v1371_v48, %v1373_v51  ;;  %v5168_v15 = vsel %vm2132_vm3, %v2164_v34, %v2166_v53  ;;  %v5175_v28 = vsel %vm2132_vm3, %v2166_v53, %v2168_v11  ;;  %v1766_v48 = vshll.u32 %v5033_v18, 16  ;;  %v5204_v53 = vld [vmem:[%s4737_s23 + $0x18] sm:$0xff]  }
  0x83   : > { %4372 = vmatmul.mubr.msk.bf16.vlgmr.msra.gmra.mxu1 %vm462_vm1, %v1368_v32  ;;  %v1741_v32 = vrot.slane %v1739_v5, 2  ;;  %v3346_v5 = vrot.slane %v5204_v53, 3 }
  0x84   : > { %4366 = vmatmul.mubr.msk.bf16.gmra.mxu0 %vm462_vm1, %v4894_v4  ;;  %v5139_v4 = vsel %vm2132_vm3, %v2162_v36, %v2164_v34  ;;  %4446 = vmatpush3.bf16.msra.mxu1 %v4903_v27  ;;  %v1732_v27 = vrot.slane %v1730_v46, 2  ;;  %v1738_v36 = vrot.slane %v1736_v19, 1  ;;  %v1763_v46 = vshrl.u32 %v5033_v18, 16  ;;  %v5209_v19 = vld [vmem:[%s4737_s23 + $0x20] sm:$0xff]  }
  0x85   : > { %4409 = vmatprep.mubr.msk.bf16.mxu0 %vm462_vm1, %v1698_v23  ;;  %4375 = vmatprep.mubr.msk.bf16.mxu1 %vm462_vm1, %v1370_v44  ;;  %v1748_v23 = vshll.u32 %v4999_v61, 16  ;;  %v1747_v44 = vrot.slane %v1745_v6, 1  ;;  %v1754_v61 = vshrl.u32 %v5007_v0, 16  ;;  %v6089_v6 = vrot.slane %v5209_v19, 3 }
  0x86   : > { %4521 = vmatprep.subr.bf16.mxu1 %v5130_v45  ;;  %v1733_v21 = vor.u32 %v1732_v27, %v1729_v40  ;;  %v1759_v27 = vrot.slane %v1757_v43, 2 }
  0x87   : > { %v1750_v39 = vrot.slane %v1748_v23, 2  ;;  %v1756_v40 = vrot.slane %v1754_v61, 1 }
  0x88   : > { %v1734_v34 = vsel %vm1681_vm4, %v1724_v17, %v1733_v21  ;;  %v1768_v17 = vrot.slane %v1766_v48, 2 }
  0x89   : > { %v1751_v20 = vor.u32 %v1750_v39, %v1747_v44  ;;  %v1760_v23 = vor.u32 %v1759_v27, %v1756_v40  ;;  %v5228_v44 = vsel %vm3344_vm5, %v3346_v5, %v6089_v6  ;;  %v1383_v39 = vrot.slane %v5037_v22, 1 }
  0x8a   : > { %v1799_v40 = vshrl.u32 %v5085_v35, 16  ;;  %v1802_v27 = vshll.u32 %v5085_v35, 16 }
  0x8b   : > { %4376 = vmatmul.mubr.msk.bf16.gmra.mxu1 %vm462_vm1, %v1372_v14  ;;  %v4061_v14 = vcombine.low %v3337_v60, %v5199_v58 }
  0x8c   : > { %4410 = vmatmul.mubr.msk.bf16.vlgmr.msra.gmra.mxu0 %vm462_vm1, %v1707_v55  ;;  %4379 = vmatprep.mubr.msk.bf16.mxu1 %vm462_vm1, %v1374_v9  ;;  %v1381_v55 = vrot.slane %v5033_v18, 1  ;;  %v1765_v9 = vrot.slane %v1763_v46, 1 }
  0x8d   : > { %4484 = vmatpush3.bf16.msra.mxu0 %v4919_v30  ;;  %4413 = vmatprep.mubr.msk.bf16.mxu0 %vm462_vm1, %v1716_v8  ;;  %v1375_v30 = vrot.slane %v4989_v56, 1  ;;  %v1742_v56 = vor.u32 %v1741_v32, %v1738_v36  ;;  %v3345_v18 = vrot.slane %v4061_v14, 3  ;;  %v1781_v32 = vshrl.u32 %v5058_v37, 16 }
  0x8e   : > { %4559 = vmatprep.subr.bf16.mxu0 %v5160_v49  ;;  %v1389_v14 = vrot.slane %v5085_v35, 1  ;;  %v1811_v35 = vshll.u32 %v5092_v52, 16 }
  0x8f   : > { %v1376_v7 = vsel %vm920_vm2, %v1373_v51, %v1375_v30  ;;  %v1378_v41 = vsel %vm920_vm2, %v1375_v30, %v1377_v31  ;;  %v1379_v51 = vrot.slane %v5007_v0, 1  ;;  %v1743_v8 = vsel %vm1681_vm4, %v1733_v21, %v1742_v56 }
  0x90   : > { %v1752_v11 = vsel %vm1681_vm4, %v1742_v56, %v1751_v20  ;;  %v1772_v30 = vshrl.u32 %v5037_v22, 16  ;;  %v5220_v36 = vsel %vm3344_vm5, %v3345_v18, %v3346_v5  ;;  %v1783_v46 = vrot.slane %v1781_v32, 1 }
  0x91   : > { %v1380_v0 = vsel %vm920_vm2, %v1377_v31, %v1379_v51  ;;  %v1382_v21 = vsel %vm920_vm2, %v1379_v51, %v1381_v55  ;;  %v1769_v31 = vor.u32 %v1768_v17, %v1765_v9  ;;  %v1384_v51 = vsel %vm920_vm2, %v1381_v55, %v1383_v39 }
  0x92   : > { %v1774_v56 = vrot.slane %v1772_v30, 1  ;;  %v1387_v55 = vrot.slane %v5062_v25, 1  ;;  %v1801_v18 = vrot.slane %v1799_v40, 1  ;;  %v1804_v5 = vrot.slane %v1802_v27, 2 }
  0x93   : > { %4380 = vmatmul.mubr.msk.bf16.gmra.mxu1 %vm462_vm1, %v1376_v7  ;;  %v1385_v7 = vrot.slane %v5058_v37, 1  ;;  %v1770_v43 = vsel %vm1681_vm4, %v1760_v23, %v1769_v31  ;;  %v1820_v32 = vshll.u32 %v5115_v12, 16  ;;  %v1397_v40 = vrot.slane %v5149_v59, 1 }
  0x94   : > { %4414 = vmatmul.mubr.msk.bf16.gmra.mxu0 %vm462_vm1, %v1725_v26  ;;  %4383 = vmatprep.mubr.msk.bf16.mxu1 %vm462_vm1, %v1378_v41  ;;  %v1775_v26 = vshll.u32 %v5037_v22, 16  ;;  %v1761_v41 = vsel %vm1681_vm4, %v1751_v20, %v1760_v23  ;;  %v1790_v22 = vshrl.u32 %v5062_v25, 16  ;;  %v1390_v23 = vsel %vm920_vm2, %v1387_v55, %v1389_v14 }
  0x95   : > { %4417 = vmatprep.mubr.msk.bf16.mxu0 %vm462_vm1, %v1734_v34  ;;  %v1784_v34 = vshll.u32 %v5058_v37, 16  ;;  %v1386_v60 = vsel %vm920_vm2, %v1383_v39, %v1385_v7  ;;  %v1793_v37 = vshll.u32 %v5062_v25, 16  ;;  %v1808_v25 = vshrl.u32 %v5092_v52, 16 }
  0x96   : > { %v1777_v61 = vrot.slane %v1775_v26, 2  ;;  %v1792_v9 = vrot.slane %v1790_v22, 1  ;;  %v1805_v26 = vor.u32 %v1804_v5, %v1801_v18  ;;  %v1393_v39 = vrot.slane %v5115_v12, 1  ;;  %v4654_v18 = vld [vmem:[%s4737_s23 + $0x98] ss:$0 sps:$4 sm:$0x11]  }
  0x97   : > { %v1786_v48 = vrot.slane %v1784_v34, 2  ;;  %v1795_v17 = vrot.slane %v1793_v37, 2  ;;  %v1391_v34 = vrot.slane %v5092_v52, 1  ;;  %v1826_v52 = vshrl.u32 %v5118_v13, 16 }
  0x98   : > { %v1835_v22 = vshrl.u32 %v5149_v59, 16  ;;  %v1838_v37 = vshll.u32 %v5149_v59, 16  ;;  %v1844_v59 = vshrl.u32 %v5154_v38, 16 }
  0x99   : > { %v1787_v20 = vor.u32 %v1786_v48, %v1783_v46  ;;  %v1796_v30 = vor.u32 %v1795_v17, %v1792_v9  ;;  %v1822_v46 = vrot.slane %v1820_v32, 2  ;;  %v1392_v48 = vsel %vm920_vm2, %v1389_v14, %v1391_v34 }
  0x9a   : > { %v1837_v9 = vrot.slane %v1835_v22, 1  ;;  %v1840_v17 = vrot.slane %v1838_v37, 2 }
  0x9b   : > { %4384 = vmatmul.mubr.msk.bf16.gmra.mxu1 %vm462_vm1, %v1380_v0 }
  0x9c   : > { %4418 = vmatmul.mubr.msk.bf16.gmra.mxu0 %vm462_vm1, %v1743_v8  ;;  %4387 = vmatprep.mubr.msk.bf16.mxu1 %vm462_vm1, %v1382_v21  ;;  %v1778_v8 = vor.u32 %v1777_v61, %v1774_v56  ;;  %v1388_v21 = vsel %vm920_vm2, %v1385_v7, %v1387_v55  ;;  %v1797_v7 = vsel %vm1681_vm4, %v1787_v20, %v1796_v30  ;;  %v1813_v56 = vrot.slane %v1811_v35, 2 }
  0x9d   : > { %4421 = vmatprep.mubr.msk.bf16.mxu0 %vm462_vm1, %v1752_v11  ;;  %v1806_v61 = vsel %vm1681_vm4, %v1796_v30, %v1805_v26  ;;  %v1828_v55 = vrot.slane %v1826_v52, 1  ;;  %v1399_v30 = vrot.slane %v4654_v18, 1  ;;  %v5333_v52 = vld [vmem:[%s4737_s23 + $0x40] sm:$0xff]  }
  0x9e   : > { %v1779_v11 = vsel %vm1681_vm4, %v1769_v31, %v1778_v8  ;;  %v1788_v0 = vsel %vm1681_vm4, %v1778_v8, %v1787_v20  ;;  %v1817_v31 = vshrl.u32 %v5115_v12, 16  ;;  %v1829_v12 = vshll.u32 %v5118_v13, 16 }
  0x9f   : > { %v1395_v20 = vrot.slane %v5118_v13, 1 }
  0xa0   : > { %v1831_v14 = vrot.slane %v1829_v12, 2 }
  0xa1   : > { %v1398_v5 = vsel %vm920_vm2, %v1395_v20, %v1397_v40 }
  0xa2   : > { %v1832_v13 = vor.u32 %v1831_v14, %v1828_v55  ;;  %v5359_v55 = vld [vmem:[%s4737_s23 + $0x50] sm:$0xff]  }
  0xa3   : > { %4388 = vmatmul.mubr.msk.bf16.gmra.mxu1 %vm462_vm1, %v1384_v51  ;;  %v1394_v51 = vsel %vm920_vm2, %v1391_v34, %v1393_v39 }
  0xa4   : > { %4422 = vmatmul.mubr.msk.bf16.gmra.mxu0 %vm462_vm1, %v1761_v41  ;;  %4391 = vmatprep.mubr.msk.bf16.mxu1 %vm462_vm1, %v1386_v60  ;;  %v1810_v41 = vrot.slane %v1808_v25, 1  ;;  %v2443_v25 = vld [vmem:[%s4737_s23 + $0x10] sm:$0xc] }
  0xa5   : > { %4425 = vmatprep.mubr.msk.bf16.mxu0 %vm462_vm1, %v1770_v43  ;;  %v1819_v43 = vrot.slane %v1817_v31, 1  ;;  %v5290_v34 = vcombine.low %v2443_v25, %v5199_v58 }
  0xa6   : > { %v1814_v60 = vor.u32 %v1813_v56, %v1810_v41  ;;  %v2577_v41 = vrot.slane %v5204_v53, 2 }
  0xa7   : > { %v1823_v8 = vor.u32 %v1822_v46, %v1819_v43  ;;  %v2579_v43 = vrot.slane %v5209_v19, 2 }
  0xa8   : > { %v1815_v27 = vsel %vm1681_vm4, %v1805_v26, %v1814_v60  ;;  %v1846_v26 = vrot.slane %v1844_v59, 1 }
  0xa9   : > { %v1833_v35 = vsel %vm1681_vm4, %v1823_v8, %v1832_v13 }
  0xab   : > { %4392 = vmatmul.mubr.msk.bf16.gmra.mxu1 %vm462_vm1, %v1388_v21  ;;  %v1847_v21 = vshll.u32 %v5154_v38, 16 }
  0xac   : > { %4426 = vmatmul.mubr.msk.bf16.gmra.mxu0 %vm462_vm1, %v1779_v11  ;;  %4395 = vmatprep.mubr.msk.bf16.mxu1 %vm462_vm1, %v1390_v23  ;;  %v1824_v11 = vsel %vm1681_vm4, %v1814_v60, %v1823_v8  ;;  %v1841_v23 = vor.u32 %v1840_v17, %v1837_v9  ;;  %v5320_v60 = vld [vmem:[%s4737_s23 + $0x38] sm:$0xff]  }
  0xad   : > { %4429 = vmatprep.mubr.msk.bf16.mxu0 %vm462_vm1, %v1788_v0  ;;  %v1396_v0 = vsel %vm920_vm2, %v1393_v39, %v1395_v20  ;;  %v1849_v31 = vrot.slane %v1847_v21, 2  ;;  %v1400_v39 = vsel %vm920_vm2, %v1397_v40, %v1399_v30  ;;  %v5367_v9 = vld [vmem:[%s4737_s23 + $0x58] sm:$0xff]   ;;  %v5391_v30 = vld [vmem:[%s4737_s23 + $0x60] sm:$0xff]  }
  0xae   : > { %v1842_v32 = vsel %vm1681_vm4, %v1832_v13, %v1841_v23  ;;  %v2593_v13 = vrot.slane %v5367_v9, 2 }
  0xaf   : > { %v1850_v38 = vor.u32 %v1849_v31, %v1846_v26  ;;  %v5399_v26 = vld [vmem:[%s4737_s23 + $0x68] sm:$0xff]  }
  0xb1   : > { %v1851_v58 = vsel %vm1681_vm4, %v1841_v23, %v1850_v38 }
  0xb3   : > { %4396 = vmatmul.mubr.msk.bf16.gmra.mxu1 %vm462_vm1, %v1392_v48  ;;  %v5316_v48 = vld [vmem:[%s4737_s23 + $0x30] sm:$0xff]  }
  0xb4   : > { %4430 = vmatmul.mubr.msk.bf16.gmra.mxu0 %vm462_vm1, %v1797_v7  ;;  %4399 = vmatprep.mubr.msk.bf16.mxu1 %vm462_vm1, %v1394_v51  ;;  %v2576_v7 = vrot.slane %v5290_v34, 2 }
  0xb5   : > { %4433 = vmatprep.mubr.msk.bf16.mxu0 %vm462_vm1, %v1806_v61  ;;  %v5303_v61 = vld [vmem:[%s4737_s23 + $0x28] sm:$0xff]  }
  0xb6   : > { %v2578_v56 = vsel %vm2132_vm3, %v2576_v7, %v2577_v41  ;;  %v2581_v46 = vrot.slane %v5303_v61, 2  ;;  %v2597_v7 = vrot.slane %v5399_v26, 2 }
  0xb8   : > { %v2582_v51 = vsel %vm2132_vm3, %v2579_v43, %v2581_v46 }
  0xbb   : > { %4400 = vmatmul.mubr.msk.bf16.gmra.mxu1 %vm462_vm1, %v1396_v0  ;;  %v2591_v0 = vrot.slane %v5359_v55, 2 }
  0xbc   : > { %4434 = vmatmul.mubr.msk.bf16.gmra.mxu0 %vm462_vm1, %v1815_v27  ;;  %4403 = vmatprep.mubr.msk.bf16.mxu1 %vm462_vm1, %v1398_v5 }
  0xbd   : > { %4437 = vmatprep.mubr.msk.bf16.mxu0 %vm462_vm1, %v1824_v11 }
  0xc3   : > { %4404 = vmatmul.mubr.msk.bf16.gmra.mxu1 %vm462_vm1, %v1400_v39 }
  0xc4   : > { %4438 = vmatmul.mubr.msk.bf16.gmra.mxu0 %vm462_vm1, %v1833_v35  ;;  %4447 = vmatprep.mubr.msk.bf16.mxu1 %vm462_vm1, %v4974_v50  ;;  %v2580_v50 = vsel %vm2132_vm3, %v2577_v41, %v2579_v43  ;;  %v5423_v43 = vld [vmem:[%s4737_s23 + $0x70] sm:$0xff]  }
  0xc5   : > { %4441 = vmatprep.mubr.msk.bf16.mxu0 %vm462_vm1, %v1842_v32  ;;  %v2595_v32 = vrot.slane %v5391_v30, 2 }
  0xcb   : > { %4448 = vmatmul.mubr.msk.bf16.vlgmr.msra.gmra.mxu1 %vm462_vm1, %v4983_v54  ;;  %v2583_v54 = vrot.slane %v5316_v48, 2 }
  0xcc   : > { %4442 = vmatmul.mubr.msk.bf16.gmra.mxu0 %vm462_vm1, %v1851_v58  ;;  %4522 = vmatpush3.bf16.msra.mxu1 %v5130_v45 }
  0xcd   : > { %4485 = vmatprep.mubr.msk.bf16.mxu0 %vm462_vm1, %v2578_v56  ;;  %4451 = vmatprep.mubr.msk.bf16.mxu1 %vm462_vm1, %v4992_v57  ;;  %v2585_v57 = vrot.slane %v5320_v60, 2  ;;  %v2584_v45 = vsel %vm2132_vm3, %v2581_v46, %v2583_v54  ;;  %v2596_v56 = vsel %vm2132_vm3, %v2593_v13, %v2595_v32 }
  0xcf   : > { %v2586_v12 = vsel %vm2132_vm3, %v2583_v54, %v2585_v57 }
  0xd3   : > { %4452 = vmatmul.mubr.msk.bf16.gmra.mxu1 %vm462_vm1, %v5002_v62  ;;  %v2587_v62 = vrot.slane %v5333_v52, 2 }
  0xd4   : > { %4486 = vmatmul.mubr.msk.bf16.vlgmr.msra.gmra.mxu0 %vm462_vm1, %v2580_v50  ;;  %4455 = vmatprep.mubr.msk.bf16.mxu1 %vm462_vm1, %v5010_v1 }
  0xd5   : > { %4560 = vmatpush3.bf16.msra.mxu0 %v5160_v49  ;;  %4489 = vmatprep.mubr.msk.bf16.mxu0 %vm462_vm1, %v2582_v51  ;;  %v5337_v49 = vld [vmem:[%s4737_s23 + $0x48] sm:$0xff]   ;;  %v2588_v27 = vsel %vm2132_vm3, %v2585_v57, %v2587_v62  ;;  %v5431_v51 = vld [vmem:[%s4737_s23 + $0x78] sm:$0xff]   ;;  %v2599_v57 = vrot.slane %v5423_v43, 2 }
  0xd6   : > { %v2589_v37 = vrot.slane %v5337_v49, 2 }
  0xd8   : > { %v2592_v23 = vsel %vm2132_vm3, %v2589_v37, %v2591_v0 }
  0xdb   : > { %v5344_v22 = vpop.f32.mrf.mxu1  ;;  %4456 = vmatmul.mubr.msk.bf16.gmra.mxu1 %vm462_vm1, %v5014_v2  ;;  %v2590_v2 = vsel %vm2132_vm3, %v2587_v62, %v2589_v37  ;;  %v2601_v62 = vrot.slane %v5431_v51, 2 }
  0xdc   : > { %v5339_v8 = vpop.f32.mrf.mxu0  ;;  %4490 = vmatmul.mubr.msk.bf16.gmra.mxu0 %vm462_vm1, %v2584_v45  ;;  %4459 = vmatprep.mubr.msk.bf16.mxu1 %vm462_vm1, %v5020_v10 }
  0xdd   : > { %4493 = vmatprep.mubr.msk.bf16.mxu0 %vm462_vm1, %v2586_v12  ;;  %v5353_v20 = vpop.f32.mrf.mxu1 }
  0xde   : > { %v5348_v1 = vpop.f32.mrf.mxu0 }
  0xdf   : > { %v5361_v14 = vpop.f32.mrf.mxu1 }
  0xe0   : > { %v5355_v40 = vpop.f32.mrf.mxu0 }
  0xe1   : > { %v5369_v17 = vpop.f32.mrf.mxu1 }
  0xe2   : > { %v5363_v11 = vpop.f32.mrf.mxu0 }
  0xe3   : > { %v5376_v18 = vpop.f32.mrf.mxu1  ;;  %4460 = vmatmul.mubr.msk.bf16.gmra.mxu1 %vm462_vm1, %v5025_v16  ;;  %v2594_v16 = vsel %vm2132_vm3, %v2591_v0, %v2593_v13  ;;  %v5455_v0 = vld [vmem:[%s4737_s23 + $0x80] sm:$0xff]  }
  0xe4   : > { %v5371_v10 = vpop.f32.mrf.mxu0  ;;  %4494 = vmatmul.mubr.msk.bf16.gmra.mxu0 %vm462_vm1, %v2588_v27  ;;  %4463 = vmatprep.mubr.msk.bf16.mxu1 %vm462_vm1, %v5044_v24  ;;  %6104 = vst [vmem:[#allocation10_spill] sm:$0xff] %v5455_v0 }
  0xe5   : > { %4497 = vmatprep.mubr.msk.bf16.mxu0 %vm462_vm1, %v2590_v2  ;;  %v5385_v59 = vpop.f32.mrf.mxu1  ;;  %v2600_v2 = vsel %vm2132_vm3, %v2597_v7, %v2599_v57 }
  0xe6   : > { %v5380_v5 = vpop.f32.mrf.mxu0 }
  0xe7   : > { %v5393_v25 = vpop.f32.mrf.mxu1 }
  0xe8   : > { %v5387_v21 = vpop.f32.mrf.mxu0  ;;  %6096 = vst [vmem:[#allocation2_spill] sm:$0xff] %v5393_v25 }
  0xe9   : > { %v5401_v31 = vpop.f32.mrf.mxu1 }
  0xea   : > { %v5395_v35 = vpop.f32.mrf.mxu0  ;;  %6097 = vst [vmem:[#allocation3_spill] sm:$0xff] %v5401_v31 }
  0xeb   : > { %v5408_v39 = vpop.f32.mrf.mxu1  ;;  %4464 = vmatmul.mubr.msk.bf16.gmra.mxu1 %vm462_vm1, %v5049_v29  ;;  %v2598_v29 = vsel %vm2132_vm3, %v2595_v32, %v2597_v7 }
  0xec   : > { %v5403_v24 = vpop.f32.mrf.mxu0  ;;  %4498 = vmatmul.mubr.msk.bf16.gmra.mxu0 %vm462_vm1, %v2592_v23  ;;  %6098 = vst [vmem:[#allocation4_spill] sm:$0xff] %v5408_v39  ;;  %4467 = vmatprep.mubr.msk.bf16.mxu1 %vm462_vm1, %v5070_v42 }
  0xed   : > { %4501 = vmatprep.mubr.msk.bf16.mxu0 %vm462_vm1, %v2594_v16  ;;  %v5417_v41 = vpop.f32.mrf.mxu1  ;;  %v5463_v16 = vld [vmem:[%s4737_s23 + $0x88] sm:$0xff]  }
  0xee   : > { %v5412_v38 = vpop.f32.mrf.mxu0  ;;  %6099 = vst [vmem:[#allocation5_spill] sm:$0xff] %v5417_v41  ;;  %6106 = vst [vmem:[#allocation12_spill] sm:$0xff] %v5463_v16  ;;  %v5495_v41 = vld [vmem:[%s4737_s23 + $0x98] sm:$0xff]  }
  0xef   : > { %v5425_v46 = vpop.f32.mrf.mxu1  ;;  %6108 = vst [vmem:[#allocation14_spill] sm:$0xff] %v5495_v41 }
  0xf0   : > { %v5419_v58 = vpop.f32.mrf.mxu0  ;;  %6100 = vst [vmem:[#allocation6_spill] sm:$0xff] %v5425_v46  ;;  %v5489_v46 = vld [vmem:[%s4737_s23 + $0x90] sm:$0xff]  }
  0xf1   : > { %v5433_v54 = vpop.f32.mrf.mxu1 }
  0xf2   : > { %v5427_v50 = vpop.f32.mrf.mxu0  ;;  %6101 = vst [vmem:[#allocation7_spill] sm:$0xff] %v5433_v54 }
  0xf3   : > { %v5440_v45 = vpop.f32.mrf.mxu1  ;;  %4468 = vmatmul.mubr.msk.bf16.gmra.mxu1 %vm462_vm1, %v5075_v47  ;;  %v2602_v47 = vsel %vm2132_vm3, %v2599_v57, %v2601_v62  ;;  %v2605_v57 = vrot.slane %v5463_v16, 2 }
  0xf4   : > { %v5435_v42 = vpop.f32.mrf.mxu0  ;;  %4502 = vmatmul.mubr.msk.bf16.gmra.mxu0 %vm462_vm1, %v2596_v56  ;;  %6102 = vst [vmem:[#allocation8_spill] sm:$0xff] %v5440_v45  ;;  %4471 = vmatprep.mubr.msk.bf16.mxu1 %vm462_vm1, %v5099_v63  ;;  %v2603_v63 = vrot.slane %v5455_v0, 2 }
  0xf5   : > { %4505 = vmatprep.mubr.msk.bf16.mxu0 %vm462_vm1, %v2598_v29  ;;  %v5449_v37 = vpop.f32.mrf.mxu1 }
  0xf6   : > { %v5444_v12 = vpop.f32.mrf.mxu0  ;;  %6103 = vst [vmem:[#allocation9_spill] sm:$0xff] %v5449_v37  ;;  %v2903_v37 = vshrl.u32 %v5204_v53, 16  ;;  %v2604_v54 = vsel %vm2132_vm3, %v2601_v62, %v2603_v63 }
  0xf7   : > { %v5457_v13 = vpop.f32.mrf.mxu1 }
  0xf8   : > { %v5451_v27 = vpop.f32.mrf.mxu0  ;;  %6105 = vst [vmem:[#allocation11_spill] sm:$0xff] %v5457_v13  ;;  %v2898_v13 = vshll.u32 %v5290_v34, 16 }
  0xf9   : > { %v5465_v32 = vpop.f32.mrf.mxu1 }
  0xfa   : > { %v5459_v23 = vpop.f32.mrf.mxu0  ;;  %6107 = vst [vmem:[#allocation13_spill] sm:$0xff] %v5465_v32  ;;  %v2900_v16 = vrot.slane %v2898_v13, 3 }
  0xfb   : > { %v4297_v7 = vpop.f32.mrf.mxu1  ;;  %4472 = vmatmul.mubr.msk.bf16.gmra.mxu1 %vm462_vm1, %v5105_v3  ;;  %v2906_v3 = vshll.u32 %v5204_v53, 16 }
  0xfc   : > { %v5467_v56 = vpop.f32.mrf.mxu0  ;;  %4506 = vmatmul.mubr.msk.bf16.gmra.mxu0 %vm462_vm1, %v2600_v2  ;;  %v779_v6 = vadd.f32 %v4297_v7, %v5339_v8  ;;  %4475 = vmatprep.mubr.msk.bf16.mxu1 %vm462_vm1, %v5133_v33  ;;  %v2606_v33 = vsel %vm2132_vm3, %v2603_v63, %v2605_v57  ;;  %v2607_v63 = vrot.slane %v5489_v46, 2 }
  0xfd   : > { %4509 = vmatprep.mubr.msk.bf16.mxu0 %vm462_vm1, %v2602_v47  ;;  %v770_v2 = vpop.f32.mrf.mxu1  ;;  %v2895_v47 = vshrl.u32 %v5290_v34, 16 }
  0xfe   : > { %v5474_v29 = vpop.f32.mrf.mxu0  ;;  %v771_v45 = vadd.f32 %v770_v2, %v5348_v1  ;;  %v2905_v1 = vrot.slane %v2903_v37, 2  ;;  %v2908_v2 = vrot.slane %v2906_v3, 3 }
  0xff   : > { %v4298_v8 = vpop.f32.mrf.mxu1  ;;  %v2897_v53 = vrot.slane %v2895_v47, 2 }
 0x100   : > { %v5480_v32 = vpop.f32.mrf.mxu0  ;;  %v782_v39 = vadd.f32 %v4298_v8, %v5355_v40  ;;  %v2609_v8 = vrot.slane %v5495_v41, 2  ;;  %v2909_v3 = vor.u32 %v2908_v2, %v2905_v1 }
 0x101   : > { %v773_v34 = vpop.f32.mrf.mxu1  ;;  %v2901_v47 = vor.u32 %v2900_v16, %v2897_v53 }
 0x102   : > { %v5491_v7 = vpop.f32.mrf.mxu0  ;;  %v774_v62 = vadd.f32 %v773_v34, %v5363_v11  ;;  %v2915_v11 = vshll.u32 %v5209_v19, 16 }
 0x103   : > { %v4301_v25 = vpop.f32.mrf.mxu1  ;;  %4476 = vmatmul.mubr.msk.bf16.gmra.mxu1 %vm462_vm1, %v5139_v4  ;;  %v2921_v4 = vshrl.u32 %v5303_v61, 16 }
 0x104   : > { %v4335_v31 = vpop.f32.mrf.mxu0  ;;  %4510 = vmatmul.mubr.msk.bf16.gmra.mxu0 %vm462_vm1, %v2604_v54  ;;  %v795_v54 = vadd.f32 %v4301_v25, %v5371_v10  ;;  %4479 = vmatprep.mubr.msk.bf16.mxu1 %vm462_vm1, %v5168_v15  ;;  %v2608_v25 = vsel %vm2132_vm3, %v2605_v57, %v2607_v63  ;;  %v4677_v15 = vld [vmem:[%s4737_s23 + $0xa0] ss:$0 sps:$4 sm:$0x33]   ;;  %v2917_v1 = vrot.slane %v2915_v11, 3  ;;  %v2933_v11 = vshll.u32 %v5316_v48, 16 }
 0x105   : > { %v5500_v0 = vadd.f32 %v4335_v31, %v779_v6  ;;  %4513 = vmatprep.mubr.msk.bf16.mxu0 %vm462_vm1, %v2606_v33  ;;  %v2912_v6 = vshrl.u32 %v5209_v19, 16  ;;  %v786_v31 = vpop.f32.mrf.mxu1  ;;  %v2924_v33 = vshll.u32 %v5303_v61, 16 }
 0x106   : > { %v1052_v40 = vpop.f32.mrf.mxu0  ;;  %v787_v34 = vadd.f32 %v786_v31, %v5380_v5  ;;  %v2910_v5 = vsel %vm2893_vm6, %v2901_v47, %v2909_v3 }
 0x107   : > { %6109 = vst [vmem:[#allocation15_spill] sm:$0xff] %v5500_v0  ;;  %v5508_v37 = vadd.f32 %v1052_v40, %v771_v45  ;;  %v4302_v45 = vpop.f32.mrf.mxu1  ;;  %v2914_v53 = vrot.slane %v2912_v6, 2  ;;  %v2926_v57 = vrot.slane %v2924_v33, 3  ;;  %v2930_v6 = vshrl.u32 %v5316_v48, 16 }
 0x108   : > { %v4336_v13 = vpop.f32.mrf.mxu0  ;;  %v798_v0 = vadd.f32 %v4302_v45, %v5387_v21  ;;  %v2939_v33 = vshrl.u32 %v5320_v60, 16 }
 0x109   : > { %6110 = vst [vmem:[#allocation16_spill] sm:$0xff] %v5508_v37  ;;  %v5517_v10 = vadd.f32 %v4336_v13, %v782_v39  ;;  %v2610_v37 = vsel %vm2132_vm3, %v2607_v63, %v2609_v8  ;;  %v789_v2 = vpop.f32.mrf.mxu1  ;;  %v2923_v39 = vrot.slane %v2921_v4, 2  ;;  %v2611_v63 = vrot.slane %v4677_v15, 2 }
 0x10a   : > { %v1055_v40 = vpop.f32.mrf.mxu0  ;;  %v790_v31 = vadd.f32 %v789_v2, %v5395_v35  ;;  %v2918_v35 = vor.u32 %v2917_v1, %v2914_v53  ;;  %v2935_v2 = vrot.slane %v2933_v11, 3 }
 0x10b   : > { %v5523_v16 = vadd.f32 %v1055_v40, %v774_v62  ;;  %v4305_v21 = vpop.f32.mrf.mxu1  ;;  %4480 = vmatmul.mubr.msk.bf16.gmra.mxu1 %vm462_vm1, %v5175_v28  ;;  %v2612_v45 = vsel %vm2132_vm3, %v2609_v8, %v2611_v63 }
 0x10c   : > { %v4339_v41 = vpop.f32.mrf.mxu0  ;;  %4514 = vmatmul.mubr.msk.bf16.gmra.mxu0 %vm462_vm1, %v2608_v25  ;;  %v811_v47 = vadd.f32 %v4305_v21, %v5403_v24  ;;  %4523 = vmatprep.mubr.msk.bf16.mxu1 %vm462_vm1, %v2910_v5  ;;  %v2942_v25 = vshll.u32 %v5320_v60, 16  ;;  %v2919_v1 = vsel %vm2893_vm6, %v2909_v3, %v2918_v35 }
 0x10d   : > { %v5528_v13 = vadd.f32 %v4339_v41, %v795_v54  ;;  %4517 = vmatprep.mubr.msk.bf16.mxu0 %vm462_vm1, %v2610_v37  ;;  %v802_v41 = vpop.f32.mrf.mxu1  ;;  %v2927_v37 = vor.u32 %v2926_v57, %v2923_v39 }
 0x10e   : > { %v1068_v62 = vpop.f32.mrf.mxu0  ;;  %v803_v28 = vadd.f32 %v802_v41, %v5412_v38  ;;  %v2944_v21 = vrot.slane %v2942_v25, 3 }
 0x10f   : > { %v5536_v4 = vadd.f32 %v1068_v62, %v787_v34  ;;  %v4306_v40 = vpop.f32.mrf.mxu1  ;;  %v2932_v34 = vrot.slane %v2930_v6, 2  ;;  %v2928_v38 = vsel %vm2893_vm6, %v2918_v35, %v2927_v37  ;;  %v3350_v62 = vrot.slane %v5303_v61, 3 }
 0x110   : > { %v4340_v54 = vpop.f32.mrf.mxu0  ;;  %v814_v5 = vadd.f32 %v4306_v40, %v5419_v58  ;;  %v6111_v40 = vrot.slane %v5209_v19, 3 }
 0x111   : > { %v5542_v15 = vadd.f32 %v4340_v54, %v798_v0  ;;  %v805_v39 = vpop.f32.mrf.mxu1  ;;  %v2941_v0 = vrot.slane %v2939_v33, 2  ;;  %v2936_v3 = vor.u32 %v2935_v2, %v2932_v34  ;;  %v2957_v54 = vshrl.u32 %v5337_v49, 16 }
 0x112   : > { %v1071_v24 = vpop.f32.mrf.mxu0  ;;  %v806_v8 = vadd.f32 %v805_v39, %v5427_v50  ;;  %v2948_v50 = vshrl.u32 %v5333_v52, 16  ;;  %v2960_v33 = vshll.u32 %v5337_v49, 16 }
 0x113   : > { %v5546_v53 = vadd.f32 %v1071_v24, %v790_v31  ;;  %v4309_v58 = vpop.f32.mrf.mxu1  ;;  %4524 = vmatmul.mubr.msk.bf16.vlgmr.msra.gmra.mxu1 %vm462_vm1, %v2919_v1  ;;  %v3351_v24 = vsel %vm3344_vm5, %v6111_v40, %v3350_v62 }
 0x114   : > { %v4343_v57 = vpop.f32.mrf.mxu0  ;;  %4518 = vmatmul.mubr.msk.bf16.gmra.mxu0 %vm462_vm1, %v2612_v45  ;;  %v827_v6 = vadd.f32 %v4309_v58, %v5435_v42  ;;  %4527 = vmatprep.mubr.msk.bf16.mxu1 %vm462_vm1, %v2928_v38  ;;  %v2937_v45 = vsel %vm2893_vm6, %v2927_v37, %v2936_v3  ;;  %v2950_v1 = vrot.slane %v2948_v50, 2  ;;  %v3354_v58 = vrot.slane %v5320_v60, 3 }
 0x115   : > { %v5552_v63 = vadd.f32 %v4343_v57, %v811_v47  ;;  %4561 = vmatprep.mubr.msk.bf16.mxu0 %vm462_vm1, %v5220_v36  ;;  %v2951_v47 = vshll.u32 %v5333_v52, 16  ;;  %v818_v35 = vpop.f32.mrf.mxu1  ;;  %v2945_v36 = vor.u32 %v2944_v21, %v2941_v0  ;;  %v2962_v0 = vrot.slane %v2960_v33, 3 }
 0x116   : > { %v1084_v31 = vpop.f32.mrf.mxu0  ;;  %v819_v25 = vadd.f32 %v818_v35, %v5444_v12  ;;  %v2975_v35 = vshrl.u32 %v5367_v9, 16 }
 0x117   : > { %v5559_v11 = vadd.f32 %v1084_v31, %v803_v28  ;;  %v4310_v42 = vpop.f32.mrf.mxu1  ;;  %v2953_v39 = vrot.slane %v2951_v47, 3  ;;  %v2946_v12 = vsel %vm2893_vm6, %v2936_v3, %v2945_v36  ;;  %v2969_v31 = vshll.u32 %v5359_v55, 16 }
 0x118   : > { %v4344_v41 = vpop.f32.mrf.mxu0  ;;  %v830_v34 = vadd.f32 %v4310_v42, %v5451_v27  ;;  %v3352_v27 = vrot.slane %v5316_v48, 3 }
 0x119   : > { %v5567_v61 = vadd.f32 %v4344_v41, %v814_v5  ;;  %v821_v57 = vpop.f32.mrf.mxu1  ;;  %v2959_v5 = vrot.slane %v2957_v54, 2  ;;  %v2978_v41 = vshll.u32 %v5367_v9, 16 }
 0x11a   : > { %v1087_v28 = vpop.f32.mrf.mxu0  ;;  %v822_v37 = vadd.f32 %v821_v57, %v5459_v23  ;;  %v2954_v23 = vor.u32 %v2953_v39, %v2950_v1  ;;  %v3353_v33 = vsel %vm3344_vm5, %v3350_v62, %v3352_v27 }
 0x11b   : > { %v5574_v2 = vadd.f32 %v1087_v28, %v806_v8  ;;  %v4313_v21 = vpop.f32.mrf.mxu1  ;;  %4528 = vmatmul.mubr.msk.bf16.gmra.mxu1 %vm462_vm1, %v2937_v45  ;;  %v2963_v48 = vor.u32 %v2962_v0, %v2959_v5  ;;  %v2971_v45 = vrot.slane %v2969_v31, 3  ;;  %v2980_v62 = vrot.slane %v2978_v41, 3 }
 0x11c   : > { %v4347_v38 = vpop.f32.mrf.mxu0  ;;  %4562 = vmatmul.mubr.msk.bf16.vlgmr.msra.gmra.mxu0 %vm462_vm1, %v5228_v44  ;;  %v2966_v44 = vshrl.u32 %v5359_v55, 16  ;;  %v843_v3 = vadd.f32 %v4313_v21, %v5467_v56  ;;  %4531 = vmatprep.mubr.msk.bf16.mxu1 %vm462_vm1, %v2946_v12  ;;  %v2955_v1 = vsel %vm2893_vm6, %v2945_v36, %v2954_v23  ;;  %v2984_v21 = vshrl.u32 %v5391_v30, 16 }
 0x11d   : > { %v5580_v19 = vadd.f32 %v4347_v38, %v827_v6  ;;  %4565 = vmatprep.mubr.msk.bf16.mxu0 %vm462_vm1, %v3351_v24  ;;  %v834_v6 = vpop.f32.mrf.mxu1 }
 0x11e   : > { %v1100_v8 = vpop.f32.mrf.mxu0  ;;  %v835_v60 = vadd.f32 %v834_v6, %v5474_v29  ;;  %v2968_v28 = vrot.slane %v2966_v44, 2  ;;  %v2964_v29 = vsel %vm2893_vm6, %v2954_v23, %v2963_v48 }
 0x11f   : > { %v5589_v50 = vadd.f32 %v1100_v8, %v819_v25  ;;  %v4314_v42 = vpop.f32.mrf.mxu1  ;;  %v3355_v25 = vsel %vm3344_vm5, %v3352_v27, %v3354_v58 }
 0x120   : > { %v4348_v47 = vpop.f32.mrf.mxu0  ;;  %v846_v40 = vadd.f32 %v4314_v42, %v5480_v32  ;;  %v3356_v32 = vrot.slane %v5333_v52, 3  ;;  %v2972_v0 = vor.u32 %v2971_v45, %v2968_v28  ;;  %v2993_v52 = vshrl.u32 %v5399_v26, 16 }
 0x121   : > { %v5595_v54 = vadd.f32 %v4348_v47, %v830_v34  ;;  %v837_v39 = vpop.f32.mrf.mxu1  ;;  %v2977_v34 = vrot.slane %v2975_v35, 2  ;;  %v2986_v42 = vrot.slane %v2984_v21, 2  ;;  %v3014_v21 = vshll.u32 %v5431_v51, 16 }
 0x122   : > { %v1103_v56 = vpop.f32.mrf.mxu0  ;;  %v838_v38 = vadd.f32 %v837_v39, %v5491_v7  ;;  %v2987_v7 = vshll.u32 %v5391_v30, 16  ;;  %v3357_v6 = vsel %vm3344_vm5, %v3354_v58, %v3356_v32  ;;  %v2973_v35 = vsel %vm2893_vm6, %v2963_v48, %v2972_v0 }
 0x123   : > { %v5600_v24 = vadd.f32 %v1103_v56, %v822_v37  ;;  %v4317_v5 = vpop.f32.mrf.mxu1  ;;  %4532 = vmatmul.mubr.msk.bf16.gmra.mxu1 %vm462_vm1, %v2955_v1  ;;  %v3358_v37 = vrot.slane %v5337_v49, 3  ;;  %v2981_v31 = vor.u32 %v2980_v62, %v2977_v34  ;;  %v3002_v34 = vshrl.u32 %v5423_v43, 16 }
 0x124   : > { %v4351_v57 = vpop.f32.mrf.mxu0  ;;  %4566 = vmatmul.mubr.msk.bf16.gmra.mxu0 %vm462_vm1, %v3353_v33  ;;  %4535 = vmatprep.mubr.msk.bf16.mxu1 %vm462_vm1, %v2964_v29  ;;  %v2989_v56 = vrot.slane %v2987_v7, 3  ;;  %v3362_v29 = vrot.slane %v5367_v9, 3  ;;  %v3005_v62 = vshll.u32 %v5423_v43, 16 }
 0x125   : > { %v5606_v12 = vadd.f32 %v4351_v57, %v843_v3  ;;  %4569 = vmatprep.mubr.msk.bf16.mxu0 %vm462_vm1, %v3355_v25  ;;  %v850_v8 = vpop.f32.mrf.mxu1  ;;  %v2996_v3 = vshll.u32 %v5399_v26, 16  ;;  %v3359_v41 = vsel %vm3344_vm5, %v3356_v32, %v3358_v37  ;;  %v2982_v45 = vsel %vm2893_vm6, %v2972_v0, %v2981_v31 }
 0x126   : > { %v1116_v36 = vpop.f32.mrf.mxu0  ;;  %v851_v1 = vadd.f32 %v850_v8, %v5353_v20  ;;  %v2990_v20 = vor.u32 %v2989_v56, %v2986_v42  ;;  %v3011_v0 = vshrl.u32 %v5431_v51, 16 }
 0x127   : > { %v5612_v27 = vadd.f32 %v1116_v36, %v835_v60  ;;  %v4318_v49 = vpop.f32.mrf.mxu1  ;;  %v859_v60 = vadd.f32 %v4317_v5, %v5344_v22  ;;  %v2998_v58 = vrot.slane %v2996_v3, 3  ;;  %v3360_v22 = vrot.slane %v5359_v55, 3 }
 0x128   : > { %v4352_v44 = vpop.f32.mrf.mxu0  ;;  %v3004_v3 = vrot.slane %v3002_v34, 2  ;;  %v3013_v42 = vrot.slane %v3011_v0, 2 }
 0x129   : > { %v5619_v23 = vadd.f32 %v4352_v44, %v846_v40  ;;  %v853_v25 = vpop.f32.mrf.mxu1  ;;  %v2995_v40 = vrot.slane %v2993_v52, 2  ;;  %v3361_v8 = vsel %vm3344_vm5, %v3358_v37, %v3360_v22  ;;  %v3363_v52 = vsel %vm3344_vm5, %v3360_v22, %v3362_v29 }
 0x12a   : > { %v1119_v47 = vpop.f32.mrf.mxu0  ;;  %v854_v9 = vadd.f32 %v853_v25, %v5369_v17  ;;  %v3016_v37 = vrot.slane %v3014_v21, 3 }
 0x12b   : > { %v5625_v33 = vadd.f32 %v1119_v47, %v838_v38  ;;  %v4321_v48 = vpop.f32.mrf.mxu1  ;;  %4536 = vmatmul.mubr.msk.bf16.gmra.mxu1 %vm462_vm1, %v2973_v35  ;;  %v862_v38 = vadd.f32 %v4318_v49, %v5361_v14  ;;  %v2999_v55 = vor.u32 %v2998_v58, %v2995_v40  ;;  %v2991_v35 = vsel %vm2893_vm6, %v2981_v31, %v2990_v20  ;;  %v6112_v58 = vld [vmem:[#allocation2_spill] sm:$0xff] }
 0x12c   : > { %v4355_v28 = vpop.f32.mrf.mxu0  ;;  %4570 = vmatmul.mubr.msk.bf16.gmra.mxu0 %vm462_vm1, %v3357_v6  ;;  %4539 = vmatprep.mubr.msk.bf16.mxu1 %vm462_vm1, %v2982_v45  ;;  %v3007_v6 = vrot.slane %v3005_v62, 3  ;;  %v875_v49 = vadd.f32 %v4321_v48, %v5376_v18  ;;  %v3364_v18 = vrot.slane %v5391_v30, 3  ;;  %v3366_v40 = vrot.slane %v5399_v26, 3 }
 0x12d   : > { %v5630_v39 = vadd.f32 %v4355_v28, %v859_v60  ;;  %4573 = vmatprep.mubr.msk.bf16.mxu0 %vm462_vm1, %v3359_v41  ;;  %v866_v5 = vpop.f32.mrf.mxu1  ;;  %v3000_v17 = vsel %vm2893_vm6, %v2990_v20, %v2999_v55  ;;  %v3017_v30 = vor.u32 %v3016_v37, %v3013_v42  ;;  %v6117_v37 = vld [vmem:[#allocation5_spill] sm:$0xff] }
 0x12e   : > { %v1132_v57 = vpop.f32.mrf.mxu0  ;;  %v867_v56 = vadd.f32 %v866_v5, %v5385_v59  ;;  %v3008_v45 = vor.u32 %v3007_v6, %v3004_v3  ;;  %v6113_v59 = vld [vmem:[#allocation10_spill] sm:$0xff]  ;;  %v3365_v21 = vsel %vm3344_vm5, %v3362_v29, %v3364_v18 }
 0x12f   : > { %v5639_v32 = vadd.f32 %v1132_v57, %v851_v1  ;;  %v4322_v44 = vpop.f32.mrf.mxu1  ;;  %v3020_v48 = vshrl.u32 %v6113_v59, 16  ;;  %v3023_v57 = vshll.u32 %v6113_v59, 16 }
 0x130   : > { %v4356_v36 = vpop.f32.mrf.mxu0  ;;  %v878_v1 = vadd.f32 %v4322_v44, %v6112_v58  ;;  %v3009_v44 = vsel %vm2893_vm6, %v2999_v55, %v3008_v45  ;;  %v3368_v55 = vrot.slane %v5423_v43, 3  ;;  %v3370_v58 = vrot.slane %v5431_v51, 3  ;;  %v6120_v51 = vld [vmem:[#allocation7_spill] sm:$0xff] }
 0x131   : > { %v5645_v7 = vadd.f32 %v4356_v36, %v862_v38  ;;  %v869_v41 = vpop.f32.mrf.mxu1  ;;  %v6114_v38 = vld [vmem:[#allocation12_spill] sm:$0xff]  ;;  %v6115_v36 = vld [vmem:[#allocation3_spill] sm:$0xff] }
 0x132   : > { %v1135_v14 = vpop.f32.mrf.mxu0  ;;  %v3029_v20 = vshrl.u32 %v6114_v38, 16  ;;  %v3032_v5 = vshll.u32 %v6114_v38, 16  ;;  %v870_v0 = vadd.f32 %v869_v41, %v6115_v36  ;;  %v3018_v41 = vsel %vm2893_vm6, %v3008_v45, %v3017_v30  ;;  %v6119_v36 = vld [vmem:[#allocation14_spill] sm:$0xff] }
 0x133   : > { %v5650_v47 = vadd.f32 %v1135_v14, %v854_v9  ;;  %v4325_v28 = vpop.f32.mrf.mxu1  ;;  %4540 = vmatmul.mubr.msk.bf16.gmra.mxu1 %vm462_vm1, %v2991_v35  ;;  %v3367_v14 = vsel %vm3344_vm5, %v3364_v18, %v3366_v40  ;;  %v3025_v35 = vrot.slane %v3023_v57, 3  ;;  %v3041_v45 = vshll.u32 %v5489_v46, 16 }
 0x134   : > { %v4359_v60 = vpop.f32.mrf.mxu0  ;;  %4574 = vmatmul.mubr.msk.bf16.gmra.mxu0 %vm462_vm1, %v3361_v8  ;;  %4543 = vmatprep.mubr.msk.bf16.mxu1 %vm462_vm1, %v3000_v17  ;;  %v3031_v42 = vrot.slane %v3029_v20, 2  ;;  %v3034_v29 = vrot.slane %v3032_v5, 3 }
 0x135   : > { %v5656_v25 = vadd.f32 %v4359_v60, %v875_v49  ;;  %4577 = vmatprep.mubr.msk.bf16.mxu0 %vm462_vm1, %v3363_v52  ;;  %v882_v34 = vpop.f32.mrf.mxu1  ;;  %v6116_v52 = vld [vmem:[#allocation4_spill] sm:$0xff]  ;;  %v3022_v49 = vrot.slane %v3020_v48, 2  ;;  %v6118_v48 = vld [vmem:[#allocation6_spill] sm:$0xff] }
 0x136   : > { %v1148_v31 = vpop.f32.mrf.mxu0  ;;  %v891_v3 = vadd.f32 %v4325_v28, %v6116_v52  ;;  %v3035_v5 = vor.u32 %v3034_v29, %v3031_v42 }
 0x137   : > { %v5663_v22 = vadd.f32 %v1148_v31, %v867_v56  ;;  %v4326_v9 = vpop.f32.mrf.mxu1  ;;  %v883_v56 = vadd.f32 %v882_v34, %v6117_v37  ;;  %v3026_v34 = vor.u32 %v3025_v35, %v3022_v49  ;;  %v5702_v49 = vld [vmem:[%s4737_s23 + $0xa0] ss:$0 sps:$4 sm:$0x77]   ;;  %v6121_v35 = vld [vmem:[#allocation8_spill] sm:$0xff] }
 0x138   : > { %v4360_v62 = vpop.f32.mrf.mxu0  ;;  %v894_v57 = vadd.f32 %v4326_v9, %v6118_v48 }
 0x139   : > { %v5671_v26 = vadd.f32 %v4360_v62, %v878_v1  ;;  %v885_v60 = vpop.f32.mrf.mxu1  ;;  %v3038_v1 = vshrl.u32 %v5489_v46, 16  ;;  %v3027_v37 = vsel %vm2893_vm6, %v3017_v30, %v3026_v34 }
 0x13a   : > { %v1151_v8 = vpop.f32.mrf.mxu0 }
 0x13b   : > { %v5677_v6 = vadd.f32 %v1151_v8, %v870_v0  ;;  %v4329_v18 = vpop.f32.mrf.mxu1  ;;  %4544 = vmatmul.mubr.msk.bf16.gmra.mxu1 %vm462_vm1, %v3009_v44  ;;  %v3047_v0 = vshrl.u32 %v6119_v36, 16  ;;  %v886_v8 = vadd.f32 %v885_v60, %v6120_v51  ;;  %v3374_v51 = vrot.slane %v6114_v38, 3 }
 0x13c   : > { %v4363_v17 = vpop.f32.mrf.mxu0  ;;  %4578 = vmatmul.mubr.msk.bf16.gmra.mxu0 %vm462_vm1, %v3365_v21  ;;  %4547 = vmatprep.mubr.msk.bf16.mxu1 %vm462_vm1, %v3018_v41  ;;  %v3050_v21 = vshll.u32 %v6119_v36, 16  ;;  %v3043_v41 = vrot.slane %v3041_v45, 3  ;;  %v907_v42 = vadd.f32 %v4329_v18, %v6121_v35  ;;  %v3372_v18 = vrot.slane %v6113_v59, 3 }
 0x13d   : > { %v5682_v31 = vadd.f32 %v4363_v17, %v891_v3  ;;  %4581 = vmatprep.mubr.msk.bf16.mxu0 %vm462_vm1, %v3367_v14  ;;  %v898_v20 = vpop.f32.mrf.mxu1  ;;  %v3369_v14 = vsel %vm3344_vm5, %v3366_v40, %v3368_v55  ;;  %v3371_v3 = vsel %vm3344_vm5, %v3368_v55, %v3370_v58  ;;  %v3040_v17 = vrot.slane %v3038_v1, 2 }
 0x13e   : > { %v1164_v28 = vpop.f32.mrf.mxu0  ;;  %v3036_v40 = vsel %vm2893_vm6, %v3026_v34, %v3035_v5  ;;  %v3052_v48 = vrot.slane %v3050_v21, 3  ;;  %v6123_v34 = vld [vmem:[#allocation11_spill] sm:$0xff] }
 0x13f   : > { %v5691_v62 = vadd.f32 %v1164_v28, %v883_v56  ;;  %v4330_v9 = vpop.f32.mrf.mxu1  ;;  %v3049_v28 = vrot.slane %v3047_v0, 2  ;;  %v6124_v21 = vld [vmem:[#allocation15_spill] sm:$0xff] }
 0x140   : > { %v4364_v43 = vpop.f32.mrf.mxu0  ;;  %v910_v0 = vadd.f32 %v4330_v9, %v6123_v34 }
 0x141   : > { %v5697_v44 = vadd.f32 %v4364_v43, %v894_v57  ;;  %v901_v56 = vpop.f32.mrf.mxu1  ;;  %v6122_v57 = vld [vmem:[#allocation9_spill] sm:$0xff]  ;;  %v3044_v43 = vor.u32 %v3043_v41, %v3040_v17  ;;  %v3053_v35 = vor.u32 %v3052_v48, %v3049_v28  ;;  %v6126_v17 = vld [vmem:[#allocation16_spill] sm:$0xff] }
 0x142   : > { %v1167_v52 = vpop.f32.mrf.mxu0  ;;  %v899_v55 = vadd.f32 %v898_v20, %v6122_v57 }
 0x143   : > { %v5705_v29 = vadd.f32 %v1167_v52, %v886_v8  ;;  %v4373_v45 = vpop.f32.mrf.mxu1  ;;  %4548 = vmatmul.mubr.msk.bf16.gmra.mxu1 %vm462_vm1, %v3027_v37  ;;  %v3056_v8 = vshrl.u32 %v5702_v49, 16  ;;  %v3059_v52 = vshll.u32 %v5702_v49, 16 }
 0x144   : > { %v4367_v60 = vpop.f32.mrf.mxu0  ;;  %4582 = vmatmul.mubr.msk.bf16.gmra.mxu0 %vm462_vm1, %v3369_v14  ;;  %v1640_v14 = vadd.f32 %v4373_v45, %v6124_v21  ;;  %4551 = vmatprep.mubr.msk.bf16.mxu1 %vm462_vm1, %v3036_v40  ;;  %v3375_v45 = vsel %vm3344_vm5, %v3372_v18, %v3374_v51 }
 0x145   : > { %v5711_v1 = vadd.f32 %v4367_v60, %v907_v42  ;;  %4585 = vmatprep.mubr.msk.bf16.mxu0 %vm462_vm1, %v3371_v3  ;;  %v1495_v59 = vpop.f32.mrf.mxu1  ;;  %v6125_v42 = vld [vmem:[#allocation13_spill] sm:$0xff]  ;;  %v3373_v60 = vsel %vm3344_vm5, %v3370_v58, %v3372_v18  ;;  %v3058_v34 = vrot.slane %v3056_v8, 2  ;;  %v3061_v28 = vrot.slane %v3059_v52, 3 }
 0x146   : > { %v1180_v30 = vpop.f32.mrf.mxu0  ;;  %v902_v37 = vadd.f32 %v901_v56, %v6125_v42  ;;  %v1638_v41 = vadd.f32 %v1495_v59, %v6126_v17  ;;  %v3378_v8 = vrot.slane %v6119_v36, 3 }
 0x147   : > { %v5720_v20 = vadd.f32 %v1180_v30, %v899_v55  ;;  %v4374_v9 = vpop.f32.mrf.mxu1  ;;  %v3045_v55 = vsel %vm2893_vm6, %v3035_v5, %v3044_v43  ;;  %v3376_v5 = vrot.slane %v5489_v46, 3 }
 0x148   : > { %v4368_v3 = vpop.f32.mrf.mxu0  ;;  %v1641_v40 = vadd.f32 %v4374_v9, %v5517_v10 }
 0x149   : > { %v5726_v38 = vadd.f32 %v4368_v3, %v910_v0  ;;  %v1498_v48 = vpop.f32.mrf.mxu1  ;;  %v3054_v0 = vsel %vm2893_vm6, %v3044_v43, %v3053_v35  ;;  %v3062_v43 = vor.u32 %v3061_v28, %v3058_v34  ;;  %v3377_v46 = vsel %vm3344_vm5, %v3374_v51, %v3376_v5 }
 0x14a   : > { %v1183_v57 = vpop.f32.mrf.mxu0  ;;  %v1639_v58 = vadd.f32 %v1498_v48, %v5523_v16  ;;  %v3380_v51 = vrot.slane %v5702_v49, 3 }
 0x14b   : > { %v5732_v30 = vadd.f32 %v1183_v57, %v902_v37  ;;  %v4377_v18 = vpop.f32.mrf.mxu1  ;;  %4552 = vmatmul.mubr.msk.bf16.gmra.mxu1 %vm462_vm1, %v3045_v55 }
 0x14c   : > { %v4411_v56 = vpop.f32.mrf.mxu0  ;;  %4586 = vmatmul.mubr.msk.bf16.gmra.mxu0 %vm462_vm1, %v3373_v60  ;;  %v1644_v52 = vadd.f32 %v4377_v18, %v5528_v13  ;;  %4555 = vmatprep.mubr.msk.bf16.mxu1 %vm462_vm1, %v3054_v0  ;;  %v3379_v60 = vsel %vm3344_vm5, %v3376_v5, %v3378_v8 }
 0x14d   : > { %v5737_v21 = vadd.f32 %v4411_v56, %v1640_v14  ;;  %4589 = vmatprep.mubr.msk.bf16.mxu0 %vm462_vm1, %v3375_v45  ;;  %v1511_v16 = vpop.f32.mrf.mxu1 }
 0x14e   : > { %v1946_v10 = vpop.f32.mrf.mxu0  ;;  %v1642_v3 = vadd.f32 %v1511_v16, %v5536_v4 }
 0x14f   : > { %v5744_v59 = vadd.f32 %v1946_v10, %v1638_v41  ;;  %v4378_v37 = vpop.f32.mrf.mxu1  ;;  %v3063_v41 = vsel %vm2893_vm6, %v3053_v35, %v3062_v43 }
 0x150   : > { %v4412_v14 = vpop.f32.mrf.mxu0  ;;  %v1645_v36 = vadd.f32 %v4378_v37, %v5542_v15 }
 0x151   : > { %v5748_v42 = vadd.f32 %v4412_v14, %v1641_v40  ;;  %v1514_v9 = vpop.f32.mrf.mxu1 }
 0x152   : > { %v1949_v17 = vpop.f32.mrf.mxu0  ;;  %v1643_v4 = vadd.f32 %v1514_v9, %v5546_v53  ;;  %v3381_v53 = vsel %vm3344_vm5, %v3378_v8, %v3380_v51 }
 0x153   : > { %v5753_v13 = vadd.f32 %v1949_v17, %v1639_v58  ;;  %v4381_v45 = vpop.f32.mrf.mxu1  ;;  %4556 = vmatmul.mubr.msk.bf16.gmra.mxu1 %vm462_vm1, %v3063_v41 }
 0x154   : > { %v4415_v57 = vpop.f32.mrf.mxu0  ;;  %4590 = vmatmul.mubr.msk.bf16.gmra.mxu0 %vm462_vm1, %v3377_v46  ;;  %v1648_v40 = vadd.f32 %v4381_v45, %v5552_v63 }
 0x155   : > { %v5758_v55 = vadd.f32 %v4415_v57, %v1644_v52  ;;  %4593 = vmatprep.mubr.msk.bf16.mxu0 %vm462_vm1, %v3379_v60  ;;  %v1527_v35 = vpop.f32.mrf.mxu1 }
 0x156   : > { %v1962_v15 = vpop.f32.mrf.mxu0  ;;  %v1646_v48 = vadd.f32 %v1527_v35, %v5559_v11 }
 0x157   : > { %v5764_v34 = vadd.f32 %v1962_v15, %v1642_v3  ;;  %v4382_v0 = vpop.f32.mrf.mxu1 }
 0x158   : > { %v4416_v28 = vpop.f32.mrf.mxu0  ;;  %v1649_v49 = vadd.f32 %v4382_v0, %v5567_v61 }
 0x159   : > { %v5767_v56 = vadd.f32 %v4416_v28, %v1645_v36  ;;  %v1530_v18 = vpop.f32.mrf.mxu1 }
 0x15a   : > { %v1965_v58 = vpop.f32.mrf.mxu0  ;;  %v1647_v63 = vadd.f32 %v1530_v18, %v5574_v2 }
 0x15b   : > { %v5771_v5 = vadd.f32 %v1965_v58, %v1643_v4  ;;  %v4385_v43 = vpop.f32.mrf.mxu1 }
 0x15c   : > { %v4419_v10 = vpop.f32.mrf.mxu0  ;;  %4594 = vmatmul.mubr.msk.bf16.gmra.mxu0 %vm462_vm1, %v3381_v53  ;;  %v1652_v16 = vadd.f32 %v4385_v43, %v5580_v19 }
 0x15d   : > { %v5775_v52 = vadd.f32 %v4419_v10, %v1648_v40  ;;  %v1543_v8 = vpop.f32.mrf.mxu1 }
 0x15e   : > { %v1978_v11 = vpop.f32.mrf.mxu0  ;;  %v1650_v61 = vadd.f32 %v1543_v8, %v5589_v50 }
 0x15f   : > { %v5778_v14 = vadd.f32 %v1978_v11, %v1646_v48  ;;  %v4386_v37 = vpop.f32.mrf.mxu1 }
 0x160   : > { %v4420_v3 = vpop.f32.mrf.mxu0  ;;  %v1653_v60 = vadd.f32 %v4386_v37, %v5595_v54 }
 0x161   : > { %v5781_v46 = vadd.f32 %v4420_v3, %v1649_v49  ;;  %v1546_v2 = vpop.f32.mrf.mxu1 }
 0x162   : > { %v1981_v17 = vpop.f32.mrf.mxu0  ;;  %v1651_v9 = vadd.f32 %v1546_v2, %v5600_v24 }
 0x163   : > { %v5784_v36 = vadd.f32 %v1981_v17, %v1647_v63  ;;  %v4389_v19 = vpop.f32.mrf.mxu1 }
 0x164   : > { %v4423_v41 = vpop.f32.mrf.mxu0  ;;  %v1656_v51 = vadd.f32 %v4389_v19, %v5606_v12 }
 0x165   : > { %v5787_v57 = vadd.f32 %v4423_v41, %v1652_v16  ;;  %v1559_v50 = vpop.f32.mrf.mxu1 }
 0x166   : > { %v1994_v4 = vpop.f32.mrf.mxu0  ;;  %v1654_v40 = vadd.f32 %v1559_v50, %v5612_v27 }
 0x167   : > { %v5790_v45 = vadd.f32 %v1994_v4, %v1650_v61  ;;  %v4390_v54 = vpop.f32.mrf.mxu1 }
 0x168   : > { %v4424_v15 = vpop.f32.mrf.mxu0  ;;  %v1657_v48 = vadd.f32 %v4390_v54, %v5619_v23 }
 0x169   : > { %v5793_v35 = vadd.f32 %v4424_v15, %v1653_v60  ;;  %v1562_v24 = vpop.f32.mrf.mxu1 }
 0x16a   : > { %v1997_v28 = vpop.f32.mrf.mxu0  ;;  %v1655_v58 = vadd.f32 %v1562_v24, %v5625_v33 }
 0x16b   : > { %v5796_v53 = vadd.f32 %v1997_v28, %v1651_v9  ;;  %v4393_v12 = vpop.f32.mrf.mxu1 }
 0x16c   : > { %v4427_v0 = vpop.f32.mrf.mxu0  ;;  %v1660_v10 = vadd.f32 %v4393_v12, %v5630_v39 }
 0x16d   : > { %v5799_v49 = vadd.f32 %v4427_v0, %v1656_v51  ;;  %v1575_v27 = vpop.f32.mrf.mxu1 }
 0x16e   : > { %v2010_v18 = vpop.f32.mrf.mxu0  ;;  %v1658_v11 = vadd.f32 %v1575_v27, %v5639_v32 }
 0x16f   : > { %v5802_v63 = vadd.f32 %v2010_v18, %v1654_v40  ;;  %v4394_v23 = vpop.f32.mrf.mxu1 }
 0x170   : > { %v4428_v43 = vpop.f32.mrf.mxu0  ;;  %v1661_v3 = vadd.f32 %v4394_v23, %v5645_v7 }
 0x171   : > { %v5805_v16 = vadd.f32 %v4428_v43, %v1657_v48  ;;  %v1578_v33 = vpop.f32.mrf.mxu1 }
 0x172   : > { %v2013_v8 = vpop.f32.mrf.mxu0  ;;  %v1659_v17 = vadd.f32 %v1578_v33, %v5650_v47 }
 0x173   : > { %v5808_v61 = vadd.f32 %v2013_v8, %v1655_v58  ;;  %v4397_v39 = vpop.f32.mrf.mxu1 }
 0x174   : > { %v4431_v37 = vpop.f32.mrf.mxu0  ;;  %v1664_v41 = vadd.f32 %v4397_v39, %v5656_v25 }
 0x175   : > { %v5811_v60 = vadd.f32 %v4431_v37, %v1660_v10  ;;  %v1591_v32 = vpop.f32.mrf.mxu1 }
 0x176   : > { %v2026_v2 = vpop.f32.mrf.mxu0  ;;  %v1662_v4 = vadd.f32 %v1591_v32, %v5663_v22 }
 0x177   : > { %v5814_v9 = vadd.f32 %v2026_v2, %v1658_v11  ;;  %v4398_v7 = vpop.f32.mrf.mxu1 }
 0x178   : > { %v4432_v19 = vpop.f32.mrf.mxu0  ;;  %v1665_v15 = vadd.f32 %v4398_v7, %v5671_v26 }
 0x179   : > { %v5817_v51 = vadd.f32 %v4432_v19, %v1661_v3  ;;  %v1594_v47 = vpop.f32.mrf.mxu1 }
 0x17a   : > { %v2029_v50 = vpop.f32.mrf.mxu0  ;;  %v1663_v28 = vadd.f32 %v1594_v47, %v5677_v6 }
 0x17b   : > { %v5820_v40 = vadd.f32 %v2029_v50, %v1659_v17  ;;  %v4401_v25 = vpop.f32.mrf.mxu1 }
 0x17c   : > { %v4435_v54 = vpop.f32.mrf.mxu0  ;;  %v1668_v0 = vadd.f32 %v4401_v25, %v5682_v31 }
 0x17d   : > { %v5823_v48 = vadd.f32 %v4435_v54, %v1664_v41  ;;  %v1607_v22 = vpop.f32.mrf.mxu1 }
 0x17e   : > { %v2042_v24 = vpop.f32.mrf.mxu0  ;;  %v1666_v18 = vadd.f32 %v1607_v22, %v5691_v62 }
 0x17f   : > { %v5826_v58 = vadd.f32 %v2042_v24, %v1662_v4  ;;  %v4402_v26 = vpop.f32.mrf.mxu1 }
 0x180   : > { %v4436_v12 = vpop.f32.mrf.mxu0  ;;  %v1669_v43 = vadd.f32 %v4402_v26, %v5697_v44 }
 0x181   : > { %v5829_v10 = vadd.f32 %v4436_v12, %v1665_v15  ;;  %v1610_v6 = vpop.f32.mrf.mxu1 }
 0x182   : > { %v2045_v27 = vpop.f32.mrf.mxu0  ;;  %v1667_v8 = vadd.f32 %v1610_v6, %v5705_v29 }
 0x183   : > { %v5832_v11 = vadd.f32 %v2045_v27, %v1663_v28  ;;  %v4405_v31 = vpop.f32.mrf.mxu1 }
 0x184   : > { %v4439_v23 = vpop.f32.mrf.mxu0  ;;  %v1672_v37 = vadd.f32 %v4405_v31, %v5711_v1 }
 0x185   : > { %v5835_v3 = vadd.f32 %v4439_v23, %v1668_v0  ;;  %v1623_v62 = vpop.f32.mrf.mxu1 }
 0x186   : > { %v2058_v33 = vpop.f32.mrf.mxu0  ;;  %v1670_v2 = vadd.f32 %v1623_v62, %v5720_v20 }
 0x187   : > { %v5838_v17 = vadd.f32 %v2058_v33, %v1666_v18  ;;  %v4406_v44 = vpop.f32.mrf.mxu1 }
 0x188   : > { %v4440_v39 = vpop.f32.mrf.mxu0  ;;  %v1673_v19 = vadd.f32 %v4406_v44, %v5726_v38 }
 0x189   : > { %v5841_v41 = vadd.f32 %v4440_v39, %v1669_v43  ;;  %v1626_v29 = vpop.f32.mrf.mxu1 }
 0x18a   : > { %v2061_v32 = vpop.f32.mrf.mxu0  ;;  %v1671_v50 = vadd.f32 %v1626_v29, %v5732_v30 }
 0x18b   : > { %v5844_v4 = vadd.f32 %v2061_v32, %v1667_v8  ;;  %v4449_v1 = vpop.f32.mrf.mxu1 }
 0x18c   : > { %v4443_v7 = vpop.f32.mrf.mxu0  ;;  %v2409_v54 = vadd.f32 %v4449_v1, %v5737_v21 }
 0x18d   : > { %v5847_v15 = vadd.f32 %v4443_v7, %v1672_v37  ;;  %v2264_v20 = vpop.f32.mrf.mxu1 }
 0x18e   : > { %v2074_v47 = vpop.f32.mrf.mxu0  ;;  %v2407_v24 = vadd.f32 %v2264_v20, %v5744_v59 }
 0x18f   : > { %v5850_v28 = vadd.f32 %v2074_v47, %v1670_v2  ;;  %v4450_v38 = vpop.f32.mrf.mxu1 }
 0x190   : > { %v4444_v25 = vpop.f32.mrf.mxu0  ;;  %v2410_v12 = vadd.f32 %v4450_v38, %v5748_v42 }
 0x191   : > { %v5853_v0 = vadd.f32 %v4444_v25, %v1673_v19  ;;  %v2267_v30 = vpop.f32.mrf.mxu1 }
 0x192   : > { %v2077_v22 = vpop.f32.mrf.mxu0  ;;  %v2408_v27 = vadd.f32 %v2267_v30, %v5753_v13 }
 0x193   : > { %v5856_v18 = vadd.f32 %v2077_v22, %v1671_v50  ;;  %v4453_v21 = vpop.f32.mrf.mxu1 }
 0x194   : > { %v4487_v26 = vpop.f32.mrf.mxu0  ;;  %v2413_v23 = vadd.f32 %v4453_v21, %v5758_v55 }
 0x195   : > { %v5859_v43 = vadd.f32 %v4487_v26, %v2409_v54  ;;  %v2280_v59 = vpop.f32.mrf.mxu1 }
 0x196   : > { %v2707_v6 = vpop.f32.mrf.mxu0  ;;  %v2411_v33 = vadd.f32 %v2280_v59, %v5764_v34 }
 0x197   : > { %v5862_v8 = vadd.f32 %v2707_v6, %v2407_v24  ;;  %v4454_v42 = vpop.f32.mrf.mxu1 }
 0x198   : > { %v4488_v31 = vpop.f32.mrf.mxu0  ;;  %v2414_v39 = vadd.f32 %v4454_v42, %v5767_v56 }
 0x199   : > { %v5865_v37 = vadd.f32 %v4488_v31, %v2410_v12  ;;  %v2283_v13 = vpop.f32.mrf.mxu1 }
 0x19a   : > { %v2710_v62 = vpop.f32.mrf.mxu0  ;;  %v2412_v32 = vadd.f32 %v2283_v13, %v5771_v5 }
 0x19b   : > { %v5868_v2 = vadd.f32 %v2710_v62, %v2408_v27  ;;  %v4457_v55 = vpop.f32.mrf.mxu1 }
 0x19c   : > { %v4491_v44 = vpop.f32.mrf.mxu0  ;;  %v2417_v7 = vadd.f32 %v4457_v55, %v5775_v52 }
 0x19d   : > { %v5871_v19 = vadd.f32 %v4491_v44, %v2413_v23  ;;  %v2296_v34 = vpop.f32.mrf.mxu1 }
 0x19e   : > { %v2723_v29 = vpop.f32.mrf.mxu0  ;;  %v2415_v47 = vadd.f32 %v2296_v34, %v5778_v14 }
 0x19f   : > { %v5874_v50 = vadd.f32 %v2723_v29, %v2411_v33  ;;  %v4458_v56 = vpop.f32.mrf.mxu1 }
 0x1a0   : > { %v4492_v1 = vpop.f32.mrf.mxu0  ;;  %v2418_v25 = vadd.f32 %v4458_v56, %v5781_v46 }
 0x1a1   : > { %v5877_v54 = vadd.f32 %v4492_v1, %v2414_v39  ;;  %v2299_v5 = vpop.f32.mrf.mxu1 }
 0x1a2   : > { %v2726_v20 = vpop.f32.mrf.mxu0  ;;  %v2416_v22 = vadd.f32 %v2299_v5, %v5784_v36 }
 0x1a3   : > { %v5880_v24 = vadd.f32 %v2726_v20, %v2412_v32  ;;  %v4461_v52 = vpop.f32.mrf.mxu1 }
 0x1a4   : > { %v4495_v38 = vpop.f32.mrf.mxu0  ;;  %v2421_v26 = vadd.f32 %v4461_v52, %v5787_v57 }
 0x1a5   : > { %v5883_v12 = vadd.f32 %v4495_v38, %v2417_v7  ;;  %v2312_v14 = vpop.f32.mrf.mxu1 }
 0x1a6   : > { %v2739_v30 = vpop.f32.mrf.mxu0  ;;  %v2419_v6 = vadd.f32 %v2312_v14, %v5790_v45 }
 0x1a7   : > { %v5886_v27 = vadd.f32 %v2739_v30, %v2415_v47  ;;  %v4462_v46 = vpop.f32.mrf.mxu1 }
 0x1a8   : > { %v4496_v21 = vpop.f32.mrf.mxu0  ;;  %v2422_v31 = vadd.f32 %v4462_v46, %v5793_v35 }
 0x1a9   : > { %v5889_v23 = vadd.f32 %v4496_v21, %v2418_v25  ;;  %v2315_v36 = vpop.f32.mrf.mxu1 }
 0x1aa   : > { %v2742_v59 = vpop.f32.mrf.mxu0  ;;  %v2420_v62 = vadd.f32 %v2315_v36, %v5796_v53 }
 0x1ab   : > { %v5892_v33 = vadd.f32 %v2742_v59, %v2416_v22  ;;  %v4465_v57 = vpop.f32.mrf.mxu1 }
 0x1ac   : > { %v4499_v42 = vpop.f32.mrf.mxu0  ;;  %v2425_v44 = vadd.f32 %v4465_v57, %v5799_v49 }
 0x1ad   : > { %v5895_v39 = vadd.f32 %v4499_v42, %v2421_v26  ;;  %v2328_v45 = vpop.f32.mrf.mxu1 }
 0x1ae   : > { %v2755_v13 = vpop.f32.mrf.mxu0  ;;  %v2423_v29 = vadd.f32 %v2328_v45, %v5802_v63 }
 0x1af   : > { %v5898_v32 = vadd.f32 %v2755_v13, %v2419_v6  ;;  %v4466_v35 = vpop.f32.mrf.mxu1 }
 0x1b0   : > { %v4500_v55 = vpop.f32.mrf.mxu0  ;;  %v2426_v1 = vadd.f32 %v4466_v35, %v5805_v16 }
 0x1b1   : > { %v5901_v7 = vadd.f32 %v4500_v55, %v2422_v31  ;;  %v2331_v53 = vpop.f32.mrf.mxu1 }
 0x1b2   : > { %v2758_v34 = vpop.f32.mrf.mxu0  ;;  %v2424_v20 = vadd.f32 %v2331_v53, %v5808_v61 }
 0x1b3   : > { %v5904_v47 = vadd.f32 %v2758_v34, %v2420_v62  ;;  %v4469_v49 = vpop.f32.mrf.mxu1 }
 0x1b4   : > { %v4503_v56 = vpop.f32.mrf.mxu0  ;;  %v2429_v38 = vadd.f32 %v4469_v49, %v5811_v60 }
 0x1b5   : > { %v5907_v25 = vadd.f32 %v4503_v56, %v2425_v44  ;;  %v2344_v63 = vpop.f32.mrf.mxu1 }
 0x1b6   : > { %v2771_v5 = vpop.f32.mrf.mxu0  ;;  %v2427_v30 = vadd.f32 %v2344_v63, %v5814_v9 }
 0x1b7   : > { %v5910_v22 = vadd.f32 %v2771_v5, %v2423_v29  ;;  %v4470_v16 = vpop.f32.mrf.mxu1 }
 0x1b8   : > { %v4504_v52 = vpop.f32.mrf.mxu0  ;;  %v2430_v21 = vadd.f32 %v4470_v16, %v5817_v51 }
 0x1b9   : > { %v5913_v26 = vadd.f32 %v4504_v52, %v2426_v1  ;;  %v2347_v61 = vpop.f32.mrf.mxu1 }
 0x1ba   : > { %v2774_v14 = vpop.f32.mrf.mxu0  ;;  %v2428_v59 = vadd.f32 %v2347_v61, %v5820_v40 }
 0x1bb   : > { %v5916_v6 = vadd.f32 %v2774_v14, %v2424_v20  ;;  %v4473_v60 = vpop.f32.mrf.mxu1 }
 0x1bc   : > { %v4507_v46 = vpop.f32.mrf.mxu0  ;;  %v2433_v42 = vadd.f32 %v4473_v60, %v5823_v48 }
 0x1bd   : > { %v5919_v31 = vadd.f32 %v4507_v46, %v2429_v38  ;;  %v2360_v9 = vpop.f32.mrf.mxu1 }
 0x1be   : > { %v2787_v36 = vpop.f32.mrf.mxu0  ;;  %v2431_v13 = vadd.f32 %v2360_v9, %v5826_v58 }
 0x1bf   : > { %v5922_v62 = vadd.f32 %v2787_v36, %v2427_v30  ;;  %v4474_v51 = vpop.f32.mrf.mxu1 }
 0x1c0   : > { %v4508_v57 = vpop.f32.mrf.mxu0  ;;  %v2434_v55 = vadd.f32 %v4474_v51, %v5829_v10 }
 0x1c1   : > { %v5925_v44 = vadd.f32 %v4508_v57, %v2430_v21  ;;  %v2363_v40 = vpop.f32.mrf.mxu1 }
 0x1c2   : > { %v2790_v45 = vpop.f32.mrf.mxu0  ;;  %v2432_v34 = vadd.f32 %v2363_v40, %v5832_v11 }
 0x1c3   : > { %v5928_v29 = vadd.f32 %v2790_v45, %v2428_v59  ;;  %v4477_v48 = vpop.f32.mrf.mxu1 }
 0x1c4   : > { %v4511_v35 = vpop.f32.mrf.mxu0  ;;  %v2437_v56 = vadd.f32 %v4477_v48, %v5835_v3 }
 0x1c5   : > { %v5931_v1 = vadd.f32 %v4511_v35, %v2433_v42  ;;  %v2376_v58 = vpop.f32.mrf.mxu1 }
 0x1c6   : > { %v2803_v53 = vpop.f32.mrf.mxu0  ;;  %v2435_v5 = vadd.f32 %v2376_v58, %v5838_v17 }
 0x1c7   : > { %v5934_v20 = vadd.f32 %v2803_v53, %v2431_v13  ;;  %v4478_v10 = vpop.f32.mrf.mxu1 }
 0x1c8   : > { %v4512_v49 = vpop.f32.mrf.mxu0  ;;  %v2438_v52 = vadd.f32 %v4478_v10, %v5841_v41 }
 0x1c9   : > { %v5937_v38 = vadd.f32 %v4512_v49, %v2434_v55  ;;  %v2379_v11 = vpop.f32.mrf.mxu1 }
 0x1ca   : > { %v2806_v63 = vpop.f32.mrf.mxu0  ;;  %v2436_v14 = vadd.f32 %v2379_v11, %v5844_v4 }
 0x1cb   : > { %v5940_v30 = vadd.f32 %v2806_v63, %v2432_v34  ;;  %v4481_v3 = vpop.f32.mrf.mxu1 }
 0x1cc   : > { %v4515_v16 = vpop.f32.mrf.mxu0  ;;  %v2441_v46 = vadd.f32 %v4481_v3, %v5847_v15 }
 0x1cd   : > { %v5943_v21 = vadd.f32 %v4515_v16, %v2437_v56  ;;  %v2392_v17 = vpop.f32.mrf.mxu1 }
 0x1ce   : > { %v2819_v61 = vpop.f32.mrf.mxu0  ;;  %v2439_v36 = vadd.f32 %v2392_v17, %v5850_v28 }
 0x1cf   : > { %v5946_v59 = vadd.f32 %v2819_v61, %v2435_v5  ;;  %v4482_v41 = vpop.f32.mrf.mxu1 }
 0x1d0   : > { %v4516_v60 = vpop.f32.mrf.mxu0  ;;  %v2442_v57 = vadd.f32 %v4482_v41, %v5853_v0 }
 0x1d1   : > { %v5949_v42 = vadd.f32 %v4516_v60, %v2438_v52  ;;  %v2395_v4 = vpop.f32.mrf.mxu1 }
 0x1d2   : > { %v2822_v9 = vpop.f32.mrf.mxu0  ;;  %v2440_v45 = vadd.f32 %v2395_v4, %v5856_v18  ;;  %v5968_v18 = vld [vmem:[%s6087_s2] ss:$0 sm:$0xff] }
 0x1d3   : > { %v5952_v13 = vadd.f32 %v2822_v9, %v2436_v14  ;;  %v4525_v55 = vpop.f32.mrf.mxu1 }
 0x1d4   : > { %v4519_v51 = vpop.f32.mrf.mxu0  ;;  %v3303_v0 = vadd.f32 %v4525_v55, %v5859_v43 }
 0x1d5   : > { %v5955_v15 = vadd.f32 %v4519_v51, %v2441_v46  ;;  %v3158_v28 = vpop.f32.mrf.mxu1 }
 0x1d6   : > { %v2835_v40 = vpop.f32.mrf.mxu0  ;;  %v3301_v10 = vadd.f32 %v3158_v28, %v5862_v8 }
 0x1d7   : > { %v5957_v35 = vadd.f32 %v2835_v40, %v2439_v36  ;;  %v4526_v53 = vpop.f32.mrf.mxu1 }
 0x1d8   : > { %v4520_v34 = vpop.f32.mrf.mxu0  ;;  %v3304_v16 = vadd.f32 %v4526_v53, %v5865_v37 }
 0x1d9   : > { %v5959_v48 = vadd.f32 %v4520_v34, %v2442_v57  ;;  %v3161_v49 = vpop.f32.mrf.mxu1 }
 0x1da   : > { %v2838_v56 = vpop.f32.mrf.mxu0  ;;  %v3302_v46 = vadd.f32 %v3161_v49, %v5868_v2 }
 0x1db   : > { %v5962_v58 = vadd.f32 %v2838_v56, %v2440_v45  ;;  %v4529_v52 = vpop.f32.mrf.mxu1 }
 0x1dc   : > { %v4563_v5 = vpop.f32.mrf.mxu0  ;;  %v3307_v41 = vadd.f32 %v4529_v52, %v5871_v19 }
 0x1dd   : > { %v3621_v63 = vadd.f32 %v4563_v5, %v3303_v0  ;;  %v3174_v3 = vpop.f32.mrf.mxu1 }
 0x1de   : > { %v3476_v11 = vpop.f32.mrf.mxu0  ;;  %v3305_v55 = vadd.f32 %v3174_v3, %v5874_v50 }
 0x1df   : > { %v3664_v14 = vadd.f32 %v5968_v18, %v3621_v63  ;;  %v3619_v43 = vadd.f32 %v3476_v11, %v3301_v10  ;;  %v4530_v36 = vpop.f32.mrf.mxu1 }
 0x1e0   : > { %v4564_v61 = vpop.f32.mrf.mxu0  ;;  %v3308_v19 = vadd.f32 %v4530_v36, %v5877_v54 }
 0x1e1   : > { %v3700_v8 = vmax.f32 %v3664_v14, 0.0  ;;  %v3662_v17 = vadd.f32 %v5968_v18, %v3619_v43  ;;  %v3622_v60 = vadd.f32 %v4564_v61, %v3304_v16  ;;  %v3177_v51 = vpop.f32.mrf.mxu1 }
 0x1e2   : > { %v3479_v37 = vpop.f32.mrf.mxu0  ;;  %v3306_v50 = vadd.f32 %v3177_v51, %v5880_v24 }
 0x1e3   : > { %3736 = vst [vmem:[%s5976_s13 + $0x10] sm:$0xff] %v3700_v8  ;;  %v3698_v9 = vmax.f32 %v3662_v17, 0.0  ;;  %v3665_v57 = vadd.f32 %v5968_v18, %v3622_v60  ;;  %v3620_v4 = vadd.f32 %v3479_v37, %v3302_v46  ;;  %v4533_v34 = vpop.f32.mrf.mxu1 }
 0x1e4   : > { %v4567_v45 = vpop.f32.mrf.mxu0  ;;  %v3311_v54 = vadd.f32 %v4533_v34, %v5883_v12 }
 0x1e5   : > { %3734 = vst [vmem:[%s5976_s13] sm:$0xff] %v3698_v9  ;;  %v3701_v2 = vmax.f32 %v3665_v57, 0.0  ;;  %v3663_v40 = vadd.f32 %v5968_v18, %v3620_v4  ;;  %v3625_v28 = vadd.f32 %v4567_v45, %v3307_v41  ;;  %v3190_v5 = vpop.f32.mrf.mxu1 }
 0x1e6   : > { %v3492_v53 = vpop.f32.mrf.mxu0  ;;  %v3309_v24 = vadd.f32 %v3190_v5, %v5886_v27 }
 0x1e7   : > { %3737 = vst [vmem:[%s5976_s13 + $0x18] sm:$0xff] %v3701_v2  ;;  %v3699_v56 = vmax.f32 %v3663_v40, 0.0  ;;  %v3668_v0 = vadd.f32 %v5968_v18, %v3625_v28  ;;  %v3623_v49 = vadd.f32 %v3492_v53, %v3305_v55  ;;  %v4534_v16 = vpop.f32.mrf.mxu1 }
 0x1e8   : > { %v4568_v10 = vpop.f32.mrf.mxu0  ;;  %v3312_v12 = vadd.f32 %v4534_v16, %v5889_v23 }
 0x1e9   : > { %3735 = vst [vmem:[%s5976_s13 + $0x8] sm:$0xff] %v3699_v56  ;;  %v3704_v63 = vmax.f32 %v3668_v0, 0.0  ;;  %v3666_v52 = vadd.f32 %v5968_v18, %v3623_v49  ;;  %v3626_v11 = vadd.f32 %v4568_v10, %v3308_v19  ;;  %v3193_v46 = vpop.f32.mrf.mxu1 }
 0x1ea   : > { %v3495_v14 = vpop.f32.mrf.mxu0  ;;  %v3310_v27 = vadd.f32 %v3193_v46, %v5892_v33 }
 0x1eb   : > { %3740 = vst [vmem:[%s5976_s13 + $0x30] sm:$0xff] %v3704_v63  ;;  %v3702_v43 = vmax.f32 %v3666_v52, 0.0  ;;  %v3669_v3 = vadd.f32 %v5968_v18, %v3626_v11  ;;  %v3624_v61 = vadd.f32 %v3495_v14, %v3306_v50  ;;  %v4537_v37 = vpop.f32.mrf.mxu1 }
 0x1ec   : > { %v4571_v8 = vpop.f32.mrf.mxu0  ;;  %v3315_v23 = vadd.f32 %v4537_v37, %v5895_v39 }
 0x1ed   : > { %3738 = vst [vmem:[%s5976_s13 + $0x20] sm:$0xff] %v3702_v43  ;;  %v3705_v17 = vmax.f32 %v3669_v3, 0.0  ;;  %v3667_v60 = vadd.f32 %v5968_v18, %v3624_v61  ;;  %v3629_v36 = vadd.f32 %v4571_v8, %v3311_v54  ;;  %v3206_v51 = vpop.f32.mrf.mxu1 }
 0x1ee   : > { %v3508_v41 = vpop.f32.mrf.mxu0  ;;  %v3313_v33 = vadd.f32 %v3206_v51, %v5898_v32 }
 0x1ef   : > { %3741 = vst [vmem:[%s5976_s13 + $0x38] sm:$0xff] %v3705_v17  ;;  %v3703_v9 = vmax.f32 %v3667_v60, 0.0  ;;  %v3672_v57 = vadd.f32 %v5968_v18, %v3629_v36  ;;  %v3627_v4 = vadd.f32 %v3508_v41, %v3309_v24  ;;  %v4538_v28 = vpop.f32.mrf.mxu1 }
 0x1f0   : > { %v4572_v45 = vpop.f32.mrf.mxu0  ;;  %v3316_v39 = vadd.f32 %v4538_v28, %v5901_v7 }
 0x1f1   : > { %3739 = vst [vmem:[%s5976_s13 + $0x28] sm:$0xff] %v3703_v9  ;;  %v3708_v55 = vmax.f32 %v3672_v57, 0.0  ;;  %v3670_v2 = vadd.f32 %v5968_v18, %v3627_v4  ;;  %v3630_v40 = vadd.f32 %v4572_v45, %v3312_v12  ;;  %v3209_v0 = vpop.f32.mrf.mxu1 }
 0x1f2   : > { %v3511_v34 = vpop.f32.mrf.mxu0  ;;  %v3314_v32 = vadd.f32 %v3209_v0, %v5904_v47 }
 0x1f3   : > { %3744 = vst [vmem:[%s5976_s13 + $0x50] sm:$0xff] %v3708_v55  ;;  %v3706_v53 = vmax.f32 %v3670_v2, 0.0  ;;  %v3673_v19 = vadd.f32 %v5968_v18, %v3630_v40  ;;  %v3628_v56 = vadd.f32 %v3511_v34, %v3310_v27  ;;  %v4541_v63 = vpop.f32.mrf.mxu1 }
 0x1f4   : > { %v4575_v49 = vpop.f32.mrf.mxu0  ;;  %v3319_v7 = vadd.f32 %v4541_v63, %v5907_v25 }
 0x1f5   : > { %3742 = vst [vmem:[%s5976_s13 + $0x40] sm:$0xff] %v3706_v53  ;;  %v3709_v5 = vmax.f32 %v3673_v19, 0.0  ;;  %v3671_v10 = vadd.f32 %v5968_v18, %v3628_v56  ;;  %v3633_v50 = vadd.f32 %v4575_v49, %v3315_v23  ;;  %v3222_v54 = vpop.f32.mrf.mxu1 }
 0x1f6   : > { %v3524_v52 = vpop.f32.mrf.mxu0  ;;  %v3317_v47 = vadd.f32 %v3222_v54, %v5910_v22 }
 0x1f7   : > { %3745 = vst [vmem:[%s5976_s13 + $0x58] sm:$0xff] %v3709_v5  ;;  %v3707_v11 = vmax.f32 %v3671_v10, 0.0  ;;  %v3676_v16 = vadd.f32 %v5968_v18, %v3633_v50  ;;  %v3631_v14 = vadd.f32 %v3524_v52, %v3313_v33  ;;  %v4542_v8 = vpop.f32.mrf.mxu1 }
 0x1f8   : > { %v4576_v43 = vpop.f32.mrf.mxu0  ;;  %v3320_v25 = vadd.f32 %v4542_v8, %v5913_v26 }
 0x1f9   : > { %3743 = vst [vmem:[%s5976_s13 + $0x48] sm:$0xff] %v3707_v11  ;;  %v3712_v3 = vmax.f32 %v3676_v16, 0.0  ;;  %v3674_v61 = vadd.f32 %v5968_v18, %v3631_v14  ;;  %v3634_v46 = vadd.f32 %v4576_v43, %v3316_v39  ;;  %v3225_v37 = vpop.f32.mrf.mxu1 }
 0x1fa   : > { %v3527_v24 = vpop.f32.mrf.mxu0  ;;  %v3318_v22 = vadd.f32 %v3225_v37, %v5916_v6 }
 0x1fb   : > { %3748 = vst [vmem:[%s5976_s13 + $0x70] sm:$0xff] %v3712_v3  ;;  %v3710_v17 = vmax.f32 %v3674_v61, 0.0  ;;  %v3677_v60 = vadd.f32 %v5968_v18, %v3634_v46  ;;  %v3632_v36 = vadd.f32 %v3527_v24, %v3314_v32  ;;  %v4545_v4 = vpop.f32.mrf.mxu1 }
 0x1fc   : > { %v4579_v41 = vpop.f32.mrf.mxu0  ;;  %v3323_v26 = vadd.f32 %v4545_v4, %v5919_v31 }
 0x1fd   : > { %3746 = vst [vmem:[%s5976_s13 + $0x60] sm:$0xff] %v3710_v17  ;;  %v3713_v12 = vmax.f32 %v3677_v60, 0.0  ;;  %v3675_v9 = vadd.f32 %v5968_v18, %v3632_v36  ;;  %v3637_v57 = vadd.f32 %v4579_v41, %v3319_v7  ;;  %v3238_v2 = vpop.f32.mrf.mxu1 }
 0x1fe   : > { %v3540_v51 = vpop.f32.mrf.mxu0  ;;  %v3321_v6 = vadd.f32 %v3238_v2, %v5922_v62 }
 0x1ff   : > { %3749 = vst [vmem:[%s5976_s13 + $0x78] sm:$0xff] %v3713_v12  ;;  %v3711_v45 = vmax.f32 %v3675_v9, 0.0  ;;  %v3680_v27 = vadd.f32 %v5968_v18, %v3637_v57  ;;  %v3635_v55 = vadd.f32 %v3540_v51, %v3317_v47  ;;  %v4546_v53 = vpop.f32.mrf.mxu1 }
 0x200   : > { %v4580_v40 = vpop.f32.mrf.mxu0  ;;  %v3324_v31 = vadd.f32 %v4546_v53, %v5925_v44 }
 0x201   : > { %3747 = vst [vmem:[%s5976_s13 + $0x68] sm:$0xff] %v3711_v45  ;;  %v3716_v28 = vmax.f32 %v3680_v27, 0.0  ;;  %v3678_v34 = vadd.f32 %v5968_v18, %v3635_v55  ;;  %v3638_v23 = vadd.f32 %v4580_v40, %v3320_v25  ;;  %v3241_v33 = vpop.f32.mrf.mxu1 }
 0x202   : > { %v3543_v19 = vpop.f32.mrf.mxu0  ;;  %v3322_v62 = vadd.f32 %v3241_v33, %v5928_v29 }
 0x203   : > { %3752 = vst [vmem:[%s5976_s13 + $0x90] sm:$0xff] %v3716_v28  ;;  %v3714_v56 = vmax.f32 %v3678_v34, 0.0  ;;  %v3681_v0 = vadd.f32 %v5968_v18, %v3638_v23  ;;  %v3636_v49 = vadd.f32 %v3543_v19, %v3318_v22  ;;  %v4549_v52 = vpop.f32.mrf.mxu1 }
 0x204   : > { %v4583_v5 = vpop.f32.mrf.mxu0  ;;  %v3327_v44 = vadd.f32 %v4549_v52, %v5931_v1 }
 0x205   : > { %3750 = vst [vmem:[%s5976_s13 + $0x80] sm:$0xff] %v3714_v56  ;;  %v3717_v10 = vmax.f32 %v3681_v0, 0.0  ;;  %v3679_v50 = vadd.f32 %v5968_v18, %v3636_v49  ;;  %v3641_v63 = vadd.f32 %v4583_v5, %v3323_v26  ;;  %v3254_v54 = vpop.f32.mrf.mxu1 }
 0x206   : > { %v3556_v39 = vpop.f32.mrf.mxu0  ;;  %v3325_v29 = vadd.f32 %v3254_v54, %v5934_v20 }
 0x207   : > { %3753 = vst [vmem:[%s5976_s13 + $0x98] sm:$0xff] %v3717_v10  ;;  %v3715_v11 = vmax.f32 %v3679_v50, 0.0  ;;  %v3684_v16 = vadd.f32 %v5968_v18, %v3641_v63  ;;  %v3639_v14 = vadd.f32 %v3556_v39, %v3321_v6  ;;  %v4550_v46 = vpop.f32.mrf.mxu1 }
 0x208   : > { %v4584_v43 = vpop.f32.mrf.mxu0  ;;  %v3328_v1 = vadd.f32 %v4550_v46, %v5937_v38 }
 0x209   : > { %3751 = vst [vmem:[%s5976_s13 + $0x88] sm:$0xff] %v3715_v11  ;;  %v3720_v32 = vmax.f32 %v3684_v16, 0.0  ;;  %v3682_v3 = vadd.f32 %v5968_v18, %v3639_v14  ;;  %v3642_v61 = vadd.f32 %v4584_v43, %v3324_v31  ;;  %v3257_v60 = vpop.f32.mrf.mxu1 }
 0x20a   : > { %v3559_v8 = vpop.f32.mrf.mxu0  ;;  %v3326_v20 = vadd.f32 %v3257_v60, %v5940_v30 }
 0x20b   : > { %3756 = vst [vmem:[%s5976_s13 + $0xb0] sm:$0xff] %v3720_v32  ;;  %v3718_v24 = vmax.f32 %v3682_v3, 0.0  ;;  %v3685_v7 = vadd.f32 %v5968_v18, %v3642_v61  ;;  %v3640_v17 = vadd.f32 %v3559_v8, %v3322_v62  ;;  %v4553_v12 = vpop.f32.mrf.mxu1 }
 0x20c   : > { %v4587_v36 = vpop.f32.mrf.mxu0  ;;  %v3331_v38 = vadd.f32 %v4553_v12, %v5943_v21 }
 0x20d   : > { %3754 = vst [vmem:[%s5976_s13 + $0xa0] sm:$0xff] %v3718_v24  ;;  %v3721_v37 = vmax.f32 %v3685_v7, 0.0  ;;  %v3683_v41 = vadd.f32 %v5968_v18, %v3640_v17  ;;  %v3645_v47 = vadd.f32 %v4587_v36, %v3327_v44  ;;  %v3270_v25 = vpop.f32.mrf.mxu1 }
 0x20e   : > { %v3572_v9 = vpop.f32.mrf.mxu0  ;;  %v3329_v30 = vadd.f32 %v3270_v25, %v5946_v59 }
 0x20f   : > { %3757 = vst [vmem:[%s5976_s13 + $0xb8] sm:$0xff] %v3721_v37  ;;  %v3719_v57 = vmax.f32 %v3683_v41, 0.0  ;;  %v3688_v4 = vadd.f32 %v5968_v18, %v3645_v47  ;;  %v3643_v51 = vadd.f32 %v3572_v9, %v3325_v29  ;;  %v4554_v40 = vpop.f32.mrf.mxu1 }
 0x210   : > { %v4588_v45 = vpop.f32.mrf.mxu0  ;;  %v3332_v21 = vadd.f32 %v4554_v40, %v5949_v42 }
 0x211   : > { %3755 = vst [vmem:[%s5976_s13 + $0xa8] sm:$0xff] %v3719_v57  ;;  %v3724_v27 = vmax.f32 %v3688_v4, 0.0  ;;  %v3686_v55 = vadd.f32 %v5968_v18, %v3643_v51  ;;  %v3646_v2 = vadd.f32 %v4588_v45, %v3328_v1  ;;  %v3273_v53 = vpop.f32.mrf.mxu1 }
 0x212   : > { %v3575_v22 = vpop.f32.mrf.mxu0  ;;  %v3330_v59 = vadd.f32 %v3273_v53, %v5952_v13 }
 0x213   : > { %3760 = vst [vmem:[%s5976_s13 + $0xd0] sm:$0xff] %v3724_v27  ;;  %v3722_v28 = vmax.f32 %v3686_v55, 0.0  ;;  %v3689_v34 = vadd.f32 %v5968_v18, %v3646_v2  ;;  %v3644_v23 = vadd.f32 %v3575_v22, %v3326_v20  ;;  %v4557_v49 = vpop.f32.mrf.mxu1 }
 0x214   : > { %v4591_v19 = vpop.f32.mrf.mxu0  ;;  %v3335_v42 = vadd.f32 %v4557_v49, %v5955_v15 }
 0x215   : > { %3758 = vst [vmem:[%s5976_s13 + $0xc0] sm:$0xff] %v3722_v28  ;;  %v3725_v26 = vmax.f32 %v3689_v34, 0.0  ;;  %v3687_v56 = vadd.f32 %v5968_v18, %v3644_v23  ;;  %v3649_v0 = vadd.f32 %v4591_v19, %v3331_v38  ;;  %v3286_v50 = vpop.f32.mrf.mxu1 }
 0x216   : > { %v3588_v33 = vpop.f32.mrf.mxu0  ;;  %v3333_v32 = vadd.f32 %v3286_v50, %v5957_v35 }
 0x217   : > { %3761 = vst [vmem:[%s5976_s13 + $0xd8] sm:$0xff] %v3725_v26  ;;  %v3723_v5 = vmax.f32 %v3687_v56, 0.0  ;;  %v3692_v6 = vadd.f32 %v5968_v18, %v3649_v0  ;;  %v3647_v10 = vadd.f32 %v3588_v33, %v3329_v30  ;;  %v4558_v11 = vpop.f32.mrf.mxu1 }
 0x218   : > { %v4592_v63 = vpop.f32.mrf.mxu0  ;;  %v3336_v44 = vadd.f32 %v4558_v11, %v5959_v48 }
 0x219   : > { %3759 = vst [vmem:[%s5976_s13 + $0xc8] sm:$0xff] %v3723_v5  ;;  %v3728_v52 = vmax.f32 %v3692_v6, 0.0  ;;  %v3690_v39 = vadd.f32 %v5968_v18, %v3647_v10  ;;  %v3650_v31 = vadd.f32 %v4592_v63, %v3332_v21  ;;  %v3289_v46 = vpop.f32.mrf.mxu1 }
 0x21a   : > { %v3591_v16 = vpop.f32.mrf.mxu0  ;;  %v3334_v35 = vadd.f32 %v3289_v46, %v5962_v58 }
 0x21b   : > { %3764 = vst [vmem:[%s5976_s13 + $0xf0] sm:$0xff] %v3728_v52  ;;  %v3726_v14 = vmax.f32 %v3690_v39, 0.0  ;;  %v3693_v54 = vadd.f32 %v5968_v18, %v3650_v31  ;;  %v3648_v43 = vadd.f32 %v3591_v16, %v3330_v59 }
 0x21c   : > { %v4595_v62 = vpop.f32.mrf.mxu0 }
 0x21d   : > { %3762 = vst [vmem:[%s5976_s13 + $0xe0] sm:$0xff] %v3726_v14  ;;  %v3729_v13 = vmax.f32 %v3693_v54, 0.0  ;;  %v3691_v3 = vadd.f32 %v5968_v18, %v3648_v43  ;;  %v3653_v61 = vadd.f32 %v4595_v62, %v3335_v42 }
 0x21e   : > { %v3604_v8 = vpop.f32.mrf.mxu0 }
 0x21f   : > { %3765 = vst [vmem:[%s5976_s13 + $0xf8] sm:$0xff] %v3729_v13  ;;  %v3727_v15 = vmax.f32 %v3691_v3, 0.0  ;;  %v3696_v24 = vadd.f32 %v5968_v18, %v3653_v61  ;;  %v3651_v7 = vadd.f32 %v3604_v8, %v3333_v32 }
 0x220   : > { %v4596_v17 = vpop.f32.mrf.mxu0 }
 0x221   : > { %3763 = vst [vmem:[%s5976_s13 + $0xe8] sm:$0xff] %v3727_v15  ;;  %v3732_v60 = vmax.f32 %v3696_v24, 0.0  ;;  %v3694_v36 = vadd.f32 %v5968_v18, %v3651_v7  ;;  %v3654_v29 = vadd.f32 %v4596_v17, %v3336_v44 }
 0x222   : > { %v3607_v37 = vpop.f32.mrf.mxu0 }
 0x223   : > { %3768 = vst [vmem:[%s5976_s13 + $0x110] sm:$0xff] %v3732_v60  ;;  %v3730_v41 = vmax.f32 %v3694_v36, 0.0  ;;  %v3697_v48 = vadd.f32 %v5968_v18, %v3654_v29  ;;  %v3652_v47 = vadd.f32 %v3607_v37, %v3334_v35 }
 0x225   : > { %3766 = vst [vmem:[%s5976_s13 + $0x100] sm:$0xff] %v3730_v41  ;;  %v3733_v12 = vmax.f32 %v3697_v48, 0.0  ;;  %v3695_v9 = vadd.f32 %v5968_v18, %v3652_v47 }
 0x227   : > { %3769 = vst [vmem:[%s5976_s13 + $0x118] sm:$0xff] %v3733_v12  ;;  %v3731_v1 = vmax.f32 %v3695_v9, 0.0 }
 0x229   : > { %3767 = vst [vmem:[%s5976_s13 + $0x108] sm:$0xff] %v3731_v1 }
 0x22a PF: > { %s13_s12 = sadd.s32 1, %s4686_s12  }
 0x22b   : > { %p10_p4 = scmp.ge.s32.totalorder %s13_s12, 4  }
 0x22d   :  { %12 = sbr.rel (!%p10_p4) target bundleno = 1 (0x1), region = 70 }

// kernel: inception_forward.8
= control target key start
LH: loop header
LB: loop body
LE: loop exit
PB: predicated region body
PF: predicated region fallthrough
CT: control target
= control target key end

     0   :  { %s1159_s6 = smov 0   ;;  %s1735_s0 = inlined_call_operand.vmem [shape: bf16[2,18,18,4], index: 0, kind: input, shape index: {}]   ;;  %s1736_s1 = inlined_call_operand.vmem [shape: bf16[2,16,16,4], index: 1, kind: output, shape index: {}]  }
   0x1 LB: > { %s1103_s7 = sadd.s32 4294967295, %s1147_s6   ;;  %p1107_p0 = scmp.ge.s32.totalorder %s1147_s6, 1  ;;  %s1147_s6 = sphi %s1159_s6, %s11_s6  }
   0x2   : > { %p87_p1 = scmp.lt.s32.totalorder %s1147_s6, 3 }
   0x4   : > { %p88_p2 = pnand %p1107_p0, %p87_p1 }
   0x5   : > { %p107_p3 = scmp.lt.s32.totalorder (!%p88_p2), %s1103_s7, 1 }
   0x6   : > { %91 = sbr.rel (%p88_p2) target bundleno = 158 (0x9e), region = 24 }
   0xb   : > { %s1742_s7 = smov (!%p107_p3, %s1103_s7), 1  ;;  %vm171_vm0 = vsmask.f32 3328  ;;  %vm172_vm1 = vsmask.f32 7440  ;;  %vm750_vm2 = vcmask 1042432  }
   0xc   : > { %s1132_s8 = smul.u32 216, %s1742_s7  ;;  %vm751_vm3 = vcmask 1046532   ;;  %vm1202_vm5 = vmor %vm171_vm0, %vm172_vm1  ;;  %vm1015_vm6 = vcmask 27648   ;;  %s1131_s12 = sshll.u32 %s1742_s7, 7 }
   0xd   : > { %vm1194_vm4 = vmor %vm750_vm2, %vm751_vm3  ;;  %s1235_s15 = scalar_lea.vmem %s1736_s1, %s1131_s12 }
   0xe   : > { %s1173_s11 = scalar_lea.vmem %s1735_s0, %s1132_s8 }
   0xf   : > { %v117_v0 = vld [vmem:[%s1173_s11] sm:$0xf]  ;;  %v1177_v1 = vld [vmem:[%s1173_s11 + $0x4] sm:$0xf]  ;;  %v119_v2 = vld [vmem:[%s1173_s11 + $0xc] sm:$0xf] }
  0x10   : > { %v1181_v3 = vld [vmem:[%s1173_s11 + $0x10] sm:$0xf]  ;;  %v121_v4 = vld [vmem:[%s1173_s11 + $0x18] sm:$0xf]  ;;  %v1185_v5 = vld [vmem:[%s1173_s11 + $0x1c] sm:$0xf] }
  0x11   : > { %v175_v6 = vshrl.u32 %v117_v0, 16  ;;  %v178_v7 = vshll.u32 %v117_v0, 16  ;;  %v184_v8 = vshll.u32 %v1177_v1, 16  ;;  %v199_v9 = vshrl.u32 %v119_v2, 16  ;;  %v678_v14 = vld [vmem:[%s1173_s11] sm:$0xe] }
  0x12   : > { %v202_v10 = vshll.u32 %v119_v2, 16  ;;  %v208_v11 = vshll.u32 %v1181_v3, 16  ;;  %v223_v12 = vshrl.u32 %v121_v4, 16  ;;  %v226_v13 = vshll.u32 %v121_v4, 16  ;;  %v679_v19 = vld [vmem:[%s1173_s11 + $0xc] sm:$0xe] }
  0x13   : > { %v177_v15 = vrot.slane %v175_v6, 4  ;;  %v180_v16 = vrot.slane %v178_v7, 5  ;;  %v186_v17 = vrot.slane %v184_v8, 5  ;;  %v201_v18 = vrot.slane %v199_v9, 4  ;;  %v680_v24 = vld [vmem:[%s1173_s11 + $0x18] sm:$0xe] }
  0x14   : > { %v204_v20 = vrot.slane %v202_v10, 5  ;;  %v210_v21 = vrot.slane %v208_v11, 5  ;;  %v225_v22 = vrot.slane %v223_v12, 4  ;;  %v228_v23 = vrot.slane %v226_v13, 5  ;;  %v153_v35 = vld [vmem:[%s1173_s11 + $0x8] sm:$0x1] }
  0x15   : > { %v181_v26 = vor.u32 %v180_v16, %v177_v15  ;;  %v232_v27 = vshll.u32 %v1185_v5, 16  ;;  %v1111_v28 = vrot.slane %v678_v14, 9  ;;  %v755_v29 = vrot.slane %v1177_v1, 5  ;;  %v154_v45 = vld [vmem:[%s1173_s11 + $0x14] sm:$0x1] }
  0x16   : > { %v205_v31 = vor.u32 %v204_v20, %v201_v18  ;;  %v229_v32 = vor.u32 %v228_v23, %v225_v22  ;;  %v1112_v33 = vrot.slane %v679_v19, 9  ;;  %v762_v34 = vrot.slane %v1181_v3, 5  ;;  %v155_v53 = vld [vmem:[%s1173_s11 + $0x20] sm:$0x1]  ;;  %v1244_v22 = vld [vmem:[%s1173_s11 + $0x28] sm:$0xf] }
  0x17   : > { %v182_v36 = vrot.slane %v181_v26, 4  ;;  %v234_v37 = vrot.slane %v232_v27, 5  ;;  %v756_v38 = vsel %vm1194_vm4, %v1111_v28, %v755_v29  ;;  %v1113_v39 = vrot.slane %v680_v24, 9  ;;  %v681_v23 = vld [vmem:[%s1173_s11 + $0x24] sm:$0xe] }
  0x18   : > { %v206_v40 = vrot.slane %v205_v31, 4  ;;  %v230_v41 = vrot.slane %v229_v32, 4  ;;  %v763_v42 = vsel %vm1194_vm4, %v1112_v33, %v762_v34  ;;  %v769_v43 = vrot.slane %v1185_v5, 5 }
  0x19   : > { %v187_v44 = vsel %vm1202_vm5, %v182_v36, %v186_v17  ;;  %v188_v46 = vshrl.u32 %v1177_v1, 16  ;;  %v194_v47 = vshll.u32 %v153_v35, 16  ;;  %v212_v48 = vshrl.u32 %v1181_v3, 16 }
  0x1a   : > { %v211_v49 = vsel %vm1202_vm5, %v206_v40, %v210_v21  ;;  %v235_v50 = vsel %vm1202_vm5, %v230_v41, %v234_v37  ;;  %v642_v51 = vmax.bf16 %v187_v44, %v117_v0  ;;  %v770_v52 = vsel %vm1194_vm4, %v1113_v39, %v769_v43 }
  0x1b   : > { %v644_v54 = vmax.bf16 %v211_v49, %v119_v2  ;;  %v646_v55 = vmax.bf16 %v235_v50, %v121_v4  ;;  %v190_v56 = vrot.slane %v188_v46, 4  ;;  %v196_v57 = vrot.slane %v194_v47, 5 }
  0x1c   : > { %v915_v58 = vmax.bf16 %v756_v38, %v642_v51  ;;  %v214_v59 = vrot.slane %v212_v48, 4  ;;  %v218_v60 = vshll.u32 %v154_v45, 16  ;;  %v236_v61 = vshrl.u32 %v1185_v5, 16  ;;  %v156_v38 = vld [vmem:[%s1173_s11 + $0x2c] sm:$0x1] }
  0x1d   : > { %v1227_v62 = vmax.bf16 %v763_v42, %v644_v54  ;;  %v1229_v63 = vmax.bf16 %v770_v52, %v646_v55  ;;  %v191_v0 = vor.u32 %v190_v56, %v186_v17  ;;  %v242_v6 = vshll.u32 %v155_v53, 16  ;;  %v123_v17 = vld [vmem:[%s1173_s11 + $0x24] sm:$0xf]  ;;  %v126_v52 = vld [vmem:[%s1173_s11 + $0x34] sm:$0xf] }
  0x1e   : > { %v215_v7 = vor.u32 %v214_v59, %v210_v21  ;;  %v220_v8 = vrot.slane %v218_v60, 5  ;;  %v238_v9 = vrot.slane %v236_v61, 4  ;;  %v757_v2 = vrot.slane %v755_v29, 4  ;;  %v682_v61 = vld [vmem:[%s1173_s11 + $0x30] sm:$0xe] }
  0x1f   : > { %v951_v4 = vmax.bf16 %v1227_v62, %v915_v58  ;;  %v192_v10 = vrot.slane %v191_v0, 4  ;;  %v244_v11 = vrot.slane %v242_v6, 5  ;;  %v758_v12 = vrot.slane %v153_v35, 5 }
  0x20   : > { %v216_v13 = vrot.slane %v215_v7, 4  ;;  %v239_v14 = vor.u32 %v238_v9, %v234_v37  ;;  %v764_v15 = vrot.slane %v762_v34, 4  ;;  %v765_v16 = vrot.slane %v154_v45, 5 }
  0x21   : > { %v983_v18 = vmax.bf16 %v951_v4, %v1229_v63  ;;  %v197_v19 = vsel %vm1202_vm5, %v192_v10, %v196_v57  ;;  %v759_v20 = vsel %vm1194_vm4, %v757_v2, %v758_v12  ;;  %v771_v21 = vrot.slane %v769_v43, 4 }
  0x22   : > { %v221_v24 = vsel %vm1202_vm5, %v216_v13, %v220_v8  ;;  %v240_v26 = vrot.slane %v239_v14, 4  ;;  %v643_v27 = vmax.bf16 %v197_v19, %v1177_v1  ;;  %v766_v28 = vsel %vm1194_vm4, %v764_v15, %v765_v16  ;;  %v157_v8 = vld [vmem:[%s1173_s11 + $0x38] sm:$0x1] }
  0x23   : > { %1016 = vst.msk [vmem:[%s1235_s15] sm:$0xf] %vm1015_vm6, %v983_v18  ;;  %v645_v29 = vmax.bf16 %v221_v24, %v1181_v3  ;;  %v772_v31 = vrot.slane %v155_v53, 5  ;;  %v247_v32 = vshrl.u32 %v123_v17, 16  ;;  %v250_v33 = vshll.u32 %v123_v17, 16 }
  0x24   : > { %v245_v34 = vsel %vm1202_vm5, %v240_v26, %v244_v11  ;;  %v916_v35 = vmax.bf16 %v759_v20, %v643_v27  ;;  %v256_v36 = vshll.u32 %v1244_v22, 16  ;;  %v1114_v37 = vrot.slane %v681_v23, 9  ;;  %v1287_v11 = vld [vmem:[%s1173_s11 + $0x3c] sm:$0xf] }
  0x25   : > { %v647_v1 = vmax.bf16 %v245_v34, %v1185_v5  ;;  %v773_v39 = vsel %vm1194_vm4, %v771_v21, %v772_v31  ;;  %v1262_v40 = vmax.bf16 %v766_v28, %v645_v29  ;;  %v249_v3 = vrot.slane %v247_v32, 4  ;;  %v125_v5 = vld [vmem:[%s1173_s11 + $0x30] sm:$0xf]  ;;  %v1296_v31 = vld [vmem:[%s1173_s11 + $0x40] sm:$0xf] }
  0x26   : > { %v252_v41 = vrot.slane %v250_v33, 5  ;;  %v258_v42 = vrot.slane %v256_v36, 5  ;;  %v776_v43 = vrot.slane %v1244_v22, 5  ;;  %v260_v46 = vshrl.u32 %v1244_v22, 16  ;;  %v683_v32 = vld [vmem:[%s1173_s11 + $0x3c] sm:$0xe] }
  0x27   : > { %v1265_v44 = vmax.bf16 %v773_v39, %v647_v1  ;;  %v952_v45 = vmax.bf16 %v1262_v40, %v916_v35  ;;  %v266_v47 = vshll.u32 %v156_v38, 16  ;;  %v953_v49 = vmax.bf16 %v1229_v63, %v1227_v62 }
  0x28   : > { %v253_v48 = vor.u32 %v252_v41, %v249_v3  ;;  %v778_v50 = vrot.slane %v776_v43, 4  ;;  %v779_v51 = vrot.slane %v156_v38, 5  ;;  %v777_v54 = vsel %vm1194_vm4, %v1114_v37, %v776_v43 }
  0x29   : > { %v984_v53 = vmax.bf16 %v952_v45, %v1265_v44  ;;  %v262_v55 = vrot.slane %v260_v46, 4  ;;  %v268_v56 = vrot.slane %v266_v47, 5  ;;  %v954_v58 = vmax.bf16 %v1265_v44, %v1262_v40 }
  0x2a   : > { %v254_v57 = vrot.slane %v253_v48, 4  ;;  %v271_v59 = vshrl.u32 %v125_v5, 16  ;;  %v274_v60 = vshll.u32 %v125_v5, 16  ;;  %v780_v0 = vsel %vm1194_vm4, %v778_v50, %v779_v51  ;;  %v129_v50 = vld [vmem:[%s1173_s11 + $0x48] sm:$0xf] }
  0x2b   : > { %1017 = vst.msk [vmem:[%s1235_s15 + $0x4] sm:$0xf] %vm1015_vm6, %v984_v53  ;;  %v263_v62 = vor.u32 %v262_v55, %v258_v42  ;;  %v280_v6 = vshll.u32 %v126_v52, 16  ;;  %v783_v7 = vrot.slane %v126_v52, 5  ;;  %v284_v10 = vshrl.u32 %v126_v52, 16 }
  0x2c   : > { %v259_v9 = vsel %vm1202_vm5, %v254_v57, %v258_v42  ;;  %v273_v2 = vrot.slane %v271_v59, 4  ;;  %v276_v4 = vrot.slane %v274_v60, 5  ;;  %v1115_v15 = vrot.slane %v682_v61, 9 }
  0x2d   : > { %v648_v12 = vmax.bf16 %v259_v9, %v123_v17  ;;  %v264_v13 = vrot.slane %v263_v62, 4  ;;  %v282_v14 = vrot.slane %v280_v6, 5  ;;  %v286_v18 = vrot.slane %v284_v10, 4 }
  0x2e   : > { %v277_v16 = vor.u32 %v276_v4, %v273_v2  ;;  %v290_v19 = vshll.u32 %v157_v8, 16  ;;  %v785_v20 = vrot.slane %v783_v7, 4  ;;  %v786_v24 = vrot.slane %v157_v8, 5  ;;  %v159_v2 = vld [vmem:[%s1173_s11 + $0x50] sm:$0x1] }
  0x2f   : > { %v1289_v21 = vmax.bf16 %v777_v54, %v648_v12  ;;  %v269_v23 = vsel %vm1202_vm5, %v264_v13, %v268_v56  ;;  %v295_v26 = vshrl.u32 %v1287_v11, 16  ;;  %v287_v28 = vor.u32 %v286_v18, %v282_v14 }
  0x30   : > { %v649_v17 = vmax.bf16 %v269_v23, %v1244_v22  ;;  %v278_v27 = vrot.slane %v277_v16, 4  ;;  %v292_v29 = vrot.slane %v290_v19, 5  ;;  %v784_v34 = vsel %vm1194_vm4, %v1115_v15, %v783_v7 }
  0x31   : > { %v985_v33 = vmax.bf16 %v953_v49, %v1289_v21  ;;  %v955_v35 = vmax.bf16 %v1289_v21, %v1229_v63  ;;  %v297_v36 = vrot.slane %v295_v26, 4  ;;  %v288_v38 = vrot.slane %v287_v28, 4  ;;  %v158_v63 = vld [vmem:[%s1173_s11 + $0x44] sm:$0x1]  ;;  %v1360_v28 = vld [vmem:[%s1173_s11 + $0x58] sm:$0xf] }
  0x32   : > { %v1304_v37 = vmax.bf16 %v780_v0, %v649_v17  ;;  %v283_v22 = vsel %vm1202_vm5, %v278_v27, %v282_v14  ;;  %v298_v1 = vshll.u32 %v1287_v11, 16  ;;  %v304_v40 = vshll.u32 %v1296_v31, 16  ;;  %v684_v0 = vld [vmem:[%s1173_s11 + $0x48] sm:$0xe] }
  0x33   : > { %1018 = vst.msk [vmem:[%s1235_s15 + $0x8] sm:$0xf] %vm1015_vm6, %v985_v33  ;;  %v650_v39 = vmax.bf16 %v283_v22, %v125_v5  ;;  %v1116_v3 = vrot.slane %v683_v32, 9  ;;  %v790_v41 = vrot.slane %v1296_v31, 5  ;;  %v293_v43 = vsel %vm1202_vm5, %v288_v38, %v292_v29 }
  0x34   : > { %v986_v42 = vmax.bf16 %v954_v58, %v1304_v37  ;;  %v787_v45 = vsel %vm1194_vm4, %v785_v20, %v786_v24  ;;  %v300_v46 = vrot.slane %v298_v1, 5  ;;  %v651_v48 = vmax.bf16 %v293_v43, %v126_v52  ;;  %v1333_v58 = vld [vmem:[%s1173_s11 + $0x4c] sm:$0xf] }
  0x35   : > { %v1319_v47 = vmax.bf16 %v784_v34, %v650_v39  ;;  %v956_v5 = vmax.bf16 %v1304_v37, %v1265_v44  ;;  %v306_v49 = vrot.slane %v304_v40, 5  ;;  %v308_v53 = vshrl.u32 %v1296_v31, 16 }
  0x36   : > { %1019 = vst.msk [vmem:[%s1235_s15 + $0xc] sm:$0xf] %vm1015_vm6, %v986_v42  ;;  %v301_v51 = vor.u32 %v300_v46, %v297_v36  ;;  %v314_v54 = vshll.u32 %v158_v63, 16  ;;  %v792_v55 = vrot.slane %v790_v41, 4  ;;  %v1328_v57 = vmax.bf16 %v787_v45, %v651_v48 }
  0x37   : > { %v987_v56 = vmax.bf16 %v955_v35, %v1319_v47  ;;  %v791_v52 = vsel %vm1194_vm4, %v1116_v3, %v790_v41  ;;  %v793_v44 = vrot.slane %v158_v63, 5  ;;  %v957_v60 = vmax.bf16 %v1319_v47, %v1289_v21  ;;  %v685_v35 = vld [vmem:[%s1173_s11 + $0x54] sm:$0xe] }
  0x38   : > { %v302_v59 = vrot.slane %v301_v51, 4  ;;  %v310_v61 = vrot.slane %v308_v53, 4  ;;  %v319_v62 = vshrl.u32 %v129_v50, 16  ;;  %v988_v6 = vmax.bf16 %v956_v5, %v1328_v57 }
  0x39   : > { %1020 = vst.msk [vmem:[%s1235_s15 + $0x10] sm:$0xf] %vm1015_vm6, %v987_v56  ;;  %v316_v7 = vrot.slane %v314_v54, 5  ;;  %v794_v8 = vsel %vm1194_vm4, %v792_v55, %v793_v44  ;;  %v322_v9 = vshll.u32 %v129_v50, 16  ;;  %v328_v13 = vshll.u32 %v1333_v58, 16 }
  0x3a   : > { %v307_v4 = vsel %vm1202_vm5, %v302_v59, %v306_v49  ;;  %v311_v10 = vor.u32 %v310_v61, %v306_v49  ;;  %v321_v12 = vrot.slane %v319_v62, 4  ;;  %1021 = vst.msk [vmem:[%s1235_s15 + $0x14] sm:$0xf] %vm1015_vm6, %v988_v6  ;;  %v1117_v16 = vrot.slane %v684_v0, 9  ;;  %v1393_v62 = vld [vmem:[%s1173_s11 + $0x64] sm:$0xf] }
  0x3b   : > { %v652_v14 = vmax.bf16 %v307_v4, %v1287_v11  ;;  %v324_v15 = vrot.slane %v322_v9, 5  ;;  %v797_v18 = vrot.slane %v1333_v58, 5  ;;  %v330_v20 = vrot.slane %v328_v13, 5  ;;  %v131_v11 = vld [vmem:[%s1173_s11 + $0x54] sm:$0xf] }
  0x3c   : > { %v312_v19 = vrot.slane %v311_v10, 4  ;;  %v332_v21 = vshrl.u32 %v1333_v58, 16  ;;  %v338_v23 = vshll.u32 %v159_v2, 16  ;;  %v958_v26 = vmax.bf16 %v1328_v57, %v1304_v37 }
  0x3d   : > { %v1352_v24 = vmax.bf16 %v791_v52, %v652_v14  ;;  %v325_v17 = vor.u32 %v324_v15, %v321_v12  ;;  %v798_v27 = vsel %vm1194_vm4, %v1117_v16, %v797_v18  ;;  %v799_v34 = vrot.slane %v797_v18, 4  ;;  %v133_v52 = vld [vmem:[%s1173_s11 + $0x60] sm:$0xf] }
  0x3e   : > { %v317_v29 = vsel %vm1202_vm5, %v312_v19, %v316_v7  ;;  %v334_v32 = vrot.slane %v332_v21, 4  ;;  %v340_v33 = vrot.slane %v338_v23, 5  ;;  %v800_v38 = vrot.slane %v159_v2, 5  ;;  %v686_v14 = vld [vmem:[%s1173_s11 + $0x60] sm:$0xe] }
  0x3f   : > { %v989_v36 = vmax.bf16 %v957_v60, %v1352_v24  ;;  %v653_v22 = vmax.bf16 %v317_v29, %v1296_v31  ;;  %v326_v37 = vrot.slane %v325_v17, 4  ;;  %v959_v1 = vmax.bf16 %v1352_v24, %v1319_v47  ;;  %v160_v47 = vld [vmem:[%s1173_s11 + $0x5c] sm:$0x1] }
  0x40   : > { %v335_v39 = vor.u32 %v334_v32, %v330_v20  ;;  %v343_v40 = vshrl.u32 %v131_v11, 16  ;;  %v346_v3 = vshll.u32 %v131_v11, 16  ;;  %v352_v42 = vshll.u32 %v1360_v28, 16 }
  0x41   : > { %1022 = vst.msk [vmem:[%s1235_s15 + $0x18] sm:$0xf] %vm1015_vm6, %v989_v36  ;;  %v1371_v41 = vmax.bf16 %v794_v8, %v653_v22  ;;  %v331_v63 = vsel %vm1202_vm5, %v326_v37, %v330_v20  ;;  %v1118_v31 = vrot.slane %v685_v35, 9  ;;  %v801_v49 = vsel %vm1194_vm4, %v799_v34, %v800_v38  ;;  %v161_v20 = vld [vmem:[%s1173_s11 + $0x68] sm:$0x1] }
  0x42   : > { %v654_v43 = vmax.bf16 %v331_v63, %v129_v50  ;;  %v336_v45 = vrot.slane %v335_v39, 4  ;;  %v345_v46 = vrot.slane %v343_v40, 4  ;;  %v348_v48 = vrot.slane %v346_v3, 5  ;;  %v135_v36 = vld [vmem:[%s1173_s11 + $0x6c] sm:$0xf] }
  0x43   : > { %v990_v5 = vmax.bf16 %v958_v26, %v1371_v41  ;;  %v354_v51 = vrot.slane %v352_v42, 5  ;;  %v804_v53 = vrot.slane %v1360_v28, 5  ;;  %v356_v50 = vshrl.u32 %v1360_v28, 16  ;;  %v1422_v22 = vld [vmem:[%s1173_s11 + $0x70] sm:$0xf] }
  0x44   : > { %v1381_v54 = vmax.bf16 %v798_v27, %v654_v43  ;;  %v341_v55 = vsel %vm1202_vm5, %v336_v45, %v340_v33  ;;  %v349_v56 = vor.u32 %v348_v48, %v345_v46  ;;  %v960_v59 = vmax.bf16 %v1371_v41, %v1328_v57 }
  0x45   : > { %1023 = vst.msk [vmem:[%s1235_s15 + $0x1c] sm:$0xf] %vm1015_vm6, %v990_v5  ;;  %v655_v44 = vmax.bf16 %v341_v55, %v1333_v58  ;;  %v362_v60 = vshll.u32 %v160_v47, 16  ;;  %v806_v61 = vrot.slane %v804_v53, 4  ;;  %v805_v7 = vsel %vm1194_vm4, %v1118_v31, %v804_v53  ;;  %v687_v31 = vld [vmem:[%s1173_s11 + $0x6c] sm:$0xe] }
  0x46   : > { %v991_v0 = vmax.bf16 %v959_v1, %v1381_v54  ;;  %v350_v6 = vrot.slane %v349_v56, 4  ;;  %v358_v8 = vrot.slane %v356_v50, 4  ;;  %v807_v58 = vrot.slane %v160_v47, 5 }
  0x47   : > { %v1398_v9 = vmax.bf16 %v801_v49, %v655_v44  ;;  %v364_v2 = vrot.slane %v362_v60, 5  ;;  %v367_v4 = vshrl.u32 %v133_v52, 16  ;;  %v370_v12 = vshll.u32 %v133_v52, 16  ;;  %v162_v49 = vld [vmem:[%s1173_s11 + $0x74] sm:$0x1] }
  0x48   : > { %1024 = vst.msk [vmem:[%s1235_s15 + $0x20] sm:$0xf] %vm1015_vm6, %v991_v0  ;;  %v355_v57 = vsel %vm1202_vm5, %v350_v6, %v354_v51  ;;  %v359_v10 = vor.u32 %v358_v8, %v354_v51  ;;  %v376_v13 = vshll.u32 %v1393_v62, 16  ;;  %v961_v18 = vmax.bf16 %v1381_v54, %v1352_v24 }
  0x49   : > { %v992_v15 = vmax.bf16 %v960_v59, %v1398_v9  ;;  %v656_v16 = vmax.bf16 %v355_v57, %v131_v11  ;;  %v808_v19 = vsel %vm1194_vm4, %v806_v61, %v807_v58  ;;  %v369_v23 = vrot.slane %v367_v4, 4  ;;  %v1458_v58 = vld [vmem:[%s1173_s11 + $0x7c] sm:$0xf] }
  0x4a   : > { %v360_v21 = vrot.slane %v359_v10, 4  ;;  %v372_v26 = vrot.slane %v370_v12, 5  ;;  %v378_v17 = vrot.slane %v376_v13, 5  ;;  %v1119_v29 = vrot.slane %v686_v14, 9 }
  0x4b   : > { %1025 = vst.msk [vmem:[%s1235_s15 + $0x24] sm:$0xf] %vm1015_vm6, %v992_v15  ;;  %v1414_v27 = vmax.bf16 %v805_v7, %v656_v16  ;;  %v811_v11 = vrot.slane %v1393_v62, 5  ;;  %v380_v24 = vshrl.u32 %v1393_v62, 16  ;;  %v386_v34 = vshll.u32 %v161_v20, 16 }
  0x4c   : > { %v365_v32 = vsel %vm1202_vm5, %v360_v21, %v364_v2  ;;  %v373_v33 = vor.u32 %v372_v26, %v369_v23  ;;  %v814_v35 = vrot.slane %v161_v20, 5  ;;  %v962_v1 = vmax.bf16 %v1398_v9, %v1371_v41 }
  0x4d   : > { %v993_v37 = vmax.bf16 %v961_v18, %v1414_v27  ;;  %v657_v38 = vmax.bf16 %v365_v32, %v1360_v28  ;;  %v812_v39 = vsel %vm1194_vm4, %v1119_v29, %v811_v11  ;;  %v963_v3 = vmax.bf16 %v1414_v27, %v1381_v54  ;;  %v688_v18 = vld [vmem:[%s1173_s11 + $0x78] sm:$0xe]  ;;  %v163_v29 = vld [vmem:[%s1173_s11 + $0x80] sm:$0x1] }
  0x4e   : > { %v374_v40 = vrot.slane %v373_v33, 4  ;;  %v382_v63 = vrot.slane %v380_v24, 4  ;;  %v813_v42 = vrot.slane %v811_v11, 4  ;;  %v391_v45 = vshrl.u32 %v135_v36, 16 }
  0x4f   : > { %1026 = vst.msk [vmem:[%s1235_s15 + $0x28] sm:$0xf] %vm1015_vm6, %v993_v37  ;;  %v1435_v43 = vmax.bf16 %v808_v19, %v657_v38  ;;  %v394_v28 = vshll.u32 %v135_v36, 16  ;;  %v400_v41 = vshll.u32 %v1422_v22, 16  ;;  %v388_v47 = vrot.slane %v386_v34, 5 }
  0x50   : > { %v379_v46 = vsel %vm1202_vm5, %v374_v40, %v378_v17  ;;  %v383_v48 = vor.u32 %v382_v63, %v378_v17  ;;  %v815_v5 = vsel %vm1194_vm4, %v813_v42, %v814_v35  ;;  %v393_v54 = vrot.slane %v391_v45, 4  ;;  %v1495_v45 = vld [vmem:[%s1173_s11 + $0x88] sm:$0xf] }
  0x51   : > { %v994_v51 = vmax.bf16 %v962_v1, %v1435_v43  ;;  %v658_v53 = vmax.bf16 %v379_v46, %v133_v52  ;;  %v1120_v55 = vrot.slane %v687_v31, 9  ;;  %v964_v50 = vmax.bf16 %v1435_v43, %v1398_v9  ;;  %v1453_v52 = vld [vmem:[%s1173_s11 + $0x78] sm:$0xf]  ;;  %v1485_v1 = vld [vmem:[%s1173_s11 + $0x84] sm:$0xf] }
  0x52   : > { %v384_v56 = vrot.slane %v383_v48, 4  ;;  %v396_v44 = vrot.slane %v394_v28, 5  ;;  %v818_v59 = vrot.slane %v1422_v22, 5  ;;  %v402_v61 = vrot.slane %v400_v41, 5 }
  0x53   : > { %1027 = vst.msk [vmem:[%s1235_s15 + $0x2c] sm:$0xf] %vm1015_vm6, %v994_v51  ;;  %v1449_v60 = vmax.bf16 %v812_v39, %v658_v53  ;;  %v404_v0 = vshrl.u32 %v1422_v22, 16  ;;  %v410_v6 = vshll.u32 %v162_v49, 16  ;;  %v821_v2 = vrot.slane %v162_v49, 5 }
  0x54   : > { %v389_v7 = vsel %vm1202_vm5, %v384_v56, %v388_v47  ;;  %v397_v8 = vor.u32 %v396_v44, %v393_v54  ;;  %v820_v9 = vrot.slane %v818_v59, 4  ;;  %v819_v10 = vsel %vm1194_vm4, %v1120_v55, %v818_v59  ;;  %v689_v47 = vld [vmem:[%s1173_s11 + $0x84] sm:$0xe] }
  0x55   : > { %v995_v4 = vmax.bf16 %v963_v3, %v1449_v60  ;;  %v659_v57 = vmax.bf16 %v389_v7, %v1393_v62  ;;  %v406_v12 = vrot.slane %v404_v0, 4  ;;  %v965_v14 = vmax.bf16 %v1449_v60, %v1414_v27 }
  0x56   : > { %v398_v13 = vrot.slane %v397_v8, 4  ;;  %v412_v15 = vrot.slane %v410_v6, 5  ;;  %v415_v16 = vshrl.u32 %v1453_v52, 16  ;;  %v418_v62 = vshll.u32 %v1453_v52, 16 }
  0x57   : > { %1028 = vst.msk [vmem:[%s1235_s15 + $0x30] sm:$0xf] %vm1015_vm6, %v995_v4  ;;  %v1470_v19 = vmax.bf16 %v815_v5, %v659_v57  ;;  %v407_v20 = vor.u32 %v406_v12, %v402_v61  ;;  %v424_v21 = vshll.u32 %v1458_v58, 16  ;;  %v822_v26 = vsel %vm1194_vm4, %v820_v9, %v821_v2  ;;  %v1521_v9 = vld [vmem:[%s1173_s11 + $0x90] sm:$0xf] }
  0x58   : > { %v403_v23 = vsel %vm1202_vm5, %v398_v13, %v402_v61  ;;  %v417_v17 = vrot.slane %v415_v16, 4  ;;  %v825_v27 = vrot.slane %v1458_v58, 5  ;;  %v1121_v33 = vrot.slane %v688_v18, 9 }
  0x59   : > { %v996_v11 = vmax.bf16 %v964_v50, %v1470_v19  ;;  %v660_v24 = vmax.bf16 %v403_v23, %v135_v36  ;;  %v408_v32 = vrot.slane %v407_v20, 4  ;;  %v966_v34 = vmax.bf16 %v1470_v19, %v1435_v43  ;;  %v164_v50 = vld [vmem:[%s1173_s11 + $0x8c] sm:$0x1] }
  0x5a   : > { %v420_v35 = vrot.slane %v418_v62, 5  ;;  %v426_v37 = vrot.slane %v424_v21, 5  ;;  %v428_v38 = vshrl.u32 %v1458_v58, 16  ;;  %v434_v40 = vshll.u32 %v163_v29, 16 }
  0x5b   : > { %1029 = vst.msk [vmem:[%s1235_s15 + $0x34] sm:$0xf] %vm1015_vm6, %v996_v11  ;;  %v1489_v39 = vmax.bf16 %v819_v10, %v660_v24  ;;  %v413_v36 = vsel %vm1202_vm5, %v408_v32, %v412_v15  ;;  %v827_v3 = vrot.slane %v825_v27, 4  ;;  %v828_v43 = vrot.slane %v163_v29, 5  ;;  %v165_v24 = vld [vmem:[%s1173_s11 + $0x98] sm:$0x1] }
  0x5c   : > { %v661_v63 = vmax.bf16 %v413_v36, %v1422_v22  ;;  %v421_v42 = vor.u32 %v420_v35, %v417_v17  ;;  %v430_v31 = vrot.slane %v428_v38, 4  ;;  %v826_v41 = vsel %vm1194_vm4, %v1121_v33, %v825_v27 }
  0x5d   : > { %v997_v28 = vmax.bf16 %v965_v14, %v1489_v39  ;;  %v967_v46 = vmax.bf16 %v1489_v39, %v1449_v60  ;;  %v439_v48 = vshrl.u32 %v1485_v1, 16  ;;  %v436_v51 = vrot.slane %v434_v40, 5 }
  0x5e   : > { %v1504_v5 = vmax.bf16 %v822_v26, %v661_v63  ;;  %v422_v22 = vrot.slane %v421_v42, 4  ;;  %v431_v49 = vor.u32 %v430_v31, %v426_v37  ;;  %v829_v53 = vsel %vm1194_vm4, %v827_v3, %v828_v43 }
  0x5f   : > { %1030 = vst.msk [vmem:[%s1235_s15 + $0x38] sm:$0xf] %vm1015_vm6, %v997_v28  ;;  %v441_v54 = vrot.slane %v439_v48, 4  ;;  %v442_v55 = vshll.u32 %v1485_v1, 16  ;;  %v448_v56 = vshll.u32 %v1495_v45, 16  ;;  %v1122_v61 = vrot.slane %v689_v47, 9 }
  0x60   : > { %v998_v44 = vmax.bf16 %v966_v34, %v1504_v5  ;;  %v427_v59 = vsel %vm1202_vm5, %v422_v22, %v426_v37  ;;  %v432_v60 = vrot.slane %v431_v49, 4  ;;  %v968_v6 = vmax.bf16 %v1504_v5, %v1470_v19  ;;  %v1534_v19 = vld [vmem:[%s1173_s11 + $0x94] sm:$0xf]  ;;  %v1569_v49 = vld [vmem:[%s1173_s11 + $0xa0] sm:$0xf] }
  0x61   : > { %v662_v0 = vmax.bf16 %v427_v59, %v1453_v52  ;;  %v444_v7 = vrot.slane %v442_v55, 5  ;;  %v832_v8 = vrot.slane %v1495_v45, 5  ;;  %v450_v4 = vrot.slane %v448_v56, 5  ;;  %v691_v56 = vld [vmem:[%s1173_s11 + $0x9c] sm:$0xe] }
  0x62   : > { %1031 = vst.msk [vmem:[%s1235_s15 + $0x3c] sm:$0xf] %vm1015_vm6, %v998_v44  ;;  %v437_v2 = vsel %vm1202_vm5, %v432_v60, %v436_v51  ;;  %v452_v57 = vshrl.u32 %v1495_v45, 16  ;;  %v458_v10 = vshll.u32 %v164_v50, 16  ;;  %v835_v14 = vrot.slane %v164_v50, 5 }
  0x63   : > { %v1528_v52 = vmax.bf16 %v826_v41, %v662_v0  ;;  %v663_v12 = vmax.bf16 %v437_v2, %v1458_v58  ;;  %v445_v13 = vor.u32 %v444_v7, %v441_v54  ;;  %v833_v15 = vsel %vm1194_vm4, %v1122_v61, %v832_v8  ;;  %v690_v58 = vld [vmem:[%s1173_s11 + $0x90] sm:$0xe]  ;;  %v143_v41 = vld [vmem:[%s1173_s11 + $0x9c] sm:$0xf] }
  0x64   : > { %v454_v16 = vrot.slane %v452_v57, 4  ;;  %v834_v18 = vrot.slane %v832_v8, 4  ;;  %v463_v20 = vshrl.u32 %v1521_v9, 16  ;;  %v460_v26 = vrot.slane %v458_v10, 5 }
  0x65   : > { %v999_v62 = vmax.bf16 %v967_v46, %v1528_v52  ;;  %v1538_v21 = vmax.bf16 %v829_v53, %v663_v12  ;;  %v446_v23 = vrot.slane %v445_v13, 4  ;;  %v969_v17 = vmax.bf16 %v1528_v52, %v1489_v39 }
  0x66   : > { %v455_v27 = vor.u32 %v454_v16, %v450_v4  ;;  %v465_v29 = vrot.slane %v463_v20, 4  ;;  %v466_v11 = vshll.u32 %v1521_v9, 16  ;;  %v836_v34 = vsel %vm1194_vm4, %v834_v18, %v835_v14 }
  0x67   : > { %1032 = vst.msk [vmem:[%s1235_s15 + $0x40] sm:$0xf] %vm1015_vm6, %v999_v62  ;;  %v1000_v32 = vmax.bf16 %v968_v6, %v1538_v21  ;;  %v451_v33 = vsel %vm1202_vm5, %v446_v23, %v450_v4  ;;  %v472_v35 = vshll.u32 %v1534_v19, 16  ;;  %v1123_v36 = vrot.slane %v690_v58, 9  ;;  %v166_v6 = vld [vmem:[%s1173_s11 + $0xa4] sm:$0x1] }
  0x68   : > { %v664_v37 = vmax.bf16 %v451_v33, %v1485_v1  ;;  %v456_v38 = vrot.slane %v455_v27, 4  ;;  %v468_v39 = vrot.slane %v466_v11, 5  ;;  %v839_v3 = vrot.slane %v1534_v19, 5  ;;  %v692_v11 = vld [vmem:[%s1173_s11 + $0xa8] sm:$0xe] }
  0x69   : > { %1033 = vst.msk [vmem:[%s1235_s15 + $0x44] sm:$0xf] %vm1015_vm6, %v1000_v32  ;;  %v474_v40 = vrot.slane %v472_v35, 5  ;;  %v476_v63 = vshrl.u32 %v1534_v19, 16  ;;  %v482_v42 = vshll.u32 %v165_v24, 16  ;;  %v842_v1 = vrot.slane %v165_v24, 5 }
  0x6a   : > { %v1558_v31 = vmax.bf16 %v833_v15, %v664_v37  ;;  %v461_v43 = vsel %vm1202_vm5, %v456_v38, %v460_v26  ;;  %v469_v28 = vor.u32 %v468_v39, %v465_v29  ;;  %v970_v48 = vmax.bf16 %v1538_v21, %v1504_v5  ;;  %v1600_v26 = vld [vmem:[%s1173_s11 + $0xac] sm:$0xf]  ;;  %v167_v38 = vld [vmem:[%s1173_s11 + $0xb0] sm:$0x1] }
  0x6b   : > { %v665_v46 = vmax.bf16 %v461_v43, %v1495_v45  ;;  %v840_v47 = vsel %vm1194_vm4, %v1123_v36, %v839_v3  ;;  %v478_v22 = vrot.slane %v476_v63, 4  ;;  %v484_v54 = vrot.slane %v482_v42, 5 }
  0x6c   : > { %v1001_v51 = vmax.bf16 %v969_v17, %v1558_v31  ;;  %v470_v53 = vrot.slane %v469_v28, 4  ;;  %v841_v55 = vrot.slane %v839_v3, 4  ;;  %v487_v45 = vshrl.u32 %v143_v41, 16 }
  0x6d   : > { %v1573_v50 = vmax.bf16 %v836_v34, %v665_v46  ;;  %v479_v44 = vor.u32 %v478_v22, %v474_v40  ;;  %v490_v59 = vshll.u32 %v143_v41, 16  ;;  %v971_v60 = vmax.bf16 %v1558_v31, %v1528_v52 }
  0x6e   : > { %1034 = vst.msk [vmem:[%s1235_s15 + $0x48] sm:$0xf] %vm1015_vm6, %v1001_v51  ;;  %v475_v5 = vsel %vm1202_vm5, %v470_v53, %v474_v40  ;;  %v843_v61 = vsel %vm1194_vm4, %v841_v55, %v842_v1  ;;  %v496_v0 = vshll.u32 %v1569_v49, 16  ;;  %v1124_v4 = vrot.slane %v691_v56, 9  ;;  %v147_v53 = vld [vmem:[%s1173_s11 + $0xb4] sm:$0xf] }
  0x6f   : > { %v1002_v7 = vmax.bf16 %v970_v48, %v1573_v50  ;;  %v666_v8 = vmax.bf16 %v475_v5, %v1521_v9  ;;  %v480_v2 = vrot.slane %v479_v44, 4  ;;  %v489_v57 = vrot.slane %v487_v45, 4  ;;  %v145_v9 = vld [vmem:[%s1173_s11 + $0xa8] sm:$0xf]  ;;  %v1634_v45 = vld [vmem:[%s1173_s11 + $0xb8] sm:$0xf] }
  0x70   : > { %v492_v10 = vrot.slane %v490_v59, 5  ;;  %v498_v12 = vrot.slane %v496_v0, 5  ;;  %v846_v13 = vrot.slane %v1569_v49, 5  ;;  %v500_v15 = vshrl.u32 %v1569_v49, 16  ;;  %v693_v0 = vld [vmem:[%s1173_s11 + $0xb4] sm:$0xe] }
  0x71   : > { %1035 = vst.msk [vmem:[%s1235_s15 + $0x4c] sm:$0xf] %vm1015_vm6, %v1002_v7  ;;  %v1590_v52 = vmax.bf16 %v840_v47, %v666_v8  ;;  %v485_v14 = vsel %vm1202_vm5, %v480_v2, %v484_v54  ;;  %v506_v16 = vshll.u32 %v166_v6, 16  ;;  %v972_v20 = vmax.bf16 %v1573_v50, %v1538_v21 }
  0x72   : > { %v667_v18 = vmax.bf16 %v485_v14, %v1534_v19  ;;  %v493_v62 = vor.u32 %v492_v10, %v489_v57  ;;  %v848_v23 = vrot.slane %v846_v13, 4  ;;  %v847_v17 = vsel %vm1194_vm4, %v1124_v4, %v846_v13  ;;  %v168_v10 = vld [vmem:[%s1173_s11 + $0xbc] sm:$0x1] }
  0x73   : > { %v1003_v58 = vmax.bf16 %v971_v60, %v1590_v52  ;;  %v973_v27 = vmax.bf16 %v1590_v52, %v1558_v31  ;;  %v502_v29 = vrot.slane %v500_v15, 4  ;;  %v849_v32 = vrot.slane %v166_v6, 5 }
  0x74   : > { %v1608_v24 = vmax.bf16 %v843_v61, %v667_v18  ;;  %v494_v19 = vrot.slane %v493_v62, 4  ;;  %v511_v21 = vshrl.u32 %v145_v9, 16  ;;  %v508_v34 = vrot.slane %v506_v16, 5 }
  0x75   : > { %1036 = vst.msk [vmem:[%s1235_s15 + $0x50] sm:$0xf] %vm1015_vm6, %v1003_v58  ;;  %v503_v33 = vor.u32 %v502_v29, %v498_v12  ;;  %v514_v35 = vshll.u32 %v145_v9, 16  ;;  %v520_v37 = vshll.u32 %v1600_v26, 16  ;;  %v850_v40 = vsel %vm1194_vm4, %v848_v23, %v849_v32 }
  0x76   : > { %v1004_v39 = vmax.bf16 %v972_v20, %v1608_v24  ;;  %v499_v36 = vsel %vm1202_vm5, %v494_v19, %v498_v12  ;;  %v1125_v3 = vrot.slane %v692_v11, 9  ;;  %v513_v31 = vrot.slane %v511_v21, 4  ;;  %v1664_v19 = vld [vmem:[%s1173_s11 + $0xc4] sm:$0xf] }
  0x77   : > { %v668_v63 = vmax.bf16 %v499_v36, %v143_v41  ;;  %v504_v42 = vrot.slane %v503_v33, 4  ;;  %v516_v43 = vrot.slane %v514_v35, 5  ;;  %v522_v28 = vrot.slane %v520_v37, 5  ;;  %v694_v35 = vld [vmem:[%s1173_s11 + $0xc0] sm:$0xe] }
  0x78   : > { %1037 = vst.msk [vmem:[%s1235_s15 + $0x54] sm:$0xf] %vm1015_vm6, %v1004_v39  ;;  %v853_v1 = vrot.slane %v1600_v26, 5  ;;  %v524_v46 = vshrl.u32 %v1600_v26, 16  ;;  %v530_v48 = vshll.u32 %v167_v38, 16  ;;  %v856_v41 = vrot.slane %v167_v38, 5 }
  0x79   : > { %v1623_v47 = vmax.bf16 %v847_v17, %v668_v63  ;;  %v509_v22 = vsel %vm1202_vm5, %v504_v42, %v508_v34  ;;  %v517_v51 = vor.u32 %v516_v43, %v513_v31  ;;  %v974_v55 = vmax.bf16 %v1608_v24, %v1573_v50  ;;  %v149_v17 = vld [vmem:[%s1173_s11 + $0xc0] sm:$0xf]  ;;  %v169_v63 = vld [vmem:[%s1173_s11 + $0xc8] sm:$0x1] }
  0x7a   : > { %v669_v54 = vmax.bf16 %v509_v22, %v1569_v49  ;;  %v854_v56 = vsel %vm1194_vm4, %v1125_v3, %v853_v1  ;;  %v526_v44 = vrot.slane %v524_v46, 4  ;;  %v532_v60 = vrot.slane %v530_v48, 5 }
  0x7b   : > { %v1005_v59 = vmax.bf16 %v973_v27, %v1623_v47  ;;  %v518_v5 = vrot.slane %v517_v51, 4  ;;  %v855_v61 = vrot.slane %v853_v1, 4  ;;  %v535_v49 = vshrl.u32 %v147_v53, 16 }
  0x7c   : > { %v1638_v6 = vmax.bf16 %v850_v40, %v669_v54  ;;  %v527_v7 = vor.u32 %v526_v44, %v522_v28  ;;  %v538_v8 = vshll.u32 %v147_v53, 16  ;;  %v975_v2 = vmax.bf16 %v1623_v47, %v1590_v52 }
  0x7d   : > { %1038 = vst.msk [vmem:[%s1235_s15 + $0x58] sm:$0xf] %vm1015_vm6, %v1005_v59  ;;  %v523_v50 = vsel %vm1202_vm5, %v518_v5, %v522_v28  ;;  %v857_v4 = vsel %vm1194_vm4, %v855_v61, %v856_v41  ;;  %v544_v57 = vshll.u32 %v1634_v45, 16  ;;  %v1126_v15 = vrot.slane %v693_v0, 9  ;;  %v151_v59 = vld [vmem:[%s1173_s11 + $0xcc] sm:$0xf] }
  0x7e   : > { %v1006_v12 = vmax.bf16 %v974_v55, %v1638_v6  ;;  %v670_v13 = vmax.bf16 %v523_v50, %v145_v9  ;;  %v528_v14 = vrot.slane %v527_v7, 4  ;;  %v537_v16 = vrot.slane %v535_v49, 4  ;;  %v152_v7 = vld [vmem:[%s1173_s11 + $0xd0] sm:$0xf] }
  0x7f   : > { %v540_v18 = vrot.slane %v538_v8, 5  ;;  %v546_v20 = vrot.slane %v544_v57, 5  ;;  %v860_v62 = vrot.slane %v1634_v45, 5  ;;  %v548_v58 = vshrl.u32 %v1634_v45, 16 }
  0x80   : > { %1039 = vst.msk [vmem:[%s1235_s15 + $0x5c] sm:$0xf] %vm1015_vm6, %v1006_v12  ;;  %v1654_v52 = vmax.bf16 %v854_v56, %v670_v13  ;;  %v533_v23 = vsel %vm1202_vm5, %v528_v14, %v532_v60  ;;  %v554_v9 = vshll.u32 %v168_v10, 16  ;;  %v976_v29 = vmax.bf16 %v1638_v6, %v1608_v24 }
  0x81   : > { %v671_v27 = vmax.bf16 %v533_v23, %v1600_v26  ;;  %v541_v11 = vor.u32 %v540_v18, %v537_v16  ;;  %v861_v21 = vsel %vm1194_vm4, %v1126_v15, %v860_v62  ;;  %v550_v33 = vrot.slane %v548_v58, 4  ;;  %v170_v15 = vld [vmem:[%s1173_s11 + $0xd4] sm:$0x1]  ;;  %v695_v23 = vld [vmem:[%s1173_s11 + $0xcc] sm:$0xe] }
  0x82   : > { %v1007_v32 = vmax.bf16 %v975_v2, %v1654_v52  ;;  %v862_v34 = vrot.slane %v860_v62, 4  ;;  %v556_v39 = vrot.slane %v554_v9, 5  ;;  %v559_v26 = vshrl.u32 %v149_v17, 16 }
  0x83   : > { %v1670_v37 = vmax.bf16 %v857_v4, %v671_v27  ;;  %v542_v38 = vrot.slane %v541_v11, 4  ;;  %v551_v24 = vor.u32 %v550_v33, %v546_v20  ;;  %v863_v36 = vrot.slane %v168_v10, 5 }
  0x84   : > { %1040 = vst.msk [vmem:[%s1235_s15 + $0x60] sm:$0xf] %vm1015_vm6, %v1007_v32  ;;  %v562_v40 = vshll.u32 %v149_v17, 16  ;;  %v568_v3 = vshll.u32 %v1664_v19, 16  ;;  %v977_v43 = vmax.bf16 %v1654_v52, %v1623_v47  ;;  %v1127_v28 = vrot.slane %v694_v35, 9 }
  0x85   : > { %v1008_v42 = vmax.bf16 %v976_v29, %v1670_v37  ;;  %v547_v31 = vsel %vm1202_vm5, %v542_v38, %v546_v20  ;;  %v552_v46 = vrot.slane %v551_v24, 4  ;;  %v561_v48 = vrot.slane %v559_v26, 4 }
  0x86   : > { %v672_v1 = vmax.bf16 %v547_v31, %v147_v53  ;;  %v564_v22 = vrot.slane %v562_v40, 5  ;;  %v570_v51 = vrot.slane %v568_v3, 5  ;;  %v867_v41 = vrot.slane %v1664_v19, 5 }
  0x87   : > { %1041 = vst.msk [vmem:[%s1235_s15 + $0x64] sm:$0xf] %vm1015_vm6, %v1008_v42  ;;  %v572_v54 = vshrl.u32 %v1664_v19, 16  ;;  %v578_v55 = vshll.u32 %v169_v63, 16  ;;  %v557_v44 = vsel %vm1202_vm5, %v552_v46, %v556_v39  ;;  %v864_v47 = vsel %vm1194_vm4, %v862_v34, %v863_v36 }
  0x88   : > { %v1685_v56 = vmax.bf16 %v861_v21, %v672_v1  ;;  %v565_v53 = vor.u32 %v564_v22, %v561_v48  ;;  %v673_v5 = vmax.bf16 %v557_v44, %v1634_v45  ;;  %v978_v60 = vmax.bf16 %v1670_v37, %v1638_v6 }
  0x89   : > { %v574_v61 = vrot.slane %v572_v54, 4  ;;  %v870_v0 = vrot.slane %v169_v63, 5  ;;  %v580_v50 = vrot.slane %v578_v55, 5  ;;  %v869_v2 = vrot.slane %v867_v41, 4 }
  0x8a   : > { %v1009_v49 = vmax.bf16 %v977_v43, %v1685_v56  ;;  %v566_v8 = vrot.slane %v565_v53, 4  ;;  %v946_v4 = vmax.bf16 %v864_v47, %v673_v5  ;;  %v583_v10 = vshrl.u32 %v151_v59, 16 }
  0x8b   : > { %v575_v57 = vor.u32 %v574_v61, %v570_v51  ;;  %v586_v12 = vshll.u32 %v151_v59, 16  ;;  %v868_v6 = vsel %vm1194_vm4, %v1127_v28, %v867_v41  ;;  %v979_v13 = vmax.bf16 %v1685_v56, %v1654_v52 }
  0x8c   : > { %1042 = vst.msk [vmem:[%s1235_s15 + $0x68] sm:$0xf] %vm1015_vm6, %v1009_v49  ;;  %v571_v45 = vsel %vm1202_vm5, %v566_v8, %v570_v51  ;;  %v592_v14 = vshll.u32 %v152_v7, 16  ;;  %v1010_v16 = vmax.bf16 %v978_v60, %v946_v4  ;;  %v871_v62 = vsel %vm1194_vm4, %v869_v2, %v870_v0 }
  0x8d   : > { %v674_v18 = vmax.bf16 %v571_v45, %v149_v17  ;;  %v576_v20 = vrot.slane %v575_v57, 4  ;;  %v585_v58 = vrot.slane %v583_v10, 4  ;;  %v588_v9 = vrot.slane %v586_v12, 5 }
  0x8e   : > { %v594_v27 = vrot.slane %v592_v14, 5  ;;  %v874_v29 = vrot.slane %v152_v7, 5  ;;  %1043 = vst.msk [vmem:[%s1235_s15 + $0x6c] sm:$0xf] %vm1015_vm6, %v1010_v16  ;;  %v596_v32 = vshrl.u32 %v152_v7, 16  ;;  %v602_v21 = vshll.u32 %v170_v15, 16 }
  0x8f   : > { %v947_v11 = vmax.bf16 %v868_v6, %v674_v18  ;;  %v581_v52 = vsel %vm1202_vm5, %v576_v20, %v580_v50  ;;  %v980_v33 = vmax.bf16 %v946_v4, %v1670_v37  ;;  %v589_v34 = vor.u32 %v588_v9, %v585_v58 }
  0x90   : > { %v675_v17 = vmax.bf16 %v581_v52, %v1664_v19  ;;  %v1128_v35 = vrot.slane %v695_v23, 9  ;;  %v598_v39 = vrot.slane %v596_v32, 4  ;;  %v604_v40 = vrot.slane %v602_v21, 5 }
  0x91   : > { %v1011_v38 = vmax.bf16 %v979_v13, %v947_v11  ;;  %v590_v24 = vrot.slane %v589_v34, 4  ;;  %v876_v3 = vrot.slane %v874_v29, 4  ;;  %v877_v63 = vrot.slane %v170_v15, 5 }
  0x92   : > { %v948_v26 = vmax.bf16 %v871_v62, %v675_v17  ;;  %v599_v36 = vor.u32 %v598_v39, %v594_v27  ;;  %v875_v37 = vsel %vm1194_vm4, %v1128_v35, %v874_v29  ;;  %v981_v43 = vmax.bf16 %v947_v11, %v1685_v56 }
  0x93   : > { %1044 = vst.msk [vmem:[%s1235_s15 + $0x70] sm:$0xf] %vm1015_vm6, %v1011_v38  ;;  %v595_v19 = vsel %vm1202_vm5, %v590_v24, %v594_v27  ;;  %v878_v48 = vsel %vm1194_vm4, %v876_v3, %v877_v63 }
  0x94   : > { %v1012_v42 = vmax.bf16 %v980_v33, %v948_v26  ;;  %v676_v31 = vmax.bf16 %v595_v19, %v151_v59  ;;  %v600_v28 = vrot.slane %v599_v36, 4  ;;  %v982_v51 = vmax.bf16 %v948_v26, %v946_v4 }
  0x96   : > { %1045 = vst.msk [vmem:[%s1235_s15 + $0x74] sm:$0xf] %vm1015_vm6, %v1012_v42  ;;  %v949_v1 = vmax.bf16 %v875_v37, %v676_v31  ;;  %v605_v46 = vsel %vm1202_vm5, %v600_v28, %v604_v40 }
  0x97   : > { %v677_v22 = vmax.bf16 %v605_v46, %v152_v7 }
  0x98   : > { %v1013_v41 = vmax.bf16 %v981_v43, %v949_v1 }
  0x99   : > { %v950_v54 = vmax.bf16 %v878_v48, %v677_v22 }
  0x9a   : > { %1046 = vst.msk [vmem:[%s1235_s15 + $0x78] sm:$0xf] %vm1015_vm6, %v1013_v41 }
  0x9b   : > { %v1014_v55 = vmax.bf16 %v982_v51, %v950_v54 }
  0x9d   : > { %1047 = vst.msk [vmem:[%s1235_s15 + $0x7c] sm:$0xf] %vm1015_vm6, %v1014_v55 }
  0x9e PF: > { %s11_s6 = sadd.s32 1, %s1147_s6  }
  0x9f   : > { %p8_p4 = scmp.ge.s32.totalorder %s11_s6, 4  }
  0xa1   :  { %10 = sbr.rel (!%p8_p4) target bundleno = 1 (0x1), region = 54 }

// kernel: inception_forward.7
= control target key start
LH: loop header
LB: loop body
LE: loop exit
PB: predicated region body
PF: predicated region fallthrough
CT: control target
= control target key end

     0   :  { %s13212_s12 = smov 0   ;;  %s17750_s0 = inlined_call_operand.vmem [shape: bf16[2,420,8], index: 0, kind: input, shape index: {}]   ;;  %s17751_s1 = inlined_call_operand.vmem [shape: bf16[25,8,128], index: 1, kind: input, shape index: {}]   ;;  %s17752_s2 = inlined_call_operand.vmem [shape: f32[1,128], index: 2, kind: input, shape index: {}]   ;;  %s17753_s3 = inlined_call_operand.vmem [shape: f32[2,320,128], index: 3, kind: output, shape index: {}]  }
   0x1 LB: > { %s10555_s13 = sadd.s32 4294967295, %s13190_s12   ;;  %p10559_p0 = scmp.ge.s32.totalorder %s13190_s12, 1  ;;  %s13190_s12 = sphi %s13212_s12, %s13_s12  }
   0x2   : > { %p137_p1 = scmp.lt.s32.totalorder %s13190_s12, 3 }
   0x4   : > { %p138_p2 = pnand %p10559_p0, %p137_p1 }
   0x6   : > { %141 = sbr.rel (%p138_p2) target bundleno = 1229 (0x4cd), region = 32 }
   0xb   : > { %v10562_v0 = vld [vmem:[%s17751_s1 + $0x4] sm:$0xf]  ;;  %vm545_vm0 = vcmask 1043456   ;;  %p161_p3 = scmp.lt.s32.totalorder %s10555_s13, 1  ;;  %v212_v2 = vld [vmem:[%s17751_s1] sm:$0xf] }
   0xc   : > { %12867 = vmatprep.subr.msk.bf16.mxu1 %vm545_vm0, %v10562_v0  ;;  %12866 = vmatprep.subr.msk.bf16.mxu0 %vm545_vm0, %v10562_v0  ;;  %v547_v1 = vsel %vm545_vm0, %v10562_v0, 0  ;;  %v10624_v3 = vld [vmem:[%s17751_s1 + $0x8] sm:$0xf]  ;;  %vm319_vm1 = vsmask.f32 7424  ;;  %vm484_vm2 = vcmask 64512  }
   0xd   : > { %12865 = vmatpush3.bf16.msra.mxu1 %v547_v1  ;;  %11815 = vmatpush3.bf16.msra.mxu0 %v547_v1  ;;  %s18448_s13 = smov (!%p161_p3, %s10555_s13), 1  ;;  %v783_v15 = vsel %vm545_vm0, %v212_v2, 0  ;;  %v1087_v19 = vsel %vm545_vm0, %v10624_v3, 0  ;;  %v13294_v32 = vld [vmem:[%s17751_s1 + $0x10] sm:$0xf]  ;;  %vm984_vm3 = vcmask 1046528  }
   0xe   : > { %12868 = vmatprep.subr.msk.bf16.mxu1 %vm545_vm0, %v212_v2  ;;  %12869 = vmatprep.subr.msk.bf16.mxu0 %vm545_vm0, %v10624_v3  ;;  %s12892_s20 = smul.u32 212, %s18448_s13  ;;  %v13319_v46 = vld [vmem:[%s17751_s1 + $0xc] sm:$0xf]  ;;  %vm1328_vm4 = vsmask.f32 6400  ;;  %vm1724_vm5 = vcmask 1045504  }
   0xf   : > { %vm2551_vm6 = vsmask.f32 5376  ;;  %vm3386_vm7 = vsmask.f32 4352  ;;  %vm3042_vm8 = vcmask 1044480  }
  0x10   : > { %s13240_s23 = scalar_lea.vmem %s17750_s0, %s12892_s20 }
  0x11   : > { %v172_v4 = vld [vmem:[%s13240_s23] sm:$0xf]  ;;  %v13244_v5 = vld [vmem:[%s13240_s23 + $0x4] sm:$0xf]  ;;  %v13250_v7 = vld [vmem:[%s13240_s23 + $0x8] sm:$0xff]  }
  0x12   : > { %v13247_v6 = vcombine.low %v172_v4, %v13244_v5  ;;  %v328_v10 = vshll.u32 %v13250_v7, 16  ;;  %v332_v11 = vshrl.u32 %v13250_v7, 16  ;;  %v13257_v12 = vld [vmem:[%s13240_s23 + $0x50] sm:$0xff]   ;;  %v13260_v13 = vld [vmem:[%s13240_s23 + $0x58] sm:$0xff]   ;;  %v13281_v27 = vld [vmem:[%s13240_s23 + $0x60] sm:$0xff]  }
  0x13   : > { %v13263_v14 = vld [vmem:[%s13240_s23 + $0x10] sm:$0xff]   ;;  %v400_v18 = vshll.u32 %v13257_v12, 16  ;;  %v404_v20 = vshrl.u32 %v13257_v12, 16  ;;  %v408_v21 = vshll.u32 %v13260_v13, 16  ;;  %v17770_v22 = vshrl.u32 %v13260_v13, 16  ;;  %v13286_v30 = vld [vmem:[%s13240_s23 + $0x18] sm:$0xff]  }
  0x14   : > { %v321_v8 = vshrl.u32 %v13247_v6, 16  ;;  %v323_v9 = vshll.u32 %v13247_v6, 16  ;;  %v330_v17 = vrot.slane %v328_v10, 1  ;;  %v336_v23 = vshll.u32 %v13263_v14, 16  ;;  %v13289_v31 = vld [vmem:[%s13240_s23 + $0x68] sm:$0xff]   ;;  %v13314_v45 = vld [vmem:[%s13240_s23 + $0x20] sm:$0xff]  }
  0x15   : > { %v13278_v26 = vrot.slane %v400_v18, 1  ;;  %v410_v28 = vrot.slane %v408_v21, 1  ;;  %v17764_v36 = vshll.u32 %v13281_v27, 16  ;;  %v340_v39 = vshrl.u32 %v13263_v14, 16  ;;  %v13326_v51 = vld [vmem:[%s13240_s23 + $0x70] sm:$0xff]   ;;  %v13343_v60 = vld [vmem:[%s13240_s23 + $0x28] sm:$0xff]  }
  0x16   : > { %v325_v16 = vrot.slane %v323_v9, 1  ;;  %v334_v25 = vor.u32 %v332_v11, %v330_v17  ;;  %v338_v29 = vrot.slane %v336_v23, 1  ;;  %v1342_v35 = vrot.slane %v336_v23, 2  ;;  %v13346_v61 = vld [vmem:[%s13240_s23 + $0x78] sm:$0xff]   ;;  %v13355_v2 = vld [vmem:[%s13240_s23 + $0x30] sm:$0xff]  }
  0x17   : > { %v406_v34 = vor.u32 %v404_v20, %v13278_v26  ;;  %v414_v37 = vor.u32 %v17770_v22, %v410_v28  ;;  %v344_v40 = vshll.u32 %v13286_v30, 16  ;;  %v418_v42 = vrot.slane %v17764_v36, 1 }
  0x18   : > { %v326_v24 = vor.u32 %v325_v16, %v321_v8  ;;  %v339_v38 = vsel %vm319_vm1, %v334_v25, %v338_v29  ;;  %v17768_v43 = vshrl.u32 %v13281_v27, 16  ;;  %v17762_v44 = vshll.u32 %v13289_v31, 16 }
  0x19   : > { %v411_v41 = vsel %vm319_vm1, %v406_v34, %v410_v28  ;;  %v342_v47 = vor.u32 %v340_v39, %v338_v29  ;;  %v346_v48 = vrot.slane %v344_v40, 1  ;;  %v1341_v49 = vrot.slane %v340_v39, 1 }
  0x1a   : > { %v331_v33 = vsel %vm319_vm1, %v326_v24, %v330_v17  ;;  %11836 = vmatprep.mubr.msk.bf16.mxu1 %vm484_vm2, %v411_v41  ;;  %v348_v50 = vshrl.u32 %v13286_v30, 16  ;;  %v419_v52 = vsel %vm319_vm1, %v414_v37, %v418_v42  ;;  %v422_v53 = vor.u32 %v17768_v43, %v418_v42 }
  0x1b   : > { %11816 = vmatprep.mubr.msk.bf16.mxu0 %vm484_vm2, %v331_v33  ;;  %v426_v54 = vrot.slane %v17762_v44, 1  ;;  %v352_v55 = vshll.u32 %v13314_v45, 16  ;;  %11837 = vmatmul.mubr.msk.bf16.vlgmr.msra.gmra.mxu1 %vm484_vm2, %v419_v52  ;;  %v347_v56 = vsel %vm319_vm1, %v342_v47, %v346_v48  ;;  %v17763_v58 = vshrl.u32 %v13289_v31, 16  ;;  %v13397_v52 = vld [vmem:[%s13240_s23 + $0x88] sm:$0xff]  }
  0x1c   : > { %11817 = vmatmul.mubr.msk.bf16.vlgmr.msra.gmra.mxu0 %vm484_vm2, %v339_v38  ;;  %v350_v57 = vor.u32 %v348_v50, %v346_v48  ;;  %v17759_v59 = vshll.u32 %v13326_v51, 16  ;;  %11857 = vmatpush3.bf16.msra.mxu1 %v783_v15  ;;  %v356_v0 = vshrl.u32 %v13314_v45, 16  ;;  %v17760_v1 = vshrl.u32 %v13326_v51, 16  ;;  %v13365_v15 = vld [vmem:[%s13240_s23 + $0x80] sm:$0xff]   ;;  %v13387_v38 = vld [vmem:[%s13240_s23 + $0x38] sm:$0xff]  }
  0x1d   : > { %11899 = vmatpush3.bf16.msra.mxu0 %v1087_v19  ;;  %11820 = vmatprep.mubr.msk.bf16.mxu0 %vm484_vm2, %v347_v56  ;;  %v427_v62 = vsel %vm319_vm1, %v422_v53, %v426_v54  ;;  %v354_v63 = vrot.slane %v352_v55, 1  ;;  %v430_v3 = vor.u32 %v17763_v58, %v426_v54  ;;  %v360_v8 = vshll.u32 %v13343_v60, 16 }
  0x1e   : > { %12871 = vmatprep.subr.msk.bf16.mxu0 %vm545_vm0, %v13294_v32  ;;  %11840 = vmatprep.mubr.msk.bf16.mxu1 %vm484_vm2, %v427_v62  ;;  %v434_v4 = vrot.slane %v17759_v59, 1  ;;  %v17755_v9 = vshll.u32 %v13346_v61, 16  ;;  %v364_v19 = vshrl.u32 %v13343_v60, 16  ;;  %v368_v23 = vshll.u32 %v13355_v2, 16 }
  0x1f   : > { %12870 = vmatprep.subr.msk.bf16.mxu1 %vm545_vm0, %v13319_v46  ;;  %v355_v16 = vsel %vm319_vm1, %v350_v57, %v354_v63  ;;  %v358_v17 = vor.u32 %v356_v0, %v354_v63  ;;  %v362_v25 = vrot.slane %v360_v8, 1  ;;  %v17758_v34 = vshrl.u32 %v13346_v61, 16 }
  0x20   : > { %v435_v24 = vsel %vm319_vm1, %v430_v3, %v434_v4  ;;  %v438_v28 = vor.u32 %v17760_v1, %v434_v4  ;;  %v442_v29 = vrot.slane %v17755_v9, 1  ;;  %v370_v33 = vrot.slane %v368_v23, 1  ;;  %v13418_v4 = vld [vmem:[%s13240_s23 + $0x90] sm:$0xff]   ;;  %v13434_v9 = vld [vmem:[%s13240_s23 + $0x98] sm:$0xff]  }
  0x21   : > { %v17754_v37 = vshll.u32 %v13365_v15, 16  ;;  %v13389_v39 = vor.u32 %v1342_v35, %v1341_v49  ;;  %v363_v41 = vsel %vm319_vm1, %v358_v17, %v362_v25  ;;  %v366_v47 = vor.u32 %v364_v19, %v362_v25  ;;  %v13403_v49 = vld [vmem:[%s13240_s23 + $0x40] sm:$0xff]  }
  0x22   : > { %v443_v42 = vsel %vm319_vm1, %v438_v28, %v442_v29  ;;  %v372_v48 = vshrl.u32 %v13355_v2, 16  ;;  %v376_v53 = vshll.u32 %v13387_v38, 16  ;;  %v17757_v35 = vshrl.u32 %v13365_v15, 16 }
  0x23   : > { %11841 = vmatmul.mubr.msk.bf16.gmra.mxu1 %vm484_vm2, %v435_v24  ;;  %v450_v54 = vrot.slane %v17754_v37, 1  ;;  %v17756_v57 = vshll.u32 %v13397_v52, 16  ;;  %v446_v62 = vor.u32 %v17758_v34, %v442_v29  ;;  %v384_v3 = vshll.u32 %v13403_v49, 16 }
  0x24   : > { %11821 = vmatmul.mubr.msk.bf16.gmra.mxu0 %vm484_vm2, %v355_v16  ;;  %v374_v56 = vor.u32 %v372_v48, %v370_v33  ;;  %11844 = vmatprep.mubr.msk.bf16.mxu1 %vm484_vm2, %v443_v42  ;;  %v378_v63 = vrot.slane %v376_v53, 1  ;;  %v13421_v16 = vld [vmem:[%s13240_s23 + $0x48] sm:$0xff]   ;;  %v371_v17 = vsel %vm319_vm1, %v366_v47, %v370_v33  ;;  %v380_v28 = vshrl.u32 %v13387_v38, 16 }
  0x25   : > { %11824 = vmatprep.mubr.msk.bf16.mxu0 %vm484_vm2, %v363_v41  ;;  %v454_v24 = vor.u32 %v17757_v35, %v450_v54  ;;  %v458_v25 = vrot.slane %v17756_v57, 1  ;;  %v17761_v41 = vshll.u32 %v13418_v4, 16  ;;  %v388_v42 = vshrl.u32 %v13403_v49, 16 }
  0x26   : > { %v379_v29 = vsel %vm319_vm1, %v374_v56, %v378_v63  ;;  %v392_v37 = vshll.u32 %v13421_v16, 16  ;;  %v451_v33 = vsel %vm319_vm1, %v446_v62, %v450_v54  ;;  %v386_v47 = vrot.slane %v384_v3, 1 }
  0x27   : > { %v17766_v57 = vshrl.u32 %v13397_v52, 16  ;;  %v459_v56 = vsel %vm319_vm1, %v454_v24, %v458_v25  ;;  %v382_v35 = vor.u32 %v380_v28, %v378_v63  ;;  %v17767_v34 = vshrl.u32 %v13418_v4, 16  ;;  %v978_v24 = vld [vmem:[%s13240_s23] sm:$0xe] }
  0x28   : > { %v17765_v59 = vshll.u32 %v13434_v9, 16  ;;  %v466_v54 = vrot.slane %v17761_v41, 1  ;;  %v390_v62 = vor.u32 %v388_v42, %v386_v47  ;;  %v13462_v41 = vld [vmem:[%s13240_s23 + $0xa0] ss:$0 sps:$4 sm:$0x11]   ;;  %v992_v43 = vrot.slane %v13314_v45, 1 }
  0x29   : > { %v462_v63 = vor.u32 %v17766_v57, %v458_v25  ;;  %v387_v44 = vsel %vm319_vm1, %v382_v35, %v386_v47  ;;  %v17769_v25 = vshrl.u32 %v13434_v9, 16  ;;  %v13475_v57 = vsel %vm545_vm0, %v13319_v46, 0 }
  0x2a   : > { %v474_v1 = vrot.slane %v17765_v59, 1  ;;  %v470_v58 = vor.u32 %v17767_v34, %v466_v54  ;;  %v480_v59 = vshll.u32 %v13462_v41, 16  ;;  %v17771_v46 = vrot.slane %v13286_v30, 1 }
  0x2b   : > { %11845 = vmatmul.mubr.msk.bf16.gmra.mxu1 %vm484_vm2, %v451_v33  ;;  %v10625_v33 = vcombine.low %v978_v24, %v13244_v5  ;;  %v988_v24 = vrot.slane %v13263_v14, 1  ;;  %v994_v22 = vrot.slane %v13343_v60, 1 }
  0x2c   : > { %11825 = vmatmul.mubr.msk.bf16.gmra.mxu0 %vm484_vm2, %v371_v17  ;;  %v394_v17 = vrot.slane %v392_v37, 1  ;;  %11848 = vmatprep.mubr.msk.bf16.mxu1 %vm484_vm2, %v459_v56  ;;  %v467_v56 = vsel %vm319_vm1, %v462_v63, %v466_v54  ;;  %v475_v35 = vsel %vm319_vm1, %v470_v58, %v474_v1  ;;  %v13484_v54 = vsel %vm545_vm0, %v13294_v32, 0  ;;  %v1718_v32 = vld [vmem:[%s13240_s23] sm:$0xc] }
  0x2d   : > { %11828 = vmatprep.mubr.msk.bf16.mxu0 %vm484_vm2, %v379_v29  ;;  %v396_v29 = vshrl.u32 %v13421_v16, 16  ;;  %v478_v58 = vor.u32 %v17769_v25, %v474_v1  ;;  %v13497_v63 = vrot.slane %v404_v20, 1  ;;  %v1330_v1 = vshrl.u32 %v10625_v33, 16 }
  0x2e   : > { %v395_v36 = vsel %vm319_vm1, %v390_v62, %v394_v17  ;;  %v985_v62 = vrot.slane %v10625_v33, 1  ;;  %v1333_v20 = vshll.u32 %v10625_v33, 16  ;;  %v1337_v25 = vrot.slane %v332_v11, 1 }
  0x2f   : > { %v398_v47 = vor.u32 %v396_v29, %v394_v17  ;;  %v482_v17 = vrot.slane %v480_v59, 1  ;;  %v991_v59 = vsel %vm984_vm3, %v988_v24, %v17771_v46 }
  0x31   : > { %v403_v34 = vsel %vm319_vm1, %v398_v47, %v13278_v26  ;;  %v483_v26 = vsel %vm319_vm1, %v478_v58, %v482_v17  ;;  %v1332_v47 = vrot.slane %v1330_v1, 1  ;;  %v1730_v58 = vrot.slane %v13286_v30, 2 }
  0x33   : > { %11849 = vmatmul.mubr.msk.bf16.gmra.mxu1 %vm484_vm2, %v467_v56  ;;  %v13501_v56 = vrot.slane %v408_v21, 2  ;;  %v10669_v21 = vcombine.low %v1718_v32, %v13244_v5  ;;  %v1345_v5 = vrot.slane %v348_v50, 1 }
  0x34   : > { %11829 = vmatmul.mubr.msk.bf16.gmra.mxu0 %vm484_vm2, %v387_v44  ;;  %v986_v44 = vrot.slane %v13250_v7, 1  ;;  %11852 = vmatprep.mubr.msk.bf16.mxu1 %vm484_vm2, %v475_v35 }
  0x35   : > { %11832 = vmatprep.mubr.msk.bf16.mxu0 %vm484_vm2, %v395_v36  ;;  %v1338_v36 = vrot.slane %v328_v10, 2  ;;  %v1725_v46 = vrot.slane %v10669_v21, 2  ;;  %v1734_v21 = vrot.slane %v13343_v60, 2 }
  0x36   : > { %v987_v10 = vsel %vm984_vm3, %v985_v62, %v986_v44  ;;  %v989_v35 = vsel %vm984_vm3, %v986_v44, %v988_v24  ;;  %v1726_v44 = vrot.slane %v13250_v7, 2  ;;  %v1728_v62 = vrot.slane %v13263_v14, 2 }
  0x37   : > { %v1335_v24 = vrot.slane %v1333_v20, 2  ;;  %v1339_v33 = vor.u32 %v1338_v36, %v1337_v25  ;;  %v1349_v36 = vrot.slane %v356_v0, 1  ;;  %v13552_v20 = vld [vmem:[%s17751_s1 + $0x18] sm:$0xf]  ;;  %v1354_v0 = vrot.slane %v360_v8, 2 }
  0x38   : > { %v13521_v11 = vsel %vm1724_vm5, %v1726_v44, %v1728_v62  ;;  %v13530_v32 = vsel %vm1724_vm5, %v1725_v46, %v1726_v44  ;;  %v1732_v46 = vrot.slane %v13314_v45, 2  ;;  %v1357_v44 = vrot.slane %v372_v48, 1 }
  0x39   : > { %v1336_v17 = vor.u32 %v1335_v24, %v1332_v47  ;;  %v13534_v25 = vsel %vm1328_vm4, %v1339_v33, %v13389_v39  ;;  %v1358_v8 = vrot.slane %v368_v23, 2  ;;  %v1361_v48 = vrot.slane %v380_v28, 1 }
  0x3a   : > { %v13564_v47 = vsel %vm1724_vm5, %v1730_v58, %v1732_v46  ;;  %v13569_v24 = vsel %vm1724_vm5, %v1732_v46, %v1734_v21  ;;  %v1738_v23 = vrot.slane %v13387_v38, 2 }
  0x3b   : > { %11853 = vmatmul.mubr.msk.bf16.gmra.mxu1 %vm484_vm2, %v483_v26  ;;  %v13547_v1 = vsel %vm1328_vm4, %v1336_v17, %v1339_v33  ;;  %v1365_v17 = vrot.slane %v388_v42, 1  ;;  %v1369_v42 = vrot.slane %v396_v29, 1  ;;  %v1374_v29 = vrot.slane %v400_v18, 2 }
  0x3c   : > { %11833 = vmatmul.mubr.msk.bf16.gmra.mxu0 %vm484_vm2, %v403_v34  ;;  %v1346_v34 = vrot.slane %v344_v40, 2  ;;  %11858 = vmatprep.mubr.msk.bf16.mxu1 %vm484_vm2, %v13247_v6  ;;  %v13541_v40 = vsel %vm1724_vm5, %v1728_v62, %v1730_v58  ;;  %v1353_v6 = vrot.slane %v364_v19, 1  ;;  %v1736_v19 = vrot.slane %v13355_v2, 2 }
  0x3d   : > { %11900 = vmatprep.mubr.msk.bf16.mxu0 %vm484_vm2, %v987_v10  ;;  %v1350_v10 = vrot.slane %v352_v55, 2  ;;  %v995_v18 = vsel %vm984_vm3, %v992_v43, %v994_v22 }
  0x3e   : > { %v1347_v50 = vor.u32 %v1346_v34, %v1345_v5  ;;  %v1355_v62 = vor.u32 %v1354_v0, %v1353_v6  ;;  %v1362_v5 = vrot.slane %v376_v53, 2  ;;  %v1359_v34 = vor.u32 %v1358_v8, %v1357_v44 }
  0x3f   : > { %v1351_v26 = vor.u32 %v1350_v10, %v1349_v36  ;;  %v13594_v58 = vsel %vm1724_vm5, %v1734_v21, %v1736_v19  ;;  %v13601_v28 = vsel %vm1724_vm5, %v1736_v19, %v1738_v23  ;;  %v1742_v10 = vrot.slane %v13421_v16, 2 }
  0x40   : > { %v13561_v55 = vsel %vm1328_vm4, %v13389_v39, %v1347_v50  ;;  %v13578_v39 = vld [vmem:[%s17751_s1 + $0x14] sm:$0xf]  ;;  %v1363_v53 = vor.u32 %v1362_v5, %v1361_v48  ;;  %v13609_v36 = vsel %vm1328_vm4, %v1355_v62, %v1359_v34  ;;  %v17932_v0 = vshrl.u32 %v13260_v13, 16 }
  0x41   : > { %v13581_v33 = vsel %vm1328_vm4, %v1347_v50, %v1351_v26  ;;  %v1370_v50 = vrot.slane %v392_v37, 2  ;;  %v17931_v37 = vrot.slane %v13286_v30, 1  ;;  %v1375_v44 = vor.u32 %v1374_v29, %v13497_v63 }
  0x42   : > { %v1377_v21 = vrot.slane %v17932_v0, 1  ;;  %v17934_v5 = vshll.u32 %v13281_v27, 16  ;;  %v996_v63 = vrot.slane %v13355_v2, 1  ;;  %v17938_v29 = vshll.u32 %v13326_v51, 16 }
  0x43   : > { %11859 = vmatmul.mubr.msk.bf16.vlgmr.msra.gmra.mxu1 %vm484_vm2, %v13250_v7  ;;  %v993_v6 = vsel %vm984_vm3, %v17931_v37, %v992_v43  ;;  %v17939_v0 = vshrl.u32 %v13346_v61, 16 }
  0x44   : > { %11901 = vmatmul.mubr.msk.bf16.vlgmr.msra.gmra.mxu0 %vm484_vm2, %v989_v35  ;;  %v13591_v35 = vsel %vm1328_vm4, %v1351_v26, %v1355_v62  ;;  %11941 = vmatpush3.bf16.msra.mxu1 %v13475_v57  ;;  %v17933_v62 = vshrl.u32 %v13281_v27, 16  ;;  %v1379_v48 = vor.u32 %v13501_v56, %v1377_v21  ;;  %v17936_v56 = vshll.u32 %v13289_v31, 16 }
  0x45   : > { %11983 = vmatpush3.bf16.msra.mxu0 %v13484_v54  ;;  %11904 = vmatprep.mubr.msk.bf16.mxu0 %vm484_vm2, %v991_v59  ;;  %v1366_v54 = vrot.slane %v384_v3, 2  ;;  %v1740_v59 = vrot.slane %v13403_v49, 2  ;;  %v13620_v3 = vsel %vm1328_vm4, %v1359_v34, %v1363_v53  ;;  %v17935_v34 = vshrl.u32 %v13289_v31, 16 }
  0x46   : > { %12873 = vmatprep.subr.msk.bf16.mxu0 %vm545_vm0, %v13552_v20  ;;  %11862 = vmatprep.mubr.msk.bf16.mxu1 %vm484_vm2, %v13263_v14  ;;  %v1371_v14 = vor.u32 %v1370_v50, %v1369_v42  ;;  %v1381_v8 = vrot.slane %v17933_v62, 1  ;;  %v998_v42 = vrot.slane %v13387_v38, 1  ;;  %v17937_v50 = vshrl.u32 %v13326_v51, 16 }
  0x47   : > { %v1367_v7 = vor.u32 %v1366_v54, %v1365_v17  ;;  %v13623_v46 = vsel %vm1724_vm5, %v1738_v23, %v1740_v59  ;;  %12872 = vmatprep.subr.msk.bf16.mxu1 %vm545_vm0, %v13578_v39  ;;  %v13637_v57 = vsel %vm1724_vm5, %v1740_v59, %v1742_v10  ;;  %v1382_v23 = vrot.slane %v17934_v5, 2 }
  0x48   : > { %v13660_v43 = vsel %vm1328_vm4, %v1371_v14, %v1375_v44  ;;  %v1385_v17 = vrot.slane %v17935_v34, 1  ;;  %v1386_v59 = vrot.slane %v17936_v56, 2  ;;  %v1390_v37 = vrot.slane %v17938_v29, 2 }
  0x49   : > { %v13647_v26 = vsel %vm1328_vm4, %v1363_v53, %v1367_v7  ;;  %v13653_v19 = vsel %vm1328_vm4, %v1367_v7, %v1371_v14  ;;  %v13667_v53 = vsel %vm1328_vm4, %v1375_v44, %v1379_v48  ;;  %v1383_v54 = vor.u32 %v1382_v23, %v1381_v8 }
  0x4a   : > { %v1389_v7 = vrot.slane %v17937_v50, 1  ;;  %v1387_v14 = vor.u32 %v1386_v59, %v1385_v17  ;;  %v1393_v21 = vrot.slane %v17939_v0, 1  ;;  %v17940_v44 = vshll.u32 %v13346_v61, 16 }
  0x4b   : > { %11863 = vmatmul.mubr.msk.bf16.gmra.mxu1 %vm484_vm2, %v13286_v30  ;;  %v997_v8 = vsel %vm984_vm3, %v994_v22, %v996_v63  ;;  %v17942_v23 = vshll.u32 %v13365_v15, 16  ;;  %v999_v17 = vsel %vm984_vm3, %v996_v63, %v998_v42  ;;  %v17943_v59 = vshrl.u32 %v13397_v52, 16 }
  0x4c   : > { %11905 = vmatmul.mubr.msk.bf16.gmra.mxu0 %vm484_vm2, %v993_v6  ;;  %v13679_v6 = vsel %vm1328_vm4, %v1379_v48, %v1383_v54  ;;  %11866 = vmatprep.mubr.msk.bf16.mxu1 %vm484_vm2, %v13314_v45  ;;  %v1394_v62 = vrot.slane %v17940_v44, 2  ;;  %v13691_v30 = vsel %vm1328_vm4, %v1383_v54, %v1387_v14  ;;  %v17941_v48 = vshrl.u32 %v13365_v15, 16 }
  0x4d   : > { %11908 = vmatprep.mubr.msk.bf16.mxu0 %vm484_vm2, %v995_v18  ;;  %v1391_v18 = vor.u32 %v1390_v37, %v1389_v7  ;;  %v1398_v34 = vrot.slane %v17942_v23, 2  ;;  %v1401_v50 = vrot.slane %v17943_v59, 1  ;;  %v17944_v22 = vshll.u32 %v13397_v52, 16 }
  0x4e   : > { %v1397_v5 = vrot.slane %v17941_v48, 1  ;;  %v1395_v56 = vor.u32 %v1394_v62, %v1393_v21  ;;  %v17945_v37 = vshrl.u32 %v13418_v4, 16  ;;  %v17946_v63 = vshll.u32 %v13418_v4, 16 }
  0x4f   : > { %v13699_v45 = vsel %vm1328_vm4, %v1387_v14, %v1391_v18  ;;  %v1402_v54 = vrot.slane %v17944_v22, 2  ;;  %v1000_v21 = vrot.slane %v13403_v49, 1  ;;  %v1002_v48 = vrot.slane %v13421_v16, 1 }
  0x50   : > { %v1399_v7 = vor.u32 %v1398_v34, %v1397_v5  ;;  %v13707_v29 = vsel %vm1328_vm4, %v1391_v18, %v1395_v56  ;;  %v1405_v0 = vrot.slane %v17945_v37, 1  ;;  %v1406_v14 = vrot.slane %v17946_v63, 2  ;;  %v13753_v37 = vld [vmem:[%s13240_s23 + $0x14] sm:$0xf] }
  0x51   : > { %v1403_v62 = vor.u32 %v1402_v54, %v1401_v50  ;;  %v17947_v5 = vshrl.u32 %v13434_v9, 16  ;;  %v17948_v34 = vshll.u32 %v13434_v9, 16  ;;  %v1001_v59 = vsel %vm984_vm3, %v998_v42, %v1000_v21  ;;  %17949 = vst [vmem:[#allocation2_spill] sm:$0xff] %v13753_v37 }
  0x52   : > { %v13716_v44 = vsel %vm1328_vm4, %v1395_v56, %v1399_v7  ;;  %v1003_v50 = vsel %vm984_vm3, %v1000_v21, %v1002_v48  ;;  %v1006_v22 = vrot.slane %v13260_v13, 1  ;;  %v1008_v63 = vrot.slane %v13281_v27, 1 }
  0x53   : > { %11867 = vmatmul.mubr.msk.bf16.gmra.mxu1 %vm484_vm2, %v13343_v60  ;;  %v13722_v18 = vsel %vm1328_vm4, %v1399_v7, %v1403_v62  ;;  %v1409_v23 = vrot.slane %v17947_v5, 1  ;;  %v1016_v5 = vrot.slane %v13365_v15, 1 }
  0x54   : > { %11909 = vmatmul.mubr.msk.bf16.gmra.mxu0 %vm484_vm2, %v997_v8  ;;  %v1407_v8 = vor.u32 %v1406_v14, %v1405_v0  ;;  %11870 = vmatprep.mubr.msk.bf16.mxu1 %vm484_vm2, %v13355_v2  ;;  %v1004_v2 = vrot.slane %v13257_v12, 1  ;;  %v13756_v0 = vld [vmem:[%s13240_s23 + $0x18] sm:$0xf]  ;;  %v1010_v14 = vrot.slane %v13289_v31, 1 }
  0x55   : > { %11912 = vmatprep.mubr.msk.bf16.mxu0 %vm484_vm2, %v999_v17  ;;  %v1410_v17 = vrot.slane %v17948_v34, 2  ;;  %17950 = vst [vmem:[#allocation3_spill] sm:$0xff] %v13756_v0  ;;  %v1020_v34 = vrot.slane %v13418_v4, 1 }
  0x56   : > { %v13731_v56 = vsel %vm1328_vm4, %v1403_v62, %v1407_v8  ;;  %v1005_v42 = vsel %vm984_vm3, %v1002_v48, %v1004_v2  ;;  %v1007_v54 = vsel %vm984_vm3, %v1004_v2, %v1006_v22  ;;  %v1011_v21 = vsel %vm984_vm3, %v1008_v63, %v1010_v14 }
  0x57   : > { %v13734_v60 = vor.u32 %v1410_v17, %v1409_v23  ;;  %v1012_v62 = vrot.slane %v13326_v51, 1  ;;  %v1014_v48 = vrot.slane %v13346_v61, 1  ;;  %v1018_v23 = vrot.slane %v13397_v52, 1 }
  0x58   : > { %v1022_v17 = vrot.slane %v13434_v9, 1 }
  0x59   : > { %v13739_v7 = vsel %vm1328_vm4, %v1407_v8, %v13734_v60  ;;  %v1015_v8 = vsel %vm984_vm3, %v1012_v62, %v1014_v48 }
  0x5b   : > { %11871 = vmatmul.mubr.msk.bf16.gmra.mxu1 %vm484_vm2, %v13387_v38  ;;  %v2083_v38 = vld [vmem:[%s13240_s23 + $0x5c] sm:$0xf] }
  0x5c   : > { %11913 = vmatmul.mubr.msk.bf16.gmra.mxu0 %vm484_vm2, %v1001_v59  ;;  %11874 = vmatprep.mubr.msk.bf16.mxu1 %vm484_vm2, %v13403_v49  ;;  %v1009_v49 = vsel %vm984_vm3, %v1006_v22, %v1008_v63  ;;  %v1024_v59 = vrot.slane %v13462_v41, 1  ;;  %v2801_v41 = vsel %vm545_vm0, %v13552_v20, 0  ;;  %v12925_v22 = vld [vmem:[%s13240_s23 + $0xa0] ss:$0 sps:$4 sm:$0x33]  }
  0x5d   : > { %11916 = vmatprep.mubr.msk.bf16.mxu0 %vm484_vm2, %v1003_v50  ;;  %v13819_v50 = vld [vmem:[%s17751_s1 + $0x20] sm:$0xf] }
  0x63   : > { %11875 = vmatmul.mubr.msk.bf16.gmra.mxu1 %vm484_vm2, %v13421_v16 }
  0x64   : > { %11917 = vmatmul.mubr.msk.bf16.gmra.mxu0 %vm484_vm2, %v1005_v42  ;;  %11878 = vmatprep.mubr.msk.bf16.mxu1 %vm484_vm2, %v13257_v12  ;;  %v1013_v12 = vsel %vm984_vm3, %v1010_v14, %v1012_v62  ;;  %v2067_v42 = vld [vmem:[%s13240_s23 + $0x1c] sm:$0xf]  ;;  %v2069_v62 = vld [vmem:[%s13240_s23 + $0x24] sm:$0xf] }
  0x65   : > { %11920 = vmatprep.mubr.msk.bf16.mxu0 %vm484_vm2, %v1007_v54 }
  0x6b   : > { %11879 = vmatmul.mubr.msk.bf16.gmra.mxu1 %vm484_vm2, %v13260_v13  ;;  %v1017_v13 = vsel %vm984_vm3, %v1014_v48, %v1016_v5  ;;  %v1414_v48 = vshrl.u32 %v12925_v22, 16 }
  0x6c   : > { %11921 = vmatmul.mubr.msk.bf16.gmra.mxu0 %vm484_vm2, %v1009_v49  ;;  %11882 = vmatprep.mubr.msk.bf16.mxu1 %vm484_vm2, %v13281_v27  ;;  %v1019_v27 = vsel %vm984_vm3, %v1016_v5, %v1018_v23 }
  0x6d   : > { %11924 = vmatprep.mubr.msk.bf16.mxu0 %vm484_vm2, %v1011_v21  ;;  %v2068_v21 = vld [vmem:[%s13240_s23 + $0x20] sm:$0xf] }
  0x73   : > { %11883 = vmatmul.mubr.msk.bf16.gmra.mxu1 %vm484_vm2, %v13289_v31  ;;  %v1021_v31 = vsel %vm984_vm3, %v1018_v23, %v1020_v34 }
  0x74   : > { %11925 = vmatmul.mubr.msk.bf16.gmra.mxu0 %vm484_vm2, %v1013_v12  ;;  %11886 = vmatprep.mubr.msk.bf16.mxu1 %vm484_vm2, %v13326_v51  ;;  %v1023_v51 = vsel %vm984_vm3, %v1020_v34, %v1022_v17  ;;  %v1417_v12 = vshll.u32 %v12925_v22, 16 }
  0x75   : > { %11928 = vmatprep.mubr.msk.bf16.mxu0 %vm484_vm2, %v1015_v8 }
  0x76   : > { %v1419_v34 = vrot.slane %v1417_v12, 2 }
  0x7b   : > { %11887 = vmatmul.mubr.msk.bf16.gmra.mxu1 %vm484_vm2, %v13346_v61  ;;  %v1025_v61 = vsel %vm984_vm3, %v1022_v17, %v1024_v59 }
  0x7c   : > { %11929 = vmatmul.mubr.msk.bf16.gmra.mxu0 %vm484_vm2, %v1017_v13  ;;  %11890 = vmatprep.mubr.msk.bf16.mxu1 %vm484_vm2, %v13365_v15 }
  0x7d   : > { %11932 = vmatprep.mubr.msk.bf16.mxu0 %vm484_vm2, %v1019_v27  ;;  %v1416_v27 = vrot.slane %v1414_v48, 1 }
  0x83   : > { %11891 = vmatmul.mubr.msk.bf16.gmra.mxu1 %vm484_vm2, %v13397_v52 }
  0x84   : > { %11933 = vmatmul.mubr.msk.bf16.gmra.mxu0 %vm484_vm2, %v1021_v31  ;;  %11894 = vmatprep.mubr.msk.bf16.mxu1 %vm484_vm2, %v13418_v4 }
  0x85   : > { %11936 = vmatprep.mubr.msk.bf16.mxu0 %vm484_vm2, %v1023_v51  ;;  %v1764_v51 = vrot.slane %v12925_v22, 2  ;;  %v2076_v22 = vld [vmem:[%s13240_s23 + $0x40] sm:$0xf] }
  0x8b   : > { %11895 = vmatmul.mubr.msk.bf16.gmra.mxu1 %vm484_vm2, %v13434_v9 }
  0x8c   : > { %11937 = vmatmul.mubr.msk.bf16.gmra.mxu0 %vm484_vm2, %v1025_v61  ;;  %11942 = vmatprep.mubr.msk.bf16.mxu1 %vm484_vm2, %v13547_v1  ;;  %v13830_v1 = vld [vmem:[%s17751_s1 + $0x1c] sm:$0xf] }
  0x8d   : > { %11984 = vmatprep.mubr.msk.bf16.mxu0 %vm484_vm2, %v13530_v32  ;;  %v2310_v32 = vsel %vm545_vm0, %v13578_v39, 0 }
  0x93   : > { %11943 = vmatmul.mubr.msk.bf16.vlgmr.msra.gmra.mxu1 %vm484_vm2, %v13534_v25 }
  0x94   : > { %11985 = vmatmul.mubr.msk.bf16.vlgmr.msra.gmra.mxu0 %vm484_vm2, %v13521_v11  ;;  %12025 = vmatpush3.bf16.msra.mxu1 %v2310_v32  ;;  %v13102_v11 = vld [vmem:[%s13240_s23 + $0x50] sm:$0xff]  }
  0x95   : > { %12067 = vmatpush3.bf16.msra.mxu0 %v2801_v41  ;;  %11988 = vmatprep.mubr.msk.bf16.mxu0 %vm484_vm2, %v13541_v40  ;;  %v1744_v25 = vrot.slane %v13102_v11, 2  ;;  %v13103_v40 = vld [vmem:[%s13240_s23 + $0x58] sm:$0xff]   ;;  %v2070_v11 = vld [vmem:[%s13240_s23 + $0x28] sm:$0xf] }
  0x96   : > { %12875 = vmatprep.subr.msk.bf16.mxu0 %vm545_vm0, %v13819_v50  ;;  %11946 = vmatprep.mubr.msk.bf16.mxu1 %vm484_vm2, %v13561_v55  ;;  %v1746_v20 = vrot.slane %v13103_v40, 2  ;;  %v2072_v40 = vld [vmem:[%s13240_s23 + $0x30] sm:$0xf] }
  0x97   : > { %12874 = vmatprep.subr.msk.bf16.mxu1 %vm545_vm0, %v13830_v1  ;;  %v1745_v55 = vsel %vm1724_vm5, %v1742_v10, %v1744_v25  ;;  %v13107_v10 = vld [vmem:[%s13240_s23 + $0x78] sm:$0xff]  }
  0x9b   : > { %11947 = vmatmul.mubr.msk.bf16.gmra.mxu1 %vm484_vm2, %v13581_v33  ;;  %v13105_v33 = vld [vmem:[%s13240_s23 + $0x68] sm:$0xff]  }
  0x9c   : > { %11989 = vmatmul.mubr.msk.bf16.gmra.mxu0 %vm484_vm2, %v13564_v47  ;;  %11950 = vmatprep.mubr.msk.bf16.mxu1 %vm484_vm2, %v13591_v35  ;;  %v1747_v47 = vsel %vm1724_vm5, %v1744_v25, %v1746_v20  ;;  %v1750_v35 = vrot.slane %v13105_v33, 2  ;;  %v2071_v25 = vld [vmem:[%s13240_s23 + $0x2c] sm:$0xf] }
  0x9d   : > { %11992 = vmatprep.mubr.msk.bf16.mxu0 %vm484_vm2, %v13569_v24  ;;  %v13104_v24 = vld [vmem:[%s13240_s23 + $0x60] sm:$0xff]  }
  0x9e   : > { %v1748_v39 = vrot.slane %v13104_v24, 2 }
  0xa0   : > { %v1749_v16 = vsel %vm1724_vm5, %v1746_v20, %v1748_v39  ;;  %v2073_v20 = vld [vmem:[%s13240_s23 + $0x34] sm:$0xf] }
  0xa3   : > { %11951 = vmatmul.mubr.msk.bf16.gmra.mxu1 %vm484_vm2, %v13609_v36 }
  0xa4   : > { %11993 = vmatmul.mubr.msk.bf16.gmra.mxu0 %vm484_vm2, %v13594_v58  ;;  %11954 = vmatprep.mubr.msk.bf16.mxu1 %vm484_vm2, %v13620_v3  ;;  %v1751_v58 = vsel %vm1724_vm5, %v1748_v39, %v1750_v35  ;;  %v1754_v3 = vrot.slane %v13107_v10, 2 }
  0xa5   : > { %11996 = vmatprep.mubr.msk.bf16.mxu0 %vm484_vm2, %v13601_v28  ;;  %v13106_v28 = vld [vmem:[%s13240_s23 + $0x70] sm:$0xff]  }
  0xa6   : > { %v1752_v36 = vrot.slane %v13106_v28, 2  ;;  %v13961_v28 = vcombine.low %v2072_v40, %v2073_v20 }
  0xab   : > { %11955 = vmatmul.mubr.msk.bf16.gmra.mxu1 %vm484_vm2, %v13647_v26  ;;  %v1756_v26 = vrot.slane %v13365_v15, 2 }
  0xac   : > { %11997 = vmatmul.mubr.msk.bf16.gmra.mxu0 %vm484_vm2, %v13623_v46  ;;  %11958 = vmatprep.mubr.msk.bf16.mxu1 %vm484_vm2, %v13653_v19  ;;  %v1753_v46 = vsel %vm1724_vm5, %v1750_v35, %v1752_v36  ;;  %v1758_v19 = vrot.slane %v13397_v52, 2  ;;  %v13954_v35 = vcombine.low %v2070_v11, %v2071_v25  ;;  %v3145_v25 = vsel %vm545_vm0, %v13830_v1, 0  ;;  %v14036_v1 = vld [vmem:[%s17751_s1 + $0x24] sm:$0xf] }
  0xad   : > { %12000 = vmatprep.mubr.msk.bf16.mxu0 %vm484_vm2, %v13637_v57  ;;  %v1755_v57 = vsel %vm1724_vm5, %v1752_v36, %v1754_v3 }
  0xae   : > { %v1759_v15 = vsel %vm1724_vm5, %v1756_v26, %v1758_v19 }
  0xb3   : > { %11959 = vmatmul.mubr.msk.bf16.gmra.mxu1 %vm484_vm2, %v13660_v43  ;;  %v2062_v43 = vld [vmem:[%s13240_s23 + $0x8] sm:$0xc] }
  0xb4   : > { %12001 = vmatmul.mubr.msk.bf16.gmra.mxu0 %vm484_vm2, %v1745_v55  ;;  %11962 = vmatprep.mubr.msk.bf16.mxu1 %vm484_vm2, %v13667_v53  ;;  %v13896_v53 = vld [vmem:[%s13240_s23 + $0xc] sm:$0xf]  ;;  %v1420_v55 = vor.u32 %v1419_v34, %v1416_v27  ;;  %v14013_v27 = vld [vmem:[%s17751_s1 + $0x28] sm:$0xf] }
  0xb5   : > { %12004 = vmatprep.mubr.msk.bf16.mxu0 %vm484_vm2, %v1747_v47  ;;  %v10691_v2 = vcombine.low %v2062_v43, %v13896_v53  ;;  %v2075_v43 = vld [vmem:[%s13240_s23 + $0x3c] sm:$0xf] }
  0xb6   : > { %v1421_v10 = vsel %vm1328_vm4, %v13734_v60, %v1420_v55  ;;  %v17776_v60 = vshll.u32 %v13961_v28, 16  ;;  %v2078_v55 = vld [vmem:[%s13240_s23 + $0x48] sm:$0xf] }
  0xb7   : > { %v2553_v54 = vshrl.u32 %v10691_v2, 16  ;;  %v2556_v63 = vshll.u32 %v10691_v2, 16  ;;  %v2208_v33 = vrot.slane %v10691_v2, 2  ;;  %v17777_v2 = vshrl.u32 %v13961_v28, 16 }
  0xb9   : > { %v2555_v5 = vrot.slane %v2553_v54, 2  ;;  %v2558_v23 = vrot.slane %v2556_v63, 3 }
  0xbb   : > { %11963 = vmatmul.mubr.msk.bf16.gmra.mxu1 %vm484_vm2, %v13679_v6  ;;  %v2064_v6 = vld [vmem:[%s13240_s23 + $0x10] sm:$0xf]  ;;  %v2559_v59 = vor.u32 %v2558_v23, %v2555_v5  ;;  %v2599_v23 = vrot.slane %v17777_v2, 2 }
  0xbc   : > { %12005 = vmatmul.mubr.msk.bf16.gmra.mxu0 %vm484_vm2, %v1749_v16  ;;  %11966 = vmatprep.mubr.msk.bf16.mxu1 %vm484_vm2, %v13691_v30  ;;  %v1757_v30 = vsel %vm1724_vm5, %v1754_v3, %v1756_v26  ;;  %v13907_v52 = vcombine.low %v2064_v6, %v13753_v37  ;;  %v17778_v26 = vshll.u32 %v13954_v35, 16 }
  0xbd   : > { %12008 = vmatprep.mubr.msk.bf16.mxu0 %vm484_vm2, %v1751_v58 }
  0xbe   : > { %v17789_v14 = vshrl.u32 %v13907_v52, 16  ;;  %v17788_v49 = vshll.u32 %v13907_v52, 16 }
  0xc0   : > { %v2566_v13 = vrot.slane %v17788_v49, 3 }
  0xc3   : > { %11967 = vmatmul.mubr.msk.bf16.gmra.mxu1 %vm484_vm2, %v13699_v45  ;;  %v1760_v45 = vrot.slane %v13418_v4, 2  ;;  %v13924_v4 = vcombine.low %v13756_v0, %v2067_v42 }
  0xc4   : > { %12009 = vmatmul.mubr.msk.bf16.gmra.mxu0 %vm484_vm2, %v1753_v46  ;;  %11970 = vmatprep.mubr.msk.bf16.mxu1 %vm484_vm2, %v13707_v29  ;;  %v1762_v29 = vrot.slane %v13434_v9, 2 }
  0xc5   : > { %12012 = vmatprep.mubr.msk.bf16.mxu0 %vm484_vm2, %v1755_v57  ;;  %v1761_v9 = vsel %vm1724_vm5, %v1758_v19, %v1760_v45  ;;  %v17787_v17 = vshrl.u32 %v13924_v4, 16  ;;  %v17786_v31 = vshll.u32 %v13924_v4, 16  ;;  %v17780_v57 = vshrl.u32 %v13954_v35, 16  ;;  %v2074_v19 = vld [vmem:[%s13240_s23 + $0x38] sm:$0xf] }
  0xc6   : > { %v1763_v8 = vsel %vm1724_vm5, %v1760_v45, %v1762_v29  ;;  %v1765_v39 = vsel %vm1724_vm5, %v1762_v29, %v1764_v51  ;;  %v2077_v45 = vld [vmem:[%s13240_s23 + $0x44] sm:$0xf]  ;;  %v2211_v42 = vrot.slane %v13924_v4, 2  ;;  %v13988_v63 = vcombine.low %v2074_v19, %v2075_v43 }
  0xc7   : > { %v2572_v47 = vrot.slane %v17787_v17, 2  ;;  %v2575_v24 = vrot.slane %v17786_v31, 3  ;;  %v2590_v12 = vrot.slane %v17780_v57, 2 }
  0xc9   : > { %v2576_v3 = vor.u32 %v2575_v24, %v2572_v47 }
  0xcb   : > { %11971 = vmatmul.mubr.msk.bf16.gmra.mxu1 %vm484_vm2, %v13716_v44  ;;  %v2563_v44 = vrot.slane %v17789_v14, 2 }
  0xcc   : > { %12013 = vmatmul.mubr.msk.bf16.gmra.mxu0 %vm484_vm2, %v1757_v30  ;;  %11974 = vmatprep.mubr.msk.bf16.mxu1 %vm484_vm2, %v13722_v18  ;;  %v13932_v18 = vcombine.low %v2068_v21, %v2069_v62  ;;  %v3541_v62 = vsel %vm545_vm0, %v13819_v50, 0  ;;  %v14006_v50 = vcombine.low %v2076_v22, %v2077_v45  ;;  %v2217_v45 = vrot.slane %v13961_v28, 2 }
  0xcd   : > { %12016 = vmatprep.mubr.msk.bf16.mxu0 %vm484_vm2, %v1759_v15  ;;  %v2567_v61 = vor.u32 %v2566_v13, %v2563_v44  ;;  %v2602_v44 = vrot.slane %v17776_v60, 3 }
  0xce   : > { %v17785_v41 = vshrl.u32 %v13932_v18, 16  ;;  %v17784_v32 = vshll.u32 %v13932_v18, 16  ;;  %v2213_v48 = vrot.slane %v13932_v18, 2 }
  0xcf   : > { %v2568_v16 = vsel %vm2551_vm6, %v2559_v59, %v2567_v61  ;;  %v2577_v54 = vsel %vm2551_vm6, %v2567_v61, %v2576_v3  ;;  %v17775_v59 = vshrl.u32 %v13988_v63, 16  ;;  %v17774_v61 = vshll.u32 %v13988_v63, 16 }
  0xd0   : > { %v2584_v58 = vrot.slane %v17784_v32, 3  ;;  %v2214_v40 = vsel %vm1724_vm5, %v2211_v42, %v2213_v48  ;;  %v2603_v24 = vor.u32 %v2602_v44, %v2599_v23 }
  0xd1   : > { %v2611_v19 = vrot.slane %v17774_v61, 3 }
  0xd3   : > { %11975 = vmatmul.mubr.msk.bf16.gmra.mxu1 %vm484_vm2, %v13731_v56  ;;  %v2209_v56 = vrot.slane %v13907_v52, 2 }
  0xd4   : > { %12017 = vmatmul.mubr.msk.bf16.gmra.mxu0 %vm484_vm2, %v1761_v9  ;;  %11978 = vmatprep.mubr.msk.bf16.mxu1 %vm484_vm2, %v13739_v7  ;;  %v2581_v7 = vrot.slane %v17785_v41, 2  ;;  %v2593_v9 = vrot.slane %v17778_v26, 3 }
  0xd5   : > { %12020 = vmatprep.mubr.msk.bf16.mxu0 %vm484_vm2, %v1763_v8  ;;  %v2210_v46 = vsel %vm1724_vm5, %v2208_v33, %v2209_v56  ;;  %v2212_v51 = vsel %vm1724_vm5, %v2209_v56, %v2211_v42  ;;  %v17772_v33 = vshll.u32 %v14006_v50, 16  ;;  %v2079_v56 = vld [vmem:[%s13240_s23 + $0x4c] sm:$0xf] }
  0xd6   : > { %v2585_v30 = vor.u32 %v2584_v58, %v2581_v7  ;;  %v2594_v20 = vor.u32 %v2593_v9, %v2590_v12  ;;  %v2080_v7 = vld [vmem:[%s13240_s23 + $0x50] sm:$0xf]  ;;  %v2081_v58 = vld [vmem:[%s13240_s23 + $0x54] sm:$0xf]  ;;  %v14057_v42 = vcombine.low %v2078_v55, %v2079_v56 }
  0xd7   : > { %v2620_v9 = vrot.slane %v17772_v33, 3  ;;  %v2219_v33 = vrot.slane %v13988_v63, 2 }
  0xd8   : > { %v2586_v5 = vsel %vm2551_vm6, %v2576_v3, %v2585_v30  ;;  %v2215_v3 = vrot.slane %v13954_v35, 2  ;;  %v2595_v22 = vsel %vm2551_vm6, %v2585_v30, %v2594_v20  ;;  %17952 = vst [vmem:[#allocation5_spill] sm:$0xff] %v14057_v42  ;;  %v17783_v55 = vshll.u32 %v14057_v42, 16 }
  0xda   : > { %v2216_v44 = vsel %vm1724_vm5, %v2213_v48, %v2215_v3 }
  0xdb   : > { %v13978_v15 = vpop.f32.mrf.mxu1  ;;  %11979 = vmatmul.mubr.msk.bf16.gmra.mxu1 %vm484_vm2, %v1421_v10 }
  0xdc   : > { %v13963_v36 = vpop.f32.mrf.mxu0  ;;  %12021 = vmatmul.mubr.msk.bf16.gmra.mxu0 %vm484_vm2, %v1765_v39  ;;  %12026 = vmatprep.mubr.msk.bf16.mxu1 %vm484_vm2, %v2210_v46  ;;  %v17773_v39 = vshrl.u32 %v14006_v50, 16  ;;  %v2608_v46 = vrot.slane %v17775_v59, 2 }
  0xdd   : > { %12068 = vmatprep.mubr.msk.bf16.mxu0 %vm484_vm2, %v2568_v16  ;;  %v13990_v21 = vpop.f32.mrf.mxu1 }
  0xde   : > { %v13974_v6 = vpop.f32.mrf.mxu0  ;;  %v2617_v12 = vrot.slane %v17773_v39, 2  ;;  %v2221_v39 = vrot.slane %v14006_v50, 2 }
  0xdf   : > { %v14008_v13 = vpop.f32.mrf.mxu1 }
  0xe0   : > { %v13983_v29 = vpop.f32.mrf.mxu0 }
  0xe1   : > { %v14021_v11 = vpop.f32.mrf.mxu1 }
  0xe2   : > { %v13999_v8 = vpop.f32.mrf.mxu0 }
  0xe3   : > { %v14040_v16 = vpop.f32.mrf.mxu1  ;;  %12027 = vmatmul.mubr.msk.bf16.vlgmr.msra.gmra.mxu1 %vm484_vm2, %v2212_v51  ;;  %v2612_v51 = vor.u32 %v2611_v19, %v2608_v46  ;;  %v2085_v19 = vld [vmem:[%s13240_s23 + $0x64] sm:$0xf] }
  0xe4   : > { %v14015_v34 = vpop.f32.mrf.mxu0  ;;  %12069 = vmatmul.mubr.msk.bf16.vlgmr.msra.gmra.mxu0 %vm484_vm2, %v2577_v54  ;;  %12109 = vmatpush3.bf16.msra.mxu1 %v3145_v25 }
  0xe5   : > { %12151 = vmatpush3.bf16.msra.mxu0 %v3541_v62  ;;  %12072 = vmatprep.mubr.msk.bf16.mxu0 %vm484_vm2, %v2586_v5  ;;  %v14053_v43 = vpop.f32.mrf.mxu1  ;;  %v2604_v62 = vsel %vm2551_vm6, %v2594_v20, %v2603_v24  ;;  %v14068_v5 = vcombine.low %v2080_v7, %v2081_v58  ;;  %v17779_v20 = vshrl.u32 %v14057_v42, 16  ;;  %v2621_v7 = vor.u32 %v2620_v9, %v2617_v12 }
  0xe6   : > { %v14028_v47 = vpop.f32.mrf.mxu0  ;;  %12877 = vmatprep.subr.msk.bf16.mxu0 %vm545_vm0, %v14013_v27  ;;  %12030 = vmatprep.mubr.msk.bf16.mxu1 %vm484_vm2, %v2214_v40  ;;  %17951 = vst [vmem:[#allocation4_spill] sm:$0xff] %v14053_v43  ;;  %v2218_v40 = vsel %vm1724_vm5, %v2215_v3, %v2217_v45  ;;  %v2084_v3 = vld [vmem:[%s13240_s23 + $0x60] sm:$0xf]  ;;  %v2613_v12 = vsel %vm2551_vm6, %v2603_v24, %v2612_v51  ;;  %v2099_v43 = vld [vmem:[%s13240_s23 + $0x9c] sm:$0xf] }
  0xe7   : > { %12876 = vmatprep.subr.msk.bf16.mxu1 %vm545_vm0, %v14036_v1  ;;  %17953 = vst [vmem:[#allocation6_spill] sm:$0xff] %v14068_v5  ;;  %v14070_v30 = vpop.f32.mrf.mxu1  ;;  %v17781_v48 = vshrl.u32 %v14068_v5, 16  ;;  %v17782_v58 = vshll.u32 %v14068_v5, 16  ;;  %v2626_v61 = vrot.slane %v17779_v20, 2  ;;  %v14114_v26 = vcombine.low %v2084_v3, %v2085_v19 }
  0xe8   : > { %v14045_v10 = vpop.f32.mrf.mxu0  ;;  %17954 = vst [vmem:[#allocation7_spill] sm:$0xff] %v14070_v30 }
  0xe9   : > { %v14076_v25 = vpop.f32.mrf.mxu1  ;;  %v2635_v24 = vrot.slane %v17781_v48, 2  ;;  %v2638_v2 = vrot.slane %v17782_v58, 3  ;;  %17959 = vst [vmem:[#allocation12_spill] sm:$0xff] %v14114_v26  ;;  %v2086_v58 = vld [vmem:[%s13240_s23 + $0x68] sm:$0xf]  ;;  %v17794_v41 = vshrl.u32 %v14114_v26, 16 }
  0xea   : > { %v14061_v54 = vpop.f32.mrf.mxu0  ;;  %17955 = vst [vmem:[#allocation8_spill] sm:$0xff] %v14076_v25 }
  0xeb   : > { %v14088_v46 = vpop.f32.mrf.mxu1  ;;  %12031 = vmatmul.mubr.msk.bf16.gmra.mxu1 %vm484_vm2, %v2216_v44  ;;  %v2629_v44 = vrot.slane %v17783_v55, 3  ;;  %v2087_v55 = vld [vmem:[%s13240_s23 + $0x6c] sm:$0xf] }
  0xec   : > { %v14072_v23 = vpop.f32.mrf.mxu0  ;;  %12073 = vmatmul.mubr.msk.bf16.gmra.mxu0 %vm484_vm2, %v2595_v22  ;;  %v2082_v22 = vld [vmem:[%s13240_s23 + $0x58] sm:$0xf]  ;;  %17956 = vst [vmem:[#allocation9_spill] sm:$0xff] %v14088_v46  ;;  %12034 = vmatprep.mubr.msk.bf16.mxu1 %vm484_vm2, %v2218_v40  ;;  %v2622_v40 = vsel %vm2551_vm6, %v2612_v51, %v2621_v7  ;;  %v2222_v51 = vsel %vm1724_vm5, %v2219_v33, %v2221_v39 }
  0xed   : > { %12076 = vmatprep.mubr.msk.bf16.mxu0 %vm484_vm2, %v2604_v62  ;;  %v14098_v9 = vpop.f32.mrf.mxu1  ;;  %v14105_v59 = vcombine.low %v2082_v22, %v2083_v38  ;;  %v2220_v38 = vsel %vm1724_vm5, %v2217_v45, %v2219_v33  ;;  %v2630_v48 = vor.u32 %v2629_v44, %v2626_v61  ;;  %v2639_v45 = vor.u32 %v2638_v2, %v2635_v24  ;;  %v2088_v33 = vld [vmem:[%s13240_s23 + $0x70] sm:$0xf] }
  0xee   : > { %v14082_v56 = vpop.f32.mrf.mxu0  ;;  %17957 = vst [vmem:[#allocation10_spill] sm:$0xff] %v14098_v9  ;;  %v2223_v44 = vrot.slane %v14057_v42, 2  ;;  %v14143_v17 = vcombine.low %v2086_v58, %v2087_v55  ;;  %v2225_v24 = vrot.slane %v14068_v5, 2  ;;  %v2653_v55 = vrot.slane %v17794_v41, 2 }
  0xef   : > { %17958 = vst [vmem:[#allocation11_spill] sm:$0xff] %v14105_v59  ;;  %v14116_v20 = vpop.f32.mrf.mxu1  ;;  %v17792_v3 = vshrl.u32 %v14105_v59, 16  ;;  %v17793_v19 = vshll.u32 %v14105_v59, 16  ;;  %v2631_v2 = vsel %vm2551_vm6, %v2621_v7, %v2630_v48  ;;  %v17965_v58 = vshll.u32 %v14114_v26, 16 }
  0xf0   : > { %v14093_v62 = vpop.f32.mrf.mxu0  ;;  %17960 = vst [vmem:[#allocation13_spill] sm:$0xff] %v14116_v20  ;;  %17963 = vst [vmem:[#allocation16_spill] sm:$0xff] %v14143_v17  ;;  %v2092_v20 = vld [vmem:[%s13240_s23 + $0x80] sm:$0xf] }
  0xf1   : > { %v14122_v22 = vpop.f32.mrf.mxu1  ;;  %v2644_v14 = vrot.slane %v17792_v3, 2  ;;  %v2656_v7 = vrot.slane %v17965_v58, 3  ;;  %v2226_v58 = vsel %vm1724_vm5, %v2223_v44, %v2225_v24 }
  0xf2   : > { %v14107_v60 = vpop.f32.mrf.mxu0  ;;  %17961 = vst [vmem:[#allocation14_spill] sm:$0xff] %v14122_v22 }
  0xf3   : > { %v14134_v31 = vpop.f32.mrf.mxu1  ;;  %12035 = vmatmul.mubr.msk.bf16.gmra.mxu1 %vm484_vm2, %v2220_v38  ;;  %v2647_v38 = vrot.slane %v17793_v19, 3  ;;  %v2224_v19 = vsel %vm1724_vm5, %v2221_v39, %v2223_v44  ;;  %v2657_v22 = vor.u32 %v2656_v7, %v2653_v55  ;;  %v2229_v44 = vrot.slane %v14114_v26, 2 }
  0xf4   : > { %v14118_v57 = vpop.f32.mrf.mxu0  ;;  %12077 = vmatmul.mubr.msk.bf16.gmra.mxu0 %vm484_vm2, %v2613_v12  ;;  %17962 = vst [vmem:[#allocation15_spill] sm:$0xff] %v14134_v31  ;;  %12038 = vmatprep.mubr.msk.bf16.mxu1 %vm484_vm2, %v2222_v51  ;;  %v2640_v51 = vsel %vm2551_vm6, %v2630_v48, %v2639_v45  ;;  %v2093_v48 = vld [vmem:[%s13240_s23 + $0x84] sm:$0xf]  ;;  %v17971_v55 = vshll.u32 %v14143_v17, 16 }
  0xf5   : > { %12080 = vmatprep.mubr.msk.bf16.mxu0 %vm484_vm2, %v2622_v40  ;;  %v2089_v40 = vld [vmem:[%s13240_s23 + $0x74] sm:$0xf]  ;;  %v14145_v49 = vpop.f32.mrf.mxu1 }
  0xf6   : > { %v14130_v32 = vpop.f32.mrf.mxu0  ;;  %17964 = vst [vmem:[#allocation17_spill] sm:$0xff] %v14145_v49  ;;  %v14160_v0 = vcombine.low %v2088_v33, %v2089_v40  ;;  %v2648_v33 = vor.u32 %v2647_v38, %v2644_v14  ;;  %v2090_v40 = vld [vmem:[%s13240_s23 + $0x78] sm:$0xf]  ;;  %v2227_v14 = vrot.slane %v14105_v59, 2  ;;  %v17970_v38 = vshrl.u32 %v14143_v17, 16 }
  0xf7   : > { %v14162_v37 = vpop.f32.mrf.mxu1  ;;  %v2665_v7 = vrot.slane %v17971_v55, 3 }
  0xf8   : > { %v14139_v61 = vpop.f32.mrf.mxu0  ;;  %17966 = vst [vmem:[#allocation18_spill] sm:$0xff] %v14160_v0  ;;  %17967 = vst [vmem:[#allocation19_spill] sm:$0xff] %v14162_v37  ;;  %v2091_v37 = vld [vmem:[%s13240_s23 + $0x7c] sm:$0xf]  ;;  %v17973_v26 = vshrl.u32 %v14160_v0, 16  ;;  %v17974_v59 = vshll.u32 %v14160_v0, 16 }
  0xf9   : > { %v14170_v41 = vpop.f32.mrf.mxu1  ;;  %v14197_v39 = vcombine.low %v2090_v40, %v2091_v37  ;;  %v2230_v37 = vsel %vm1724_vm5, %v2227_v14, %v2229_v44 }
  0xfa   : > { %v14153_v12 = vpop.f32.mrf.mxu0  ;;  %17968 = vst [vmem:[#allocation20_spill] sm:$0xff] %v14170_v41  ;;  %v2658_v41 = vsel %vm2551_vm6, %v2648_v33, %v2657_v22  ;;  %v2674_v9 = vrot.slane %v17974_v59, 3  ;;  %v2231_v59 = vrot.slane %v14143_v17, 2 }
  0xfb   : > { %v14182_v5 = vpop.f32.mrf.mxu1  ;;  %12039 = vmatmul.mubr.msk.bf16.gmra.mxu1 %vm484_vm2, %v2224_v19  ;;  %v2649_v19 = vsel %vm2551_vm6, %v2639_v45, %v2648_v33  ;;  %v2094_v45 = vld [vmem:[%s13240_s23 + $0x88] sm:$0xf] }
  0xfc   : > { %v14164_v3 = vpop.f32.mrf.mxu0  ;;  %12081 = vmatmul.mubr.msk.bf16.gmra.mxu0 %vm484_vm2, %v2631_v2  ;;  %17969 = vst [vmem:[#allocation21_spill] sm:$0xff] %v14182_v5  ;;  %12042 = vmatprep.mubr.msk.bf16.mxu1 %vm484_vm2, %v2226_v58  ;;  %v14199_v5 = vcombine.low %v2092_v20, %v2093_v48  ;;  %v2095_v48 = vld [vmem:[%s13240_s23 + $0x8c] sm:$0xf] }
  0xfd   : > { %12084 = vmatprep.mubr.msk.bf16.mxu0 %vm484_vm2, %v2640_v51  ;;  %v2662_v51 = vrot.slane %v17970_v38, 2  ;;  %v14194_v2 = vpop.f32.mrf.mxu1  ;;  %v2671_v38 = vrot.slane %v17973_v26, 2 }
  0xfe   : > { %v14176_v31 = vpop.f32.mrf.mxu0  ;;  %17972 = vst [vmem:[#allocation22_spill] sm:$0xff] %v14194_v2  ;;  %v2228_v2 = vsel %vm1724_vm5, %v2225_v24, %v2227_v14  ;;  %v14223_v14 = vcombine.low %v2094_v45, %v2095_v48  ;;  %v2233_v24 = vrot.slane %v14160_v0, 2  ;;  %v17979_v48 = vshrl.u32 %v14199_v5, 16 }
  0xff   : > { %v14208_v55 = vpop.f32.mrf.mxu1  ;;  %v2666_v20 = vor.u32 %v2665_v7, %v2662_v51  ;;  %v2096_v51 = vld [vmem:[%s13240_s23 + $0x90] sm:$0xf]  ;;  %v2097_v7 = vld [vmem:[%s13240_s23 + $0x94] sm:$0xf] }
 0x100   : > { %v14185_v49 = vpop.f32.mrf.mxu0  ;;  %17975 = vst [vmem:[#allocation23_spill] sm:$0xff] %v14208_v55  ;;  %v2675_v55 = vor.u32 %v2674_v9, %v2671_v38  ;;  %v17977_v9 = vshrl.u32 %v14197_v39, 16  ;;  %v2689_v25 = vrot.slane %v17979_v48, 2  ;;  %v14244_v30 = vcombine.low %v2096_v51, %v2097_v7  ;;  %v2098_v7 = vld [vmem:[%s13240_s23 + $0x98] sm:$0xf] }
 0x101   : > { %v14215_v33 = vpop.f32.mrf.mxu1  ;;  %v2667_v40 = vsel %vm2551_vm6, %v2657_v22, %v2666_v20 }
 0x102   : > { %v14201_v58 = vpop.f32.mrf.mxu0  ;;  %17976 = vst [vmem:[#allocation24_spill] sm:$0xff] %v14215_v33  ;;  %v2680_v38 = vrot.slane %v17977_v9, 2  ;;  %v2676_v0 = vsel %vm2551_vm6, %v2666_v20, %v2675_v55 }
 0x103   : > { %v11860_v46 = vpop.f32.mrf.mxu1  ;;  %12043 = vmatmul.mubr.msk.bf16.gmra.mxu1 %vm484_vm2, %v2228_v2  ;;  %v17978_v2 = vshll.u32 %v14197_v39, 16 }
 0x104   : > { %v11902_v42 = vpop.f32.mrf.mxu0  ;;  %12085 = vmatmul.mubr.msk.bf16.gmra.mxu0 %vm484_vm2, %v2649_v19  ;;  %v828_v33 = vadd.f32 %v11860_v46, %v13963_v36  ;;  %12046 = vmatprep.mubr.msk.bf16.mxu1 %vm484_vm2, %v2230_v37  ;;  %v17980_v36 = vshll.u32 %v14199_v5, 16 }
 0x105   : > { %12088 = vmatprep.mubr.msk.bf16.mxu0 %vm484_vm2, %v2658_v41  ;;  %v819_v26 = vpop.f32.mrf.mxu1  ;;  %v2683_v45 = vrot.slane %v17978_v2, 3  ;;  %v2100_v2 = vld [vmem:[%s13240_s23 + $0xa0] sm:$0xf] }
 0x106   : > { %v1123_v19 = vpop.f32.mrf.mxu0  ;;  %v2692_v46 = vrot.slane %v17980_v36, 3  ;;  %v14240_v37 = vadd.f32 %v11902_v42, %v828_v33  ;;  %v820_v17 = vadd.f32 %v819_v26, %v13974_v6  ;;  %v2232_v6 = vsel %vm1724_vm5, %v2229_v44, %v2231_v59 }
 0x107   : > { %v11861_v9 = vpop.f32.mrf.mxu1  ;;  %v2234_v33 = vsel %vm1724_vm5, %v2231_v59, %v2233_v24  ;;  %v2684_v26 = vor.u32 %v2683_v45, %v2680_v38  ;;  %v2237_v44 = vrot.slane %v14199_v5, 2 }
 0x108   : > { %v11903_v41 = vpop.f32.mrf.mxu0  ;;  %v14248_v48 = vadd.f32 %v1123_v19, %v820_v17  ;;  %v831_v36 = vadd.f32 %v11861_v9, %v13983_v29  ;;  %v2693_v51 = vor.u32 %v2692_v46, %v2689_v25  ;;  %v17983_v25 = vshrl.u32 %v14223_v14, 16 }
 0x109   : > { %v822_v20 = vpop.f32.mrf.mxu1 }
 0x10a   : > { %v1126_v22 = vpop.f32.mrf.mxu0  ;;  %17981 = vst [vmem:[#allocation25_spill] sm:$0xff] %v14248_v48  ;;  %v14257_v17 = vadd.f32 %v11903_v41, %v831_v36  ;;  %v823_v29 = vadd.f32 %v822_v20, %v13999_v8  ;;  %v2698_v59 = vrot.slane %v17983_v25, 2  ;;  %v17984_v41 = vshll.u32 %v14223_v14, 16 }
 0x10b   : > { %v11864_v48 = vpop.f32.mrf.mxu1  ;;  %12047 = vmatmul.mubr.msk.bf16.gmra.mxu1 %vm484_vm2, %v2232_v6  ;;  %v14274_v36 = vcombine.low %v2098_v7, %v2099_v43  ;;  %v2685_v6 = vsel %vm2551_vm6, %v2675_v55, %v2684_v26  ;;  %v2694_v9 = vsel %vm2551_vm6, %v2684_v26, %v2693_v51  ;;  %v17987_v43 = vshll.u32 %v14244_v30, 16 }
 0x10c   : > { %v11906_v42 = vpop.f32.mrf.mxu0  ;;  %12089 = vmatmul.mubr.msk.bf16.gmra.mxu0 %vm484_vm2, %v2667_v40  ;;  %17982 = vst [vmem:[#allocation26_spill] sm:$0xff] %v14257_v17  ;;  %v2101_v40 = vld [vmem:[%s13240_s23 + $0xa4] sm:$0xf]  ;;  %v2701_v38 = vrot.slane %v17984_v41, 3  ;;  %v14270_v45 = vadd.f32 %v1126_v22, %v823_v29  ;;  %v844_v8 = vadd.f32 %v11864_v48, %v14015_v34  ;;  %12050 = vmatprep.mubr.msk.bf16.mxu1 %vm484_vm2, %v2234_v33  ;;  %v17986_v34 = vshrl.u32 %v14244_v30, 16 }
 0x10d   : > { %12092 = vmatprep.mubr.msk.bf16.mxu0 %vm484_vm2, %v2676_v0  ;;  %v2235_v0 = vrot.slane %v14197_v39, 2  ;;  %v835_v20 = vpop.f32.mrf.mxu1  ;;  %v14279_v25 = vcombine.low %v2100_v2, %v2101_v40  ;;  %v2710_v33 = vrot.slane %v17987_v43, 3  ;;  %v17807_v26 = vshll.u32 %v14274_v36, 16  ;;  %v14307_v43 = vld [vmem:[%s13240_s23 + $0xa8] ss:$0 sps:$4 sm:$0x77]  }
 0x10e   : > { %v1139_v19 = vpop.f32.mrf.mxu0  ;;  %17985 = vst [vmem:[#allocation27_spill] sm:$0xff] %v14270_v45  ;;  %v14281_v17 = vadd.f32 %v11906_v42, %v844_v8  ;;  %v836_v22 = vadd.f32 %v835_v20, %v14028_v47  ;;  %v2707_v48 = vrot.slane %v17986_v34, 2  ;;  %v2702_v41 = vor.u32 %v2701_v38, %v2698_v59  ;;  %17988 = vst [vmem:[#allocation28_spill] sm:$0xff] %v14307_v43 }
 0x10f   : > { %v11865_v7 = vpop.f32.mrf.mxu1  ;;  %v2236_v55 = vsel %vm1724_vm5, %v2233_v24, %v2235_v0  ;;  %v17808_v47 = vshrl.u32 %v14274_v36, 16  ;;  %v2238_v8 = vsel %vm1724_vm5, %v2235_v0, %v2237_v44  ;;  %v17809_v24 = vshrl.u32 %v14279_v25, 16 }
 0x110   : > { %v11907_v46 = vpop.f32.mrf.mxu0  ;;  %v14289_v45 = vadd.f32 %v1139_v19, %v836_v22  ;;  %v847_v2 = vadd.f32 %v11865_v7, %v14045_v10  ;;  %v17810_v19 = vshll.u32 %v14279_v25, 16  ;;  %v2711_v20 = vor.u32 %v2710_v33, %v2707_v48 }
 0x111   : > { %v838_v40 = vpop.f32.mrf.mxu1  ;;  %v2239_v34 = vrot.slane %v14223_v14, 2  ;;  %v2703_v0 = vsel %vm2551_vm6, %v2693_v51, %v2702_v41  ;;  %v2719_v48 = vrot.slane %v17807_v26, 3  ;;  %v2725_v51 = vrot.slane %v17809_v24, 2 }
 0x112   : > { %v1142_v29 = vpop.f32.mrf.mxu0  ;;  %v14299_v59 = vadd.f32 %v11907_v46, %v847_v2  ;;  %v839_v10 = vadd.f32 %v838_v40, %v14061_v54  ;;  %v2716_v54 = vrot.slane %v17808_v47, 2  ;;  %v2732_v26 = vshrl.u32 %v14307_v43, 16 }
 0x113   : > { %v11868_v22 = vpop.f32.mrf.mxu1  ;;  %12051 = vmatmul.mubr.msk.bf16.gmra.mxu1 %vm484_vm2, %v2236_v55  ;;  %v2241_v55 = vrot.slane %v14244_v30, 2  ;;  %v2735_v47 = vshll.u32 %v14307_v43, 16 }
 0x114   : > { %v11910_v42 = vpop.f32.mrf.mxu0  ;;  %12093 = vmatmul.mubr.msk.bf16.gmra.mxu0 %vm484_vm2, %v2685_v6  ;;  %v3036_v6 = vld [vmem:[%s13240_s23 + $0x8] sm:$0x8]  ;;  %v860_v7 = vadd.f32 %v11868_v22, %v14072_v23  ;;  %12054 = vmatprep.mubr.msk.bf16.mxu1 %vm484_vm2, %v2238_v8 }
 0x115   : > { %12096 = vmatprep.mubr.msk.bf16.mxu0 %vm484_vm2, %v2694_v9  ;;  %v14309_v9 = vadd.f32 %v1142_v29, %v839_v10  ;;  %v851_v33 = vpop.f32.mrf.mxu1  ;;  %v2728_v29 = vrot.slane %v17810_v19, 3  ;;  %v14323_v23 = vcombine.low %v3036_v6, %v13896_v53  ;;  %v2712_v10 = vsel %vm2551_vm6, %v2702_v41, %v2711_v20 }
 0x116   : > { %v1155_v38 = vpop.f32.mrf.mxu0  ;;  %v14325_v2 = vadd.f32 %v11910_v42, %v860_v7  ;;  %v852_v40 = vadd.f32 %v851_v33, %v14082_v56  ;;  %v2240_v53 = vsel %vm1724_vm5, %v2237_v44, %v2239_v34  ;;  %v2720_v42 = vor.u32 %v2719_v48, %v2716_v54 }
 0x117   : > { %17989 = vst [vmem:[#allocation29_spill] sm:$0xff] %v14309_v9  ;;  %v11869_v22 = vpop.f32.mrf.mxu1  ;;  %v2242_v56 = vsel %vm1724_vm5, %v2239_v34, %v2241_v55  ;;  %v2729_v41 = vor.u32 %v2728_v29, %v2725_v51  ;;  %v3388_v7 = vshrl.u32 %v14323_v23, 16  ;;  %v3391_v33 = vshll.u32 %v14323_v23, 16 }
 0x118   : > { %v11911_v46 = vpop.f32.mrf.mxu0  ;;  %v14331_v9 = vadd.f32 %v1155_v38, %v852_v40  ;;  %v863_v24 = vadd.f32 %v11869_v22, %v14093_v62  ;;  %v2734_v44 = vrot.slane %v2732_v26, 2  ;;  %v2243_v51 = vrot.slane %v14274_v36, 2 }
 0x119   : > { %v854_v6 = vpop.f32.mrf.mxu1  ;;  %v2730_v29 = vsel %vm2551_vm6, %v2720_v42, %v2729_v41  ;;  %v3393_v26 = vrot.slane %v3391_v33, 4 }
 0x11a   : > { %v1158_v8 = vpop.f32.mrf.mxu0  ;;  %v14340_v38 = vadd.f32 %v11911_v46, %v863_v24  ;;  %v855_v62 = vadd.f32 %v854_v6, %v14107_v60  ;;  %v2721_v24 = vsel %vm2551_vm6, %v2711_v20, %v2720_v42  ;;  %v2245_v60 = vrot.slane %v14279_v25, 2  ;;  %v12947_v20 = vld [vmem:[%s13240_s23 + $0xa8] ss:$0 sps:$4 sm:$0x33]  }
 0x11b   : > { %v11872_v22 = vpop.f32.mrf.mxu1  ;;  %12055 = vmatmul.mubr.msk.bf16.gmra.mxu1 %vm484_vm2, %v2240_v53  ;;  %v17991_v53 = vshrl.u32 %v13907_v52, 16 }
 0x11c   : > { %v11914_v19 = vpop.f32.mrf.mxu0  ;;  %12097 = vmatmul.mubr.msk.bf16.gmra.mxu0 %vm484_vm2, %v2703_v0  ;;  %v2737_v0 = vrot.slane %v2735_v47, 3  ;;  %v14344_v54 = vadd.f32 %v1158_v8, %v855_v62  ;;  %v876_v34 = vadd.f32 %v11872_v22, %v14118_v57  ;;  %12058 = vmatprep.mubr.msk.bf16.mxu1 %vm484_vm2, %v2242_v56  ;;  %v17992_v56 = vshll.u32 %v13907_v52, 16 }
 0x11d   : > { %12100 = vmatprep.mubr.msk.bf16.mxu0 %vm484_vm2, %v2712_v10  ;;  %v867_v46 = vpop.f32.mrf.mxu1  ;;  %v3390_v10 = vrot.slane %v3388_v7, 3  ;;  %v3395_v6 = vrot.slane %v17991_v53, 3  ;;  %v2246_v33 = vsel %vm1724_vm5, %v2243_v51, %v2245_v60 }
 0x11e   : > { %v1171_v40 = vpop.f32.mrf.mxu0  ;;  %17990 = vst [vmem:[#allocation30_spill] sm:$0xff] %v14344_v54  ;;  %v14352_v47 = vadd.f32 %v11914_v19, %v876_v34  ;;  %v868_v8 = vadd.f32 %v867_v46, %v14130_v32  ;;  %v3396_v62 = vrot.slane %v17992_v56, 4  ;;  %v2738_v43 = vor.u32 %v2737_v0, %v2734_v44 }
 0x11f   : > { %v11873_v22 = vpop.f32.mrf.mxu1  ;;  %v2244_v19 = vsel %vm1724_vm5, %v2241_v55, %v2243_v51  ;;  %v3394_v44 = vor.u32 %v3393_v26, %v3390_v10  ;;  %v17993_v10 = vshrl.u32 %v13924_v4, 16 }
 0x120   : > { %v11915_v48 = vpop.f32.mrf.mxu0  ;;  %v14360_v54 = vadd.f32 %v1171_v40, %v868_v8  ;;  %v879_v42 = vadd.f32 %v11873_v22, %v14139_v61  ;;  %v3397_v40 = vor.u32 %v3396_v62, %v3395_v6  ;;  %v2247_v61 = vrot.slane %v12947_v20, 2 }
 0x121   : > { %v870_v32 = vpop.f32.mrf.mxu1  ;;  %v2739_v55 = vsel %vm2551_vm6, %v2729_v41, %v2738_v43  ;;  %v3399_v26 = vrot.slane %v17993_v10, 3  ;;  %v17994_v6 = vshll.u32 %v13924_v4, 16  ;;  %v17995_v43 = vshrl.u32 %v13932_v18, 16 }
 0x122   : > { %v1174_v57 = vpop.f32.mrf.mxu0  ;;  %v14367_v34 = vadd.f32 %v11915_v48, %v879_v42  ;;  %v871_v46 = vadd.f32 %v870_v32, %v14153_v12  ;;  %v3043_v48 = vrot.slane %v14323_v23, 3  ;;  %v3044_v12 = vrot.slane %v13907_v52, 3 }
 0x123   : > { %v11876_v0 = vpop.f32.mrf.mxu1  ;;  %12059 = vmatmul.mubr.msk.bf16.gmra.mxu1 %vm484_vm2, %v2244_v19  ;;  %v3400_v56 = vrot.slane %v17994_v6, 4  ;;  %v3403_v41 = vrot.slane %v17995_v43, 3  ;;  %v3398_v52 = vsel %vm3386_vm7, %v3394_v44, %v3397_v40 }
 0x124   : > { %v11918_v7 = vpop.f32.mrf.mxu0  ;;  %12101 = vmatmul.mubr.msk.bf16.gmra.mxu0 %vm484_vm2, %v2721_v24  ;;  %v14372_v24 = vadd.f32 %v1174_v57, %v871_v46  ;;  %v892_v51 = vadd.f32 %v11876_v0, %v14164_v3  ;;  %12062 = vmatprep.mubr.msk.bf16.mxu1 %vm484_vm2, %v2246_v33  ;;  %v17996_v57 = vshll.u32 %v13932_v18, 16  ;;  %v2248_v33 = vsel %vm1724_vm5, %v2245_v60, %v2247_v61 }
 0x125   : > { %12104 = vmatprep.mubr.msk.bf16.mxu0 %vm484_vm2, %v2730_v29  ;;  %v883_v29 = vpop.f32.mrf.mxu1 }
 0x126   : > { %v1187_v53 = vpop.f32.mrf.mxu0  ;;  %v3404_v3 = vrot.slane %v17996_v57, 4  ;;  %v14386_v62 = vadd.f32 %v11918_v7, %v892_v51  ;;  %v884_v22 = vadd.f32 %v883_v29, %v14176_v31  ;;  %v3045_v7 = vsel %vm3042_vm8, %v3043_v48, %v3044_v12 }
 0x127   : > { %v11877_v20 = vpop.f32.mrf.mxu1  ;;  %v3401_v31 = vor.u32 %v3400_v56, %v3399_v26  ;;  %v17997_v48 = vshrl.u32 %v13954_v35, 16  ;;  %v4297_v56 = vsel %vm545_vm0, %v14013_v27, 0  ;;  %v14425_v27 = vld [vmem:[%s17751_s1 + $0x30] sm:$0xf] }
 0x128   : > { %v11919_v8 = vpop.f32.mrf.mxu0  ;;  %v14390_v42 = vadd.f32 %v1187_v53, %v884_v22  ;;  %v895_v19 = vadd.f32 %v11877_v20, %v14185_v49  ;;  %v3405_v0 = vor.u32 %v3404_v3, %v3403_v41  ;;  %v3046_v49 = vrot.slane %v13924_v4, 3 }
 0x129   : > { %v886_v46 = vpop.f32.mrf.mxu1  ;;  %v3407_v10 = vrot.slane %v17997_v48, 3  ;;  %v3402_v6 = vsel %vm3386_vm7, %v3397_v40, %v3401_v31  ;;  %v3048_v4 = vrot.slane %v13932_v18, 3  ;;  %v17999_v3 = vshrl.u32 %v13961_v28, 16 }
 0x12a   : > { %v1190_v23 = vpop.f32.mrf.mxu0  ;;  %v14397_v51 = vadd.f32 %v11919_v8, %v895_v19  ;;  %v887_v44 = vadd.f32 %v886_v46, %v14201_v58  ;;  %v17998_v8 = vshll.u32 %v13954_v35, 16  ;;  %v3406_v43 = vsel %vm3386_vm7, %v3401_v31, %v3405_v0 }
 0x12b   : > { %v11880_v29 = vpop.f32.mrf.mxu1  ;;  %12063 = vmatmul.mubr.msk.bf16.gmra.mxu1 %vm484_vm2, %v2248_v33  ;;  %v3411_v22 = vrot.slane %v17999_v3, 3  ;;  %v3859_v46 = vsel %vm545_vm0, %v14036_v1, 0  ;;  %v3052_v48 = vrot.slane %v13961_v28, 3 }
 0x12c   : > { %v11922_v32 = vpop.f32.mrf.mxu0  ;;  %12105 = vmatmul.mubr.msk.bf16.gmra.mxu0 %vm484_vm2, %v2739_v55  ;;  %v14402_v60 = vadd.f32 %v1190_v23, %v887_v44  ;;  %v908_v61 = vadd.f32 %v11880_v29, %v13978_v15  ;;  %12110 = vmatprep.mubr.msk.bf16.mxu1 %vm484_vm2, %v3045_v7  ;;  %v3408_v26 = vrot.slane %v17998_v8, 4  ;;  %v18000_v23 = vshll.u32 %v13961_v28, 16 }
 0x12d   : > { %12152 = vmatprep.mubr.msk.bf16.mxu0 %vm484_vm2, %v3398_v52  ;;  %v899_v58 = vpop.f32.mrf.mxu1  ;;  %v3049_v7 = vsel %vm3042_vm8, %v3046_v49, %v3048_v4  ;;  %v3050_v29 = vrot.slane %v13954_v35, 3  ;;  %v18001_v8 = vshrl.u32 %v13988_v63, 16  ;;  %v18003_v35 = vshrl.u32 %v14006_v50, 16 }
 0x12e   : > { %v1203_v53 = vpop.f32.mrf.mxu0  ;;  %v14415_v15 = vadd.f32 %v11922_v32, %v908_v61  ;;  %v900_v41 = vadd.f32 %v899_v58, %v13990_v21  ;;  %v3412_v52 = vrot.slane %v18000_v23, 4  ;;  %v3047_v21 = vsel %vm3042_vm8, %v3044_v12, %v3046_v49  ;;  %v14442_v12 = vld [vmem:[%s17751_s1 + $0x2c] sm:$0xf] }
 0x12f   : > { %v11881_v20 = vpop.f32.mrf.mxu1  ;;  %v3409_v32 = vor.u32 %v3408_v26, %v3407_v10  ;;  %v3415_v26 = vrot.slane %v18001_v8, 3  ;;  %v18002_v58 = vshll.u32 %v13988_v63, 16 }
 0x130   : > { %v11923_v55 = vpop.f32.mrf.mxu0  ;;  %v14427_v18 = vadd.f32 %v1203_v53, %v900_v41  ;;  %v911_v40 = vadd.f32 %v11881_v20, %v14008_v13  ;;  %v3413_v53 = vor.u32 %v3412_v52, %v3411_v22  ;;  %v18006_v52 = vld [vmem:[#allocation7_spill] sm:$0xff] }
 0x131   : > { %v902_v33 = vpop.f32.mrf.mxu1 }
 0x132   : > { %v1206_v57 = vpop.f32.mrf.mxu0  ;;  %v14436_v31 = vadd.f32 %v11923_v55, %v911_v40  ;;  %v903_v44 = vadd.f32 %v902_v33, %v14021_v11  ;;  %v3410_v55 = vsel %vm3386_vm7, %v3405_v0, %v3409_v32  ;;  %v18005_v0 = vld [vmem:[#allocation4_spill] sm:$0xff]  ;;  %v3414_v3 = vsel %vm3386_vm7, %v3409_v32, %v3413_v53 }
 0x133   : > { %v11884_v1 = vpop.f32.mrf.mxu1  ;;  %12111 = vmatmul.mubr.msk.bf16.vlgmr.msra.gmra.mxu1 %vm484_vm2, %v3047_v21  ;;  %v3051_v21 = vsel %vm3042_vm8, %v3048_v4, %v3050_v29  ;;  %v18007_v32 = vld [vmem:[#allocation8_spill] sm:$0xff] }
 0x134   : > { %v11926_v19 = vpop.f32.mrf.mxu0  ;;  %12153 = vmatmul.mubr.msk.bf16.vlgmr.msra.gmra.mxu0 %vm484_vm2, %v3402_v6  ;;  %v14448_v49 = vadd.f32 %v1206_v57, %v903_v44  ;;  %v924_v61 = vadd.f32 %v11884_v1, %v14040_v16  ;;  %12193 = vmatpush3.bf16.msra.mxu1 %v3859_v46  ;;  %v3416_v6 = vrot.slane %v18002_v58, 4  ;;  %v18004_v16 = vshll.u32 %v14006_v50, 16 }
 0x135   : > { %12235 = vmatpush3.bf16.msra.mxu0 %v4297_v56  ;;  %12156 = vmatprep.mubr.msk.bf16.mxu0 %vm484_vm2, %v3406_v43  ;;  %v915_v10 = vpop.f32.mrf.mxu1  ;;  %v3419_v56 = vrot.slane %v18003_v35, 3  ;;  %v3053_v46 = vsel %vm3042_vm8, %v3050_v29, %v3052_v48  ;;  %v18009_v29 = vld [vmem:[#allocation5_spill] sm:$0xff] }
 0x136   : > { %v1219_v13 = vpop.f32.mrf.mxu0  ;;  %12879 = vmatprep.subr.msk.bf16.mxu0 %vm545_vm0, %v14425_v27  ;;  %12114 = vmatprep.mubr.msk.bf16.mxu1 %vm484_vm2, %v3049_v7  ;;  %v3420_v43 = vrot.slane %v18004_v16, 4  ;;  %v14464_v41 = vadd.f32 %v11926_v19, %v924_v61  ;;  %v916_v28 = vadd.f32 %v915_v10, %v18005_v0  ;;  %v3417_v19 = vor.u32 %v3416_v6, %v3415_v26 }
 0x137   : > { %12878 = vmatprep.subr.msk.bf16.mxu1 %vm545_vm0, %v14442_v12  ;;  %v11885_v22 = vpop.f32.mrf.mxu1  ;;  %v3054_v10 = vrot.slane %v13988_v63, 3  ;;  %v18010_v26 = vshrl.u32 %v18009_v29, 16 }
 0x138   : > { %v11927_v11 = vpop.f32.mrf.mxu0  ;;  %v14468_v23 = vadd.f32 %v1219_v13, %v916_v28  ;;  %v927_v20 = vadd.f32 %v11885_v22, %v18006_v52  ;;  %v3421_v7 = vor.u32 %v3420_v43, %v3419_v56  ;;  %v3418_v16 = vsel %vm3386_vm7, %v3413_v53, %v3417_v19  ;;  %v18012_v28 = vld [vmem:[#allocation10_spill] sm:$0xff] }
 0x139   : > { %v918_v33 = vpop.f32.mrf.mxu1  ;;  %v3423_v6 = vrot.slane %v18010_v26, 3  ;;  %v3056_v43 = vrot.slane %v14006_v50, 3  ;;  %v18013_v22 = vld [vmem:[#allocation6_spill] sm:$0xff]  ;;  %v3055_v50 = vsel %vm3042_vm8, %v3052_v48, %v3054_v10 }
 0x13a   : > { %v1222_v57 = vpop.f32.mrf.mxu0  ;;  %v14475_v44 = vadd.f32 %v11927_v11, %v927_v20  ;;  %v919_v1 = vadd.f32 %v918_v33, %v18007_v32  ;;  %v18011_v11 = vshll.u32 %v18009_v29, 16  ;;  %v3422_v63 = vsel %vm3386_vm7, %v3417_v19, %v3421_v7  ;;  %v18017_v26 = vld [vmem:[#allocation14_spill] sm:$0xff] }
 0x13b   : > { %v11888_v61 = vpop.f32.mrf.mxu1  ;;  %12115 = vmatmul.mubr.msk.bf16.gmra.mxu1 %vm484_vm2, %v3051_v21  ;;  %v18014_v52 = vshrl.u32 %v18013_v22, 16  ;;  %v18015_v21 = vshll.u32 %v18013_v22, 16 }
 0x13c   : > { %v11930_v40 = vpop.f32.mrf.mxu0  ;;  %12157 = vmatmul.mubr.msk.bf16.gmra.mxu0 %vm484_vm2, %v3410_v55  ;;  %v14480_v4 = vadd.f32 %v1222_v57, %v919_v1  ;;  %v18008_v55 = vld [vmem:[#allocation9_spill] sm:$0xff]  ;;  %12118 = vmatprep.mubr.msk.bf16.mxu1 %vm484_vm2, %v3053_v46  ;;  %v3424_v35 = vrot.slane %v18011_v11, 4 }
 0x13d   : > { %12160 = vmatprep.mubr.msk.bf16.mxu0 %vm484_vm2, %v3414_v3  ;;  %v940_v8 = vadd.f32 %v11888_v61, %v18008_v55  ;;  %v931_v56 = vpop.f32.mrf.mxu1  ;;  %v3427_v20 = vrot.slane %v18014_v52, 3  ;;  %v3428_v33 = vrot.slane %v18015_v21, 4  ;;  %v18016_v1 = vld [vmem:[#allocation13_spill] sm:$0xff]  ;;  %v3057_v55 = vsel %vm3042_vm8, %v3054_v10, %v3056_v43  ;;  %v18020_v52 = vld [vmem:[#allocation11_spill] sm:$0xff] }
 0x13e   : > { %v1235_v13 = vpop.f32.mrf.mxu0  ;;  %v932_v57 = vadd.f32 %v931_v56, %v18012_v28  ;;  %v18021_v21 = vshrl.u32 %v18020_v52, 16 }
 0x13f   : > { %v14491_v0 = vadd.f32 %v11930_v40, %v940_v8  ;;  %v11889_v46 = vpop.f32.mrf.mxu1  ;;  %v3425_v40 = vor.u32 %v3424_v35, %v3423_v6 }
 0x140   : > { %v11931_v58 = vpop.f32.mrf.mxu0  ;;  %v14498_v32 = vadd.f32 %v1235_v13, %v932_v57  ;;  %v943_v53 = vadd.f32 %v11889_v46, %v18016_v1  ;;  %v3429_v13 = vor.u32 %v3428_v33, %v3427_v20  ;;  %v3058_v57 = vrot.slane %v18009_v29, 3  ;;  %v18023_v1 = vld [vmem:[#allocation12_spill] sm:$0xff] }
 0x141   : > { %v934_v19 = vpop.f32.mrf.mxu1  ;;  %v3426_v10 = vsel %vm3386_vm7, %v3421_v7, %v3425_v40  ;;  %v3431_v20 = vrot.slane %v18021_v21, 3  ;;  %v18022_v33 = vshll.u32 %v18020_v52, 16  ;;  %v18024_v29 = vshrl.u32 %v18023_v1, 16 }
 0x142   : > { %v1238_v3 = vpop.f32.mrf.mxu0  ;;  %v14505_v8 = vadd.f32 %v11931_v58, %v943_v53  ;;  %v935_v11 = vadd.f32 %v934_v19, %v18017_v26  ;;  %v3060_v58 = vrot.slane %v18013_v22, 3  ;;  %v18025_v53 = vshll.u32 %v18023_v1, 16 }
 0x143   : > { %v11892_v28 = vpop.f32.mrf.mxu1  ;;  %12119 = vmatmul.mubr.msk.bf16.gmra.mxu1 %vm484_vm2, %v3055_v50  ;;  %v3432_v46 = vrot.slane %v18022_v33, 4  ;;  %v3430_v22 = vsel %vm3386_vm7, %v3425_v40, %v3429_v13  ;;  %v3059_v33 = vsel %vm3042_vm8, %v3056_v43, %v3058_v57  ;;  %v18031_v40 = vld [vmem:[#allocation20_spill] sm:$0xff] }
 0x144   : > { %v11934_v61 = vpop.f32.mrf.mxu0  ;;  %12161 = vmatmul.mubr.msk.bf16.gmra.mxu0 %vm484_vm2, %v3418_v16  ;;  %v14510_v48 = vadd.f32 %v1238_v3, %v935_v11  ;;  %v18019_v16 = vld [vmem:[#allocation15_spill] sm:$0xff]  ;;  %12122 = vmatprep.mubr.msk.bf16.mxu1 %vm484_vm2, %v3057_v55  ;;  %v3435_v3 = vrot.slane %v18024_v29, 3  ;;  %v3436_v50 = vrot.slane %v18025_v53, 4  ;;  %v18027_v55 = vld [vmem:[#allocation17_spill] sm:$0xff]  ;;  %v3061_v53 = vsel %vm3042_vm8, %v3058_v57, %v3060_v58  ;;  %v18034_v57 = vld [vmem:[#allocation16_spill] sm:$0xff] }
 0x145   : > { %12164 = vmatprep.mubr.msk.bf16.mxu0 %vm484_vm2, %v3422_v63  ;;  %v956_v6 = vadd.f32 %v11892_v28, %v18019_v16  ;;  %v947_v63 = vpop.f32.mrf.mxu1  ;;  %v18029_v16 = vld [vmem:[#allocation19_spill] sm:$0xff] }
 0x146   : > { %v1251_v56 = vpop.f32.mrf.mxu0  ;;  %18018 = vst [vmem:[#allocation4_spill] sm:$0xff] %v14510_v48  ;;  %v948_v26 = vadd.f32 %v947_v63, %v18027_v55 }
 0x147   : > { %v14524_v19 = vadd.f32 %v11934_v61, %v956_v6  ;;  %v11893_v11 = vpop.f32.mrf.mxu1  ;;  %v3433_v61 = vor.u32 %v3432_v46, %v3431_v20  ;;  %v3437_v6 = vor.u32 %v3436_v50, %v3435_v3  ;;  %v18035_v20 = vshrl.u32 %v18034_v57, 16 }
 0x148   : > { %v11935_v35 = vpop.f32.mrf.mxu0  ;;  %v14528_v28 = vadd.f32 %v1251_v56, %v948_v26  ;;  %v959_v21 = vadd.f32 %v11893_v11, %v18029_v16  ;;  %v3062_v11 = vrot.slane %v18020_v52, 3 }
 0x149   : > { %18026 = vst [vmem:[#allocation7_spill] sm:$0xff] %v14524_v19  ;;  %v950_v29 = vpop.f32.mrf.mxu1  ;;  %v3439_v46 = vrot.slane %v18035_v20, 3  ;;  %v3438_v52 = vsel %vm3386_vm7, %v3433_v61, %v3437_v6 }
 0x14a   : > { %v1254_v7 = vpop.f32.mrf.mxu0  ;;  %18028 = vst [vmem:[#allocation8_spill] sm:$0xff] %v14528_v28  ;;  %v14535_v63 = vadd.f32 %v11935_v35, %v959_v21  ;;  %v951_v55 = vadd.f32 %v950_v29, %v18031_v40  ;;  %v18036_v35 = vshll.u32 %v18034_v57, 16  ;;  %v3064_v21 = vrot.slane %v18023_v1, 3 }
 0x14b   : > { %v11896_v26 = vpop.f32.mrf.mxu1  ;;  %12123 = vmatmul.mubr.msk.bf16.gmra.mxu1 %vm484_vm2, %v3059_v33  ;;  %v18037_v33 = vld [vmem:[#allocation22_spill] sm:$0xff]  ;;  %v3063_v1 = vsel %vm3042_vm8, %v3060_v58, %v3062_v11 }
 0x14c   : > { %v11938_v48 = vpop.f32.mrf.mxu0  ;;  %12165 = vmatmul.mubr.msk.bf16.gmra.mxu0 %vm484_vm2, %v3426_v10  ;;  %18030 = vst [vmem:[#allocation9_spill] sm:$0xff] %v14535_v63  ;;  %v14540_v43 = vadd.f32 %v1254_v7, %v951_v55  ;;  %v18033_v10 = vld [vmem:[#allocation21_spill] sm:$0xff]  ;;  %12126 = vmatprep.mubr.msk.bf16.mxu1 %vm484_vm2, %v3061_v53  ;;  %v3440_v3 = vrot.slane %v18036_v35, 4  ;;  %v18038_v55 = vld [vmem:[#allocation18_spill] sm:$0xff]  ;;  %v18041_v63 = vld [vmem:[#allocation23_spill] sm:$0xff] }
 0x14d   : > { %12168 = vmatprep.mubr.msk.bf16.mxu0 %vm484_vm2, %v3430_v22  ;;  %v972_v16 = vadd.f32 %v11896_v26, %v18033_v10  ;;  %v963_v50 = vpop.f32.mrf.mxu1  ;;  %v3434_v22 = vsel %vm3386_vm7, %v3429_v13, %v3433_v61  ;;  %v18039_v53 = vshrl.u32 %v18038_v55, 16  ;;  %v18040_v10 = vshll.u32 %v18038_v55, 16 }
 0x14e   : > { %v1267_v56 = vpop.f32.mrf.mxu0  ;;  %18032 = vst [vmem:[#allocation5_spill] sm:$0xff] %v14540_v43  ;;  %v964_v29 = vadd.f32 %v963_v50, %v18037_v33  ;;  %v18042_v33 = vld [vmem:[#allocation24_spill] sm:$0xff] }
 0x14f   : > { %v14551_v7 = vadd.f32 %v11938_v48, %v972_v16  ;;  %v3443_v26 = vrot.slane %v18039_v53, 3  ;;  %v3444_v20 = vrot.slane %v18040_v10, 4  ;;  %v11897_v43 = vpop.f32.mrf.mxu1  ;;  %v3441_v48 = vor.u32 %v3440_v3, %v3439_v46 }
 0x150   : > { %v11939_v28 = vpop.f32.mrf.mxu0  ;;  %v14558_v35 = vadd.f32 %v1267_v56, %v964_v29  ;;  %v975_v13 = vadd.f32 %v11897_v43, %v18041_v63  ;;  %v3065_v16 = vsel %vm3042_vm8, %v3062_v11, %v3064_v21  ;;  %v3066_v63 = vrot.slane %v18034_v57, 3 }
 0x151   : > { %v966_v61 = vpop.f32.mrf.mxu1  ;;  %v3445_v56 = vor.u32 %v3444_v20, %v3443_v26  ;;  %v3068_v11 = vrot.slane %v18038_v55, 3  ;;  %v18045_v26 = vshll.u32 %v14197_v39, 16  ;;  %v18046_v57 = vshrl.u32 %v14199_v5, 16 }
 0x152   : > { %v1270_v40 = vpop.f32.mrf.mxu0  ;;  %v14565_v50 = vadd.f32 %v11939_v28, %v975_v13  ;;  %v967_v53 = vadd.f32 %v966_v61, %v18042_v33  ;;  %v3442_v28 = vsel %vm3386_vm7, %v3437_v6, %v3441_v48  ;;  %v18047_v13 = vshll.u32 %v14199_v5, 16  ;;  %v18049_v61 = vld [vmem:[#allocation25_spill] sm:$0xff]  ;;  %v14589_v33 = vld [vmem:[%s13240_s23 + $0x24] sm:$0xff]  }
 0x153   : > { %v11944_v29 = vpop.f32.mrf.mxu1  ;;  %12127 = vmatmul.mubr.msk.bf16.gmra.mxu1 %vm484_vm2, %v3063_v1  ;;  %v3448_v20 = vrot.slane %v18045_v26, 4  ;;  %v3446_v55 = vsel %vm3386_vm7, %v3441_v48, %v3445_v56  ;;  %18050 = vst [vmem:[#allocation13_spill] sm:$0xff] %v14589_v33 }
 0x154   : > { %v11986_v19 = vpop.f32.mrf.mxu0  ;;  %12169 = vmatmul.mubr.msk.bf16.gmra.mxu0 %vm484_vm2, %v3434_v22  ;;  %v14570_v58 = vadd.f32 %v1270_v40, %v967_v53  ;;  %v1680_v43 = vadd.f32 %v11944_v29, %v14240_v37  ;;  %12130 = vmatprep.mubr.msk.bf16.mxu1 %vm484_vm2, %v3065_v16  ;;  %v18044_v22 = vshrl.u32 %v14197_v39, 16  ;;  %v3451_v40 = vrot.slane %v18046_v57, 3 }
 0x155   : > { %12172 = vmatprep.mubr.msk.bf16.mxu0 %vm484_vm2, %v3438_v52  ;;  %v1519_v3 = vpop.f32.mrf.mxu1  ;;  %v3452_v37 = vrot.slane %v18047_v13, 4  ;;  %v3067_v57 = vsel %vm3042_vm8, %v3064_v21, %v3066_v63  ;;  %v3070_v21 = vrot.slane %v14197_v39, 3 }
 0x156   : > { %v1863_v10 = vpop.f32.mrf.mxu0  ;;  %18043 = vst [vmem:[#allocation10_spill] sm:$0xff] %v14570_v58  ;;  %v3447_v52 = vrot.slane %v18044_v22, 3  ;;  %v14584_v1 = vadd.f32 %v11986_v19, %v1680_v43  ;;  %v1678_v16 = vadd.f32 %v1519_v3, %v18049_v61  ;;  %v18051_v22 = vld [vmem:[#allocation26_spill] sm:$0xff]  ;;  %v3069_v19 = vsel %vm3042_vm8, %v3066_v63, %v3068_v11  ;;  %v18052_v61 = vld [vmem:[#allocation27_spill] sm:$0xff] }
 0x157   : > { %v11945_v53 = vpop.f32.mrf.mxu1  ;;  %v3453_v3 = vor.u32 %v3452_v37, %v3451_v40  ;;  %v18053_v63 = vshrl.u32 %v14223_v14, 16 }
 0x158   : > { %v11987_v46 = vpop.f32.mrf.mxu0  ;;  %18048 = vst [vmem:[#allocation6_spill] sm:$0xff] %v14584_v1  ;;  %v14591_v29 = vadd.f32 %v1863_v10, %v1678_v16  ;;  %v1681_v26 = vadd.f32 %v11945_v53, %v18051_v22  ;;  %v3449_v43 = vor.u32 %v3448_v20, %v3447_v52  ;;  %v17813_v16 = vshll.u32 %v14589_v33, 16 }
 0x159   : > { %v1522_v13 = vpop.f32.mrf.mxu1  ;;  %v17812_v53 = vshrl.u32 %v14589_v33, 16  ;;  %v18054_v52 = vshll.u32 %v14223_v14, 16 }
 0x15a   : > { %v1866_v6 = vpop.f32.mrf.mxu0  ;;  %v14598_v48 = vadd.f32 %v11987_v46, %v1681_v26  ;;  %v1679_v1 = vadd.f32 %v1522_v13, %v18052_v61  ;;  %v5500_v26 = vrot.slane %v17813_v16, 2  ;;  %v3072_v13 = vrot.slane %v14199_v5, 3 }
 0x15b   : > { %v11948_v22 = vpop.f32.mrf.mxu1  ;;  %12131 = vmatmul.mubr.msk.bf16.gmra.mxu1 %vm484_vm2, %v3067_v57  ;;  %v3456_v20 = vrot.slane %v18054_v52, 4  ;;  %v3450_v57 = vsel %vm3386_vm7, %v3445_v56, %v3449_v43  ;;  %v18055_v61 = vshrl.u32 %v14244_v30, 16  ;;  %v3454_v52 = vsel %vm3386_vm7, %v3449_v43, %v3453_v3 }
 0x15c   : > { %v11990_v58 = vpop.f32.mrf.mxu0  ;;  %12173 = vmatmul.mubr.msk.bf16.gmra.mxu0 %vm484_vm2, %v3442_v28  ;;  %v3455_v28 = vrot.slane %v18053_v63, 3  ;;  %v14609_v46 = vadd.f32 %v1866_v6, %v1679_v1  ;;  %v1684_v40 = vadd.f32 %v11948_v22, %v14281_v17  ;;  %12134 = vmatprep.mubr.msk.bf16.mxu1 %vm484_vm2, %v3069_v19  ;;  %v18056_v6 = vshll.u32 %v14244_v30, 16 }
 0x15d   : > { %12176 = vmatprep.mubr.msk.bf16.mxu0 %vm484_vm2, %v3446_v55  ;;  %v5499_v55 = vrot.slane %v17812_v53, 1  ;;  %v1535_v39 = vpop.f32.mrf.mxu1  ;;  %v3459_v1 = vrot.slane %v18055_v61, 3  ;;  %v3071_v61 = vsel %vm3042_vm8, %v3068_v11, %v3070_v21  ;;  %v3074_v11 = vrot.slane %v14223_v14, 3 }
 0x15e   : > { %v1879_v10 = vpop.f32.mrf.mxu0  ;;  %v3460_v17 = vrot.slane %v18056_v6, 4  ;;  %v14623_v22 = vadd.f32 %v11990_v58, %v1684_v40  ;;  %v1682_v19 = vadd.f32 %v1535_v39, %v14289_v45  ;;  %v3457_v58 = vor.u32 %v3456_v20, %v3455_v28  ;;  %v14640_v6 = vld [vmem:[%s13240_s23 + $0xa8] sm:$0xf] }
 0x15f   : > { %v14627_v53 = vor.u32 %v5500_v26, %v5499_v55  ;;  %v11949_v16 = vpop.f32.mrf.mxu1  ;;  %v3073_v45 = vsel %vm3042_vm8, %v3070_v21, %v3072_v13  ;;  %v18058_v55 = vld [vmem:[#allocation29_spill] sm:$0xff] }
 0x160   : > { %v11991_v37 = vpop.f32.mrf.mxu0  ;;  %v14629_v56 = vadd.f32 %v1879_v10, %v1682_v19  ;;  %v1685_v5 = vadd.f32 %v11949_v16, %v14299_v59  ;;  %v3461_v43 = vor.u32 %v3460_v17, %v3459_v1  ;;  %v3458_v20 = vsel %vm3386_vm7, %v3453_v3, %v3457_v58 }
 0x161   : > { %18057 = vst [vmem:[#allocation14_spill] sm:$0xff] %v14627_v53  ;;  %v1538_v40 = vpop.f32.mrf.mxu1  ;;  %v18059_v17 = vshrl.u32 %v14274_v36, 16  ;;  %v18061_v3 = vshrl.u32 %v14279_v25, 16 }
 0x162   : > { %v1882_v63 = vpop.f32.mrf.mxu0  ;;  %v14636_v39 = vadd.f32 %v11991_v37, %v1685_v5  ;;  %v1683_v26 = vadd.f32 %v1538_v40, %v18058_v55  ;;  %v3076_v37 = vrot.slane %v14244_v30, 3  ;;  %v3462_v1 = vsel %vm3386_vm7, %v3457_v58, %v3461_v43 }
 0x163   : > { %v11952_v59 = vpop.f32.mrf.mxu1  ;;  %12135 = vmatmul.mubr.msk.bf16.gmra.mxu1 %vm484_vm2, %v3071_v61  ;;  %v3463_v19 = vrot.slane %v18059_v17, 3  ;;  %v3467_v30 = vrot.slane %v18061_v3, 3  ;;  %v18062_v40 = vshll.u32 %v14279_v25, 16  ;;  %v3075_v17 = vsel %vm3042_vm8, %v3072_v13, %v3074_v11 }
 0x164   : > { %v11994_v33 = vpop.f32.mrf.mxu0  ;;  %12177 = vmatmul.mubr.msk.bf16.gmra.mxu0 %vm484_vm2, %v3450_v57  ;;  %v14644_v16 = vadd.f32 %v1882_v63, %v1683_v26  ;;  %v1688_v28 = vadd.f32 %v11952_v59, %v14325_v2  ;;  %12138 = vmatprep.mubr.msk.bf16.mxu1 %vm484_vm2, %v3073_v45  ;;  %v10777_v63 = vcombine.low %v14640_v6, %v14640_v6 }
 0x165   : > { %12180 = vmatprep.mubr.msk.bf16.mxu0 %vm484_vm2, %v3454_v52  ;;  %v1551_v57 = vpop.f32.mrf.mxu1  ;;  %v18060_v52 = vshll.u32 %v14274_v36, 16  ;;  %v3468_v58 = vrot.slane %v18062_v40, 4  ;;  %v18063_v40 = vld [vmem:[#allocation30_spill] sm:$0xff] }
 0x166   : > { %v1895_v10 = vpop.f32.mrf.mxu0  ;;  %v14657_v2 = vadd.f32 %v11994_v33, %v1688_v28  ;;  %v1686_v5 = vadd.f32 %v1551_v57, %v14331_v9  ;;  %v3077_v9 = vsel %vm3042_vm8, %v3074_v11, %v3076_v37  ;;  %v3472_v57 = vshrl.u32 %v10777_v63, 16 }
 0x167   : > { %v3464_v14 = vrot.slane %v18060_v52, 4  ;;  %v11953_v45 = vpop.f32.mrf.mxu1  ;;  %v3475_v52 = vshll.u32 %v10777_v63, 16  ;;  %v3469_v53 = vor.u32 %v3468_v58, %v3467_v30  ;;  %v3078_v11 = vrot.slane %v14274_v36, 3 }
 0x168   : > { %v11995_v21 = vpop.f32.mrf.mxu0  ;;  %v14664_v55 = vadd.f32 %v1895_v10, %v1686_v5  ;;  %v1689_v26 = vadd.f32 %v11953_v45, %v14340_v38 }
 0x169   : > { %v1554_v33 = vpop.f32.mrf.mxu1  ;;  %v3465_v28 = vor.u32 %v3464_v14, %v3463_v19  ;;  %v3080_v19 = vrot.slane %v14279_v25, 3  ;;  %v3474_v14 = vrot.slane %v3472_v57, 3  ;;  %v3477_v63 = vrot.slane %v3475_v52, 4 }
 0x16a   : > { %v1898_v61 = vpop.f32.mrf.mxu0  ;;  %v14671_v3 = vadd.f32 %v11995_v21, %v1689_v26  ;;  %v1687_v10 = vadd.f32 %v1554_v33, %v18063_v40 }
 0x16b   : > { %v11956_v38 = vpop.f32.mrf.mxu1  ;;  %12139 = vmatmul.mubr.msk.bf16.gmra.mxu1 %vm484_vm2, %v3075_v17  ;;  %v3466_v21 = vsel %vm3386_vm7, %v3461_v43, %v3465_v28  ;;  %v3470_v26 = vsel %vm3386_vm7, %v3465_v28, %v3469_v53  ;;  %v3081_v43 = vsel %vm3042_vm8, %v3078_v11, %v3080_v19 }
 0x16c   : > { %v11998_v59 = vpop.f32.mrf.mxu0  ;;  %12181 = vmatmul.mubr.msk.bf16.gmra.mxu0 %vm484_vm2, %v3458_v20  ;;  %v14675_v13 = vadd.f32 %v1898_v61, %v1687_v10  ;;  %v1692_v20 = vadd.f32 %v11956_v38, %v14352_v47  ;;  %12142 = vmatprep.mubr.msk.bf16.mxu1 %vm484_vm2, %v3077_v9  ;;  %v3079_v9 = vsel %vm3042_vm8, %v3076_v37, %v3078_v11  ;;  %v18064_v10 = vld [vmem:[#allocation28_spill] sm:$0xff] }
 0x16d   : > { %12184 = vmatprep.mubr.msk.bf16.mxu0 %vm484_vm2, %v3462_v1  ;;  %v1567_v1 = vpop.f32.mrf.mxu1 }
 0x16e   : > { %v1911_v5 = vpop.f32.mrf.mxu0  ;;  %v14682_v30 = vadd.f32 %v11998_v59, %v1692_v20  ;;  %v1690_v58 = vadd.f32 %v1567_v1, %v14360_v54  ;;  %v3478_v54 = vor.u32 %v3477_v63, %v3474_v14 }
 0x16f   : > { %v11957_v47 = vpop.f32.mrf.mxu1 }
 0x170   : > { %v11999_v45 = vpop.f32.mrf.mxu0  ;;  %v14686_v17 = vadd.f32 %v1911_v5, %v1690_v58  ;;  %v1693_v33 = vadd.f32 %v11957_v47, %v14367_v34  ;;  %v3082_v5 = vrot.slane %v18064_v10, 3  ;;  %v3479_v20 = vsel %vm3386_vm7, %v3469_v53, %v3478_v54  ;;  %v13109_v53 = vld [vmem:[%s13240_s23 + $0x10] sm:$0xf] }
 0x171   : > { %v1570_v25 = vpop.f32.mrf.mxu1 }
 0x172   : > { %v1914_v61 = vpop.f32.mrf.mxu0  ;;  %v14693_v59 = vadd.f32 %v11999_v45, %v1693_v33  ;;  %v1691_v28 = vadd.f32 %v1570_v25, %v14372_v24  ;;  %v12952_v45 = vld [vmem:[%s13240_s23 + $0x14] sm:$0xff]   ;;  %v3083_v58 = vsel %vm3042_vm8, %v3080_v19, %v3082_v5 }
 0x173   : > { %v11960_v52 = vpop.f32.mrf.mxu1  ;;  %12143 = vmatmul.mubr.msk.bf16.gmra.mxu1 %vm484_vm2, %v3079_v9 }
 0x174   : > { %v12002_v36 = vpop.f32.mrf.mxu0  ;;  %12185 = vmatmul.mubr.msk.bf16.gmra.mxu0 %vm484_vm2, %v3466_v21  ;;  %v14697_v34 = vadd.f32 %v1914_v61, %v1691_v28  ;;  %v1696_v37 = vadd.f32 %v11960_v52, %v14386_v62  ;;  %12146 = vmatprep.mubr.msk.bf16.mxu1 %vm484_vm2, %v3081_v43  ;;  %v13108_v61 = vld [vmem:[%s13240_s23 + $0xc] sm:$0xf]  ;;  %v12953_v43 = vld [vmem:[%s13240_s23 + $0x1c] sm:$0xff]   ;;  %v12955_v28 = vld [vmem:[%s13240_s23 + $0x24] sm:$0xff]  }
 0x175   : > { %12188 = vmatprep.mubr.msk.bf16.mxu0 %vm484_vm2, %v3470_v26  ;;  %v1583_v38 = vpop.f32.mrf.mxu1  ;;  %v10799_v26 = vcombine.low %v13108_v61, %v13109_v53 }
 0x176   : > { %v1927_v57 = vpop.f32.mrf.mxu0  ;;  %v14704_v24 = vadd.f32 %v12002_v36, %v1696_v37  ;;  %v1694_v11 = vadd.f32 %v1583_v38, %v14390_v42  ;;  %v5246_v37 = vsel %vm545_vm0, %v14425_v27, 0  ;;  %v4903_v27 = vsel %vm545_vm0, %v14442_v12, 0  ;;  %v18065_v12 = vld [vmem:[#allocation2_spill] sm:$0xff] }
 0x177   : > { %v11961_v21 = vpop.f32.mrf.mxu1 }
 0x178   : > { %v12003_v40 = vpop.f32.mrf.mxu0  ;;  %v14707_v14 = vadd.f32 %v1927_v57, %v1694_v11  ;;  %v1697_v62 = vadd.f32 %v11961_v21, %v14397_v51 }
 0x179   : > { %v1586_v47 = vpop.f32.mrf.mxu1 }
 0x17a   : > { %v1930_v1 = vpop.f32.mrf.mxu0  ;;  %v14715_v42 = vadd.f32 %v12003_v40, %v1697_v62  ;;  %v1695_v33 = vadd.f32 %v1586_v47, %v14402_v60  ;;  %v14750_v62 = vld [vmem:[%s17751_s1 + $0x34] sm:$0xf]  ;;  %v12957_v47 = vld [vmem:[%s13240_s23 + $0x2c] sm:$0xff]  }
 0x17b   : > { %v11964_v9 = vpop.f32.mrf.mxu1  ;;  %12147 = vmatmul.mubr.msk.bf16.gmra.mxu1 %vm484_vm2, %v3083_v58  ;;  %v18066_v58 = vld [vmem:[#allocation3_spill] sm:$0xff] }
 0x17c   : > { %v12006_v63 = vpop.f32.mrf.mxu0  ;;  %12189 = vmatmul.mubr.msk.bf16.gmra.mxu0 %vm484_vm2, %v3479_v20  ;;  %v14719_v51 = vadd.f32 %v1930_v1, %v1695_v33  ;;  %v1700_v19 = vadd.f32 %v11964_v9, %v14415_v15  ;;  %12194 = vmatprep.mubr.msk.bf16.mxu1 %vm484_vm2, %v10799_v26  ;;  %v14733_v15 = vld [vmem:[%s17751_s1 + $0x38] sm:$0xf]  ;;  %v13110_v20 = vld [vmem:[%s13240_s23 + $0x1c] sm:$0xf]  ;;  %v18067_v61 = vcombine.low %v18065_v12, %v18066_v58  ;;  %v12963_v12 = vld [vmem:[%s13240_s23 + $0x44] sm:$0xff]  }
 0x17d   : > { %12236 = vmatprep.mubr.msk.bf16.mxu0 %vm484_vm2, %v12952_v45  ;;  %v1599_v54 = vpop.f32.mrf.mxu1  ;;  %v13111_v45 = vld [vmem:[%s13240_s23 + $0x20] sm:$0xf] }
 0x17e   : > { %v1943_v36 = vpop.f32.mrf.mxu0  ;;  %v14725_v57 = vadd.f32 %v12006_v63, %v1700_v19  ;;  %v1698_v60 = vadd.f32 %v1599_v54, %v14427_v18  ;;  %v10801_v18 = vcombine.low %v13110_v20, %v13111_v45  ;;  %v13112_v54 = vld [vmem:[%s13240_s23 + $0x24] sm:$0xf] }
 0x17f   : > { %v11965_v40 = vpop.f32.mrf.mxu1 }
 0x180   : > { %v12007_v25 = vpop.f32.mrf.mxu0  ;;  %v14735_v10 = vadd.f32 %v1943_v36, %v1698_v60  ;;  %v1701_v5 = vadd.f32 %v11965_v40, %v14436_v31  ;;  %v12959_v36 = vld [vmem:[%s13240_s23 + $0x34] sm:$0xff]   ;;  %v13114_v40 = vld [vmem:[%s13240_s23 + $0x2c] sm:$0xf] }
 0x181   : > { %v1602_v11 = vpop.f32.mrf.mxu1 }
 0x182   : > { %v1946_v52 = vpop.f32.mrf.mxu0  ;;  %v14744_v1 = vadd.f32 %v12007_v25, %v1701_v5  ;;  %v1699_v21 = vadd.f32 %v1602_v11, %v14448_v49  ;;  %v13115_v5 = vld [vmem:[%s13240_s23 + $0x30] sm:$0xf] }
 0x183   : > { %v11968_v63 = vpop.f32.mrf.mxu1  ;;  %12195 = vmatmul.mubr.msk.bf16.vlgmr.msra.gmra.mxu1 %vm484_vm2, %v18067_v61 }
 0x184   : > { %v12010_v38 = vpop.f32.mrf.mxu0  ;;  %12237 = vmatmul.mubr.msk.bf16.vlgmr.msra.gmra.mxu0 %vm484_vm2, %v12953_v43  ;;  %v14758_v53 = vadd.f32 %v1946_v52, %v1699_v21  ;;  %v1704_v49 = vadd.f32 %v11968_v63, %v14464_v41  ;;  %12277 = vmatpush3.bf16.msra.mxu1 %v4903_v27  ;;  %v13113_v41 = vld [vmem:[%s13240_s23 + $0x28] sm:$0xf] }
 0x185   : > { %12319 = vmatpush3.bf16.msra.mxu0 %v5246_v37  ;;  %12240 = vmatprep.mubr.msk.bf16.mxu0 %vm484_vm2, %v12955_v28  ;;  %v1615_v33 = vpop.f32.mrf.mxu1  ;;  %v10802_v28 = vcombine.low %v13112_v54, %v13113_v41 }
 0x186   : > { %v1959_v31 = vpop.f32.mrf.mxu0  ;;  %12881 = vmatprep.subr.msk.bf16.mxu0 %vm545_vm0, %v14733_v15  ;;  %12198 = vmatprep.mubr.msk.bf16.mxu1 %vm484_vm2, %v10801_v18  ;;  %v14766_v9 = vadd.f32 %v12010_v38, %v1704_v49  ;;  %v1702_v19 = vadd.f32 %v1615_v33, %v14468_v23  ;;  %v10803_v38 = vcombine.low %v13114_v40, %v13115_v5  ;;  %v18069_v5 = vld [vmem:[#allocation7_spill] sm:$0xff] }
 0x187   : > { %12880 = vmatprep.subr.msk.bf16.mxu1 %vm545_vm0, %v14750_v62  ;;  %v11969_v43 = vpop.f32.mrf.mxu1 }
 0x188   : > { %v12011_v26 = vpop.f32.mrf.mxu0  ;;  %v14771_v60 = vadd.f32 %v1959_v31, %v1702_v19  ;;  %v1705_v52 = vadd.f32 %v11969_v43, %v14475_v44  ;;  %v12961_v31 = vld [vmem:[%s13240_s23 + $0x3c] sm:$0xff]  }
 0x189   : > { %v1618_v20 = vpop.f32.mrf.mxu1  ;;  %v13119_v43 = vld [vmem:[%s13240_s23 + $0x40] sm:$0xf] }
 0x18a   : > { %v1962_v25 = vpop.f32.mrf.mxu0  ;;  %v14778_v23 = vadd.f32 %v12011_v26, %v1705_v52  ;;  %v1703_v45 = vadd.f32 %v1618_v20, %v14480_v4  ;;  %v13116_v26 = vld [vmem:[%s13240_s23 + $0x34] sm:$0xf] }
 0x18b   : > { %v11972_v11 = vpop.f32.mrf.mxu1  ;;  %12199 = vmatmul.mubr.msk.bf16.gmra.mxu1 %vm484_vm2, %v10802_v28  ;;  %v18068_v28 = vld [vmem:[#allocation4_spill] sm:$0xff] }
 0x18c   : > { %v12014_v37 = vpop.f32.mrf.mxu0  ;;  %12241 = vmatmul.mubr.msk.bf16.gmra.mxu0 %vm484_vm2, %v12957_v47  ;;  %v14782_v44 = vadd.f32 %v1962_v25, %v1703_v45  ;;  %v1708_v27 = vadd.f32 %v11972_v11, %v14491_v0  ;;  %12202 = vmatprep.mubr.msk.bf16.mxu1 %vm484_vm2, %v10803_v38  ;;  %v13117_v47 = vld [vmem:[%s13240_s23 + $0x38] sm:$0xf]  ;;  %v13118_v25 = vld [vmem:[%s13240_s23 + $0x3c] sm:$0xf]  ;;  %v12965_v45 = vld [vmem:[%s13240_s23 + $0x4c] sm:$0xff]  }
 0x18d   : > { %12244 = vmatprep.mubr.msk.bf16.mxu0 %vm484_vm2, %v12959_v36  ;;  %v1631_v63 = vpop.f32.mrf.mxu1  ;;  %v10804_v33 = vcombine.low %v13116_v26, %v13117_v47  ;;  %v10805_v54 = vcombine.low %v13118_v25, %v13119_v43  ;;  %v12967_v11 = vld [vmem:[%s13240_s23 + $0x54] sm:$0xff]   ;;  %v13122_v25 = vld [vmem:[%s13240_s23 + $0x4c] sm:$0xf]  ;;  %v13123_v43 = vld [vmem:[%s13240_s23 + $0x50] sm:$0xf] }
 0x18e   : > { %v1975_v18 = vpop.f32.mrf.mxu0  ;;  %v14788_v58 = vadd.f32 %v12014_v37, %v1708_v27  ;;  %v1706_v4 = vadd.f32 %v1631_v63, %v14498_v32  ;;  %v18071_v47 = vld [vmem:[#allocation9_spill] sm:$0xff] }
 0x18f   : > { %v11973_v49 = vpop.f32.mrf.mxu1 }
 0x190   : > { %v12015_v21 = vpop.f32.mrf.mxu0  ;;  %v14793_v36 = vadd.f32 %v1975_v18, %v1706_v4  ;;  %v1709_v0 = vadd.f32 %v11973_v49, %v14505_v8  ;;  %v13120_v4 = vld [vmem:[%s13240_s23 + $0x44] sm:$0xf]  ;;  %v13121_v49 = vld [vmem:[%s13240_s23 + $0x48] sm:$0xf] }
 0x191   : > { %v1634_v41 = vpop.f32.mrf.mxu1 }
 0x192   : > { %v1978_v61 = vpop.f32.mrf.mxu0  ;;  %v14800_v32 = vadd.f32 %v12015_v21, %v1709_v0  ;;  %v1707_v52 = vadd.f32 %v1634_v41, %v18068_v28  ;;  %v18070_v21 = vld [vmem:[#allocation8_spill] sm:$0xff]  ;;  %v18072_v28 = vld [vmem:[#allocation5_spill] sm:$0xff] }
 0x193   : > { %v11976_v40 = vpop.f32.mrf.mxu1  ;;  %12203 = vmatmul.mubr.msk.bf16.gmra.mxu1 %vm484_vm2, %v10804_v33 }
 0x194   : > { %v12018_v19 = vpop.f32.mrf.mxu0  ;;  %12245 = vmatmul.mubr.msk.bf16.gmra.mxu0 %vm484_vm2, %v12961_v31  ;;  %v14804_v8 = vadd.f32 %v1978_v61, %v1707_v52  ;;  %v1712_v38 = vadd.f32 %v11976_v40, %v18069_v5  ;;  %12206 = vmatprep.mubr.msk.bf16.mxu1 %vm484_vm2, %v10805_v54  ;;  %v10806_v61 = vcombine.low %v13120_v4, %v13121_v49  ;;  %v13124_v49 = vld [vmem:[%s13240_s23 + $0x54] sm:$0xf] }
 0x195   : > { %12248 = vmatprep.mubr.msk.bf16.mxu0 %vm484_vm2, %v12963_v12  ;;  %v1647_v18 = vpop.f32.mrf.mxu1 }
 0x196   : > { %v1991_v37 = vpop.f32.mrf.mxu0  ;;  %v14810_v27 = vadd.f32 %v12018_v19, %v1712_v38  ;;  %v1710_v31 = vadd.f32 %v1647_v18, %v18070_v21  ;;  %v10807_v19 = vcombine.low %v13122_v25, %v13123_v43  ;;  %v12969_v18 = vld [vmem:[%s13240_s23 + $0x5c] sm:$0xff]  }
 0x197   : > { %v11977_v12 = vpop.f32.mrf.mxu1  ;;  %v13126_v25 = vld [vmem:[%s13240_s23 + $0x5c] sm:$0xf]  ;;  %v13127_v43 = vld [vmem:[%s13240_s23 + $0x60] sm:$0xf] }
 0x198   : > { %v12019_v20 = vpop.f32.mrf.mxu0  ;;  %v14815_v26 = vadd.f32 %v1991_v37, %v1710_v31  ;;  %v1713_v33 = vadd.f32 %v11977_v12, %v18071_v47 }
 0x199   : > { %v1650_v54 = vpop.f32.mrf.mxu1 }
 0x19a   : > { %v1994_v63 = vpop.f32.mrf.mxu0  ;;  %v14822_v41 = vadd.f32 %v12019_v20, %v1713_v33  ;;  %v1711_v52 = vadd.f32 %v1650_v54, %v18072_v28  ;;  %v18073_v54 = vld [vmem:[#allocation10_spill] sm:$0xff] }
 0x19b   : > { %v11980_v40 = vpop.f32.mrf.mxu1  ;;  %12207 = vmatmul.mubr.msk.bf16.gmra.mxu1 %vm484_vm2, %v10806_v61  ;;  %v13125_v61 = vld [vmem:[%s13240_s23 + $0x58] sm:$0xf] }
 0x19c   : > { %v12022_v0 = vpop.f32.mrf.mxu0  ;;  %12249 = vmatmul.mubr.msk.bf16.gmra.mxu0 %vm484_vm2, %v12965_v45  ;;  %v14826_v5 = vadd.f32 %v1994_v63, %v1711_v52  ;;  %v1716_v38 = vadd.f32 %v11980_v40, %v14551_v7  ;;  %12210 = vmatprep.mubr.msk.bf16.mxu1 %vm484_vm2, %v10807_v19  ;;  %v10808_v63 = vcombine.low %v13124_v49, %v13125_v61  ;;  %v18074_v40 = vld [vmem:[#allocation6_spill] sm:$0xff] }
 0x19d   : > { %12252 = vmatprep.mubr.msk.bf16.mxu0 %vm484_vm2, %v12967_v11  ;;  %v1663_v20 = vpop.f32.mrf.mxu1  ;;  %v12971_v11 = vld [vmem:[%s13240_s23 + $0x64] sm:$0xff]  }
 0x19e   : > { %v2007_v37 = vpop.f32.mrf.mxu0  ;;  %v14832_v21 = vadd.f32 %v12022_v0, %v1716_v38  ;;  %v1714_v31 = vadd.f32 %v1663_v20, %v14558_v35  ;;  %v10809_v0 = vcombine.low %v13126_v25, %v13127_v43  ;;  %v12973_v20 = vld [vmem:[%s13240_s23 + $0x6c] sm:$0xff]  }
 0x19f   : > { %v11981_v4 = vpop.f32.mrf.mxu1 }
 0x1a0   : > { %v12023_v45 = vpop.f32.mrf.mxu0  ;;  %v14837_v47 = vadd.f32 %v2007_v37, %v1714_v31  ;;  %v1717_v7 = vadd.f32 %v11981_v4, %v14565_v50 }
 0x1a1   : > { %v1666_v19 = vpop.f32.mrf.mxu1 }
 0x1a2   : > { %v2010_v12 = vpop.f32.mrf.mxu0  ;;  %v14844_v35 = vadd.f32 %v12023_v45, %v1717_v7  ;;  %v1715_v28 = vadd.f32 %v1666_v19, %v18073_v54  ;;  %v13128_v7 = vld [vmem:[%s13240_s23 + $0x64] sm:$0xf]  ;;  %v13131_v54 = vld [vmem:[%s13240_s23 + $0x70] sm:$0xf] }
 0x1a3   : > { %v12028_v37 = vpop.f32.mrf.mxu1  ;;  %12211 = vmatmul.mubr.msk.bf16.gmra.mxu1 %vm484_vm2, %v10808_v63  ;;  %v13129_v63 = vld [vmem:[%s13240_s23 + $0x68] sm:$0xf] }
 0x1a4   : > { %v12070_v33 = vpop.f32.mrf.mxu0  ;;  %12253 = vmatmul.mubr.msk.bf16.gmra.mxu0 %vm484_vm2, %v12969_v18  ;;  %v14848_v50 = vadd.f32 %v2010_v12, %v1715_v28  ;;  %v2507_v38 = vadd.f32 %v12028_v37, %v18074_v40  ;;  %12214 = vmatprep.mubr.msk.bf16.mxu1 %vm484_vm2, %v10809_v0  ;;  %v10810_v12 = vcombine.low %v13128_v7, %v13129_v63  ;;  %v13130_v0 = vld [vmem:[%s13240_s23 + $0x6c] sm:$0xf]  ;;  %v13132_v63 = vld [vmem:[%s13240_s23 + $0x74] sm:$0xf] }
 0x1a5   : > { %12256 = vmatprep.mubr.msk.bf16.mxu0 %vm484_vm2, %v12971_v11  ;;  %v2346_v45 = vpop.f32.mrf.mxu1  ;;  %v12975_v11 = vld [vmem:[%s13240_s23 + $0x74] sm:$0xff]  }
 0x1a6   : > { %v2837_v52 = vpop.f32.mrf.mxu0  ;;  %v14854_v31 = vadd.f32 %v12070_v33, %v2507_v38  ;;  %v2505_v4 = vadd.f32 %v2346_v45, %v14591_v29  ;;  %v10811_v33 = vcombine.low %v13130_v0, %v13131_v54  ;;  %v12977_v45 = vld [vmem:[%s13240_s23 + $0x7c] sm:$0xff]  }
 0x1a7   : > { %v12029_v61 = vpop.f32.mrf.mxu1  ;;  %v13134_v54 = vld [vmem:[%s13240_s23 + $0x7c] sm:$0xf] }
 0x1a8   : > { %v12071_v18 = vpop.f32.mrf.mxu0  ;;  %v14859_v25 = vadd.f32 %v2837_v52, %v2505_v4  ;;  %v2508_v43 = vadd.f32 %v12029_v61, %v14598_v48 }
 0x1a9   : > { %v2349_v28 = vpop.f32.mrf.mxu1 }
 0x1aa   : > { %v2840_v49 = vpop.f32.mrf.mxu0  ;;  %v14866_v29 = vadd.f32 %v12071_v18, %v2508_v43  ;;  %v2506_v37 = vadd.f32 %v2349_v28, %v14609_v46 }
 0x1ab   : > { %v12032_v40 = vpop.f32.mrf.mxu1  ;;  %12215 = vmatmul.mubr.msk.bf16.gmra.mxu1 %vm484_vm2, %v10810_v12  ;;  %v13133_v12 = vld [vmem:[%s13240_s23 + $0x78] sm:$0xf] }
 0x1ac   : > { %v12074_v19 = vpop.f32.mrf.mxu0  ;;  %12257 = vmatmul.mubr.msk.bf16.gmra.mxu0 %vm484_vm2, %v12973_v20  ;;  %v14870_v48 = vadd.f32 %v2840_v49, %v2506_v37  ;;  %v2511_v38 = vadd.f32 %v12032_v40, %v14623_v22  ;;  %12218 = vmatprep.mubr.msk.bf16.mxu1 %vm484_vm2, %v10811_v33  ;;  %v10812_v49 = vcombine.low %v13132_v63, %v13133_v12  ;;  %v13135_v33 = vld [vmem:[%s13240_s23 + $0x80] sm:$0xf]  ;;  %v4532_v63 = vld [vmem:[%s13240_s23 + $0x14] sm:$0xf]  ;;  %v14903_v12 = vld [vmem:[%s13240_s23 + $0x18] sm:$0xf] }
 0x1ad   : > { %12260 = vmatprep.mubr.msk.bf16.mxu0 %vm484_vm2, %v12975_v11  ;;  %v2362_v18 = vpop.f32.mrf.mxu1  ;;  %v12979_v11 = vld [vmem:[%s13240_s23 + $0x84] sm:$0xff]  }
 0x1ae   : > { %v2853_v52 = vpop.f32.mrf.mxu0  ;;  %v14876_v4 = vadd.f32 %v12074_v19, %v2511_v38  ;;  %v2509_v46 = vadd.f32 %v2362_v18, %v14629_v56  ;;  %v10813_v19 = vcombine.low %v13134_v54, %v13135_v33  ;;  %v12981_v18 = vld [vmem:[%s13240_s23 + $0x8c] sm:$0xff]  }
 0x1af   : > { %v12033_v7 = vpop.f32.mrf.mxu1 }
 0x1b0   : > { %v12075_v20 = vpop.f32.mrf.mxu0  ;;  %v14881_v43 = vadd.f32 %v2853_v52, %v2509_v46  ;;  %v2512_v22 = vadd.f32 %v12033_v7, %v14636_v39 }
 0x1b1   : > { %v2365_v28 = vpop.f32.mrf.mxu1 }
 0x1b2   : > { %v2856_v61 = vpop.f32.mrf.mxu0  ;;  %v14888_v56 = vadd.f32 %v12075_v20, %v2512_v22  ;;  %v2510_v37 = vadd.f32 %v2365_v28, %v14644_v16  ;;  %v13137_v22 = vld [vmem:[%s13240_s23 + $0x88] sm:$0xf]  ;;  %v13139_v28 = vld [vmem:[%s13240_s23 + $0x90] sm:$0xf] }
 0x1b3   : > { %v12036_v39 = vpop.f32.mrf.mxu1  ;;  %12219 = vmatmul.mubr.msk.bf16.gmra.mxu1 %vm484_vm2, %v10812_v49  ;;  %v13136_v49 = vld [vmem:[%s13240_s23 + $0x84] sm:$0xf] }
 0x1b4   : > { %v12078_v0 = vpop.f32.mrf.mxu0  ;;  %12261 = vmatmul.mubr.msk.bf16.gmra.mxu0 %vm484_vm2, %v12977_v45  ;;  %v14892_v40 = vadd.f32 %v2856_v61, %v2510_v37  ;;  %v2515_v38 = vadd.f32 %v12036_v39, %v14657_v2  ;;  %12222 = vmatprep.mubr.msk.bf16.mxu1 %vm484_vm2, %v10813_v19  ;;  %v10814_v2 = vcombine.low %v13136_v49, %v13137_v22 }
 0x1b5   : > { %12264 = vmatprep.mubr.msk.bf16.mxu0 %vm484_vm2, %v12979_v11  ;;  %v2378_v20 = vpop.f32.mrf.mxu1  ;;  %v12983_v11 = vld [vmem:[%s13240_s23 + $0x94] sm:$0xff]   ;;  %v10881_v39 = vcombine.low %v4532_v63, %v14903_v12 }
 0x1b6   : > { %v2869_v52 = vpop.f32.mrf.mxu0  ;;  %v14898_v46 = vadd.f32 %v12078_v0, %v2515_v38  ;;  %v2513_v16 = vadd.f32 %v2378_v20, %v14664_v55  ;;  %v13138_v0 = vld [vmem:[%s13240_s23 + $0x8c] sm:$0xf] }
 0x1b7   : > { %v12037_v61 = vpop.f32.mrf.mxu1  ;;  %v10815_v55 = vcombine.low %v13138_v0, %v13139_v28  ;;  %v4681_v22 = vshll.u32 %v10881_v39, 16  ;;  %v13140_v28 = vld [vmem:[%s13240_s23 + $0x94] sm:$0xf] }
 0x1b8   : > { %v12079_v45 = vpop.f32.mrf.mxu0  ;;  %v14907_v54 = vadd.f32 %v2869_v52, %v2513_v16  ;;  %v2516_v33 = vadd.f32 %v12037_v61, %v14671_v3 }
 0x1b9   : > { %v2381_v37 = vpop.f32.mrf.mxu1 }
 0x1ba   : > { %v2872_v7 = vpop.f32.mrf.mxu0  ;;  %v14915_v38 = vadd.f32 %v12079_v45, %v2516_v33  ;;  %v2514_v52 = vadd.f32 %v2381_v37, %v14675_v13  ;;  %v12987_v45 = vld [vmem:[%s13240_s23 + $0xa4] sm:$0xff]   ;;  %v14927_v13 = vld [vmem:[%s13240_s23 + $0x1c] sm:$0xff]   ;;  %v13141_v37 = vld [vmem:[%s13240_s23 + $0x98] sm:$0xf] }
 0x1bb   : > { %v12040_v3 = vpop.f32.mrf.mxu1  ;;  %12223 = vmatmul.mubr.msk.bf16.gmra.mxu1 %vm484_vm2, %v10814_v2 }
 0x1bc   : > { %v12082_v19 = vpop.f32.mrf.mxu0  ;;  %12265 = vmatmul.mubr.msk.bf16.gmra.mxu0 %vm484_vm2, %v12981_v18  ;;  %18075 = vst [vmem:[#allocation15_spill] sm:$0xff] %v14915_v38  ;;  %v5138_v18 = vld [vmem:[%s13240_s23 + $0x14] sm:$0xe]  ;;  %v14920_v16 = vadd.f32 %v2872_v7, %v2514_v52  ;;  %v2519_v61 = vadd.f32 %v12040_v3, %v14682_v30  ;;  %12226 = vmatprep.mubr.msk.bf16.mxu1 %vm484_vm2, %v10815_v55  ;;  %v13142_v38 = vld [vmem:[%s13240_s23 + $0x9c] sm:$0xf] }
 0x1bd   : > { %12268 = vmatprep.mubr.msk.bf16.mxu0 %vm484_vm2, %v12983_v11  ;;  %v12985_v11 = vld [vmem:[%s13240_s23 + $0x9c] sm:$0xff]   ;;  %v2394_v63 = vpop.f32.mrf.mxu1  ;;  %v14933_v7 = vcombine.low %v5138_v18, %v14903_v12  ;;  %v10816_v55 = vcombine.low %v13140_v28, %v13141_v37  ;;  %v4683_v18 = vrot.slane %v4681_v22, 1 }
 0x1be   : > { %v2885_v20 = vpop.f32.mrf.mxu0  ;;  %18076 = vst [vmem:[#allocation11_spill] sm:$0xff] %v14920_v16  ;;  %v14929_v33 = vadd.f32 %v12082_v19, %v2519_v61  ;;  %v2517_v2 = vadd.f32 %v2394_v63, %v14686_v17  ;;  %v13143_v19 = vld [vmem:[%s13240_s23 + $0xa0] sm:$0xf]  ;;  %v4679_v17 = vshrl.u32 %v10881_v39, 16  ;;  %v17817_v63 = vshll.u32 %v14927_v13, 16 }
 0x1bf   : > { %v12041_v30 = vpop.f32.mrf.mxu1  ;;  %v10817_v61 = vcombine.low %v13142_v38, %v13143_v19 }
 0x1c0   : > { %v12083_v49 = vpop.f32.mrf.mxu0  ;;  %18077 = vst [vmem:[#allocation12_spill] sm:$0xff] %v14929_v33  ;;  %v14937_v52 = vadd.f32 %v2885_v20, %v2517_v2  ;;  %v2520_v3 = vadd.f32 %v12041_v30, %v14693_v59  ;;  %v5144_v2 = vrot.slane %v14933_v7, 1  ;;  %v4684_v37 = vor.u32 %v4683_v18, %v4679_v17 }
 0x1c1   : > { %v2397_v33 = vpop.f32.mrf.mxu1 }
 0x1c2   : > { %v2888_v0 = vpop.f32.mrf.mxu0  ;;  %v14945_v28 = vadd.f32 %v12083_v49, %v2520_v3  ;;  %v2518_v20 = vadd.f32 %v2397_v33, %v14697_v34  ;;  %v12989_v49 = vld [vmem:[%s13240_s23 + $0xac] sm:$0xff]   ;;  %v4688_v34 = vrot.slane %v17817_v63, 1 }
 0x1c3   : > { %v12044_v30 = vpop.f32.mrf.mxu1  ;;  %12227 = vmatmul.mubr.msk.bf16.gmra.mxu1 %vm484_vm2, %v10816_v55  ;;  %v14959_v33 = vld [vmem:[%s13240_s23 + $0x2c] sm:$0xff]  }
 0x1c4   : > { %v12086_v16 = vpop.f32.mrf.mxu0  ;;  %12269 = vmatmul.mubr.msk.bf16.gmra.mxu0 %vm484_vm2, %v12985_v11  ;;  %v5145_v11 = vrot.slane %v14927_v13, 1  ;;  %v14951_v38 = vadd.f32 %v2888_v0, %v2518_v20  ;;  %v2523_v39 = vadd.f32 %v12044_v30, %v14704_v24  ;;  %12230 = vmatprep.mubr.msk.bf16.mxu1 %vm484_vm2, %v10817_v61  ;;  %v13144_v24 = vld [vmem:[%s13240_s23 + $0xa4] sm:$0xf]  ;;  %v17818_v61 = vshrl.u32 %v14927_v13, 16 }
 0x1c5   : > { %12272 = vmatprep.mubr.msk.bf16.mxu0 %vm484_vm2, %v12987_v45  ;;  %v2410_v22 = vpop.f32.mrf.mxu1  ;;  %v10818_v30 = vcombine.low %v13144_v24, %v14640_v6  ;;  %v14986_v24 = vld [vmem:[%s13240_s23 + $0x34] sm:$0xff]  }
 0x1c6   : > { %v2901_v59 = vpop.f32.mrf.mxu0  ;;  %18078 = vst [vmem:[#allocation17_spill] sm:$0xff] %v14951_v38  ;;  %v14961_v3 = vadd.f32 %v12086_v16, %v2523_v39  ;;  %v2521_v19 = vadd.f32 %v2410_v22, %v14707_v14  ;;  %v5146_v0 = vsel %vm984_vm3, %v5144_v2, %v5145_v11  ;;  %v4689_v14 = vsel %vm319_vm1, %v4684_v37, %v4688_v34  ;;  %v18079_v2 = vld [vmem:[#allocation13_spill] sm:$0xff] }
 0x1c7   : > { %v12045_v20 = vpop.f32.mrf.mxu1  ;;  %v5147_v39 = vrot.slane %v18079_v2, 1  ;;  %v18081_v37 = vshll.u32 %v18079_v2, 16 }
 0x1c8   : > { %v12087_v45 = vpop.f32.mrf.mxu0  ;;  %v14968_v38 = vadd.f32 %v2901_v59, %v2521_v19  ;;  %v2524_v17 = vadd.f32 %v12045_v20, %v14715_v42  ;;  %v5149_v42 = vrot.slane %v14959_v33, 1 }
 0x1c9   : > { %v2413_v16 = vpop.f32.mrf.mxu1 }
 0x1ca   : > { %v2904_v55 = vpop.f32.mrf.mxu0  ;;  %v14976_v6 = vadd.f32 %v12087_v45, %v2524_v17  ;;  %v2522_v59 = vadd.f32 %v2413_v16, %v14719_v51  ;;  %v5148_v16 = vsel %vm984_vm3, %v5145_v11, %v5147_v39 }
 0x1cb   : > { %v12048_v20 = vpop.f32.mrf.mxu1  ;;  %12231 = vmatmul.mubr.msk.bf16.gmra.mxu1 %vm484_vm2, %v10818_v30  ;;  %v18082_v30 = vshrl.u32 %v18079_v2, 16  ;;  %v17819_v2 = vshll.u32 %v14986_v24, 16 }
 0x1cc   : > { %v12090_v18 = vpop.f32.mrf.mxu0  ;;  %12273 = vmatmul.mubr.msk.bf16.gmra.mxu0 %vm484_vm2, %v12989_v49  ;;  %18080 = vst [vmem:[#allocation19_spill] sm:$0xff] %v14976_v6  ;;  %v4692_v49 = vor.u32 %v17818_v61, %v4688_v34  ;;  %v14988_v63 = vadd.f32 %v2904_v55, %v2522_v59  ;;  %v2527_v45 = vadd.f32 %v12048_v20, %v14725_v57  ;;  %v18083_v34 = vshll.u32 %v14959_v33, 16  ;;  %v14998_v6 = vld [vmem:[%s13240_s23 + $0x3c] sm:$0xff]  }
 0x1cd   : > { %12320 = vmatprep.mubr.msk.bf16.mxu0 %vm484_vm2, %v5146_v0  ;;  %v4696_v0 = vrot.slane %v18081_v37, 1  ;;  %12278 = vmatprep.mubr.msk.bf16.mxu1 %vm484_vm2, %v4689_v14  ;;  %v2426_v17 = vpop.f32.mrf.mxu1  ;;  %v5984_v57 = vsel %vm545_vm0, %v14733_v15, 0  ;;  %v5150_v14 = vsel %vm984_vm3, %v5147_v39, %v5149_v42  ;;  %v5641_v15 = vsel %vm545_vm0, %v14750_v62, 0 }
 0x1ce   : > { %v2917_v19 = vpop.f32.mrf.mxu0  ;;  %v4704_v61 = vrot.slane %v18083_v34, 1  ;;  %v15000_v37 = vadd.f32 %v12090_v18, %v2527_v45  ;;  %v2525_v55 = vadd.f32 %v2426_v17, %v14735_v10  ;;  %v17821_v39 = vshrl.u32 %v14959_v33, 16 }
 0x1cf   : > { %v4700_v22 = vor.u32 %v18082_v30, %v4696_v0  ;;  %v12049_v20 = vpop.f32.mrf.mxu1  ;;  %v4697_v11 = vsel %vm319_vm1, %v4692_v49, %v4696_v0  ;;  %v15011_v30 = vld [vmem:[%s17751_s1 + $0x40] sm:$0xf] }
 0x1d0   : > { %v12091_v51 = vpop.f32.mrf.mxu0  ;;  %18084 = vst [vmem:[#allocation20_spill] sm:$0xff] %v15011_v30  ;;  %v15013_v18 = vadd.f32 %v2917_v19, %v2525_v55  ;;  %v2528_v10 = vadd.f32 %v12049_v20, %v14744_v1  ;;  %v5151_v19 = vrot.slane %v14986_v24, 1  ;;  %v5153_v55 = vrot.slane %v14998_v6, 1 }
 0x1d1   : > { %v2429_v49 = vpop.f32.mrf.mxu1  ;;  %v4705_v0 = vsel %vm319_vm1, %v4700_v22, %v4704_v61 }
 0x1d2   : > { %v2920_v59 = vpop.f32.mrf.mxu0  ;;  %v15025_v34 = vadd.f32 %v12091_v51, %v2528_v10  ;;  %v4712_v51 = vrot.slane %v17819_v2, 1  ;;  %v5152_v17 = vsel %vm984_vm3, %v5149_v42, %v5151_v19  ;;  %v18087_v2 = vshll.u32 %v14998_v6, 16 }
 0x1d3   : > { %v12052_v22 = vpop.f32.mrf.mxu1  ;;  %12279 = vmatmul.mubr.msk.bf16.vlgmr.msra.gmra.mxu1 %vm484_vm2, %v4697_v11  ;;  %v18086_v11 = vshrl.u32 %v14986_v24, 16 }
 0x1d4   : > { %v12094_v45 = vpop.f32.mrf.mxu0  ;;  %12321 = vmatmul.mubr.msk.bf16.vlgmr.msra.gmra.mxu0 %vm484_vm2, %v5148_v16  ;;  %18085 = vst [vmem:[#allocation21_spill] sm:$0xff] %v15025_v34  ;;  %v2526_v16 = vadd.f32 %v2429_v49, %v14758_v53  ;;  %v2531_v20 = vadd.f32 %v12052_v22, %v14766_v9  ;;  %12361 = vmatpush3.bf16.msra.mxu1 %v5641_v15 }
 0x1d5   : > { %12403 = vmatpush3.bf16.msra.mxu0 %v5984_v57  ;;  %12324 = vmatprep.mubr.msk.bf16.mxu0 %vm484_vm2, %v5150_v14  ;;  %v15032_v57 = vld [vmem:[%s17751_s1 + $0x3c] sm:$0xf]  ;;  %v15040_v14 = vld [vmem:[%s13240_s23 + $0x44] sm:$0xff]   ;;  %v4708_v49 = vor.u32 %v17821_v39, %v4704_v61  ;;  %v2442_v1 = vpop.f32.mrf.mxu1  ;;  %v4716_v34 = vor.u32 %v18086_v11, %v4712_v51 }
 0x1d6   : > { %v2933_v62 = vpop.f32.mrf.mxu0  ;;  %12883 = vmatprep.subr.msk.bf16.mxu0 %vm545_vm0, %v15011_v30  ;;  %v15042_v53 = vadd.f32 %v2920_v59, %v2526_v16  ;;  %12282 = vmatprep.mubr.msk.bf16.mxu1 %vm484_vm2, %v4705_v0  ;;  %v4720_v30 = vrot.slane %v18087_v2, 1  ;;  %v15054_v59 = vld [vmem:[%s13240_s23 + $0x4c] sm:$0xff]   ;;  %v15058_v9 = vadd.f32 %v12094_v45, %v2531_v20  ;;  %v2529_v61 = vadd.f32 %v2442_v1, %v14771_v60 }
 0x1d7   : > { %12882 = vmatprep.subr.msk.bf16.mxu1 %vm545_vm0, %v15032_v57  ;;  %v5154_v0 = vsel %vm984_vm3, %v5151_v19, %v5153_v55  ;;  %v12053_v16 = vpop.f32.mrf.mxu1  ;;  %v17822_v42 = vshll.u32 %v15040_v14, 16  ;;  %v4713_v39 = vsel %vm319_vm1, %v4708_v49, %v4712_v51  ;;  %v17823_v45 = vshrl.u32 %v14998_v6, 16 }
 0x1d8   : > { %v12095_v10 = vpop.f32.mrf.mxu0  ;;  %v15063_v22 = vadd.f32 %v2933_v62, %v2529_v61  ;;  %v2532_v11 = vadd.f32 %v12053_v16, %v14778_v23  ;;  %v4721_v60 = vsel %vm319_vm1, %v4716_v34, %v4720_v30  ;;  %v5155_v19 = vrot.slane %v15040_v14, 1 }
 0x1d9   : > { %v2445_v20 = vpop.f32.mrf.mxu1  ;;  %v17824_v1 = vshrl.u32 %v15040_v14, 16  ;;  %v4728_v34 = vrot.slane %v17822_v42, 1  ;;  %v18091_v42 = vshll.u32 %v15054_v59, 16 }
 0x1da   : > { %v2936_v15 = vpop.f32.mrf.mxu0  ;;  %18088 = vst [vmem:[#allocation16_spill] sm:$0xff] %v15063_v22  ;;  %v15074_v23 = vadd.f32 %v12095_v10, %v2532_v11  ;;  %v2530_v51 = vadd.f32 %v2445_v20, %v14782_v44  ;;  %v4724_v44 = vor.u32 %v17823_v45, %v4720_v30  ;;  %v5156_v20 = vsel %vm984_vm3, %v5153_v55, %v5155_v19  ;;  %v15096_v22 = vld [vmem:[%s13240_s23 + $0x5c] sm:$0xff]  }
 0x1db   : > { %v12056_v61 = vpop.f32.mrf.mxu1  ;;  %12283 = vmatmul.mubr.msk.bf16.gmra.mxu1 %vm484_vm2, %v4713_v39  ;;  %v4732_v39 = vor.u32 %v17824_v1, %v4728_v34 }
 0x1dc   : > { %v12098_v2 = vpop.f32.mrf.mxu0  ;;  %12325 = vmatmul.mubr.msk.bf16.gmra.mxu0 %vm484_vm2, %v5152_v17  ;;  %18089 = vst [vmem:[#allocation22_spill] sm:$0xff] %v15074_v23  ;;  %v5157_v17 = vrot.slane %v15054_v59, 1  ;;  %v15084_v16 = vadd.f32 %v2936_v15, %v2530_v51  ;;  %v2535_v62 = vadd.f32 %v12056_v61, %v14788_v58  ;;  %12286 = vmatprep.mubr.msk.bf16.mxu1 %vm484_vm2, %v4721_v60  ;;  %v4736_v23 = vrot.slane %v18091_v42, 1 }
 0x1dd   : > { %12328 = vmatprep.mubr.msk.bf16.mxu0 %vm484_vm2, %v5154_v0  ;;  %v15082_v0 = vld [vmem:[%s13240_s23 + $0x54] sm:$0xff]   ;;  %v2458_v11 = vpop.f32.mrf.mxu1  ;;  %v17826_v42 = vshrl.u32 %v15054_v59, 16 }
 0x1de   : > { %v2949_v49 = vpop.f32.mrf.mxu0  ;;  %18090 = vst [vmem:[#allocation18_spill] sm:$0xff] %v15084_v16  ;;  %v15098_v15 = vadd.f32 %v12098_v2, %v2535_v62  ;;  %v2533_v58 = vadd.f32 %v2458_v11, %v14793_v36  ;;  %v5158_v30 = vsel %vm984_vm3, %v5155_v19, %v5157_v17  ;;  %v17825_v60 = vshll.u32 %v15082_v0, 16 }
 0x1df   : > { %v12057_v61 = vpop.f32.mrf.mxu1  ;;  %v4729_v16 = vsel %vm319_vm1, %v4724_v44, %v4728_v34  ;;  %v4737_v36 = vsel %vm319_vm1, %v4732_v39, %v4736_v23  ;;  %v5159_v19 = vrot.slane %v15082_v0, 1  ;;  %v17827_v62 = vshrl.u32 %v15082_v0, 16 }
 0x1e0   : > { %v12099_v10 = vpop.f32.mrf.mxu0  ;;  %v15103_v45 = vadd.f32 %v2949_v49, %v2533_v58  ;;  %v2536_v55 = vadd.f32 %v12057_v61, %v14800_v32  ;;  %v17828_v49 = vshll.u32 %v15096_v22, 16  ;;  %v5161_v11 = vrot.slane %v15096_v22, 1  ;;  %v15122_v58 = vld [vmem:[%s13240_s23 + $0x64] sm:$0xff]  }
 0x1e1   : > { %v2461_v2 = vpop.f32.mrf.mxu1  ;;  %v4744_v39 = vrot.slane %v17825_v60, 1 }
 0x1e2   : > { %v2952_v51 = vpop.f32.mrf.mxu0  ;;  %v15114_v32 = vadd.f32 %v12099_v10, %v2536_v55  ;;  %v2534_v34 = vadd.f32 %v2461_v2, %v14804_v8  ;;  %v4740_v8 = vor.u32 %v17826_v42, %v4736_v23  ;;  %v5160_v2 = vsel %vm984_vm3, %v5157_v17, %v5159_v19 }
 0x1e3   : > { %12287 = vmatmul.mubr.msk.bf16.gmra.mxu1 %vm484_vm2, %v4729_v16  ;;  %v4748_v16 = vor.u32 %v17827_v62, %v4744_v39  ;;  %v4752_v60 = vrot.slane %v17828_v49, 1  ;;  %v5162_v23 = vsel %vm984_vm3, %v5159_v19, %v5161_v11  ;;  %v5163_v19 = vrot.slane %v15122_v58, 1 }
 0x1e4   : > { %v12102_v1 = vpop.f32.mrf.mxu0  ;;  %12329 = vmatmul.mubr.msk.bf16.gmra.mxu0 %vm484_vm2, %v5156_v20  ;;  %18092 = vst [vmem:[#allocation23_spill] sm:$0xff] %v15114_v32  ;;  %v12060_v20 = vpop.f32.mrf.mxu1  ;;  %12290 = vmatprep.mubr.msk.bf16.mxu1 %vm484_vm2, %v4737_v36  ;;  %v15136_v32 = vld [vmem:[%s13240_s23 + $0x6c] sm:$0xff]   ;;  %v17829_v36 = vshll.u32 %v15122_v58, 16 }
 0x1e5   : > { %12332 = vmatprep.mubr.msk.bf16.mxu0 %vm484_vm2, %v5158_v30  ;;  %v15124_v30 = vadd.f32 %v2952_v51, %v2534_v34  ;;  %v2539_v61 = vadd.f32 %v12060_v20, %v14810_v27 }
 0x1e6   : > { %v2965_v44 = vpop.f32.mrf.mxu0  ;;  %v2474_v55 = vpop.f32.mrf.mxu1 }
 0x1e7   : > { %18093 = vst [vmem:[#allocation24_spill] sm:$0xff] %v15124_v30  ;;  %v15138_v51 = vadd.f32 %v12102_v1, %v2539_v61  ;;  %v2537_v27 = vadd.f32 %v2474_v55, %v14815_v26  ;;  %v4745_v30 = vsel %vm319_vm1, %v4740_v8, %v4744_v39  ;;  %v17830_v1 = vshrl.u32 %v15096_v22, 16 }
 0x1e8   : > { %v12103_v10 = vpop.f32.mrf.mxu0  ;;  %v12061_v20 = vpop.f32.mrf.mxu1  ;;  %v4753_v26 = vsel %vm319_vm1, %v4748_v16, %v4752_v60  ;;  %v17832_v55 = vshll.u32 %v15136_v32, 16  ;;  %v4760_v16 = vrot.slane %v17829_v36, 1 }
 0x1e9   : > { %v15143_v42 = vadd.f32 %v2965_v44, %v2537_v27  ;;  %v2540_v17 = vadd.f32 %v12061_v20, %v14822_v41  ;;  %v17831_v44 = vshrl.u32 %v15122_v58, 16 }
 0x1ea   : > { %v2968_v34 = vpop.f32.mrf.mxu0  ;;  %v2477_v61 = vpop.f32.mrf.mxu1  ;;  %v4768_v36 = vrot.slane %v17832_v55, 1  ;;  %v15208_v55 = vld [vmem:[%s13240_s23 + $0x2c] sm:$0xf] }
 0x1eb   : > { %v15154_v41 = vadd.f32 %v12103_v10, %v2540_v17  ;;  %v2538_v39 = vadd.f32 %v2477_v61, %v14826_v5  ;;  %12291 = vmatmul.mubr.msk.bf16.gmra.mxu1 %vm484_vm2, %v4745_v30  ;;  %v4756_v5 = vor.u32 %v17830_v1, %v4752_v60  ;;  %v5164_v61 = vsel %vm984_vm3, %v5161_v11, %v5163_v19 }
 0x1ec   : > { %v12106_v62 = vpop.f32.mrf.mxu0  ;;  %12333 = vmatmul.mubr.msk.bf16.gmra.mxu0 %vm484_vm2, %v5160_v2  ;;  %v5165_v2 = vrot.slane %v15136_v32, 1  ;;  %v12064_v27 = vpop.f32.mrf.mxu1  ;;  %12294 = vmatprep.mubr.msk.bf16.mxu1 %vm484_vm2, %v4753_v26  ;;  %v4764_v30 = vor.u32 %v17831_v44, %v4760_v16  ;;  %18098 = vst [vmem:[#allocation30_spill] sm:$0xff] %v15208_v55 }
 0x1ed   : > { %12336 = vmatprep.mubr.msk.bf16.mxu0 %vm484_vm2, %v5162_v23  ;;  %18094 = vst [vmem:[#allocation25_spill] sm:$0xff] %v15154_v41  ;;  %v15162_v23 = vld [vmem:[%s13240_s23 + $0x74] sm:$0xff]   ;;  %v15164_v20 = vadd.f32 %v2968_v34, %v2538_v39  ;;  %v2543_v49 = vadd.f32 %v12064_v27, %v14832_v21  ;;  %v15176_v41 = vld [vmem:[%s13240_s23 + $0x7c] sm:$0xff]  }
 0x1ee   : > { %v2981_v8 = vpop.f32.mrf.mxu0  ;;  %v2490_v17 = vpop.f32.mrf.mxu1  ;;  %v5166_v60 = vsel %vm984_vm3, %v5163_v19, %v5165_v2  ;;  %v17833_v26 = vshll.u32 %v15162_v23, 16  ;;  %v5167_v19 = vrot.slane %v15162_v23, 1 }
 0x1ef   : > { %18095 = vst [vmem:[#allocation26_spill] sm:$0xff] %v15164_v20  ;;  %v15178_v34 = vadd.f32 %v12106_v62, %v2543_v49  ;;  %v2541_v21 = vadd.f32 %v2490_v17, %v14837_v47  ;;  %v4761_v20 = vsel %vm319_vm1, %v4756_v5, %v4760_v16  ;;  %v17834_v62 = vshrl.u32 %v15136_v32, 16 }
 0x1f0   : > { %v12107_v10 = vpop.f32.mrf.mxu0  ;;  %v12065_v27 = vpop.f32.mrf.mxu1  ;;  %v4769_v49 = vsel %vm319_vm1, %v4764_v30, %v4768_v36  ;;  %v4776_v30 = vrot.slane %v17833_v26, 1 }
 0x1f1   : > { %v15183_v1 = vadd.f32 %v2981_v8, %v2541_v21  ;;  %v2544_v11 = vadd.f32 %v12065_v27, %v14844_v35  ;;  %v17837_v8 = vshrl.u32 %v15162_v23, 16  ;;  %v15205_v27 = vld [vmem:[%s13240_s23 + $0x28] sm:$0xf]  ;;  %v5168_v35 = vsel %vm984_vm3, %v5165_v2, %v5167_v19 }
 0x1f2   : > { %v2984_v39 = vpop.f32.mrf.mxu0  ;;  %v2493_v47 = vpop.f32.mrf.mxu1  ;;  %18097 = vst [vmem:[#allocation29_spill] sm:$0xff] %v15205_v27 }
 0x1f3   : > { %v15194_v17 = vadd.f32 %v12107_v10, %v2544_v11  ;;  %v2542_v16 = vadd.f32 %v2493_v47, %v14848_v50  ;;  %12295 = vmatmul.mubr.msk.bf16.gmra.mxu1 %vm484_vm2, %v4761_v20  ;;  %v4772_v47 = vor.u32 %v17834_v62, %v4768_v36 }
 0x1f4   : > { %v12154_v44 = vpop.f32.mrf.mxu0  ;;  %12337 = vmatmul.mubr.msk.bf16.gmra.mxu0 %vm484_vm2, %v5164_v61  ;;  %v5169_v61 = vrot.slane %v15176_v41, 1  ;;  %v12112_v21 = vpop.f32.mrf.mxu1  ;;  %12298 = vmatprep.mubr.msk.bf16.mxu1 %vm484_vm2, %v4769_v49 }
 0x1f5   : > { %12340 = vmatprep.mubr.msk.bf16.mxu0 %vm484_vm2, %v5166_v60  ;;  %18096 = vst [vmem:[#allocation27_spill] sm:$0xff] %v15194_v17  ;;  %v15202_v60 = vld [vmem:[%s13240_s23 + $0x84] sm:$0xff]   ;;  %v15210_v10 = vadd.f32 %v2984_v39, %v2542_v16  ;;  %v3342_v50 = vadd.f32 %v12112_v21, %v14854_v31  ;;  %v4780_v17 = vor.u32 %v17837_v8, %v4776_v30  ;;  %v18100_v39 = vshll.u32 %v15176_v41, 16 }
 0x1f6   : > { %v3577_v5 = vpop.f32.mrf.mxu0  ;;  %v3181_v26 = vpop.f32.mrf.mxu1  ;;  %v5170_v49 = vsel %vm984_vm3, %v5167_v19, %v5169_v61  ;;  %v17840_v20 = vshll.u32 %v15202_v60, 16  ;;  %v4777_v27 = vsel %vm319_vm1, %v4772_v47, %v4776_v30  ;;  %v17842_v19 = vshrl.u32 %v15202_v60, 16 }
 0x1f7   : > { %18099 = vst [vmem:[#allocation28_spill] sm:$0xff] %v15210_v10  ;;  %v4784_v16 = vrot.slane %v18100_v39, 1  ;;  %v15224_v10 = vld [vmem:[%s13240_s23 + $0x8c] sm:$0xff]   ;;  %v15226_v31 = vadd.f32 %v12154_v44, %v3342_v50  ;;  %v3340_v36 = vadd.f32 %v3181_v26, %v14859_v25  ;;  %v17841_v44 = vshrl.u32 %v15176_v41, 16  ;;  %v15250_v39 = vld [vmem:[%s13240_s23 + $0x94] sm:$0xff]  }
 0x1f8   : > { %v12155_v11 = vpop.f32.mrf.mxu0  ;;  %v12113_v62 = vpop.f32.mrf.mxu1  ;;  %v5171_v26 = vrot.slane %v15202_v60, 1  ;;  %18102 = vst [vmem:[#allocation3_spill] sm:$0xff] %v15250_v39 }
 0x1f9   : > { %v15231_v55 = vadd.f32 %v3577_v5, %v3340_v36  ;;  %v3343_v2 = vadd.f32 %v12113_v62, %v14866_v29  ;;  %v4785_v25 = vsel %vm319_vm1, %v4780_v17, %v4784_v16  ;;  %v17843_v5 = vshll.u32 %v15224_v10, 16 }
 0x1fa   : > { %v3580_v21 = vpop.f32.mrf.mxu0  ;;  %v3184_v50 = vpop.f32.mrf.mxu1  ;;  %v4792_v17 = vrot.slane %v17840_v20, 1 }
 0x1fb   : > { %v15242_v29 = vadd.f32 %v12155_v11, %v3343_v2  ;;  %v3341_v62 = vadd.f32 %v3184_v50, %v14870_v48  ;;  %12299 = vmatmul.mubr.msk.bf16.gmra.mxu1 %vm484_vm2, %v4777_v27  ;;  %v4788_v48 = vor.u32 %v17841_v44, %v4784_v16  ;;  %v5172_v50 = vsel %vm984_vm3, %v5169_v61, %v5171_v26 }
 0x1fc   : > { %v12158_v8 = vpop.f32.mrf.mxu0  ;;  %12341 = vmatmul.mubr.msk.bf16.gmra.mxu0 %vm484_vm2, %v5168_v35  ;;  %v5173_v35 = vrot.slane %v15224_v10, 1  ;;  %v12116_v47 = vpop.f32.mrf.mxu1  ;;  %12302 = vmatprep.mubr.msk.bf16.mxu1 %vm484_vm2, %v4785_v25  ;;  %v4796_v27 = vor.u32 %v17842_v19, %v4792_v17  ;;  %v4800_v20 = vrot.slane %v17843_v5, 1  ;;  %v17844_v25 = vshrl.u32 %v15224_v10, 16 }
 0x1fd   : > { %12344 = vmatprep.mubr.msk.bf16.mxu0 %vm484_vm2, %v5170_v49  ;;  %18101 = vst [vmem:[#allocation2_spill] sm:$0xff] %v15242_v29  ;;  %v15252_v36 = vadd.f32 %v3580_v21, %v3341_v62  ;;  %v3346_v49 = vadd.f32 %v12116_v47, %v14876_v4  ;;  %v15264_v29 = vld [vmem:[%s13240_s23 + $0x9c] sm:$0xff]   ;;  %v17845_v61 = vshll.u32 %v15250_v39, 16 }
 0x1fe   : > { %v3593_v30 = vpop.f32.mrf.mxu0  ;;  %v3197_v2 = vpop.f32.mrf.mxu1  ;;  %v5174_v16 = vsel %vm984_vm3, %v5171_v26, %v5173_v35  ;;  %v5175_v26 = vrot.slane %v15250_v39, 1 }
 0x1ff   : > { %18103 = vst [vmem:[#allocation4_spill] sm:$0xff] %v15252_v36  ;;  %v15266_v21 = vadd.f32 %v12158_v8, %v3346_v49  ;;  %v3344_v4 = vadd.f32 %v3197_v2, %v14881_v43  ;;  %v4793_v36 = vsel %vm319_vm1, %v4788_v48, %v4792_v17  ;;  %v4801_v43 = vsel %vm319_vm1, %v4796_v27, %v4800_v20  ;;  %v15287_v48 = vld [vmem:[%s13240_s23 + $0xa4] sm:$0xff]  }
 0x200   : > { %v12159_v11 = vpop.f32.mrf.mxu0  ;;  %v12117_v47 = vpop.f32.mrf.mxu1  ;;  %v17846_v49 = vshrl.u32 %v15250_v39, 16  ;;  %v5177_v17 = vrot.slane %v15264_v29, 1  ;;  %18106 = vst [vmem:[#allocation9_spill] sm:$0xff] %v15287_v48  ;;  %v4804_v27 = vor.u32 %v17844_v25, %v4800_v20  ;;  %v18108_v20 = vshll.u32 %v15264_v29, 16 }
 0x201   : > { %v15272_v44 = vadd.f32 %v3593_v30, %v3344_v4  ;;  %v3347_v19 = vadd.f32 %v12117_v47, %v14888_v56  ;;  %v5176_v30 = vsel %vm984_vm3, %v5173_v35, %v5175_v26  ;;  %v17850_v35 = vshrl.u32 %v15264_v29, 16 }
 0x202   : > { %v3596_v62 = vpop.f32.mrf.mxu0  ;;  %v3200_v8 = vpop.f32.mrf.mxu1  ;;  %v4816_v25 = vrot.slane %v18108_v20, 1 }
 0x203   : > { %18104 = vst [vmem:[#allocation7_spill] sm:$0xff] %v15272_v44  ;;  %v15282_v2 = vadd.f32 %v12159_v11, %v3347_v19  ;;  %v3345_v56 = vadd.f32 %v3200_v8, %v14892_v40  ;;  %12303 = vmatmul.mubr.msk.bf16.gmra.mxu1 %vm484_vm2, %v4793_v36  ;;  %v15299_v40 = vld [vmem:[%s13240_s23 + $0xac] sm:$0xff]  }
 0x204   : > { %v12162_v5 = vpop.f32.mrf.mxu0  ;;  %12345 = vmatmul.mubr.msk.bf16.gmra.mxu0 %vm484_vm2, %v5172_v50  ;;  %v12120_v50 = vpop.f32.mrf.mxu1  ;;  %12306 = vmatprep.mubr.msk.bf16.mxu1 %vm484_vm2, %v4801_v43  ;;  %v17849_v43 = vshll.u32 %v15287_v48, 16  ;;  %v5181_v20 = vrot.slane %v15299_v40, 1 }
 0x205   : > { %12348 = vmatprep.mubr.msk.bf16.mxu0 %vm484_vm2, %v5174_v16  ;;  %18105 = vst [vmem:[#allocation8_spill] sm:$0xff] %v15282_v2  ;;  %v4808_v16 = vrot.slane %v17845_v61, 1  ;;  %v15294_v47 = vadd.f32 %v3596_v62, %v3345_v56  ;;  %v3350_v19 = vadd.f32 %v12120_v50, %v14898_v46  ;;  %v5178_v46 = vsel %vm984_vm3, %v5175_v26, %v5177_v17 }
 0x206   : > { %v3609_v4 = vpop.f32.mrf.mxu0  ;;  %v3213_v8 = vpop.f32.mrf.mxu1 }
 0x207   : > { %18107 = vst [vmem:[#allocation5_spill] sm:$0xff] %v15294_v47  ;;  %v4812_v36 = vor.u32 %v17846_v49, %v4808_v16  ;;  %v15306_v2 = vadd.f32 %v12162_v5, %v3350_v19  ;;  %v3348_v62 = vadd.f32 %v3213_v8, %v14907_v54  ;;  %v4809_v61 = vsel %vm319_vm1, %v4804_v27, %v4808_v16  ;;  %v18111_v49 = vld [vmem:[#allocation15_spill] sm:$0xff] }
 0x208   : > { %v12163_v11 = vpop.f32.mrf.mxu0  ;;  %v12121_v50 = vpop.f32.mrf.mxu1  ;;  %v5179_v27 = vrot.slane %v15287_v48, 1  ;;  %v18113_v16 = vld [vmem:[#allocation11_spill] sm:$0xff] }
 0x209   : > { %18109 = vst [vmem:[#allocation10_spill] sm:$0xff] %v15306_v2  ;;  %v15313_v47 = vadd.f32 %v3609_v4, %v3348_v62  ;;  %v3351_v39 = vadd.f32 %v12121_v50, %v18111_v49  ;;  %v4817_v19 = vsel %vm319_vm1, %v4812_v36, %v4816_v25  ;;  %v4820_v36 = vor.u32 %v17850_v35, %v4816_v25  ;;  %v13011_v50 = vld [vmem:[%s13240_s23 + $0xb4] ss:$0 sps:$4 sm:$0x11]  }
 0x20a   : > { %v3612_v56 = vpop.f32.mrf.mxu0  ;;  %v3216_v26 = vpop.f32.mrf.mxu1  ;;  %v5488_v25 = vshrl.u32 %v14933_v7, 16  ;;  %v5491_v35 = vshll.u32 %v14933_v7, 16 }
 0x20b   : > { %18110 = vst [vmem:[#allocation6_spill] sm:$0xff] %v15313_v47  ;;  %v15322_v4 = vadd.f32 %v12163_v11, %v3351_v39  ;;  %v3349_v49 = vadd.f32 %v3216_v26, %v18113_v16  ;;  %12307 = vmatmul.mubr.msk.bf16.gmra.mxu1 %vm484_vm2, %v4809_v61  ;;  %v18115_v39 = vld [vmem:[#allocation12_spill] sm:$0xff]  ;;  %v18116_v26 = vshrl.u32 %v15287_v48, 16  ;;  %v5180_v61 = vsel %vm984_vm3, %v5177_v17, %v5179_v27 }
 0x20c   : > { %v12166_v44 = vpop.f32.mrf.mxu0  ;;  %12349 = vmatmul.mubr.msk.bf16.gmra.mxu0 %vm484_vm2, %v5176_v30  ;;  %v4824_v30 = vrot.slane %v17849_v43, 1  ;;  %v12124_v62 = vpop.f32.mrf.mxu1  ;;  %12310 = vmatprep.mubr.msk.bf16.mxu1 %vm484_vm2, %v4817_v19  ;;  %v18117_v43 = vshll.u32 %v15299_v40, 16  ;;  %v5182_v19 = vsel %vm984_vm3, %v5179_v27, %v5181_v20  ;;  %v4838_v48 = vshll.u32 %v13011_v50, 16 }
 0x20d   : > { %12352 = vmatprep.mubr.msk.bf16.mxu0 %vm484_vm2, %v5178_v46  ;;  %18112 = vst [vmem:[#allocation13_spill] sm:$0xff] %v15322_v4  ;;  %v5876_v46 = vld [vmem:[%s13240_s23 + $0x14] sm:$0xc]  ;;  %v15333_v5 = vadd.f32 %v3612_v56, %v3349_v49  ;;  %v3354_v11 = vadd.f32 %v12124_v62, %v18115_v39  ;;  %v5493_v27 = vrot.slane %v5491_v35, 2 }
 0x20e   : > { %v3625_v8 = vpop.f32.mrf.mxu0  ;;  %v4828_v16 = vor.u32 %v18116_v26, %v4824_v30  ;;  %v4832_v4 = vrot.slane %v18117_v43, 1  ;;  %v3229_v47 = vpop.f32.mrf.mxu1  ;;  %v10967_v39 = vcombine.low %v5876_v46, %v14903_v12  ;;  %v17853_v43 = vshrl.u32 %v15299_v40, 16 }
 0x20f   : > { %18114 = vst [vmem:[#allocation15_spill] sm:$0xff] %v15333_v5  ;;  %v15344_v56 = vadd.f32 %v12166_v44, %v3354_v11  ;;  %v3352_v49 = vadd.f32 %v3229_v47, %v14937_v52  ;;  %v4825_v5 = vsel %vm319_vm1, %v4820_v36, %v4824_v30  ;;  %v5183_v44 = vrot.slane %v13011_v50, 1 }
 0x210   : > { %v12167_v54 = vpop.f32.mrf.mxu0  ;;  %v12125_v26 = vpop.f32.mrf.mxu1  ;;  %v4833_v52 = vsel %vm319_vm1, %v4828_v16, %v4832_v4  ;;  %v5490_v12 = vrot.slane %v5488_v25, 1  ;;  %v18118_v30 = vshrl.u32 %v14927_v13, 16  ;;  %v18119_v46 = vshll.u32 %v14927_v13, 16 }
 0x211   : > { %v15351_v17 = vadd.f32 %v3625_v8, %v3352_v49  ;;  %v3355_v2 = vadd.f32 %v12125_v26, %v14945_v28  ;;  %v18120_v28 = vld [vmem:[#allocation17_spill] sm:$0xff]  ;;  %v5883_v16 = vrot.slane %v14927_v13, 2 }
 0x212   : > { %v3628_v62 = vpop.f32.mrf.mxu0  ;;  %v3232_v47 = vpop.f32.mrf.mxu1  ;;  %v5495_v36 = vrot.slane %v18118_v30, 1  ;;  %v5496_v8 = vrot.slane %v18119_v46, 2  ;;  %v4836_v30 = vor.u32 %v17853_v43, %v4832_v4  ;;  %v18121_v4 = vld [vmem:[#allocation19_spill] sm:$0xff] }
 0x213   : > { %v15361_v11 = vadd.f32 %v12167_v54, %v3355_v2  ;;  %v3353_v49 = vadd.f32 %v3232_v47, %v18120_v28  ;;  %12311 = vmatmul.mubr.msk.bf16.gmra.mxu1 %vm484_vm2, %v4825_v5  ;;  %v4840_v2 = vrot.slane %v4838_v48, 1  ;;  %v5184_v47 = vsel %vm984_vm3, %v5181_v20, %v5183_v44 }
 0x214   : > { %v12170_v7 = vpop.f32.mrf.mxu0  ;;  %12353 = vmatmul.mubr.msk.bf16.gmra.mxu0 %vm484_vm2, %v5180_v61  ;;  %v5882_v61 = vrot.slane %v10967_v39, 2  ;;  %v12128_v50 = vpop.f32.mrf.mxu1  ;;  %12314 = vmatprep.mubr.msk.bf16.mxu1 %vm484_vm2, %v4833_v52  ;;  %v5494_v39 = vor.u32 %v5493_v27, %v5490_v12  ;;  %v5497_v13 = vor.u32 %v5496_v8, %v5495_v36  ;;  %v18122_v12 = vshrl.u32 %v14959_v33, 16 }
 0x215   : > { %12356 = vmatprep.mubr.msk.bf16.mxu0 %vm484_vm2, %v5182_v19  ;;  %v15366_v19 = vadd.f32 %v3628_v62, %v3353_v49  ;;  %v3358_v35 = vadd.f32 %v12128_v50, %v14961_v3  ;;  %v4841_v48 = vsel %vm319_vm1, %v4836_v30, %v4840_v2  ;;  %v18123_v36 = vshll.u32 %v14959_v33, 16 }
 0x216   : > { %v3641_v26 = vpop.f32.mrf.mxu0  ;;  %v3245_v54 = vpop.f32.mrf.mxu1  ;;  %v5884_v3 = vsel %vm1724_vm5, %v5882_v61, %v5883_v16  ;;  %v5498_v44 = vsel %vm1328_vm4, %v5494_v39, %v5497_v13  ;;  %v5503_v27 = vrot.slane %v18122_v12, 1  ;;  %v5887_v30 = vrot.slane %v14959_v33, 2  ;;  %v18124_v33 = vld [vmem:[#allocation20_spill] sm:$0xff] }
 0x217   : > { %v15373_v46 = vadd.f32 %v12170_v7, %v3358_v35  ;;  %v3356_v5 = vadd.f32 %v3245_v54, %v14968_v38  ;;  %v13145_v7 = vld [vmem:[%s13240_s23 + $0x24] sm:$0xff]   ;;  %v5504_v8 = vrot.slane %v18123_v36, 2  ;;  %v18128_v36 = vshll.u32 %v14986_v24, 16 }
 0x218   : > { %v12171_v25 = vpop.f32.mrf.mxu0  ;;  %v12129_v28 = vpop.f32.mrf.mxu1  ;;  %v5885_v38 = vrot.slane %v13145_v7, 2  ;;  %v18126_v7 = vld [vmem:[#allocation14_spill] sm:$0xff] }
 0x219   : > { %v15377_v49 = vadd.f32 %v3641_v26, %v3356_v5  ;;  %v3359_v50 = vadd.f32 %v12129_v28, %v18121_v4 }
 0x21a   : > { %v3644_v62 = vpop.f32.mrf.mxu0  ;;  %v3248_v20 = vpop.f32.mrf.mxu1 }
 0x21b   : > { %v15389_v26 = vadd.f32 %v12171_v25, %v3359_v50  ;;  %v3357_v61 = vadd.f32 %v3248_v20, %v14988_v63  ;;  %12315 = vmatmul.mubr.msk.bf16.gmra.mxu1 %vm484_vm2, %v4841_v48  ;;  %v5505_v25 = vor.u32 %v5504_v8, %v5503_v27  ;;  %v6957_v50 = vsel %vm545_vm0, %v18124_v33, 0 }
 0x21c   : > { %v12174_v52 = vpop.f32.mrf.mxu0  ;;  %12357 = vmatmul.mubr.msk.bf16.gmra.mxu0 %vm484_vm2, %v5184_v47  ;;  %v12132_v2 = vpop.f32.mrf.mxu1  ;;  %12362 = vmatprep.mubr.msk.bf16.mxu1 %vm484_vm2, %v5498_v44  ;;  %v18125_v48 = vshrl.u32 %v14986_v24, 16  ;;  %v5502_v44 = vsel %vm1328_vm4, %v5497_v13, %v18126_v7  ;;  %v5508_v8 = vrot.slane %v18128_v36, 2  ;;  %v18131_v36 = vld [vmem:[#allocation16_spill] sm:$0xff] }
 0x21d   : > { %12404 = vmatprep.mubr.msk.bf16.mxu0 %vm484_vm2, %v5884_v3  ;;  %v15394_v54 = vadd.f32 %v3644_v62, %v3357_v61  ;;  %v3362_v47 = vadd.f32 %v12132_v2, %v15000_v37  ;;  %v5886_v3 = vsel %vm1724_vm5, %v5883_v16, %v5885_v38  ;;  %v5888_v62 = vsel %vm1724_vm5, %v5885_v38, %v5887_v30  ;;  %v15412_v16 = vld [vmem:[%s17751_s1 + $0x48] sm:$0xf] }
 0x21e   : > { %v3657_v35 = vpop.f32.mrf.mxu0  ;;  %v3261_v5 = vpop.f32.mrf.mxu1  ;;  %v5507_v37 = vrot.slane %v18125_v48, 1  ;;  %v6467_v38 = vsel %vm545_vm0, %v15032_v57, 0  ;;  %v5506_v13 = vsel %vm1328_vm4, %v18126_v7, %v5505_v25  ;;  %v18129_v2 = vshrl.u32 %v14998_v6, 16  ;;  %v15437_v48 = vld [vmem:[%s17751_s1 + $0x44] sm:$0xf] }
 0x21f   : > { %v15399_v28 = vadd.f32 %v12174_v52, %v3362_v47  ;;  %v3360_v63 = vadd.f32 %v3261_v5, %v15013_v18  ;;  %v18127_v18 = vld [vmem:[#allocation21_spill] sm:$0xff]  ;;  %v18130_v5 = vshll.u32 %v14998_v6, 16 }
 0x220   : > { %v12175_v39 = vpop.f32.mrf.mxu0  ;;  %v12133_v20 = vpop.f32.mrf.mxu1  ;;  %v5511_v47 = vrot.slane %v18129_v2, 1 }
 0x221   : > { %v15414_v52 = vadd.f32 %v3657_v35, %v3360_v63  ;;  %v3363_v12 = vadd.f32 %v12133_v20, %v18127_v18  ;;  %v5889_v35 = vrot.slane %v14986_v24, 2 }
 0x222   : > { %v3660_v4 = vpop.f32.mrf.mxu0  ;;  %v3264_v61 = vpop.f32.mrf.mxu1 }
 0x223   : > { %v15430_v63 = vadd.f32 %v12175_v39, %v3363_v12  ;;  %v3361_v57 = vadd.f32 %v3264_v61, %v15042_v53  ;;  %12363 = vmatmul.mubr.msk.bf16.vlgmr.msra.gmra.mxu1 %vm484_vm2, %v5502_v44  ;;  %v5890_v7 = vsel %vm1724_vm5, %v5887_v30, %v5889_v35 }
 0x224   : > { %v12178_v27 = vpop.f32.mrf.mxu0  ;;  %12405 = vmatmul.mubr.msk.bf16.vlgmr.msra.gmra.mxu0 %vm484_vm2, %v5886_v3  ;;  %v5512_v3 = vrot.slane %v18130_v5, 2  ;;  %v12136_v24 = vpop.f32.mrf.mxu1  ;;  %12445 = vmatpush3.bf16.msra.mxu1 %v6467_v38 }
 0x225   : > { %12487 = vmatpush3.bf16.msra.mxu0 %v6957_v50  ;;  %12408 = vmatprep.mubr.msk.bf16.mxu0 %vm484_vm2, %v5888_v62  ;;  %v5891_v50 = vrot.slane %v14998_v6, 2  ;;  %v15442_v62 = vadd.f32 %v3660_v4, %v3361_v57  ;;  %v3366_v39 = vadd.f32 %v12136_v24, %v15058_v9  ;;  %v5509_v6 = vor.u32 %v5508_v8, %v5507_v37  ;;  %v18133_v37 = vld [vmem:[#allocation22_spill] sm:$0xff] }
 0x226   : > { %v3673_v33 = vpop.f32.mrf.mxu0  ;;  %12885 = vmatprep.subr.msk.bf16.mxu0 %vm545_vm0, %v15412_v16  ;;  %12366 = vmatprep.mubr.msk.bf16.mxu1 %vm484_vm2, %v5506_v13  ;;  %v3277_v20 = vpop.f32.mrf.mxu1  ;;  %v5513_v18 = vor.u32 %v5512_v3, %v5511_v47  ;;  %v18132_v9 = vshrl.u32 %v15040_v14, 16 }
 0x227   : > { %12884 = vmatprep.subr.msk.bf16.mxu1 %vm545_vm0, %v15437_v48  ;;  %v15449_v12 = vadd.f32 %v12178_v27, %v3366_v39  ;;  %v3364_v44 = vadd.f32 %v3277_v20, %v18131_v36  ;;  %v5892_v61 = vsel %vm1724_vm5, %v5889_v35, %v5891_v50  ;;  %v5510_v47 = vsel %vm1328_vm4, %v5505_v25, %v5509_v6  ;;  %v18137_v25 = vld [vmem:[#allocation18_spill] sm:$0xff] }
 0x228   : > { %v12179_v53 = vpop.f32.mrf.mxu0  ;;  %v5515_v38 = vrot.slane %v18132_v9, 1  ;;  %v12137_v2 = vpop.f32.mrf.mxu1  ;;  %v18134_v27 = vshll.u32 %v15040_v14, 16  ;;  %v5514_v57 = vsel %vm1328_vm4, %v5509_v6, %v5513_v18  ;;  %v5893_v35 = vrot.slane %v15040_v14, 2 }
 0x229   : > { %v15455_v13 = vadd.f32 %v3673_v33, %v3364_v44  ;;  %v3367_v8 = vadd.f32 %v12137_v2, %v18133_v37  ;;  %v18135_v33 = vshrl.u32 %v15054_v59, 16  ;;  %v18136_v39 = vshll.u32 %v15054_v59, 16 }
 0x22a   : > { %v3676_v4 = vpop.f32.mrf.mxu0  ;;  %v5516_v5 = vrot.slane %v18134_v27, 2  ;;  %v3280_v3 = vpop.f32.mrf.mxu1  ;;  %v5895_v9 = vrot.slane %v15054_v59, 2 }
 0x22b   : > { %v5519_v24 = vrot.slane %v18135_v33, 1  ;;  %v5520_v20 = vrot.slane %v18136_v39, 2  ;;  %v15469_v36 = vadd.f32 %v12179_v53, %v3367_v8  ;;  %12367 = vmatmul.mubr.msk.bf16.gmra.mxu1 %vm484_vm2, %v5510_v47  ;;  %v5894_v53 = vsel %vm1724_vm5, %v5891_v50, %v5893_v35 }
 0x22c   : > { %v12182_v30 = vpop.f32.mrf.mxu0  ;;  %12409 = vmatmul.mubr.msk.bf16.gmra.mxu0 %vm484_vm2, %v5890_v7  ;;  %v3365_v7 = vadd.f32 %v3280_v3, %v18137_v25  ;;  %v12140_v2 = vpop.f32.mrf.mxu1  ;;  %12370 = vmatprep.mubr.msk.bf16.mxu1 %vm484_vm2, %v5514_v57  ;;  %v5517_v37 = vor.u32 %v5516_v5, %v5515_v38  ;;  %v5896_v39 = vsel %vm1724_vm5, %v5893_v35, %v5895_v9  ;;  %v18140_v50 = vshll.u32 %v15082_v0, 16 }
 0x22d   : > { %12412 = vmatprep.mubr.msk.bf16.mxu0 %vm484_vm2, %v5892_v61  ;;  %v3370_v14 = vadd.f32 %v12140_v2, %v15098_v15  ;;  %v5521_v8 = vor.u32 %v5520_v20, %v5519_v24  ;;  %v5897_v35 = vrot.slane %v15082_v0, 2  ;;  %v18141_v20 = vshrl.u32 %v15096_v22, 16 }
 0x22e   : > { %v3689_v44 = vpop.f32.mrf.mxu0  ;;  %v15474_v6 = vadd.f32 %v3676_v4, %v3365_v7  ;;  %v3293_v27 = vpop.f32.mrf.mxu1  ;;  %v18138_v4 = vshrl.u32 %v15082_v0, 16  ;;  %v18139_v7 = vld [vmem:[#allocation23_spill] sm:$0xff]  ;;  %v5518_v5 = vsel %vm1328_vm4, %v5513_v18, %v5517_v37  ;;  %v18142_v2 = vshll.u32 %v15096_v22, 16  ;;  %v18143_v18 = vld [vmem:[#allocation24_spill] sm:$0xff] }
 0x22f   : > { %v15479_v33 = vadd.f32 %v12182_v30, %v3370_v14  ;;  %v3368_v3 = vadd.f32 %v3293_v27, %v15103_v45  ;;  %v5524_v30 = vrot.slane %v18140_v50, 2  ;;  %v5522_v24 = vsel %vm1328_vm4, %v5517_v37, %v5521_v8 }
 0x230   : > { %v12183_v61 = vpop.f32.mrf.mxu0  ;;  %v5523_v47 = vrot.slane %v18138_v4, 1  ;;  %v12141_v25 = vpop.f32.mrf.mxu1  ;;  %v5528_v14 = vrot.slane %v18142_v2, 2  ;;  %v5899_v4 = vrot.slane %v15096_v22, 2 }
 0x231   : > { %v15485_v15 = vadd.f32 %v3689_v44, %v3368_v3  ;;  %v3371_v57 = vadd.f32 %v12141_v25, %v18139_v7  ;;  %v5527_v44 = vrot.slane %v18141_v20, 1 }
 0x232   : > { %v3692_v59 = vpop.f32.mrf.mxu0  ;;  %v3296_v45 = vpop.f32.mrf.mxu1  ;;  %v5525_v7 = vor.u32 %v5524_v30, %v5523_v47  ;;  %v5900_v2 = vsel %vm1724_vm5, %v5897_v35, %v5899_v4 }
 0x233   : > { %v15499_v27 = vadd.f32 %v12183_v61, %v3371_v57  ;;  %12371 = vmatmul.mubr.msk.bf16.gmra.mxu1 %vm484_vm2, %v5518_v5  ;;  %v5898_v61 = vsel %vm1724_vm5, %v5895_v9, %v5897_v35  ;;  %v5529_v57 = vor.u32 %v5528_v14, %v5527_v44  ;;  %v18146_v9 = vshll.u32 %v15122_v58, 16 }
 0x234   : > { %v12186_v38 = vpop.f32.mrf.mxu0  ;;  %12413 = vmatmul.mubr.msk.bf16.gmra.mxu0 %vm484_vm2, %v5894_v53  ;;  %v3369_v53 = vadd.f32 %v3296_v45, %v18143_v18  ;;  %v12144_v25 = vpop.f32.mrf.mxu1  ;;  %12374 = vmatprep.mubr.msk.bf16.mxu1 %vm484_vm2, %v5522_v24  ;;  %v5526_v30 = vsel %vm1328_vm4, %v5521_v8, %v5525_v7  ;;  %v5901_v35 = vrot.slane %v15122_v58, 2  ;;  %v18147_v14 = vshrl.u32 %v15136_v32, 16  ;;  %v18149_v8 = vld [vmem:[#allocation26_spill] sm:$0xff] }
 0x235   : > { %12416 = vmatprep.mubr.msk.bf16.mxu0 %vm484_vm2, %v5896_v39  ;;  %v3374_v0 = vadd.f32 %v12144_v25, %v15138_v51  ;;  %v5530_v44 = vsel %vm1328_vm4, %v5525_v7, %v5529_v57  ;;  %v18148_v25 = vshll.u32 %v15136_v32, 16 }
 0x236   : > { %v3705_v3 = vpop.f32.mrf.mxu0  ;;  %v15504_v37 = vadd.f32 %v3692_v59, %v3369_v53  ;;  %v3309_v50 = vpop.f32.mrf.mxu1  ;;  %v18144_v59 = vshrl.u32 %v15122_v58, 16  ;;  %v18145_v53 = vld [vmem:[#allocation25_spill] sm:$0xff] }
 0x237   : > { %v15509_v20 = vadd.f32 %v12186_v38, %v3374_v0  ;;  %v3372_v45 = vadd.f32 %v3309_v50, %v15143_v42  ;;  %v5532_v38 = vrot.slane %v18146_v9, 2  ;;  %v5536_v0 = vrot.slane %v18148_v25, 2 }
 0x238   : > { %v12187_v39 = vpop.f32.mrf.mxu0  ;;  %v5531_v5 = vrot.slane %v18144_v59, 1  ;;  %v12145_v18 = vpop.f32.mrf.mxu1  ;;  %v5903_v59 = vrot.slane %v15136_v32, 2 }
 0x239   : > { %v15515_v51 = vadd.f32 %v3705_v3, %v3372_v45  ;;  %v3375_v24 = vadd.f32 %v12145_v18, %v18145_v53  ;;  %v5535_v3 = vrot.slane %v18147_v14, 1 }
 0x23a   : > { %v3708_v22 = vpop.f32.mrf.mxu0  ;;  %v3312_v42 = vpop.f32.mrf.mxu1  ;;  %v5533_v53 = vor.u32 %v5532_v38, %v5531_v5  ;;  %v5904_v25 = vsel %vm1724_vm5, %v5901_v35, %v5903_v59 }
 0x23b   : > { %v15529_v50 = vadd.f32 %v12187_v39, %v3375_v24  ;;  %12375 = vmatmul.mubr.msk.bf16.gmra.mxu1 %vm484_vm2, %v5526_v30  ;;  %v5902_v39 = vsel %vm1724_vm5, %v5899_v4, %v5901_v35  ;;  %v5537_v24 = vor.u32 %v5536_v0, %v5535_v3  ;;  %v18152_v4 = vshll.u32 %v15162_v23, 16 }
 0x23c   : > { %v12190_v47 = vpop.f32.mrf.mxu0  ;;  %12417 = vmatmul.mubr.msk.bf16.gmra.mxu0 %vm484_vm2, %v5898_v61  ;;  %v3373_v61 = vadd.f32 %v3312_v42, %v18149_v8  ;;  %v12148_v18 = vpop.f32.mrf.mxu1  ;;  %12378 = vmatprep.mubr.msk.bf16.mxu1 %vm484_vm2, %v5530_v44  ;;  %v5534_v38 = vsel %vm1328_vm4, %v5529_v57, %v5533_v53  ;;  %v5905_v35 = vrot.slane %v15162_v23, 2  ;;  %v18153_v0 = vshrl.u32 %v15176_v41, 16  ;;  %v18156_v57 = vld [vmem:[#allocation28_spill] sm:$0xff] }
 0x23d   : > { %12420 = vmatprep.mubr.msk.bf16.mxu0 %vm484_vm2, %v5900_v2  ;;  %v3378_v58 = vadd.f32 %v12148_v18, %v15178_v34  ;;  %v5538_v3 = vsel %vm1328_vm4, %v5533_v53, %v5537_v24  ;;  %v18154_v18 = vshll.u32 %v15176_v41, 16 }
 0x23e   : > { %v3721_v45 = vpop.f32.mrf.mxu0  ;;  %v15534_v7 = vadd.f32 %v3708_v22, %v3373_v61  ;;  %v3325_v9 = vpop.f32.mrf.mxu1  ;;  %v18150_v22 = vshrl.u32 %v15162_v23, 16  ;;  %v18151_v61 = vld [vmem:[#allocation27_spill] sm:$0xff] }
 0x23f   : > { %v15539_v14 = vadd.f32 %v12190_v47, %v3378_v58  ;;  %v3376_v42 = vadd.f32 %v3325_v9, %v15183_v1  ;;  %v5540_v47 = vrot.slane %v18152_v4, 2  ;;  %v5544_v58 = vrot.slane %v18154_v18, 2 }
 0x240   : > { %v12191_v2 = vpop.f32.mrf.mxu0  ;;  %v5539_v30 = vrot.slane %v18150_v22, 1  ;;  %v12149_v8 = vpop.f32.mrf.mxu1  ;;  %v5907_v22 = vrot.slane %v15176_v41, 2 }
 0x241   : > { %v15545_v34 = vadd.f32 %v3721_v45, %v3376_v42  ;;  %v3379_v44 = vadd.f32 %v12149_v8, %v18151_v61  ;;  %v5543_v45 = vrot.slane %v18153_v0, 1 }
 0x242   : > { %v3724_v32 = vpop.f32.mrf.mxu0  ;;  %v3328_v1 = vpop.f32.mrf.mxu1  ;;  %v5541_v61 = vor.u32 %v5540_v47, %v5539_v30  ;;  %v5908_v18 = vsel %vm1724_vm5, %v5905_v35, %v5907_v22 }
 0x243   : > { %v15559_v9 = vadd.f32 %v12191_v2, %v3379_v44  ;;  %12379 = vmatmul.mubr.msk.bf16.gmra.mxu1 %vm484_vm2, %v5534_v38  ;;  %v5906_v2 = vsel %vm1724_vm5, %v5903_v59, %v5905_v35  ;;  %v5545_v44 = vor.u32 %v5544_v58, %v5543_v45  ;;  %v18162_v59 = vshll.u32 %v15202_v60, 16 }
 0x244   : > { %v12238_v5 = vpop.f32.mrf.mxu0  ;;  %12421 = vmatmul.mubr.msk.bf16.gmra.mxu0 %vm484_vm2, %v5902_v39  ;;  %v3377_v39 = vadd.f32 %v3328_v1, %v18156_v57  ;;  %v12196_v8 = vpop.f32.mrf.mxu1  ;;  %12382 = vmatprep.mubr.msk.bf16.mxu1 %vm484_vm2, %v5538_v3  ;;  %v5542_v47 = vsel %vm1328_vm4, %v5537_v24, %v5541_v61  ;;  %v5909_v35 = vrot.slane %v15202_v60, 2  ;;  %v18163_v58 = vshrl.u32 %v15224_v10, 16  ;;  %v18166_v24 = vld [vmem:[#allocation4_spill] sm:$0xff] }
 0x245   : > { %12424 = vmatprep.mubr.msk.bf16.mxu0 %vm484_vm2, %v5904_v25  ;;  %18155 = vst [vmem:[#allocation11_spill] sm:$0xff] %v15559_v9  ;;  %v4056_v23 = vadd.f32 %v12196_v8, %v15226_v31  ;;  %v5546_v45 = vsel %vm1328_vm4, %v5541_v61, %v5545_v44  ;;  %v18164_v8 = vshll.u32 %v15224_v10, 16 }
 0x246   : > { %v4333_v42 = vpop.f32.mrf.mxu0  ;;  %v15564_v53 = vadd.f32 %v3724_v32, %v3377_v39  ;;  %v3895_v4 = vpop.f32.mrf.mxu1  ;;  %v18159_v32 = vshrl.u32 %v15202_v60, 16  ;;  %v18161_v39 = vld [vmem:[#allocation2_spill] sm:$0xff] }
 0x247   : > { %v15569_v0 = vadd.f32 %v12238_v5, %v4056_v23  ;;  %v4054_v1 = vadd.f32 %v3895_v4, %v15231_v55  ;;  %v5548_v5 = vrot.slane %v18162_v59, 2  ;;  %v5552_v23 = vrot.slane %v18164_v8, 2 }
 0x248   : > { %18157 = vst [vmem:[#allocation12_spill] sm:$0xff] %v15564_v53  ;;  %v12239_v25 = vpop.f32.mrf.mxu0  ;;  %v5547_v38 = vrot.slane %v18159_v32, 1  ;;  %v12197_v57 = vpop.f32.mrf.mxu1  ;;  %v5911_v32 = vrot.slane %v15224_v10, 2 }
 0x249   : > { %18158 = vst [vmem:[#allocation17_spill] sm:$0xff] %v15569_v0  ;;  %v15575_v31 = vadd.f32 %v4333_v42, %v4054_v1  ;;  %v4057_v3 = vadd.f32 %v12197_v57, %v18161_v39  ;;  %v5551_v42 = vrot.slane %v18163_v58, 1  ;;  %v18194_v0 = vld [vmem:[#allocation30_spill] sm:$0xff] }
 0x24a   : > { %v4336_v41 = vpop.f32.mrf.mxu0  ;;  %v3898_v55 = vpop.f32.mrf.mxu1  ;;  %v5549_v39 = vor.u32 %v5548_v5, %v5547_v38  ;;  %v18174_v5 = vld [vmem:[#allocation8_spill] sm:$0xff] }
 0x24b   : > { %18160 = vst [vmem:[#allocation19_spill] sm:$0xff] %v15575_v31  ;;  %v15589_v4 = vadd.f32 %v12239_v25, %v4057_v3  ;;  %12383 = vmatmul.mubr.msk.bf16.gmra.mxu1 %vm484_vm2, %v5542_v47  ;;  %v5910_v25 = vsel %vm1724_vm5, %v5907_v22, %v5909_v35  ;;  %v5553_v3 = vor.u32 %v5552_v23, %v5551_v42  ;;  %v18170_v47 = vld [vmem:[#allocation3_spill] sm:$0xff] }
 0x24c   : > { %v12242_v30 = vpop.f32.mrf.mxu0  ;;  %12425 = vmatmul.mubr.msk.bf16.gmra.mxu0 %vm484_vm2, %v5906_v2  ;;  %v4055_v2 = vadd.f32 %v3898_v55, %v18166_v24  ;;  %v12200_v57 = vpop.f32.mrf.mxu1  ;;  %12386 = vmatprep.mubr.msk.bf16.mxu1 %vm484_vm2, %v5546_v45  ;;  %v18169_v55 = vld [vmem:[#allocation7_spill] sm:$0xff]  ;;  %v5912_v24 = vsel %vm1724_vm5, %v5909_v35, %v5911_v32  ;;  %v5550_v45 = vsel %vm1328_vm4, %v5545_v44, %v5549_v39  ;;  %v5913_v23 = vrot.slane %v18170_v47, 2 }
 0x24d   : > { %12428 = vmatprep.mubr.msk.bf16.mxu0 %vm484_vm2, %v5908_v18  ;;  %18165 = vst [vmem:[#allocation20_spill] sm:$0xff] %v15589_v4  ;;  %v4060_v60 = vadd.f32 %v12200_v57, %v15266_v21  ;;  %v18172_v21 = vshll.u32 %v18170_v47, 16  ;;  %v5554_v42 = vsel %vm1328_vm4, %v5549_v39, %v5553_v3  ;;  %v6226_v4 = vld [vmem:[%s13240_s23 + $0x38] sm:$0xf] }
 0x24e   : > { %v4349_v1 = vpop.f32.mrf.mxu0  ;;  %v15594_v61 = vadd.f32 %v4336_v41, %v4055_v2  ;;  %v3911_v59 = vpop.f32.mrf.mxu1  ;;  %v18171_v41 = vshrl.u32 %v18170_v47, 16  ;;  %v6221_v47 = vld [vmem:[%s13240_s23 + $0x24] sm:$0xf] }
 0x24f   : > { %v15599_v58 = vadd.f32 %v12242_v30, %v4060_v60  ;;  %v4058_v8 = vadd.f32 %v3911_v59, %v18169_v55  ;;  %v5556_v57 = vrot.slane %v18172_v21, 2  ;;  %v18175_v60 = vshrl.u32 %v15264_v29, 16  ;;  %v6219_v21 = vld [vmem:[%s13240_s23 + $0x1c] sm:$0xc] }
 0x250   : > { %18167 = vst [vmem:[#allocation14_spill] sm:$0xff] %v15594_v61  ;;  %v12243_v18 = vpop.f32.mrf.mxu0  ;;  %v5555_v2 = vrot.slane %v18171_v41, 1  ;;  %v12201_v43 = vpop.f32.mrf.mxu1  ;;  %v18176_v59 = vshll.u32 %v15264_v29, 16  ;;  %v6225_v61 = vld [vmem:[%s13240_s23 + $0x34] sm:$0xf] }
 0x251   : > { %18168 = vst [vmem:[#allocation21_spill] sm:$0xff] %v15599_v58  ;;  %v15607_v38 = vadd.f32 %v4349_v1, %v4058_v8  ;;  %v4061_v22 = vadd.f32 %v12201_v43, %v18174_v5  ;;  %v5559_v1 = vrot.slane %v18175_v60, 1  ;;  %v18178_v8 = vld [vmem:[#allocation5_spill] sm:$0xff]  ;;  %v15625_v5 = vld [vmem:[%s13240_s23 + $0x20] sm:$0xf]  ;;  %v15691_v9 = vcombine.low %v6225_v61, %v6226_v4 }
 0x252   : > { %v4352_v10 = vpop.f32.mrf.mxu0  ;;  %v3914_v35 = vpop.f32.mrf.mxu1  ;;  %v5560_v55 = vrot.slane %v18176_v59, 2  ;;  %18179 = vst [vmem:[#allocation18_spill] sm:$0xff] %v15625_v5  ;;  %v18181_v60 = vld [vmem:[#allocation10_spill] sm:$0xff] }
 0x253   : > { %18173 = vst [vmem:[#allocation16_spill] sm:$0xff] %v15607_v38  ;;  %v15619_v43 = vadd.f32 %v12243_v18, %v4061_v22  ;;  %v4059_v44 = vadd.f32 %v3914_v35, %v18178_v8  ;;  %12387 = vmatmul.mubr.msk.bf16.gmra.mxu1 %vm484_vm2, %v5550_v45  ;;  %v5914_v22 = vsel %vm1724_vm5, %v5911_v32, %v5913_v23 }
 0x254   : > { %v12246_v30 = vpop.f32.mrf.mxu0  ;;  %12429 = vmatmul.mubr.msk.bf16.gmra.mxu0 %vm484_vm2, %v5910_v25  ;;  %v5915_v25 = vrot.slane %v15264_v29, 2  ;;  %v12204_v39 = vpop.f32.mrf.mxu1  ;;  %12390 = vmatprep.mubr.msk.bf16.mxu1 %vm484_vm2, %v5554_v42  ;;  %v15634_v29 = vor.u32 %v5560_v55, %v5559_v1  ;;  %v15637_v35 = vcombine.low %v6219_v21, %v15625_v5  ;;  %v18185_v42 = vld [vmem:[#allocation9_spill] sm:$0xff] }
 0x255   : > { %12432 = vmatprep.mubr.msk.bf16.mxu0 %vm484_vm2, %v5912_v24  ;;  %18177 = vst [vmem:[#allocation22_spill] sm:$0xff] %v15619_v43  ;;  %v5557_v24 = vor.u32 %v5556_v57, %v5555_v2  ;;  %v15629_v38 = vadd.f32 %v4352_v10, %v4059_v44  ;;  %v4064_v58 = vadd.f32 %v12204_v39, %v18181_v60  ;;  %v18183_v2 = vld [vmem:[#allocation6_spill] sm:$0xff]  ;;  %v18184_v44 = vld [vmem:[#allocation29_spill] sm:$0xff]  ;;  %v18186_v60 = vshrl.u32 %v18185_v42, 16 }
 0x256   : > { %v4365_v41 = vpop.f32.mrf.mxu0  ;;  %v3927_v18 = vpop.f32.mrf.mxu1  ;;  %v5916_v45 = vsel %vm1724_vm5, %v5913_v23, %v5915_v25  ;;  %v15644_v39 = vcombine.low %v6221_v47, %v18184_v44  ;;  %v18187_v55 = vshll.u32 %v18185_v42, 16  ;;  %v18190_v47 = vshrl.u32 %v15299_v40, 16 }
 0x257   : > { %18180 = vst [vmem:[#allocation23_spill] sm:$0xff] %v15629_v38  ;;  %v15639_v8 = vadd.f32 %v12246_v30, %v4064_v58  ;;  %v4062_v57 = vadd.f32 %v3927_v18, %v18183_v2  ;;  %v5563_v38 = vrot.slane %v18186_v60, 1  ;;  %v5558_v1 = vsel %vm1328_vm4, %v5553_v3, %v5557_v24  ;;  %v15653_v30 = vld [vmem:[%s13240_s23 + $0xb4] ss:$0 sps:$4 sm:$0x33]   ;;  %v18189_v2 = vld [vmem:[#allocation13_spill] sm:$0xff] }
 0x258   : > { %v12247_v59 = vpop.f32.mrf.mxu0  ;;  %v12205_v32 = vpop.f32.mrf.mxu1  ;;  %v5564_v21 = vrot.slane %v18187_v55, 2  ;;  %v5917_v58 = vrot.slane %v18185_v42, 2  ;;  %v5567_v60 = vrot.slane %v18190_v47, 1  ;;  %v18191_v3 = vshll.u32 %v15299_v40, 16  ;;  %v6224_v55 = vld [vmem:[%s13240_s23 + $0x30] sm:$0xf] }
 0x259   : > { %18182 = vst [vmem:[#allocation24_spill] sm:$0xff] %v15639_v8  ;;  %v15655_v18 = vadd.f32 %v4365_v41, %v4062_v57  ;;  %v4065_v23 = vadd.f32 %v12205_v32, %v18189_v2  ;;  %v5562_v42 = vsel %vm1328_vm4, %v5557_v24, %v15634_v29  ;;  %v6709_v57 = vshrl.u32 %v15637_v35, 16  ;;  %v18193_v2 = vld [vmem:[#allocation15_spill] sm:$0xff] }
 0x25a   : > { %v4368_v10 = vpop.f32.mrf.mxu0  ;;  %v5568_v44 = vrot.slane %v18191_v3, 2  ;;  %v3930_v8 = vpop.f32.mrf.mxu1  ;;  %v5572_v41 = vshrl.u32 %v15653_v30, 16  ;;  %v5575_v31 = vshll.u32 %v15653_v30, 16  ;;  %v5918_v43 = vsel %vm1724_vm5, %v5915_v25, %v5917_v58 }
 0x25b   : > { %18188 = vst [vmem:[#allocation25_spill] sm:$0xff] %v15655_v18  ;;  %v15670_v32 = vadd.f32 %v12247_v59, %v4065_v23  ;;  %v4063_v47 = vadd.f32 %v3930_v8, %v18193_v2  ;;  %12391 = vmatmul.mubr.msk.bf16.gmra.mxu1 %vm484_vm2, %v5558_v1  ;;  %v15681_v59 = vcombine.low %v18194_v0, %v6224_v55  ;;  %v18197_v25 = vshll.u32 %v15644_v39, 16 }
 0x25c   : > { %v12250_v5 = vpop.f32.mrf.mxu0  ;;  %12433 = vmatmul.mubr.msk.bf16.gmra.mxu0 %vm484_vm2, %v5914_v22  ;;  %v6712_v22 = vshll.u32 %v15637_v35, 16  ;;  %v12208_v24 = vpop.f32.mrf.mxu1  ;;  %12394 = vmatprep.mubr.msk.bf16.mxu1 %vm484_vm2, %v5562_v42  ;;  %v5569_v3 = vor.u32 %v5568_v44, %v5567_v60 }
 0x25d   : > { %12436 = vmatprep.mubr.msk.bf16.mxu0 %vm484_vm2, %v5916_v45  ;;  %18192 = vst [vmem:[#allocation26_spill] sm:$0xff] %v15670_v32  ;;  %v5565_v45 = vor.u32 %v5564_v21, %v5563_v38  ;;  %v15683_v23 = vadd.f32 %v4368_v10, %v4063_v47  ;;  %v4068_v8 = vadd.f32 %v12208_v24, %v15344_v56  ;;  %v18195_v38 = vrot.slane %v15299_v40, 2 }
 0x25e   : > { %v4381_v18 = vpop.f32.mrf.mxu0  ;;  %v3943_v32 = vpop.f32.mrf.mxu1  ;;  %v6711_v21 = vrot.slane %v6709_v57, 2  ;;  %v6714_v53 = vrot.slane %v6712_v22, 3  ;;  %v18196_v47 = vshrl.u32 %v15644_v39, 16  ;;  %v6722_v44 = vrot.slane %v18197_v25, 3 }
 0x25f   : > { %v5920_v1 = vsel %vm1724_vm5, %v5917_v58, %v18195_v38  ;;  %v15693_v55 = vadd.f32 %v12250_v5, %v4068_v8  ;;  %v4066_v10 = vadd.f32 %v3943_v32, %v15351_v17  ;;  %v5574_v24 = vrot.slane %v5572_v41, 1  ;;  %v6228_v38 = vld [vmem:[%s13240_s23 + $0x40] sm:$0xf] }
 0x260   : > { %v12251_v2 = vpop.f32.mrf.mxu0  ;;  %v6719_v42 = vrot.slane %v18196_v47, 2  ;;  %v12209_v60 = vpop.f32.mrf.mxu1  ;;  %v5577_v58 = vrot.slane %v5575_v31, 2  ;;  %v17864_v57 = vshrl.u32 %v15681_v59, 16  ;;  %v17863_v4 = vshll.u32 %v15681_v59, 16  ;;  %v6230_v31 = vld [vmem:[%s13240_s23 + $0x48] sm:$0xf] }
 0x261   : > { %v15702_v61 = vadd.f32 %v4381_v18, %v4066_v10  ;;  %v4069_v17 = vadd.f32 %v12209_v60, %v15361_v11  ;;  %v5566_v22 = vsel %vm1328_vm4, %v15634_v29, %v5565_v45  ;;  %v5921_v32 = vrot.slane %v15653_v30, 2  ;;  %v6227_v11 = vld [vmem:[%s13240_s23 + $0x3c] sm:$0xf]  ;;  %v6229_v18 = vld [vmem:[%s13240_s23 + $0x44] sm:$0xf] }
 0x262   : > { %v4384_v56 = vpop.f32.mrf.mxu0  ;;  %v3946_v8 = vpop.f32.mrf.mxu1  ;;  %v5570_v41 = vsel %vm1328_vm4, %v5565_v45, %v5569_v3  ;;  %v6715_v47 = vor.u32 %v6714_v53, %v6711_v21  ;;  %v6723_v30 = vor.u32 %v6722_v44, %v6719_v42  ;;  %v5578_v45 = vor.u32 %v5577_v58, %v5574_v24 }
 0x263   : > { %v15715_v10 = vadd.f32 %v12251_v2, %v4069_v17  ;;  %v4067_v29 = vadd.f32 %v3946_v8, %v15366_v19  ;;  %12395 = vmatmul.mubr.msk.bf16.gmra.mxu1 %vm484_vm2, %v5566_v22  ;;  %v6731_v60 = vrot.slane %v17863_v4, 3  ;;  %v18198_v53 = vrot.slane %v15299_v40, 2 }
 0x264   : > { %v12254_v5 = vpop.f32.mrf.mxu0  ;;  %12437 = vmatmul.mubr.msk.bf16.gmra.mxu0 %vm484_vm2, %v5918_v43  ;;  %v12212_v25 = vpop.f32.mrf.mxu1  ;;  %12398 = vmatprep.mubr.msk.bf16.mxu1 %vm484_vm2, %v5570_v41  ;;  %v15732_v42 = vcombine.low %v6227_v11, %v6228_v38  ;;  %v6365_v24 = vrot.slane %v15637_v35, 2  ;;  %v6366_v58 = vrot.slane %v15644_v39, 2  ;;  %v18199_v17 = vshrl.u32 %v15691_v9, 16 }
 0x265   : > { %12440 = vmatprep.mubr.msk.bf16.mxu0 %vm484_vm2, %v5920_v1  ;;  %v6728_v1 = vrot.slane %v17864_v57, 2  ;;  %v15725_v0 = vadd.f32 %v4384_v56, %v4067_v29  ;;  %v4072_v2 = vadd.f32 %v12212_v25, %v15373_v46  ;;  %v5922_v21 = vsel %vm1724_vm5, %v18198_v53, %v5921_v32 }
 0x266   : > { %v4397_v43 = vpop.f32.mrf.mxu0  ;;  %v3959_v44 = vpop.f32.mrf.mxu1  ;;  %v6737_v56 = vrot.slane %v18199_v17, 2  ;;  %v18200_v22 = vshll.u32 %v15691_v9, 16  ;;  %v6724_v32 = vsel %vm2551_vm6, %v6715_v47, %v6723_v30  ;;  %v15744_v11 = vcombine.low %v6229_v18, %v6230_v31  ;;  %v6231_v18 = vld [vmem:[%s13240_s23 + $0x4c] sm:$0xf]  ;;  %v6234_v17 = vld [vmem:[%s13240_s23 + $0x58] sm:$0xf] }
 0x267   : > { %v15740_v8 = vadd.f32 %v12254_v5, %v4072_v2  ;;  %v4070_v41 = vadd.f32 %v3959_v44, %v15377_v49  ;;  %v5579_v38 = vsel %vm1328_vm4, %v5569_v3, %v5578_v45  ;;  %v6732_v29 = vor.u32 %v6731_v60, %v6728_v1  ;;  %v6233_v44 = vld [vmem:[%s13240_s23 + $0x54] sm:$0xf] }
 0x268   : > { %v12255_v19 = vpop.f32.mrf.mxu0  ;;  %v6740_v46 = vrot.slane %v18200_v22, 3  ;;  %v12213_v35 = vpop.f32.mrf.mxu1  ;;  %v17858_v49 = vshrl.u32 %v15732_v42, 16  ;;  %v17855_v47 = vshll.u32 %v15732_v42, 16  ;;  %v6367_v31 = vsel %vm1724_vm5, %v6365_v24, %v6366_v58 }
 0x269   : > { %v15747_v25 = vadd.f32 %v4397_v43, %v4070_v41  ;;  %v4073_v53 = vadd.f32 %v12213_v35, %v15389_v26  ;;  %v6232_v43 = vld [vmem:[%s13240_s23 + $0x50] sm:$0xf]  ;;  %v17857_v60 = vshrl.u32 %v15744_v11, 16  ;;  %v6368_v24 = vrot.slane %v15681_v59, 2 }
 0x26a   : > { %v4400_v40 = vpop.f32.mrf.mxu0  ;;  %v3962_v2 = vpop.f32.mrf.mxu1  ;;  %v15755_v3 = vor.u32 %v6740_v46, %v6737_v56  ;;  %v6733_v56 = vsel %vm2551_vm6, %v6723_v30, %v6732_v29  ;;  %v6370_v46 = vrot.slane %v15691_v9, 2  ;;  %v6749_v35 = vrot.slane %v17855_v47, 3 }
 0x26b   : > { %v15759_v45 = vadd.f32 %v12255_v19, %v4073_v53  ;;  %v4071_v26 = vadd.f32 %v3962_v2, %v15394_v54  ;;  %12399 = vmatmul.mubr.msk.bf16.gmra.mxu1 %vm484_vm2, %v5579_v38  ;;  %v7695_v53 = vsel %vm545_vm0, %v15412_v16, 0  ;;  %v15784_v2 = vcombine.low %v6233_v44, %v6234_v17 }
 0x26c   : > { %v12258_v5 = vpop.f32.mrf.mxu0  ;;  %12441 = vmatmul.mubr.msk.bf16.gmra.mxu0 %vm484_vm2, %v5922_v21  ;;  %v17856_v21 = vshll.u32 %v15744_v11, 16  ;;  %v12216_v22 = vpop.f32.mrf.mxu1  ;;  %12446 = vmatprep.mubr.msk.bf16.mxu1 %vm484_vm2, %v6367_v31  ;;  %v6742_v30 = vsel %vm2551_vm6, %v6732_v29, %v15755_v3  ;;  %v6369_v29 = vsel %vm1724_vm5, %v6366_v58, %v6368_v24  ;;  %v6371_v17 = vsel %vm1724_vm5, %v6368_v24, %v6370_v46 }
 0x26d   : > { %12488 = vmatprep.mubr.msk.bf16.mxu0 %vm484_vm2, %v6724_v32  ;;  %v15770_v19 = vadd.f32 %v4400_v40, %v4071_v26  ;;  %v4076_v54 = vadd.f32 %v12216_v22, %v15399_v28  ;;  %v6746_v32 = vrot.slane %v17858_v49, 2  ;;  %v15782_v40 = vcombine.low %v6231_v18, %v6232_v43 }
 0x26e   : > { %v4413_v1 = vpop.f32.mrf.mxu0  ;;  %v3975_v38 = vpop.f32.mrf.mxu1  ;;  %v6755_v22 = vrot.slane %v17857_v60, 2  ;;  %v6758_v16 = vrot.slane %v17856_v21, 3  ;;  %v7300_v18 = vsel %vm545_vm0, %v15437_v48, 0  ;;  %v6372_v21 = vrot.slane %v15732_v42, 2 }
 0x26f   : > { %v15786_v28 = vadd.f32 %v12258_v5, %v4076_v54  ;;  %v4074_v31 = vadd.f32 %v3975_v38, %v15414_v52  ;;  %v15799_v5 = vld [vmem:[%s17751_s1 + $0x50] sm:$0xf]  ;;  %v6750_v58 = vor.u32 %v6749_v35, %v6746_v32  ;;  %v6235_v54 = vld [vmem:[%s13240_s23 + $0x5c] sm:$0xf]  ;;  %v6236_v38 = vld [vmem:[%s13240_s23 + $0x60] sm:$0xf] }
 0x270   : > { %v12259_v41 = vpop.f32.mrf.mxu0  ;;  %v12217_v47 = vpop.f32.mrf.mxu1  ;;  %v6759_v35 = vor.u32 %v6758_v16, %v6755_v22  ;;  %v15827_v60 = vcombine.low %v6235_v54, %v6236_v38  ;;  %v6374_v49 = vrot.slane %v15744_v11, 2 }
 0x271   : > { %v15801_v43 = vadd.f32 %v4413_v1, %v4074_v31  ;;  %v4077_v52 = vadd.f32 %v12217_v47, %v15430_v63  ;;  %v17861_v1 = vshrl.u32 %v15782_v40, 16  ;;  %v17859_v63 = vshll.u32 %v15782_v40, 16 }
 0x272   : > { %v4416_v26 = vpop.f32.mrf.mxu0  ;;  %v3978_v48 = vpop.f32.mrf.mxu1  ;;  %v17860_v47 = vshrl.u32 %v15784_v2, 16 }
 0x273   : > { %v15815_v31 = vadd.f32 %v12259_v41, %v4077_v52  ;;  %v4075_v24 = vadd.f32 %v3978_v48, %v15442_v62  ;;  %12447 = vmatmul.mubr.msk.bf16.vlgmr.msra.gmra.mxu1 %vm484_vm2, %v6369_v29  ;;  %v6237_v41 = vld [vmem:[%s13240_s23 + $0x64] sm:$0xf]  ;;  %v6238_v52 = vld [vmem:[%s13240_s23 + $0x68] sm:$0xf]  ;;  %v6751_v48 = vsel %vm2551_vm6, %v15755_v3, %v6750_v58  ;;  %v6764_v54 = vrot.slane %v17861_v1, 2 }
 0x274   : > { %v12262_v44 = vpop.f32.mrf.mxu0  ;;  %12489 = vmatmul.mubr.msk.bf16.vlgmr.msra.gmra.mxu0 %vm484_vm2, %v6733_v56  ;;  %v17862_v56 = vshll.u32 %v15784_v2, 16  ;;  %12529 = vmatpush3.bf16.msra.mxu1 %v7300_v18  ;;  %v6767_v38 = vrot.slane %v17859_v63, 3  ;;  %v6241_v1 = vld [vmem:[%s13240_s23 + $0x74] sm:$0xf] }
 0x275   : > { %12571 = vmatpush3.bf16.msra.mxu0 %v7695_v53  ;;  %12492 = vmatprep.mubr.msk.bf16.mxu0 %vm484_vm2, %v6742_v30  ;;  %v15821_v53 = vld [vmem:[%s17751_s1 + $0x4c] sm:$0xf]  ;;  %v12220_v30 = vpop.f32.mrf.mxu1  ;;  %v15831_v62 = vadd.f32 %v4416_v26, %v4075_v24  ;;  %v6773_v26 = vrot.slane %v17860_v47, 2  ;;  %v6760_v24 = vsel %vm2551_vm6, %v6750_v58, %v6759_v35 }
 0x276   : > { %v4429_v32 = vpop.f32.mrf.mxu0  ;;  %12887 = vmatprep.subr.msk.bf16.mxu0 %vm545_vm0, %v15799_v5  ;;  %v4080_v22 = vadd.f32 %v12220_v30, %v15449_v12  ;;  %12450 = vmatprep.mubr.msk.bf16.mxu1 %vm484_vm2, %v6371_v17  ;;  %v6776_v12 = vrot.slane %v17862_v56, 3  ;;  %v15852_v30 = vcombine.low %v6237_v41, %v6238_v52  ;;  %v6375_v41 = vsel %vm1724_vm5, %v6372_v21, %v6374_v49 }
 0x277   : > { %v3991_v29 = vpop.f32.mrf.mxu1  ;;  %12886 = vmatprep.subr.msk.bf16.mxu1 %vm545_vm0, %v15821_v53  ;;  %v6768_v52 = vor.u32 %v6767_v38, %v6764_v54  ;;  %v18203_v54 = vshrl.u32 %v15827_v60, 16 }
 0x278   : > { %v12263_v16 = vpop.f32.mrf.mxu0  ;;  %v15848_v18 = vadd.f32 %v12262_v44, %v4080_v22  ;;  %v4078_v3 = vadd.f32 %v3991_v29, %v15455_v13  ;;  %18201 = vst [vmem:[#allocation27_spill] sm:$0xff] %v15852_v30  ;;  %v6373_v13 = vsel %vm1724_vm5, %v6370_v46, %v6372_v21  ;;  %v6777_v22 = vor.u32 %v6776_v12, %v6773_v26  ;;  %v6240_v29 = vld [vmem:[%s13240_s23 + $0x70] sm:$0xf] }
 0x279   : > { %v12221_v63 = vpop.f32.mrf.mxu1  ;;  %v6376_v21 = vrot.slane %v15782_v40, 2  ;;  %v6782_v38 = vrot.slane %v18203_v54, 2  ;;  %v6378_v46 = vrot.slane %v15784_v2, 2 }
 0x27a   : > { %v4432_v17 = vpop.f32.mrf.mxu0  ;;  %v15856_v56 = vadd.f32 %v4429_v32, %v4078_v3  ;;  %v4081_v4 = vadd.f32 %v12221_v63, %v15469_v36  ;;  %v6239_v32 = vld [vmem:[%s13240_s23 + $0x6c] sm:$0xf]  ;;  %v6778_v57 = vsel %vm2551_vm6, %v6768_v52, %v6777_v22 }
 0x27b   : > { %v3994_v58 = vpop.f32.mrf.mxu1  ;;  %12451 = vmatmul.mubr.msk.bf16.gmra.mxu1 %vm484_vm2, %v6373_v13  ;;  %v6769_v13 = vsel %vm2551_vm6, %v6759_v35, %v6768_v52 }
 0x27c   : > { %v12266_v44 = vpop.f32.mrf.mxu0  ;;  %12493 = vmatmul.mubr.msk.bf16.gmra.mxu0 %vm484_vm2, %v6751_v48  ;;  %v15867_v3 = vadd.f32 %v12263_v16, %v4081_v4  ;;  %v4079_v36 = vadd.f32 %v3994_v58, %v15474_v6  ;;  %v6242_v48 = vld [vmem:[%s13240_s23 + $0x78] sm:$0xf]  ;;  %v18204_v4 = vshll.u32 %v15827_v60, 16  ;;  %12454 = vmatprep.mubr.msk.bf16.mxu1 %vm484_vm2, %v6375_v41  ;;  %v18207_v41 = vshll.u32 %v15852_v30, 16 }
 0x27d   : > { %12496 = vmatprep.mubr.msk.bf16.mxu0 %vm484_vm2, %v6760_v24  ;;  %v12224_v47 = vpop.f32.mrf.mxu1  ;;  %v15884_v24 = vcombine.low %v6239_v32, %v6240_v29  ;;  %v15889_v54 = vcombine.low %v6241_v1, %v6242_v48  ;;  %v6377_v29 = vsel %vm1724_vm5, %v6374_v49, %v6376_v21  ;;  %v6246_v48 = vld [vmem:[%s13240_s23 + $0x88] sm:$0xf] }
 0x27e   : > { %18202 = vst [vmem:[#allocation28_spill] sm:$0xff] %v15867_v3  ;;  %v4445_v63 = vpop.f32.mrf.mxu0  ;;  %v6785_v16 = vrot.slane %v18204_v4, 3  ;;  %v15880_v26 = vadd.f32 %v4432_v17, %v4079_v36  ;;  %v4084_v6 = vadd.f32 %v12224_v47, %v15479_v33  ;;  %v18206_v33 = vshrl.u32 %v15852_v30, 16 }
 0x27f   : > { %v4007_v58 = vpop.f32.mrf.mxu1  ;;  %18205 = vst [vmem:[#allocation2_spill] sm:$0xff] %v15889_v54  ;;  %v6794_v32 = vrot.slane %v18207_v41, 3 }
 0x280   : > { %v12267_v12 = vpop.f32.mrf.mxu0  ;;  %v15891_v3 = vadd.f32 %v12266_v44, %v4084_v6  ;;  %v4082_v17 = vadd.f32 %v4007_v58, %v15485_v15  ;;  %v6791_v47 = vrot.slane %v18206_v33, 2  ;;  %v6786_v4 = vor.u32 %v6785_v16, %v6782_v38  ;;  %v6243_v38 = vld [vmem:[%s13240_s23 + $0x7c] sm:$0xf] }
 0x281   : > { %v12225_v35 = vpop.f32.mrf.mxu1  ;;  %v6379_v58 = vsel %vm1724_vm5, %v6376_v21, %v6378_v46 }
 0x282   : > { %v4448_v36 = vpop.f32.mrf.mxu0  ;;  %v15899_v52 = vadd.f32 %v4445_v63, %v4082_v17  ;;  %v4085_v1 = vadd.f32 %v12225_v35, %v15499_v27  ;;  %v6244_v27 = vld [vmem:[%s13240_s23 + $0x80] sm:$0xf]  ;;  %v6795_v33 = vor.u32 %v6794_v32, %v6791_v47  ;;  %v6380_v35 = vrot.slane %v15827_v60, 2 }
 0x283   : > { %v4010_v6 = vpop.f32.mrf.mxu1  ;;  %12455 = vmatmul.mubr.msk.bf16.gmra.mxu1 %vm484_vm2, %v6377_v29  ;;  %v6787_v21 = vsel %vm2551_vm6, %v6777_v22, %v6786_v4  ;;  %v18211_v32 = vshrl.u32 %v15884_v24, 16 }
 0x284   : > { %v12270_v44 = vpop.f32.mrf.mxu0  ;;  %12497 = vmatmul.mubr.msk.bf16.gmra.mxu0 %vm484_vm2, %v6769_v13  ;;  %v15911_v16 = vadd.f32 %v12267_v12, %v4085_v1  ;;  %v4083_v13 = vadd.f32 %v4010_v6, %v15504_v37  ;;  %12458 = vmatprep.mubr.msk.bf16.mxu1 %vm484_vm2, %v6379_v58  ;;  %v6382_v37 = vrot.slane %v15852_v30, 2  ;;  %v15924_v12 = vcombine.low %v6243_v38, %v6244_v27 }
 0x285   : > { %12500 = vmatprep.mubr.msk.bf16.mxu0 %vm484_vm2, %v6778_v57  ;;  %v12228_v41 = vpop.f32.mrf.mxu1  ;;  %v6245_v57 = vld [vmem:[%s13240_s23 + $0x84] sm:$0xf]  ;;  %v6800_v29 = vrot.slane %v18211_v32, 2  ;;  %v18212_v1 = vshll.u32 %v15884_v24, 16  ;;  %v18213_v6 = vshrl.u32 %v15889_v54, 16 }
 0x286   : > { %18208 = vst [vmem:[#allocation4_spill] sm:$0xff] %v15911_v16  ;;  %v4461_v17 = vpop.f32.mrf.mxu0  ;;  %v15919_v49 = vadd.f32 %v4448_v36, %v4083_v13  ;;  %v4088_v63 = vadd.f32 %v12228_v41, %v15509_v20  ;;  %18210 = vst [vmem:[#allocation3_spill] sm:$0xff] %v15924_v12  ;;  %v18214_v20 = vshll.u32 %v15889_v54, 16  ;;  %v6796_v41 = vsel %vm2551_vm6, %v6786_v4, %v6795_v33  ;;  %v6248_v4 = vld [vmem:[%s13240_s23 + $0x90] sm:$0xf] }
 0x287   : > { %v4023_v47 = vpop.f32.mrf.mxu1  ;;  %v6803_v22 = vrot.slane %v18212_v1, 3  ;;  %v6809_v36 = vrot.slane %v18213_v6, 2  ;;  %v6381_v1 = vsel %vm1724_vm5, %v6378_v46, %v6380_v35 }
 0x288   : > { %18209 = vst [vmem:[#allocation7_spill] sm:$0xff] %v15919_v49  ;;  %v12271_v15 = vpop.f32.mrf.mxu0  ;;  %v6812_v13 = vrot.slane %v18214_v20, 3  ;;  %v15934_v58 = vadd.f32 %v12270_v44, %v4088_v63  ;;  %v4086_v38 = vadd.f32 %v4023_v47, %v15515_v51  ;;  %v15938_v49 = vcombine.low %v6245_v57, %v6246_v48  ;;  %v6247_v63 = vld [vmem:[%s13240_s23 + $0x8c] sm:$0xf]  ;;  %v6250_v51 = vld [vmem:[%s13240_s23 + $0x98] sm:$0xf] }
 0x289   : > { %v12229_v32 = vpop.f32.mrf.mxu1  ;;  %v6383_v57 = vsel %vm1724_vm5, %v6380_v35, %v6382_v37  ;;  %v6804_v46 = vor.u32 %v6803_v22, %v6800_v29  ;;  %v6384_v35 = vrot.slane %v15884_v24, 2 }
 0x28a   : > { %v4464_v27 = vpop.f32.mrf.mxu0  ;;  %18215 = vst [vmem:[#allocation8_spill] sm:$0xff] %v15938_v49  ;;  %v15941_v16 = vadd.f32 %v4461_v17, %v4086_v38  ;;  %v4089_v6 = vadd.f32 %v12229_v32, %v15529_v50  ;;  %v6813_v17 = vor.u32 %v6812_v13, %v6809_v36  ;;  %v17867_v38 = vshll.u32 %v15938_v49, 16  ;;  %v6249_v32 = vld [vmem:[%s13240_s23 + $0x94] sm:$0xf] }
 0x28b   : > { %v4026_v48 = vpop.f32.mrf.mxu1  ;;  %12459 = vmatmul.mubr.msk.bf16.gmra.mxu1 %vm484_vm2, %v6381_v1  ;;  %v18221_v13 = vshll.u32 %v15924_v12, 16  ;;  %v6805_v1 = vsel %vm2551_vm6, %v6795_v33, %v6804_v46  ;;  %v6251_v33 = vld [vmem:[%s13240_s23 + $0x9c] sm:$0xf] }
 0x28c   : > { %18216 = vst [vmem:[#allocation5_spill] sm:$0xff] %v15941_v16  ;;  %v12274_v30 = vpop.f32.mrf.mxu0  ;;  %12501 = vmatmul.mubr.msk.bf16.gmra.mxu0 %vm484_vm2, %v6787_v21  ;;  %v15951_v47 = vadd.f32 %v12271_v15, %v4089_v6  ;;  %v4087_v50 = vadd.f32 %v4026_v48, %v15534_v7  ;;  %v17868_v21 = vshrl.u32 %v15938_v49, 16  ;;  %v15960_v16 = vcombine.low %v6247_v63, %v6248_v4 }
 0x28d   : > { %12504 = vmatprep.mubr.msk.bf16.mxu0 %vm484_vm2, %v6796_v41  ;;  %v12232_v44 = vpop.f32.mrf.mxu1  ;;  %12462 = vmatprep.mubr.msk.bf16.mxu1 %vm484_vm2, %v6383_v57  ;;  %v18220_v7 = vshrl.u32 %v15924_v12, 16  ;;  %v6821_v41 = vrot.slane %v18221_v13, 3  ;;  %v6386_v48 = vrot.slane %v15889_v54, 2  ;;  %v6814_v63 = vsel %vm2551_vm6, %v6804_v46, %v6813_v17 }
 0x28e   : > { %18217 = vst [vmem:[#allocation10_spill] sm:$0xff] %v15951_v47  ;;  %v4477_v20 = vpop.f32.mrf.mxu0  ;;  %18218 = vst [vmem:[#allocation6_spill] sm:$0xff] %v15960_v16  ;;  %v15962_v29 = vadd.f32 %v4464_v27, %v4087_v50  ;;  %v4092_v15 = vadd.f32 %v12232_v44, %v15539_v14  ;;  %v15973_v27 = vcombine.low %v6249_v32, %v6250_v51  ;;  %v6827_v57 = vrot.slane %v17868_v21, 2  ;;  %v18225_v51 = vld [vmem:[#allocation11_spill] sm:$0xff]  ;;  %v6253_v21 = vld [vmem:[%s13240_s23 + $0xa4] sm:$0xf] }
 0x28f   : > { %v6818_v36 = vrot.slane %v18220_v7, 2  ;;  %v4039_v6 = vpop.f32.mrf.mxu1  ;;  %v6830_v50 = vrot.slane %v17867_v38, 3  ;;  %v6387_v38 = vsel %vm1724_vm5, %v6384_v35, %v6386_v48 }
 0x290   : > { %18219 = vst [vmem:[#allocation9_spill] sm:$0xff] %v15962_v29  ;;  %v12275_v22 = vpop.f32.mrf.mxu0  ;;  %18222 = vst [vmem:[#allocation13_spill] sm:$0xff] %v15973_v27  ;;  %v15975_v4 = vadd.f32 %v12274_v30, %v4092_v15  ;;  %v4090_v14 = vadd.f32 %v4039_v6, %v15545_v34  ;;  %v6385_v34 = vsel %vm1724_vm5, %v6382_v37, %v6384_v35 }
 0x291   : > { %v12233_v7 = vpop.f32.mrf.mxu1  ;;  %v6822_v15 = vor.u32 %v6821_v41, %v6818_v36  ;;  %v6831_v37 = vor.u32 %v6830_v50, %v6827_v57  ;;  %v18228_v41 = vshrl.u32 %v15960_v16, 16  ;;  %v6388_v57 = vrot.slane %v15924_v12, 2 }
 0x292   : > { %18223 = vst [vmem:[#allocation15_spill] sm:$0xff] %v15975_v4  ;;  %v4480_v44 = vpop.f32.mrf.mxu0  ;;  %v15984_v46 = vadd.f32 %v4477_v20, %v4090_v14  ;;  %v4093_v30 = vadd.f32 %v12233_v7, %v18225_v51  ;;  %v18227_v7 = vld [vmem:[#allocation12_spill] sm:$0xff]  ;;  %v6254_v4 = vld [vmem:[%s13240_s23 + $0xa8] sm:$0xf] }
 0x293   : > { %v4042_v6 = vpop.f32.mrf.mxu1  ;;  %12463 = vmatmul.mubr.msk.bf16.gmra.mxu1 %vm484_vm2, %v6385_v34  ;;  %v6836_v35 = vrot.slane %v18228_v41, 2  ;;  %v6823_v50 = vsel %vm2551_vm6, %v6813_v17, %v6822_v15  ;;  %v18232_v41 = vshrl.u32 %v15973_v27, 16  ;;  %v16022_v17 = vcombine.low %v6253_v21, %v6254_v4 }
 0x294   : > { %18224 = vst [vmem:[#allocation31_spill] sm:$0xff] %v15984_v46  ;;  %v12322_v32 = vpop.f32.mrf.mxu0  ;;  %12505 = vmatmul.mubr.msk.bf16.gmra.mxu0 %vm484_vm2, %v6805_v1  ;;  %v15993_v14 = vadd.f32 %v12275_v22, %v4093_v30  ;;  %v4091_v51 = vadd.f32 %v4042_v6, %v18227_v7  ;;  %v6252_v1 = vld [vmem:[%s13240_s23 + $0xa0] sm:$0xf]  ;;  %v18231_v22 = vld [vmem:[#allocation17_spill] sm:$0xff]  ;;  %12466 = vmatprep.mubr.msk.bf16.mxu1 %vm484_vm2, %v6387_v38  ;;  %v6390_v7 = vrot.slane %v15938_v49, 2 }
 0x295   : > { %12508 = vmatprep.mubr.msk.bf16.mxu0 %vm484_vm2, %v6814_v63  ;;  %v12280_v36 = vpop.f32.mrf.mxu1  ;;  %v18229_v63 = vshll.u32 %v15960_v16, 16 }
 0x296   : > { %18226 = vst [vmem:[#allocation11_spill] sm:$0xff] %v15993_v14  ;;  %v5282_v13 = vpop.f32.mrf.mxu0  ;;  %v16005_v20 = vadd.f32 %v4480_v44, %v4091_v51  ;;  %v5100_v30 = vadd.f32 %v12280_v36, %v18231_v22  ;;  %v6845_v14 = vrot.slane %v18232_v41, 2  ;;  %v16016_v44 = vcombine.low %v6251_v33, %v6252_v1  ;;  %v18235_v36 = vld [vmem:[#allocation19_spill] sm:$0xff]  ;;  %v18238_v41 = vld [vmem:[#allocation20_spill] sm:$0xff] }
 0x297   : > { %v6839_v46 = vrot.slane %v18229_v63, 3  ;;  %v4939_v34 = vpop.f32.mrf.mxu1  ;;  %v18233_v63 = vshll.u32 %v15973_v27, 16  ;;  %18236 = vst [vmem:[#allocation19_spill] sm:$0xff] %v16022_v17  ;;  %v6389_v33 = vsel %vm1724_vm5, %v6386_v48, %v6388_v57  ;;  %v6391_v1 = vsel %vm1724_vm5, %v6388_v57, %v6390_v7  ;;  %v6257_v57 = vld [vmem:[%s13240_s23 + $0xb4] sm:$0xf] }
 0x298   : > { %18230 = vst [vmem:[#allocation12_spill] sm:$0xff] %v16005_v20  ;;  %v12323_v6 = vpop.f32.mrf.mxu0  ;;  %18234 = vst [vmem:[#allocation17_spill] sm:$0xff] %v16016_v44  ;;  %v16018_v51 = vadd.f32 %v12322_v32, %v5100_v30  ;;  %v5098_v22 = vadd.f32 %v4939_v34, %v18235_v36  ;;  %v6832_v20 = vsel %vm2551_vm6, %v6822_v15, %v6831_v37  ;;  %v17875_v4 = vshrl.u32 %v16016_v44, 16  ;;  %v6258_v36 = vld [vmem:[%s13240_s23 + $0xb8] sm:$0xf] }
 0x299   : > { %v6848_v29 = vrot.slane %v18233_v63, 3  ;;  %v12281_v49 = vpop.f32.mrf.mxu1  ;;  %v6840_v12 = vor.u32 %v6839_v46, %v6836_v35  ;;  %v6255_v46 = vld [vmem:[%s13240_s23 + $0xac] sm:$0xf]  ;;  %v18240_v35 = vld [vmem:[#allocation14_spill] sm:$0xff] }
 0x29a   : > { %v5285_v38 = vpop.f32.mrf.mxu0  ;;  %v16024_v47 = vadd.f32 %v5282_v13, %v5098_v22  ;;  %v5101_v54 = vadd.f32 %v12281_v49, %v18238_v41  ;;  %v17878_v13 = vshll.u32 %v16016_v44, 16  ;;  %v6256_v49 = vld [vmem:[%s13240_s23 + $0xb0] sm:$0xf] }
 0x29b   : > { %v4942_v32 = vpop.f32.mrf.mxu1  ;;  %v16031_v21 = vor.u32 %v6848_v29, %v6845_v14  ;;  %12467 = vmatmul.mubr.msk.bf16.gmra.mxu1 %vm484_vm2, %v6389_v33  ;;  %v6392_v29 = vrot.slane %v15960_v16, 2  ;;  %v6841_v14 = vsel %vm2551_vm6, %v6831_v37, %v6840_v12  ;;  %v6854_v33 = vrot.slane %v17875_v4, 2 }
 0x29c   : > { %18237 = vst [vmem:[#allocation32_spill] sm:$0xff] %v16024_v47  ;;  %v12326_v63 = vpop.f32.mrf.mxu0  ;;  %12509 = vmatmul.mubr.msk.bf16.gmra.mxu0 %vm484_vm2, %v6823_v50  ;;  %v16037_v15 = vadd.f32 %v12323_v6, %v5101_v54  ;;  %v5099_v48 = vadd.f32 %v4942_v32, %v18240_v35  ;;  %v18242_v54 = vld [vmem:[#allocation21_spill] sm:$0xff]  ;;  %12470 = vmatprep.mubr.msk.bf16.mxu1 %vm484_vm2, %v6391_v1  ;;  %v6394_v32 = vrot.slane %v15973_v27, 2  ;;  %v6857_v37 = vrot.slane %v17878_v13, 3  ;;  %v18248_v27 = vld [vmem:[#allocation22_spill] sm:$0xff] }
 0x29d   : > { %12512 = vmatprep.mubr.msk.bf16.mxu0 %vm484_vm2, %v6832_v20  ;;  %v12284_v20 = vpop.f32.mrf.mxu1  ;;  %v16052_v35 = vcombine.low %v6255_v46, %v6256_v49  ;;  %v6850_v50 = vsel %vm2551_vm6, %v6840_v12, %v16031_v21  ;;  %v18245_v46 = vshrl.u32 %v16022_v17, 16  ;;  %v6393_v47 = vsel %vm1724_vm5, %v6390_v7, %v6392_v29 }
 0x29e   : > { %18239 = vst [vmem:[#allocation20_spill] sm:$0xff] %v16037_v15  ;;  %v5298_v30 = vpop.f32.mrf.mxu0  ;;  %v16047_v22 = vadd.f32 %v5285_v38, %v5099_v48  ;;  %v5104_v6 = vadd.f32 %v12284_v20, %v18242_v54  ;;  %v16060_v38 = vcombine.low %v6257_v57, %v6258_v36  ;;  %v18244_v20 = vld [vmem:[#allocation16_spill] sm:$0xff] }
 0x29f   : > { %v4955_v34 = vpop.f32.mrf.mxu1  ;;  %v6863_v49 = vrot.slane %v18245_v46, 2 }
 0x2a0   : > { %18241 = vst [vmem:[#allocation14_spill] sm:$0xff] %v16047_v22  ;;  %v12327_v41 = vpop.f32.mrf.mxu0  ;;  %v16062_v48 = vadd.f32 %v12326_v63, %v5104_v6  ;;  %v5102_v1 = vadd.f32 %v4955_v34, %v18244_v20  ;;  %v18246_v22 = vshll.u32 %v16022_v17, 16  ;;  %v6395_v6 = vsel %vm1724_vm5, %v6392_v29, %v6394_v32  ;;  %v18250_v20 = vld [vmem:[#allocation23_spill] sm:$0xff]  ;;  %v16086_v63 = vld [vmem:[%s13240_s23 + $0xbc] ss:$0 sps:$4 sm:$0x77]  }
 0x2a1   : > { %v12285_v12 = vpop.f32.mrf.mxu1  ;;  %v6396_v34 = vrot.slane %v16016_v44, 2  ;;  %18251 = vst [vmem:[#allocation23_spill] sm:$0xff] %v16086_v63  ;;  %v7192_v29 = vld [vmem:[%s13240_s23 + $0x1c] sm:$0x8] }
 0x2a2   : > { %18243 = vst [vmem:[#allocation21_spill] sm:$0xff] %v16062_v48  ;;  %v5301_v54 = vpop.f32.mrf.mxu0  ;;  %v6866_v15 = vrot.slane %v18246_v22, 3  ;;  %v16070_v4 = vadd.f32 %v5298_v30, %v5102_v1  ;;  %v5105_v13 = vadd.f32 %v12285_v12, %v18248_v27  ;;  %v6858_v22 = vor.u32 %v6857_v37, %v6854_v33  ;;  %v18253_v33 = vld [vmem:[#allocation24_spill] sm:$0xff] }
 0x2a3   : > { %v4958_v36 = vpop.f32.mrf.mxu1  ;;  %v17885_v30 = vshll.u32 %v16060_v38, 16  ;;  %12471 = vmatmul.mubr.msk.bf16.gmra.mxu1 %vm484_vm2, %v6393_v47 }
 0x2a4   : > { %18247 = vst [vmem:[#allocation16_spill] sm:$0xff] %v16070_v4  ;;  %v12330_v57 = vpop.f32.mrf.mxu0  ;;  %12513 = vmatmul.mubr.msk.bf16.gmra.mxu0 %vm484_vm2, %v6841_v14  ;;  %v16080_v27 = vadd.f32 %v12327_v41, %v5105_v13  ;;  %v5103_v14 = vadd.f32 %v4958_v36, %v18250_v20  ;;  %v6867_v46 = vor.u32 %v6866_v15, %v6863_v49  ;;  %v18254_v13 = vshrl.u32 %v16052_v35, 16 }
 0x2a5   : > { %12516 = vmatprep.mubr.msk.bf16.mxu0 %vm484_vm2, %v6850_v50  ;;  %v12288_v12 = vpop.f32.mrf.mxu1  ;;  %12474 = vmatprep.mubr.msk.bf16.mxu1 %vm484_vm2, %v6395_v6  ;;  %v18255_v15 = vshll.u32 %v16052_v35, 16  ;;  %v6859_v47 = vsel %vm2551_vm6, %v16031_v21, %v6858_v22  ;;  %v6398_v20 = vrot.slane %v16022_v17, 2  ;;  %v18257_v6 = vld [vmem:[#allocation25_spill] sm:$0xff]  ;;  %v6888_v21 = vshrl.u32 %v16086_v63, 16 }
 0x2a6   : > { %18249 = vst [vmem:[#allocation22_spill] sm:$0xff] %v16080_v27  ;;  %v5314_v1 = vpop.f32.mrf.mxu0  ;;  %v16089_v50 = vadd.f32 %v5301_v54, %v5103_v14  ;;  %v5108_v37 = vadd.f32 %v12288_v12, %v18253_v33  ;;  %v6872_v41 = vrot.slane %v18254_v13, 2  ;;  %v18256_v54 = vshrl.u32 %v16060_v38, 16 }
 0x2a7   : > { %v6875_v49 = vrot.slane %v18255_v15, 3  ;;  %v4971_v36 = vpop.f32.mrf.mxu1  ;;  %v6884_v12 = vrot.slane %v17885_v30, 3  ;;  %v6868_v27 = vsel %vm2551_vm6, %v6858_v22, %v6867_v46  ;;  %v18258_v15 = vld [vmem:[#allocation18_spill] sm:$0xff]  ;;  %v6891_v17 = vshll.u32 %v16086_v63, 16 }
 0x2a8   : > { %18252 = vst [vmem:[#allocation33_spill] sm:$0xff] %v16089_v50  ;;  %v12331_v7 = vpop.f32.mrf.mxu0  ;;  %v6881_v14 = vrot.slane %v18256_v54, 2  ;;  %v16104_v33 = vadd.f32 %v12330_v57, %v5108_v37  ;;  %v5106_v50 = vadd.f32 %v4971_v36, %v18257_v6  ;;  %v16109_v4 = vcombine.low %v7192_v29, %v18258_v15  ;;  %v18259_v54 = vld [vmem:[#allocation26_spill] sm:$0xff] }
 0x2a9   : > { %v12289_v48 = vpop.f32.mrf.mxu1  ;;  %v6397_v57 = vsel %vm1724_vm5, %v6394_v32, %v6396_v34  ;;  %v6876_v37 = vor.u32 %v6875_v49, %v6872_v41  ;;  %v6399_v22 = vsel %vm1724_vm5, %v6396_v34, %v6398_v20  ;;  %v6890_v32 = vrot.slane %v6888_v21, 2 }
 0x2aa   : > { %v5317_v13 = vpop.f32.mrf.mxu0  ;;  %v16113_v44 = vadd.f32 %v5314_v1, %v5106_v50  ;;  %v5109_v16 = vadd.f32 %v12289_v48, %v18259_v54  ;;  %v6885_v29 = vor.u32 %v6884_v12, %v6881_v14  ;;  %v7542_v50 = vshrl.u32 %v16109_v4, 16 }
 0x2ab   : > { %v4974_v36 = vpop.f32.mrf.mxu1  ;;  %v7545_v48 = vshll.u32 %v16109_v4, 16  ;;  %12475 = vmatmul.mubr.msk.bf16.gmra.mxu1 %vm484_vm2, %v6397_v57  ;;  %v6893_v41 = vrot.slane %v6891_v17, 3  ;;  %v18262_v12 = vshrl.u32 %v15644_v39, 16 }
 0x2ac   : > { %v12334_v30 = vpop.f32.mrf.mxu0  ;;  %12517 = vmatmul.mubr.msk.bf16.gmra.mxu0 %vm484_vm2, %v6859_v47  ;;  %v16120_v6 = vadd.f32 %v12331_v7, %v5109_v16  ;;  %v5107_v15 = vadd.f32 %v4974_v36, %v15683_v23  ;;  %12478 = vmatprep.mubr.msk.bf16.mxu1 %vm484_vm2, %v6399_v22  ;;  %v6400_v23 = vrot.slane %v16052_v35, 2  ;;  %v6877_v16 = vsel %vm2551_vm6, %v6867_v46, %v6876_v37  ;;  %v13035_v46 = vld [vmem:[%s13240_s23 + $0xbc] ss:$0 sps:$4 sm:$0x33]  }
 0x2ad   : > { %12520 = vmatprep.mubr.msk.bf16.mxu0 %vm484_vm2, %v6868_v27  ;;  %v12292_v54 = vpop.f32.mrf.mxu1  ;;  %v6402_v47 = vrot.slane %v16060_v38, 2  ;;  %v6886_v14 = vsel %vm2551_vm6, %v6876_v37, %v6885_v29  ;;  %v7549_v17 = vrot.slane %v18262_v12, 3  ;;  %v7544_v22 = vrot.slane %v7542_v50, 3 }
 0x2ae   : > { %18260 = vst [vmem:[#allocation24_spill] sm:$0xff] %v16120_v6  ;;  %v5330_v1 = vpop.f32.mrf.mxu0  ;;  %v16126_v49 = vadd.f32 %v5317_v13, %v5107_v15  ;;  %v5112_v34 = vadd.f32 %v12292_v54, %v15693_v55  ;;  %v18263_v13 = vshll.u32 %v15644_v39, 16  ;;  %v7547_v15 = vrot.slane %v7545_v48, 4 }
 0x2af   : > { %v4987_v7 = vpop.f32.mrf.mxu1  ;;  %v6894_v63 = vor.u32 %v6893_v41, %v6890_v32  ;;  %v6401_v12 = vsel %vm1724_vm5, %v6398_v20, %v6400_v23 }
 0x2b0   : > { %18261 = vst [vmem:[#allocation25_spill] sm:$0xff] %v16126_v49  ;;  %v12335_v27 = vpop.f32.mrf.mxu0  ;;  %v7550_v21 = vrot.slane %v18263_v13, 4  ;;  %v16138_v55 = vadd.f32 %v12334_v30, %v5112_v34  ;;  %v5110_v57 = vadd.f32 %v4987_v7, %v15702_v61  ;;  %v6403_v30 = vsel %vm1724_vm5, %v6400_v23, %v6402_v47 }
 0x2b1   : > { %v12293_v54 = vpop.f32.mrf.mxu1  ;;  %v7548_v32 = vor.u32 %v7547_v15, %v7544_v22  ;;  %v6895_v20 = vsel %vm2551_vm6, %v6885_v29, %v6894_v63  ;;  %v18266_v63 = vshrl.u32 %v15691_v9, 16 }
 0x2b2   : > { %v5333_v36 = vpop.f32.mrf.mxu0  ;;  %v16142_v49 = vadd.f32 %v5330_v1, %v5110_v57  ;;  %v5113_v37 = vadd.f32 %v12293_v54, %v15715_v10  ;;  %v7551_v1 = vor.u32 %v7550_v21, %v7549_v17  ;;  %v6404_v10 = vrot.slane %v13035_v46, 2 }
 0x2b3   : > { %v4990_v13 = vpop.f32.mrf.mxu1  ;;  %12479 = vmatmul.mubr.msk.bf16.gmra.mxu1 %vm484_vm2, %v6401_v12  ;;  %v18265_v21 = vshll.u32 %v15681_v59, 16  ;;  %v7557_v29 = vrot.slane %v18266_v63, 3 }
 0x2b4   : > { %v12338_v6 = vpop.f32.mrf.mxu0  ;;  %12521 = vmatmul.mubr.msk.bf16.gmra.mxu0 %vm484_vm2, %v6877_v16  ;;  %v16149_v61 = vadd.f32 %v12335_v27, %v5113_v37  ;;  %v5111_v50 = vadd.f32 %v4990_v13, %v15725_v0  ;;  %12482 = vmatprep.mubr.msk.bf16.mxu1 %vm484_vm2, %v6403_v30  ;;  %v7198_v27 = vrot.slane %v16109_v4, 3  ;;  %v7199_v0 = vrot.slane %v15644_v39, 3 }
 0x2b5   : > { %12524 = vmatprep.mubr.msk.bf16.mxu0 %vm484_vm2, %v6886_v14  ;;  %v12296_v41 = vpop.f32.mrf.mxu1  ;;  %v18264_v14 = vshrl.u32 %v15681_v59, 16  ;;  %v7554_v57 = vrot.slane %v18265_v21, 4  ;;  %v7552_v39 = vsel %vm3386_vm7, %v7548_v32, %v7551_v1  ;;  %v6405_v13 = vsel %vm1724_vm5, %v6402_v47, %v6404_v10 }
 0x2b6   : > { %v5346_v48 = vpop.f32.mrf.mxu0  ;;  %v16154_v34 = vadd.f32 %v5333_v36, %v5111_v50  ;;  %v5116_v16 = vadd.f32 %v12296_v41, %v15740_v8  ;;  %v18267_v36 = vshll.u32 %v15691_v9, 16  ;;  %v7200_v50 = vsel %vm3042_vm8, %v7198_v27, %v7199_v0 }
 0x2b7   : > { %v5003_v7 = vpop.f32.mrf.mxu1  ;;  %v7553_v17 = vrot.slane %v18264_v14, 3  ;;  %v18268_v27 = vshrl.u32 %v15732_v42, 16  ;;  %v8451_v21 = vsel %vm545_vm0, %v15799_v5, 0  ;;  %v16207_v5 = vld [vmem:[%s17751_s1 + $0x58] sm:$0xf] }
 0x2b8   : > { %v12339_v23 = vpop.f32.mrf.mxu0  ;;  %v7558_v8 = vrot.slane %v18267_v36, 4  ;;  %v16168_v22 = vadd.f32 %v12338_v6, %v5116_v16  ;;  %v5114_v15 = vadd.f32 %v5003_v7, %v15747_v25  ;;  %v18270_v36 = vshrl.u32 %v15744_v11, 16 }
 0x2b9   : > { %v12297_v54 = vpop.f32.mrf.mxu1  ;;  %v7555_v6 = vor.u32 %v7554_v57, %v7553_v17  ;;  %v7561_v7 = vrot.slane %v18268_v27, 3 }
 0x2ba   : > { %v5349_v4 = vpop.f32.mrf.mxu0  ;;  %v16172_v46 = vadd.f32 %v5346_v48, %v5114_v15  ;;  %v5117_v37 = vadd.f32 %v12297_v54, %v15759_v45  ;;  %v7559_v25 = vor.u32 %v7558_v8, %v7557_v29  ;;  %v7201_v45 = vrot.slane %v15681_v59, 3 }
 0x2bb   : > { %v5006_v30 = vpop.f32.mrf.mxu1  ;;  %12483 = vmatmul.mubr.msk.bf16.gmra.mxu1 %vm484_vm2, %v6405_v13  ;;  %v7556_v17 = vsel %vm3386_vm7, %v7551_v1, %v7555_v6  ;;  %v7203_v59 = vrot.slane %v15691_v9, 3  ;;  %v7565_v8 = vrot.slane %v18270_v36, 3  ;;  %v18271_v15 = vshll.u32 %v15744_v11, 16 }
 0x2bc   : > { %v12342_v12 = vpop.f32.mrf.mxu0  ;;  %12525 = vmatmul.mubr.msk.bf16.gmra.mxu0 %vm484_vm2, %v6895_v20  ;;  %v16179_v41 = vadd.f32 %v12339_v23, %v5117_v37  ;;  %v5115_v32 = vadd.f32 %v5006_v30, %v15770_v19  ;;  %12530 = vmatprep.mubr.msk.bf16.mxu1 %vm484_vm2, %v7200_v50  ;;  %v18269_v23 = vshll.u32 %v15732_v42, 16  ;;  %v7560_v57 = vsel %vm3386_vm7, %v7555_v6, %v7559_v25 }
 0x2bd   : > { %12572 = vmatprep.mubr.msk.bf16.mxu0 %vm484_vm2, %v7552_v39  ;;  %v12300_v16 = vpop.f32.mrf.mxu1  ;;  %v8013_v13 = vsel %vm545_vm0, %v15821_v53, 0  ;;  %v7204_v30 = vsel %vm3042_vm8, %v7201_v45, %v7203_v59 }
 0x2be   : > { %v5362_v48 = vpop.f32.mrf.mxu0  ;;  %v16184_v47 = vadd.f32 %v5349_v4, %v5115_v32  ;;  %v5120_v10 = vadd.f32 %v12300_v16, %v15786_v28  ;;  %v7562_v14 = vrot.slane %v18269_v23, 4  ;;  %v7566_v4 = vrot.slane %v18271_v15, 4 }
 0x2bf   : > { %v5019_v19 = vpop.f32.mrf.mxu1 }
 0x2c0   : > { %v12343_v20 = vpop.f32.mrf.mxu0  ;;  %v16197_v28 = vadd.f32 %v12342_v12, %v5120_v10  ;;  %v5118_v63 = vadd.f32 %v5019_v19, %v15801_v43  ;;  %v7202_v43 = vsel %vm3042_vm8, %v7199_v0, %v7201_v45  ;;  %v7563_v37 = vor.u32 %v7562_v14, %v7561_v7  ;;  %v16224_v0 = vld [vmem:[%s17751_s1 + $0x54] sm:$0xf] }
 0x2c1   : > { %v12301_v39 = vpop.f32.mrf.mxu1  ;;  %v7567_v32 = vor.u32 %v7566_v4, %v7565_v8  ;;  %v18272_v7 = vshrl.u32 %v15782_v40, 16  ;;  %v18273_v14 = vshll.u32 %v15782_v40, 16  ;;  %v18276_v8 = vld [vmem:[#allocation28_spill] sm:$0xff] }
 0x2c2   : > { %v5365_v29 = vpop.f32.mrf.mxu0  ;;  %v16209_v9 = vadd.f32 %v5362_v48, %v5118_v63  ;;  %v5121_v1 = vadd.f32 %v12301_v39, %v15815_v31  ;;  %v7205_v48 = vrot.slane %v15732_v42, 3  ;;  %v7564_v10 = vsel %vm3386_vm7, %v7559_v25, %v7563_v37 }
 0x2c3   : > { %v5022_v12 = vpop.f32.mrf.mxu1  ;;  %12531 = vmatmul.mubr.msk.bf16.vlgmr.msra.gmra.mxu1 %vm484_vm2, %v7202_v43  ;;  %v7569_v23 = vrot.slane %v18272_v7, 3  ;;  %v7570_v19 = vrot.slane %v18273_v14, 4  ;;  %v18274_v42 = vshrl.u32 %v15784_v2, 16  ;;  %v7568_v63 = vsel %vm3386_vm7, %v7563_v37, %v7567_v32 }
 0x2c4   : > { %v12346_v54 = vpop.f32.mrf.mxu0  ;;  %12573 = vmatmul.mubr.msk.bf16.vlgmr.msra.gmra.mxu0 %vm484_vm2, %v7556_v17  ;;  %v16218_v50 = vadd.f32 %v12343_v20, %v5121_v1  ;;  %v5119_v6 = vadd.f32 %v5022_v12, %v15831_v62  ;;  %12613 = vmatpush3.bf16.msra.mxu1 %v8013_v13  ;;  %v7207_v20 = vrot.slane %v15744_v11, 3  ;;  %v7206_v39 = vsel %vm3042_vm8, %v7203_v59, %v7205_v48 }
 0x2c5   : > { %12655 = vmatpush3.bf16.msra.mxu0 %v8451_v21  ;;  %12576 = vmatprep.mubr.msk.bf16.mxu0 %vm484_vm2, %v7560_v57  ;;  %v12304_v53 = vpop.f32.mrf.mxu1  ;;  %v7573_v17 = vrot.slane %v18274_v42, 3  ;;  %v7211_v7 = vrot.slane %v15784_v2, 3 }
 0x2c6   : > { %v5378_v31 = vpop.f32.mrf.mxu0  ;;  %12889 = vmatprep.subr.msk.bf16.mxu0 %vm545_vm0, %v16207_v5  ;;  %v16230_v16 = vadd.f32 %v5365_v29, %v5119_v6  ;;  %v5124_v45 = vadd.f32 %v12304_v53, %v15848_v18  ;;  %12534 = vmatprep.mubr.msk.bf16.mxu1 %vm484_vm2, %v7204_v30  ;;  %v18275_v18 = vshll.u32 %v15784_v2, 16  ;;  %v7208_v43 = vsel %vm3042_vm8, %v7205_v48, %v7207_v20 }
 0x2c7   : > { %v5035_v27 = vpop.f32.mrf.mxu1  ;;  %12888 = vmatprep.subr.msk.bf16.mxu1 %vm545_vm0, %v16224_v0  ;;  %v7209_v6 = vrot.slane %v15782_v40, 3  ;;  %v18277_v48 = vshrl.u32 %v15827_v60, 16 }
 0x2c8   : > { %v12347_v62 = vpop.f32.mrf.mxu0  ;;  %v7574_v21 = vrot.slane %v18275_v18, 4  ;;  %v16246_v57 = vadd.f32 %v12346_v54, %v5124_v45  ;;  %v5122_v11 = vadd.f32 %v5035_v27, %v15856_v56  ;;  %v7571_v54 = vor.u32 %v7570_v19, %v7569_v23  ;;  %v18279_v19 = vld [vmem:[#allocation27_spill] sm:$0xff] }
 0x2c9   : > { %v12305_v29 = vpop.f32.mrf.mxu1  ;;  %v7577_v45 = vrot.slane %v18277_v48, 3  ;;  %v18280_v42 = vshrl.u32 %v18279_v19, 16  ;;  %v18281_v18 = vshll.u32 %v18279_v19, 16  ;;  %v7210_v2 = vsel %vm3042_vm8, %v7207_v20, %v7209_v6 }
 0x2ca   : > { %v5381_v25 = vpop.f32.mrf.mxu0  ;;  %v16250_v36 = vadd.f32 %v5378_v31, %v5122_v11  ;;  %v5125_v15 = vadd.f32 %v12305_v29, %v18276_v8  ;;  %v7575_v56 = vor.u32 %v7574_v21, %v7573_v17  ;;  %v7572_v27 = vsel %vm3386_vm7, %v7567_v32, %v7571_v54 }
 0x2cb   : > { %v5038_v1 = vpop.f32.mrf.mxu1  ;;  %12535 = vmatmul.mubr.msk.bf16.gmra.mxu1 %vm484_vm2, %v7206_v39  ;;  %v7581_v17 = vrot.slane %v18280_v42, 3  ;;  %v7582_v21 = vrot.slane %v18281_v18, 4  ;;  %v18283_v39 = vld [vmem:[#allocation7_spill] sm:$0xff]  ;;  %v18289_v42 = vld [vmem:[#allocation5_spill] sm:$0xff] }
 0x2cc   : > { %v12350_v4 = vpop.f32.mrf.mxu0  ;;  %12577 = vmatmul.mubr.msk.bf16.gmra.mxu0 %vm484_vm2, %v7564_v10  ;;  %v16257_v12 = vadd.f32 %v12347_v62, %v5125_v15  ;;  %v5123_v37 = vadd.f32 %v5038_v1, %v15880_v26  ;;  %12538 = vmatprep.mubr.msk.bf16.mxu1 %vm484_vm2, %v7208_v43  ;;  %v18278_v62 = vshll.u32 %v15827_v60, 16  ;;  %v7576_v40 = vsel %vm3386_vm7, %v7571_v54, %v7575_v56 }
 0x2cd   : > { %12580 = vmatprep.mubr.msk.bf16.mxu0 %vm484_vm2, %v7568_v63  ;;  %v12308_v30 = vpop.f32.mrf.mxu1  ;;  %v18282_v63 = vld [vmem:[#allocation4_spill] sm:$0xff]  ;;  %v7583_v54 = vor.u32 %v7582_v21, %v7581_v17 }
 0x2ce   : > { %v5394_v13 = vpop.f32.mrf.mxu0  ;;  %v16262_v59 = vadd.f32 %v5381_v25, %v5123_v37  ;;  %v5128_v31 = vadd.f32 %v12308_v30, %v15891_v3  ;;  %v7578_v10 = vrot.slane %v18278_v62, 4 }
 0x2cf   : > { %v5051_v26 = vpop.f32.mrf.mxu1 }
 0x2d0   : > { %v12351_v53 = vpop.f32.mrf.mxu0  ;;  %v16273_v23 = vadd.f32 %v12350_v4, %v5128_v31  ;;  %v5126_v3 = vadd.f32 %v5051_v26, %v15899_v52  ;;  %v7579_v8 = vor.u32 %v7578_v10, %v7577_v45  ;;  %v7212_v52 = vsel %vm3042_vm8, %v7209_v6, %v7211_v7 }
 0x2d1   : > { %v12309_v11 = vpop.f32.mrf.mxu1  ;;  %v18284_v45 = vshrl.u32 %v15884_v24, 16  ;;  %v18285_v10 = vshll.u32 %v15884_v24, 16 }
 0x2d2   : > { %v5397_v14 = vpop.f32.mrf.mxu0  ;;  %v16280_v25 = vadd.f32 %v5394_v13, %v5126_v3  ;;  %v5129_v32 = vadd.f32 %v12309_v11, %v18282_v63  ;;  %v7213_v13 = vrot.slane %v15827_v60, 3  ;;  %v7580_v6 = vsel %vm3386_vm7, %v7575_v56, %v7579_v8  ;;  %v18290_v11 = vld [vmem:[#allocation10_spill] sm:$0xff] }
 0x2d3   : > { %v5054_v15 = vpop.f32.mrf.mxu1  ;;  %12539 = vmatmul.mubr.msk.bf16.gmra.mxu1 %vm484_vm2, %v7210_v2  ;;  %v7585_v62 = vrot.slane %v18284_v45, 3  ;;  %v7586_v26 = vrot.slane %v18285_v10, 4 }
 0x2d4   : > { %v12354_v29 = vpop.f32.mrf.mxu0  ;;  %12581 = vmatmul.mubr.msk.bf16.gmra.mxu0 %vm484_vm2, %v7572_v27  ;;  %v16287_v4 = vadd.f32 %v12351_v53, %v5129_v32  ;;  %v5127_v1 = vadd.f32 %v5054_v15, %v18283_v39  ;;  %12542 = vmatprep.mubr.msk.bf16.mxu1 %vm484_vm2, %v7212_v52  ;;  %v7215_v53 = vrot.slane %v18279_v19, 3  ;;  %v18286_v27 = vld [vmem:[#allocation2_spill] sm:$0xff]  ;;  %v7584_v19 = vsel %vm3386_vm7, %v7579_v8, %v7583_v54  ;;  %v18291_v8 = vld [vmem:[#allocation9_spill] sm:$0xff] }
 0x2d5   : > { %12584 = vmatprep.mubr.msk.bf16.mxu0 %vm484_vm2, %v7576_v40  ;;  %v12312_v37 = vpop.f32.mrf.mxu1  ;;  %v18287_v60 = vshrl.u32 %v18286_v27, 16  ;;  %v18288_v3 = vshll.u32 %v18286_v27, 16  ;;  %v7214_v2 = vsel %vm3042_vm8, %v7211_v7, %v7213_v13 }
 0x2d6   : > { %v5410_v43 = vpop.f32.mrf.mxu0  ;;  %v16292_v20 = vadd.f32 %v5397_v14, %v5127_v1  ;;  %v5132_v30 = vadd.f32 %v12312_v37, %v15934_v58  ;;  %v7216_v52 = vsel %vm3042_vm8, %v7213_v13, %v7215_v53  ;;  %v18293_v13 = vld [vmem:[#allocation3_spill] sm:$0xff] }
 0x2d7   : > { %v5067_v48 = vpop.f32.mrf.mxu1  ;;  %v7589_v40 = vrot.slane %v18287_v60, 3  ;;  %v7590_v58 = vrot.slane %v18288_v3, 4 }
 0x2d8   : > { %v12355_v31 = vpop.f32.mrf.mxu0  ;;  %v16306_v14 = vadd.f32 %v12354_v29, %v5132_v30  ;;  %v5130_v17 = vadd.f32 %v5067_v48, %v18289_v42  ;;  %v7587_v29 = vor.u32 %v7586_v26, %v7585_v62  ;;  %v7217_v48 = vrot.slane %v15884_v24, 3 }
 0x2d9   : > { %v12313_v18 = vpop.f32.mrf.mxu1  ;;  %v7591_v39 = vor.u32 %v7590_v58, %v7589_v40  ;;  %v18294_v62 = vshrl.u32 %v18293_v13, 16  ;;  %v7219_v58 = vrot.slane %v18286_v27, 3 }
 0x2da   : > { %v5413_v56 = vpop.f32.mrf.mxu0  ;;  %v16310_v21 = vadd.f32 %v5410_v43, %v5130_v17  ;;  %v5133_v63 = vadd.f32 %v12313_v18, %v18290_v11  ;;  %v7588_v3 = vsel %vm3386_vm7, %v7583_v54, %v7587_v29  ;;  %v18296_v17 = vld [vmem:[#allocation31_spill] sm:$0xff]  ;;  %v18297_v18 = vld [vmem:[#allocation8_spill] sm:$0xff]  ;;  %v7218_v27 = vsel %vm3042_vm8, %v7215_v53, %v7217_v48 }
 0x2db   : > { %v5070_v15 = vpop.f32.mrf.mxu1  ;;  %12543 = vmatmul.mubr.msk.bf16.gmra.mxu1 %vm484_vm2, %v7214_v2  ;;  %v7593_v26 = vrot.slane %v18294_v62, 3  ;;  %v7592_v24 = vsel %vm3386_vm7, %v7587_v29, %v7591_v39  ;;  %v18298_v11 = vshrl.u32 %v18297_v18, 16  ;;  %v18299_v2 = vshll.u32 %v18297_v18, 16  ;;  %v18302_v62 = vld [vmem:[#allocation12_spill] sm:$0xff] }
 0x2dc   : > { %v12358_v32 = vpop.f32.mrf.mxu0  ;;  %12585 = vmatmul.mubr.msk.bf16.gmra.mxu0 %vm484_vm2, %v7580_v6  ;;  %v16317_v1 = vadd.f32 %v12355_v31, %v5133_v63  ;;  %v5131_v37 = vadd.f32 %v5070_v15, %v18291_v8  ;;  %v18292_v6 = vld [vmem:[#allocation15_spill] sm:$0xff]  ;;  %12546 = vmatprep.mubr.msk.bf16.mxu1 %vm484_vm2, %v7216_v52  ;;  %v18295_v31 = vshll.u32 %v18293_v13, 16 }
 0x2dd   : > { %12588 = vmatprep.mubr.msk.bf16.mxu0 %vm484_vm2, %v7584_v19  ;;  %v12316_v30 = vpop.f32.mrf.mxu1  ;;  %v7597_v63 = vrot.slane %v18298_v11, 3  ;;  %v7598_v15 = vrot.slane %v18299_v2, 4 }
 0x2de   : > { %v5426_v43 = vpop.f32.mrf.mxu0  ;;  %v16322_v7 = vadd.f32 %v5413_v56, %v5131_v37  ;;  %v5136_v45 = vadd.f32 %v12316_v30, %v18292_v6  ;;  %v7594_v60 = vrot.slane %v18295_v31, 4  ;;  %v18300_v37 = vld [vmem:[#allocation11_spill] sm:$0xff]  ;;  %v7220_v6 = vsel %vm3042_vm8, %v7217_v48, %v7219_v58 }
 0x2df   : > { %v5083_v40 = vpop.f32.mrf.mxu1 }
 0x2e0   : > { %v12359_v10 = vpop.f32.mrf.mxu0  ;;  %v16333_v42 = vadd.f32 %v12358_v32, %v5136_v45  ;;  %v5134_v56 = vadd.f32 %v5083_v40, %v18296_v17  ;;  %v7595_v32 = vor.u32 %v7594_v60, %v7593_v26 }
 0x2e1   : > { %v12317_v52 = vpop.f32.mrf.mxu1 }
 0x2e2   : > { %v5429_v19 = vpop.f32.mrf.mxu0  ;;  %v16340_v8 = vadd.f32 %v5426_v43, %v5134_v56  ;;  %v5137_v54 = vadd.f32 %v12317_v52, %v18300_v37  ;;  %v7599_v43 = vor.u32 %v7598_v15, %v7597_v63  ;;  %v7221_v56 = vrot.slane %v18293_v13, 3  ;;  %v18307_v13 = vld [vmem:[#allocation13_spill] sm:$0xff] }
 0x2e3   : > { %v5086_v29 = vpop.f32.mrf.mxu1  ;;  %12547 = vmatmul.mubr.msk.bf16.gmra.mxu1 %vm484_vm2, %v7218_v27  ;;  %v7596_v48 = vsel %vm3386_vm7, %v7591_v39, %v7595_v32  ;;  %v18308_v52 = vshrl.u32 %v18307_v13, 16  ;;  %v18309_v37 = vshll.u32 %v18307_v13, 16  ;;  %v18311_v27 = vld [vmem:[#allocation32_spill] sm:$0xff] }
 0x2e4   : > { %v12406_v30 = vpop.f32.mrf.mxu0  ;;  %12589 = vmatmul.mubr.msk.bf16.gmra.mxu0 %vm484_vm2, %v7588_v3  ;;  %v16347_v45 = vadd.f32 %v12359_v10, %v5137_v54  ;;  %v5135_v31 = vadd.f32 %v5086_v29, %v18302_v62  ;;  %12550 = vmatprep.mubr.msk.bf16.mxu1 %vm484_vm2, %v7220_v6  ;;  %v7223_v10 = vrot.slane %v18297_v18, 3  ;;  %v7600_v18 = vsel %vm3386_vm7, %v7595_v32, %v7599_v43  ;;  %v16371_v6 = vld [vmem:[%s13240_s23 + $0x38] sm:$0xff]  }
 0x2e5   : > { %12592 = vmatprep.mubr.msk.bf16.mxu0 %vm484_vm2, %v7592_v24  ;;  %v12364_v17 = vpop.f32.mrf.mxu1  ;;  %v18304_v24 = vld [vmem:[#allocation6_spill] sm:$0xff]  ;;  %18312 = vst [vmem:[#allocation27_spill] sm:$0xff] %v16371_v6 }
 0x2e6   : > { %18301 = vst [vmem:[#allocation18_spill] sm:$0xff] %v16347_v45  ;;  %v6020_v40 = vpop.f32.mrf.mxu0  ;;  %v16352_v53 = vadd.f32 %v5429_v19, %v5135_v31  ;;  %v5838_v26 = vadd.f32 %v12364_v17, %v16018_v51  ;;  %v18305_v11 = vshrl.u32 %v18304_v24, 16  ;;  %v18306_v2 = vshll.u32 %v18304_v24, 16  ;;  %v18314_v17 = vld [vmem:[#allocation20_spill] sm:$0xff] }
 0x2e7   : > { %v5677_v3 = vpop.f32.mrf.mxu1  ;;  %v7605_v19 = vrot.slane %v18308_v52, 3  ;;  %v7606_v51 = vrot.slane %v18309_v37, 4  ;;  %v7222_v52 = vsel %vm3042_vm8, %v7219_v58, %v7221_v56  ;;  %v7225_v58 = vrot.slane %v18304_v24, 3 }
 0x2e8   : > { %18303 = vst [vmem:[#allocation26_spill] sm:$0xff] %v16352_v53  ;;  %v12407_v60 = vpop.f32.mrf.mxu0  ;;  %v7601_v63 = vrot.slane %v18305_v11, 3  ;;  %v7602_v15 = vrot.slane %v18306_v2, 4  ;;  %v16366_v54 = vadd.f32 %v12406_v30, %v5838_v26  ;;  %v5836_v29 = vadd.f32 %v5677_v3, %v18311_v27  ;;  %v18316_v27 = vld [vmem:[#allocation14_spill] sm:$0xff] }
 0x2e9   : > { %v12365_v62 = vpop.f32.mrf.mxu1  ;;  %v7224_v30 = vsel %vm3042_vm8, %v7221_v56, %v7223_v10  ;;  %v7607_v3 = vor.u32 %v7606_v51, %v7605_v19  ;;  %v18321_v19 = vld [vmem:[#allocation21_spill] sm:$0xff] }
 0x2ea   : > { %18310 = vst [vmem:[#allocation28_spill] sm:$0xff] %v16366_v54  ;;  %v6023_v39 = vpop.f32.mrf.mxu0  ;;  %v16373_v31 = vadd.f32 %v6020_v40, %v5836_v29  ;;  %v5839_v11 = vadd.f32 %v12365_v62, %v18314_v17  ;;  %v7603_v26 = vor.u32 %v7602_v15, %v7601_v63  ;;  %v17888_v29 = vshll.u32 %v16371_v6, 16 }
 0x2eb   : > { %v5680_v37 = vpop.f32.mrf.mxu1  ;;  %v17887_v62 = vshrl.u32 %v16371_v6, 16  ;;  %12551 = vmatmul.mubr.msk.bf16.gmra.mxu1 %vm484_vm2, %v7222_v52 }
 0x2ec   : > { %18313 = vst [vmem:[#allocation4_spill] sm:$0xff] %v16373_v31  ;;  %v12410_v2 = vpop.f32.mrf.mxu0  ;;  %12593 = vmatmul.mubr.msk.bf16.gmra.mxu0 %vm484_vm2, %v7596_v48  ;;  %v16380_v32 = vadd.f32 %v12407_v60, %v5839_v11  ;;  %v5837_v54 = vadd.f32 %v5680_v37, %v18316_v27  ;;  %v18317_v48 = vld [vmem:[#allocation17_spill] sm:$0xff]  ;;  %12554 = vmatprep.mubr.msk.bf16.mxu1 %vm484_vm2, %v7224_v30  ;;  %v9654_v52 = vrot.slane %v17888_v29, 2  ;;  %v7227_v27 = vrot.slane %v18307_v13, 3  ;;  %v18325_v30 = vld [vmem:[#allocation16_spill] sm:$0xff]  ;;  %v18327_v13 = vld [vmem:[#allocation22_spill] sm:$0xff] }
 0x2ed   : > { %12596 = vmatprep.mubr.msk.bf16.mxu0 %vm484_vm2, %v7600_v18  ;;  %v12368_v17 = vpop.f32.mrf.mxu1  ;;  %v18318_v56 = vshrl.u32 %v18317_v48, 16  ;;  %v18319_v63 = vshll.u32 %v18317_v48, 16  ;;  %v9653_v11 = vrot.slane %v17887_v62, 1  ;;  %v7604_v37 = vsel %vm3386_vm7, %v7599_v43, %v7603_v26 }
 0x2ee   : > { %18315 = vst [vmem:[#allocation7_spill] sm:$0xff] %v16380_v32  ;;  %v6036_v40 = vpop.f32.mrf.mxu0  ;;  %v16391_v60 = vadd.f32 %v6023_v39, %v5837_v54  ;;  %v5842_v51 = vadd.f32 %v12368_v17, %v18321_v19  ;;  %v7608_v62 = vsel %vm3386_vm7, %v7603_v26, %v7607_v3 }
 0x2ef   : > { %v7609_v31 = vrot.slane %v18318_v56, 3  ;;  %v7610_v15 = vrot.slane %v18319_v63, 4  ;;  %v5693_v24 = vpop.f32.mrf.mxu1  ;;  %v18322_v56 = vld [vmem:[#allocation19_spill] sm:$0xff]  ;;  %v16409_v29 = vor.u32 %v9654_v52, %v9653_v11  ;;  %v18328_v11 = vld [vmem:[#allocation33_spill] sm:$0xff] }
 0x2f0   : > { %18320 = vst [vmem:[#allocation2_spill] sm:$0xff] %v16391_v60  ;;  %v12411_v18 = vpop.f32.mrf.mxu0  ;;  %v18323_v63 = vshrl.u32 %v18322_v56, 16  ;;  %v18324_v39 = vshll.u32 %v18322_v56, 16  ;;  %v16405_v19 = vadd.f32 %v12410_v2, %v5842_v51  ;;  %v5840_v60 = vadd.f32 %v5693_v24, %v18325_v30 }
 0x2f1   : > { %18326 = vst [vmem:[#allocation5_spill] sm:$0xff] %v16409_v29  ;;  %v12369_v6 = vpop.f32.mrf.mxu1  ;;  %v7611_v2 = vor.u32 %v7610_v15, %v7609_v31  ;;  %v7228_v24 = vsel %vm3042_vm8, %v7225_v58, %v7227_v27  ;;  %v18331_v30 = vshll.u32 %v16052_v35, 16 }
 0x2f2   : > { %v7613_v54 = vrot.slane %v18323_v63, 3  ;;  %v7614_v17 = vrot.slane %v18324_v39, 4  ;;  %v6039_v32 = vpop.f32.mrf.mxu0  ;;  %v16411_v43 = vadd.f32 %v6036_v40, %v5840_v60  ;;  %v5843_v53 = vadd.f32 %v12369_v6, %v18327_v13  ;;  %v16422_v60 = vld [vmem:[%s13240_s23 + $0xbc] sm:$0xf] }
 0x2f3   : > { %v7226_v63 = vsel %vm3042_vm8, %v7223_v10, %v7225_v58  ;;  %v5696_v51 = vpop.f32.mrf.mxu1  ;;  %18329 = vst [vmem:[#allocation10_spill] sm:$0xff] %v16422_v60  ;;  %v7229_v10 = vrot.slane %v18317_v48, 3  ;;  %v7618_v48 = vrot.slane %v18331_v30, 4 }
 0x2f4   : > { %v12414_v45 = vpop.f32.mrf.mxu0  ;;  %12597 = vmatmul.mubr.msk.bf16.gmra.mxu0 %vm484_vm2, %v7604_v37  ;;  %v7615_v26 = vor.u32 %v7614_v17, %v7613_v54  ;;  %v16418_v39 = vadd.f32 %v12411_v18, %v5843_v53  ;;  %v5841_v52 = vadd.f32 %v5696_v51, %v18328_v11  ;;  %12555 = vmatmul.mubr.msk.bf16.gmra.mxu1 %vm484_vm2, %v7226_v63  ;;  %v18330_v54 = vshrl.u32 %v16052_v35, 16 }
 0x2f5   : > { %12600 = vmatprep.mubr.msk.bf16.mxu0 %vm484_vm2, %v7608_v62  ;;  %v12372_v6 = vpop.f32.mrf.mxu1  ;;  %12558 = vmatprep.mubr.msk.bf16.mxu1 %vm484_vm2, %v7228_v24  ;;  %v7612_v53 = vsel %vm3386_vm7, %v7607_v3, %v7611_v2  ;;  %v7231_v62 = vrot.slane %v18322_v56, 3  ;;  %v18332_v3 = vshrl.u32 %v16060_v38, 16  ;;  %v18333_v51 = vshll.u32 %v16060_v38, 16 }
 0x2f6   : > { %v6052_v40 = vpop.f32.mrf.mxu0  ;;  %v16426_v37 = vadd.f32 %v6039_v32, %v5841_v52  ;;  %v5846_v31 = vadd.f32 %v12372_v6, %v16104_v33  ;;  %v7616_v18 = vsel %vm3386_vm7, %v7611_v2, %v7615_v26  ;;  %v7617_v17 = vrot.slane %v18330_v54, 3  ;;  %v18334_v52 = vld [vmem:[#allocation24_spill] sm:$0xff] }
 0x2f7   : > { %v5709_v15 = vpop.f32.mrf.mxu1  ;;  %v11075_v32 = vcombine.low %v16422_v60, %v16422_v60  ;;  %v7621_v56 = vrot.slane %v18332_v3, 3  ;;  %v7622_v2 = vrot.slane %v18333_v51, 4  ;;  %v7230_v30 = vsel %vm3042_vm8, %v7227_v27, %v7229_v10  ;;  %v18335_v51 = vld [vmem:[#allocation25_spill] sm:$0xff] }
 0x2f8   : > { %v12415_v58 = vpop.f32.mrf.mxu0  ;;  %v16439_v33 = vadd.f32 %v12414_v45, %v5846_v31  ;;  %v5844_v13 = vadd.f32 %v5709_v15, %v16113_v44  ;;  %v7232_v44 = vsel %vm3042_vm8, %v7229_v10, %v7231_v62  ;;  %v7619_v31 = vor.u32 %v7618_v48, %v7617_v17 }
 0x2f9   : > { %v12373_v24 = vpop.f32.mrf.mxu1  ;;  %v7626_v15 = vshrl.u32 %v11075_v32, 16  ;;  %v7629_v3 = vshll.u32 %v11075_v32, 16  ;;  %v7623_v60 = vor.u32 %v7622_v2, %v7621_v56  ;;  %v7233_v10 = vrot.slane %v16052_v35, 3 }
 0x2fa   : > { %v6055_v63 = vpop.f32.mrf.mxu0  ;;  %v16446_v11 = vadd.f32 %v6052_v40, %v5844_v13  ;;  %v5847_v6 = vadd.f32 %v12373_v24, %v18334_v52  ;;  %v7235_v17 = vrot.slane %v16060_v38, 3 }
 0x2fb   : > { %v5712_v45 = vpop.f32.mrf.mxu1  ;;  %v7628_v48 = vrot.slane %v7626_v15, 3  ;;  %v7631_v32 = vrot.slane %v7629_v3, 4 }
 0x2fc   : > { %v12418_v54 = vpop.f32.mrf.mxu0  ;;  %12601 = vmatmul.mubr.msk.bf16.gmra.mxu0 %vm484_vm2, %v7612_v53  ;;  %v16453_v29 = vadd.f32 %v12415_v58, %v5847_v6  ;;  %v5845_v40 = vadd.f32 %v5712_v45, %v18335_v51  ;;  %12559 = vmatmul.mubr.msk.bf16.gmra.mxu1 %vm484_vm2, %v7230_v30  ;;  %v7620_v58 = vsel %vm3386_vm7, %v7615_v26, %v7619_v31 }
 0x2fd   : > { %12604 = vmatprep.mubr.msk.bf16.mxu0 %vm484_vm2, %v7616_v18  ;;  %v12376_v24 = vpop.f32.mrf.mxu1  ;;  %12562 = vmatprep.mubr.msk.bf16.mxu1 %vm484_vm2, %v7232_v44  ;;  %v7624_v6 = vsel %vm3386_vm7, %v7619_v31, %v7623_v60  ;;  %v7234_v44 = vsel %vm3042_vm8, %v7231_v62, %v7233_v10  ;;  %v7236_v26 = vsel %vm3042_vm8, %v7233_v10, %v7235_v17 }
 0x2fe   : > { %v6068_v13 = vpop.f32.mrf.mxu0  ;;  %v16457_v27 = vadd.f32 %v6055_v63, %v5845_v40  ;;  %v5850_v53 = vadd.f32 %v12376_v24, %v16138_v55  ;;  %v18336_v40 = vld [vmem:[#allocation23_spill] sm:$0xff] }
 0x2ff   : > { %v5725_v18 = vpop.f32.mrf.mxu1 }
 0x300   : > { %v12419_v52 = vpop.f32.mrf.mxu0  ;;  %v16464_v56 = vadd.f32 %v12418_v54, %v5850_v53  ;;  %v5848_v2 = vadd.f32 %v5725_v18, %v16142_v49  ;;  %v7632_v49 = vor.u32 %v7631_v32, %v7628_v48 }
 0x301   : > { %v12377_v55 = vpop.f32.mrf.mxu1 }
 0x302   : > { %v6071_v63 = vpop.f32.mrf.mxu0  ;;  %v16468_v30 = vadd.f32 %v6068_v13, %v5848_v2  ;;  %v5851_v45 = vadd.f32 %v12377_v55, %v16149_v61  ;;  %v7237_v13 = vrot.slane %v18336_v40, 3  ;;  %v7633_v53 = vsel %vm3386_vm7, %v7623_v60, %v7632_v49  ;;  %v13147_v60 = vld [vmem:[%s13240_s23 + $0x24] sm:$0xf] }
 0x303   : > { %v5728_v38 = vpop.f32.mrf.mxu1 }
 0x304   : > { %v12422_v35 = vpop.f32.mrf.mxu0  ;;  %12605 = vmatmul.mubr.msk.bf16.gmra.mxu0 %vm484_vm2, %v7620_v58  ;;  %v16475_v54 = vadd.f32 %v12419_v52, %v5851_v45  ;;  %v5849_v31 = vadd.f32 %v5728_v38, %v16154_v34  ;;  %12563 = vmatmul.mubr.msk.bf16.gmra.mxu1 %vm484_vm2, %v7234_v44  ;;  %v13040_v52 = vld [vmem:[%s13240_s23 + $0x28] sm:$0xff]   ;;  %v7238_v2 = vsel %vm3042_vm8, %v7235_v17, %v7237_v13 }
 0x305   : > { %12608 = vmatprep.mubr.msk.bf16.mxu0 %vm484_vm2, %v7624_v6  ;;  %v12380_v3 = vpop.f32.mrf.mxu1  ;;  %12566 = vmatprep.mubr.msk.bf16.mxu1 %vm484_vm2, %v7236_v26  ;;  %v13041_v26 = vld [vmem:[%s13240_s23 + $0x30] sm:$0xff]  }
 0x306   : > { %v6084_v15 = vpop.f32.mrf.mxu0  ;;  %v16479_v61 = vadd.f32 %v6071_v63, %v5849_v31  ;;  %v5854_v62 = vadd.f32 %v12380_v3, %v16168_v22  ;;  %v13146_v63 = vld [vmem:[%s13240_s23 + $0x20] sm:$0xf]  ;;  %v13043_v31 = vld [vmem:[%s13240_s23 + $0x38] sm:$0xff]  }
 0x307   : > { %v5741_v24 = vpop.f32.mrf.mxu1  ;;  %v11097_v6 = vcombine.low %v13146_v63, %v13147_v60 }
 0x308   : > { %v12423_v51 = vpop.f32.mrf.mxu0  ;;  %v16486_v34 = vadd.f32 %v12422_v35, %v5854_v62  ;;  %v5852_v10 = vadd.f32 %v5741_v24, %v16172_v46  ;;  %v9400_v62 = vsel %vm545_vm0, %v16207_v5, 0  ;;  %v9057_v5 = vsel %vm545_vm0, %v16224_v0, 0  ;;  %v18337_v0 = vld [vmem:[#allocation29_spill] sm:$0xff] }
 0x309   : > { %v12381_v58 = vpop.f32.mrf.mxu1 }
 0x30a   : > { %v6087_v18 = vpop.f32.mrf.mxu0  ;;  %v16489_v48 = vadd.f32 %v6084_v15, %v5852_v10  ;;  %v5855_v22 = vadd.f32 %v12381_v58, %v16179_v41 }
 0x30b   : > { %v5744_v55 = vpop.f32.mrf.mxu1 }
 0x30c   : > { %v12426_v32 = vpop.f32.mrf.mxu0  ;;  %12609 = vmatmul.mubr.msk.bf16.gmra.mxu0 %vm484_vm2, %v7633_v53  ;;  %v16497_v46 = vadd.f32 %v12423_v51, %v5855_v22  ;;  %v5853_v45 = vadd.f32 %v5744_v55, %v16184_v47  ;;  %12567 = vmatmul.mubr.msk.bf16.gmra.mxu1 %vm484_vm2, %v7238_v2  ;;  %v13148_v53 = vld [vmem:[%s13240_s23 + $0x30] sm:$0xf]  ;;  %v16532_v22 = vld [vmem:[%s17751_s1 + $0x5c] sm:$0xf]  ;;  %v18338_v2 = vld [vmem:[#allocation30_spill] sm:$0xff] }
 0x30d   : > { %12656 = vmatprep.mubr.msk.bf16.mxu0 %vm484_vm2, %v13040_v52  ;;  %v12384_v44 = vpop.f32.mrf.mxu1  ;;  %12614 = vmatprep.mubr.msk.bf16.mxu1 %vm484_vm2, %v11097_v6  ;;  %v13149_v52 = vld [vmem:[%s13240_s23 + $0x34] sm:$0xf]  ;;  %v18339_v63 = vcombine.low %v18337_v0, %v18338_v2  ;;  %v13045_v55 = vld [vmem:[%s13240_s23 + $0x40] sm:$0xff]   ;;  %v13051_v0 = vld [vmem:[%s13240_s23 + $0x58] sm:$0xff]  }
 0x30e   : > { %v6100_v35 = vpop.f32.mrf.mxu0  ;;  %v16501_v41 = vadd.f32 %v6087_v18, %v5853_v45  ;;  %v5858_v17 = vadd.f32 %v12384_v44, %v16197_v28  ;;  %v16515_v28 = vld [vmem:[%s17751_s1 + $0x60] sm:$0xf] }
 0x30f   : > { %v5757_v49 = vpop.f32.mrf.mxu1 }
 0x310   : > { %v12427_v38 = vpop.f32.mrf.mxu0  ;;  %v16507_v15 = vadd.f32 %v12426_v32, %v5858_v17  ;;  %v5856_v47 = vadd.f32 %v5757_v49, %v16209_v9  ;;  %v11099_v9 = vcombine.low %v13148_v53, %v13149_v52  ;;  %v13150_v49 = vld [vmem:[%s13240_s23 + $0x38] sm:$0xf] }
 0x311   : > { %v12385_v51 = vpop.f32.mrf.mxu1 }
 0x312   : > { %v6103_v3 = vpop.f32.mrf.mxu0  ;;  %v16517_v40 = vadd.f32 %v6100_v35, %v5856_v47  ;;  %v5859_v13 = vadd.f32 %v12385_v51, %v16218_v50  ;;  %v13047_v35 = vld [vmem:[%s13240_s23 + $0x48] sm:$0xff]   ;;  %v13152_v51 = vld [vmem:[%s13240_s23 + $0x40] sm:$0xf] }
 0x313   : > { %v5760_v10 = vpop.f32.mrf.mxu1 }
 0x314   : > { %v12430_v24 = vpop.f32.mrf.mxu0  ;;  %12657 = vmatmul.mubr.msk.bf16.vlgmr.msra.gmra.mxu0 %vm484_vm2, %v13041_v26  ;;  %v16526_v18 = vadd.f32 %v12427_v38, %v5859_v13  ;;  %v5857_v58 = vadd.f32 %v5760_v10, %v16230_v16  ;;  %12615 = vmatmul.mubr.msk.bf16.vlgmr.msra.gmra.mxu1 %vm484_vm2, %v18339_v63  ;;  %v13153_v13 = vld [vmem:[%s13240_s23 + $0x44] sm:$0xf] }
 0x315   : > { %12739 = vmatpush3.bf16.msra.mxu0 %v9400_v62  ;;  %12660 = vmatprep.mubr.msk.bf16.mxu0 %vm484_vm2, %v13043_v31  ;;  %v12388_v32 = vpop.f32.mrf.mxu1 }
 0x316   : > { %v6116_v50 = vpop.f32.mrf.mxu0  ;;  %12891 = vmatprep.subr.msk.bf16.mxu0 %vm545_vm0, %v16515_v28  ;;  %v16540_v60 = vadd.f32 %v6103_v3, %v5857_v58  ;;  %v5862_v16 = vadd.f32 %v12388_v32, %v16246_v57  ;;  %12697 = vmatpush3.bf16.msra.mxu1 %v9057_v5  ;;  %v13151_v57 = vld [vmem:[%s13240_s23 + $0x3c] sm:$0xf] }
 0x317   : > { %12618 = vmatprep.mubr.msk.bf16.mxu1 %vm484_vm2, %v11099_v9  ;;  %v5773_v45 = vpop.f32.mrf.mxu1  ;;  %12890 = vmatprep.subr.msk.bf16.mxu1 %vm545_vm0, %v16532_v22  ;;  %v11100_v31 = vcombine.low %v13150_v49, %v13151_v57 }
 0x318   : > { %v12431_v6 = vpop.f32.mrf.mxu0  ;;  %v16548_v44 = vadd.f32 %v12430_v24, %v5862_v16  ;;  %v5860_v17 = vadd.f32 %v5773_v45, %v16250_v36  ;;  %v11101_v24 = vcombine.low %v13152_v51, %v13153_v13 }
 0x319   : > { %v12389_v26 = vpop.f32.mrf.mxu1 }
 0x31a   : > { %v6119_v38 = vpop.f32.mrf.mxu0  ;;  %v16553_v47 = vadd.f32 %v6116_v50, %v5860_v17  ;;  %v5863_v3 = vadd.f32 %v12389_v26, %v16257_v12  ;;  %v13049_v50 = vld [vmem:[%s13240_s23 + $0x50] sm:$0xff]  }
 0x31b   : > { %v5776_v53 = vpop.f32.mrf.mxu1  ;;  %v13157_v26 = vld [vmem:[%s13240_s23 + $0x54] sm:$0xf] }
 0x31c   : > { %v12434_v62 = vpop.f32.mrf.mxu0  ;;  %12661 = vmatmul.mubr.msk.bf16.gmra.mxu0 %vm484_vm2, %v13045_v55  ;;  %v16560_v36 = vadd.f32 %v12431_v6, %v5863_v3  ;;  %v5861_v52 = vadd.f32 %v5776_v53, %v16262_v59  ;;  %12619 = vmatmul.mubr.msk.bf16.gmra.mxu1 %vm484_vm2, %v11100_v31  ;;  %v13154_v6 = vld [vmem:[%s13240_s23 + $0x48] sm:$0xf]  ;;  %v13155_v55 = vld [vmem:[%s13240_s23 + $0x4c] sm:$0xf] }
 0x31d   : > { %12664 = vmatprep.mubr.msk.bf16.mxu0 %vm484_vm2, %v13047_v35  ;;  %v12392_v10 = vpop.f32.mrf.mxu1  ;;  %12622 = vmatprep.mubr.msk.bf16.mxu1 %vm484_vm2, %v11101_v24  ;;  %v11102_v45 = vcombine.low %v13154_v6, %v13155_v55  ;;  %v13053_v24 = vld [vmem:[%s13240_s23 + $0x60] sm:$0xff]  }
 0x31e   : > { %v6132_v9 = vpop.f32.mrf.mxu0  ;;  %v16564_v12 = vadd.f32 %v6119_v38, %v5861_v52  ;;  %v5866_v5 = vadd.f32 %v12392_v10, %v16273_v23  ;;  %v13156_v38 = vld [vmem:[%s13240_s23 + $0x50] sm:$0xf]  ;;  %v13055_v52 = vld [vmem:[%s13240_s23 + $0x68] sm:$0xff]  }
 0x31f   : > { %v5789_v32 = vpop.f32.mrf.mxu1  ;;  %v11103_v49 = vcombine.low %v13156_v38, %v13157_v26 }
 0x320   : > { %v12435_v58 = vpop.f32.mrf.mxu0  ;;  %v16570_v2 = vadd.f32 %v12434_v62, %v5866_v5  ;;  %v5864_v59 = vadd.f32 %v5789_v32, %v16280_v25 }
 0x321   : > { %v12393_v16 = vpop.f32.mrf.mxu1 }
 0x322   : > { %v6135_v63 = vpop.f32.mrf.mxu0  ;;  %v16575_v35 = vadd.f32 %v6132_v9, %v5864_v59  ;;  %v5867_v23 = vadd.f32 %v12393_v16, %v16287_v4  ;;  %v13161_v16 = vld [vmem:[%s13240_s23 + $0x64] sm:$0xf] }
 0x323   : > { %v5792_v57 = vpop.f32.mrf.mxu1 }
 0x324   : > { %v12438_v17 = vpop.f32.mrf.mxu0  ;;  %12665 = vmatmul.mubr.msk.bf16.gmra.mxu0 %vm484_vm2, %v13049_v50  ;;  %v16582_v25 = vadd.f32 %v12435_v58, %v5867_v23  ;;  %v5865_v31 = vadd.f32 %v5792_v57, %v16292_v20  ;;  %12623 = vmatmul.mubr.msk.bf16.gmra.mxu1 %vm484_vm2, %v11102_v45  ;;  %v13158_v58 = vld [vmem:[%s13240_s23 + $0x58] sm:$0xf]  ;;  %v13159_v50 = vld [vmem:[%s13240_s23 + $0x5c] sm:$0xf] }
 0x325   : > { %12668 = vmatprep.mubr.msk.bf16.mxu0 %vm484_vm2, %v13051_v0  ;;  %v12396_v62 = vpop.f32.mrf.mxu1  ;;  %12626 = vmatprep.mubr.msk.bf16.mxu1 %vm484_vm2, %v11103_v49  ;;  %v11104_v32 = vcombine.low %v13158_v58, %v13159_v50  ;;  %v13057_v49 = vld [vmem:[%s13240_s23 + $0x70] sm:$0xff]  }
 0x326   : > { %v6148_v3 = vpop.f32.mrf.mxu0  ;;  %v16586_v4 = vadd.f32 %v6135_v63, %v5865_v31  ;;  %v5870_v51 = vadd.f32 %v12396_v62, %v16306_v14  ;;  %v13160_v63 = vld [vmem:[%s13240_s23 + $0x60] sm:$0xf]  ;;  %v13059_v31 = vld [vmem:[%s13240_s23 + $0x78] sm:$0xff]   ;;  %v13165_v58 = vld [vmem:[%s13240_s23 + $0x74] sm:$0xf] }
 0x327   : > { %v5805_v53 = vpop.f32.mrf.mxu1  ;;  %v11105_v6 = vcombine.low %v13160_v63, %v13161_v16 }
 0x328   : > { %v12439_v13 = vpop.f32.mrf.mxu0  ;;  %v16592_v9 = vadd.f32 %v12438_v17, %v5870_v51  ;;  %v5868_v20 = vadd.f32 %v5805_v53, %v16310_v21 }
 0x329   : > { %v12397_v5 = vpop.f32.mrf.mxu1 }
 0x32a   : > { %v6151_v10 = vpop.f32.mrf.mxu0  ;;  %v16597_v0 = vadd.f32 %v6148_v3, %v5868_v20  ;;  %v5871_v14 = vadd.f32 %v12397_v5, %v16317_v1  ;;  %v13164_v5 = vld [vmem:[%s13240_s23 + $0x70] sm:$0xf] }
 0x32b   : > { %v5808_v55 = vpop.f32.mrf.mxu1  ;;  %v11107_v50 = vcombine.low %v13164_v5, %v13165_v58  ;;  %v13168_v58 = vld [vmem:[%s13240_s23 + $0x80] sm:$0xf] }
 0x32c   : > { %v12442_v59 = vpop.f32.mrf.mxu0  ;;  %12669 = vmatmul.mubr.msk.bf16.gmra.mxu0 %vm484_vm2, %v13053_v24  ;;  %v16604_v21 = vadd.f32 %v12439_v13, %v5871_v14  ;;  %v5869_v45 = vadd.f32 %v5808_v55, %v16322_v7  ;;  %12627 = vmatmul.mubr.msk.bf16.gmra.mxu1 %vm484_vm2, %v11104_v32  ;;  %v13162_v13 = vld [vmem:[%s13240_s23 + $0x68] sm:$0xf]  ;;  %v13163_v24 = vld [vmem:[%s13240_s23 + $0x6c] sm:$0xf]  ;;  %v18341_v14 = vld [vmem:[#allocation26_spill] sm:$0xff] }
 0x32d   : > { %12672 = vmatprep.mubr.msk.bf16.mxu0 %vm484_vm2, %v13055_v52  ;;  %v12400_v17 = vpop.f32.mrf.mxu1  ;;  %12630 = vmatprep.mubr.msk.bf16.mxu1 %vm484_vm2, %v11105_v6  ;;  %v11106_v53 = vcombine.low %v13162_v13, %v13163_v24  ;;  %v18342_v55 = vld [vmem:[#allocation28_spill] sm:$0xff]  ;;  %v13166_v13 = vld [vmem:[%s13240_s23 + $0x78] sm:$0xf]  ;;  %v13167_v24 = vld [vmem:[%s13240_s23 + $0x7c] sm:$0xf] }
 0x32e   : > { %v6164_v23 = vpop.f32.mrf.mxu0  ;;  %v16608_v1 = vadd.f32 %v6151_v10, %v5869_v45  ;;  %v5874_v38 = vadd.f32 %v12400_v17, %v16333_v42  ;;  %v18340_v42 = vld [vmem:[#allocation18_spill] sm:$0xff] }
 0x32f   : > { %v5821_v57 = vpop.f32.mrf.mxu1  ;;  %v13061_v17 = vld [vmem:[%s13240_s23 + $0x80] sm:$0xff]  }
 0x330   : > { %v12443_v26 = vpop.f32.mrf.mxu0  ;;  %v16614_v3 = vadd.f32 %v12442_v59, %v5874_v38  ;;  %v5872_v7 = vadd.f32 %v5821_v57, %v16340_v8  ;;  %v18343_v57 = vld [vmem:[#allocation4_spill] sm:$0xff] }
 0x331   : > { %v12401_v51 = vpop.f32.mrf.mxu1 }
 0x332   : > { %v6167_v62 = vpop.f32.mrf.mxu0  ;;  %v16619_v52 = vadd.f32 %v6164_v23, %v5872_v7  ;;  %v5875_v20 = vadd.f32 %v12401_v51, %v18340_v42  ;;  %v18344_v42 = vld [vmem:[#allocation7_spill] sm:$0xff] }
 0x333   : > { %v5824_v32 = vpop.f32.mrf.mxu1 }
 0x334   : > { %v12490_v10 = vpop.f32.mrf.mxu0  ;;  %12673 = vmatmul.mubr.msk.bf16.gmra.mxu0 %vm484_vm2, %v13057_v49  ;;  %v16626_v8 = vadd.f32 %v12443_v26, %v5875_v20  ;;  %v5873_v59 = vadd.f32 %v5824_v32, %v18341_v14  ;;  %12631 = vmatmul.mubr.msk.bf16.gmra.mxu1 %vm484_vm2, %v11106_v53  ;;  %v13063_v26 = vld [vmem:[%s13240_s23 + $0x88] sm:$0xff]  }
 0x335   : > { %12676 = vmatprep.mubr.msk.bf16.mxu0 %vm484_vm2, %v13059_v31  ;;  %v12448_v16 = vpop.f32.mrf.mxu1  ;;  %12634 = vmatprep.mubr.msk.bf16.mxu1 %vm484_vm2, %v11107_v50  ;;  %v13169_v50 = vld [vmem:[%s13240_s23 + $0x84] sm:$0xf] }
 0x336   : > { %v6993_v63 = vpop.f32.mrf.mxu0  ;;  %v16630_v6 = vadd.f32 %v6167_v62, %v5873_v59  ;;  %v6664_v45 = vadd.f32 %v12448_v16, %v18342_v55  ;;  %v11108_v62 = vcombine.low %v13166_v13, %v13167_v24  ;;  %v18345_v59 = vld [vmem:[#allocation2_spill] sm:$0xff] }
 0x337   : > { %v6503_v38 = vpop.f32.mrf.mxu1 }
 0x338   : > { %v12491_v23 = vpop.f32.mrf.mxu0  ;;  %v16636_v49 = vadd.f32 %v12490_v10, %v6664_v45  ;;  %v6662_v31 = vadd.f32 %v6503_v38, %v18343_v57  ;;  %v11109_v10 = vcombine.low %v13168_v58, %v13169_v50  ;;  %v13067_v57 = vld [vmem:[%s13240_s23 + $0x98] sm:$0xff]   ;;  %v13172_v50 = vld [vmem:[%s13240_s23 + $0x90] sm:$0xf] }
 0x339   : > { %v12449_v51 = vpop.f32.mrf.mxu1 }
 0x33a   : > { %v6996_v7 = vpop.f32.mrf.mxu0  ;;  %v16641_v53 = vadd.f32 %v6993_v63, %v6662_v31  ;;  %v6665_v20 = vadd.f32 %v12449_v51, %v18344_v42  ;;  %v13170_v42 = vld [vmem:[%s13240_s23 + $0x88] sm:$0xf] }
 0x33b   : > { %v6506_v32 = vpop.f32.mrf.mxu1 }
 0x33c   : > { %v12494_v5 = vpop.f32.mrf.mxu0  ;;  %12677 = vmatmul.mubr.msk.bf16.gmra.mxu0 %vm484_vm2, %v13061_v17  ;;  %v16648_v14 = vadd.f32 %v12491_v23, %v6665_v20  ;;  %v6663_v16 = vadd.f32 %v6506_v32, %v18345_v59  ;;  %12635 = vmatmul.mubr.msk.bf16.gmra.mxu1 %vm484_vm2, %v11108_v62  ;;  %v13171_v62 = vld [vmem:[%s13240_s23 + $0x8c] sm:$0xf] }
 0x33d   : > { %12680 = vmatprep.mubr.msk.bf16.mxu0 %vm484_vm2, %v13063_v26  ;;  %v12452_v55 = vpop.f32.mrf.mxu1  ;;  %12638 = vmatprep.mubr.msk.bf16.mxu1 %vm484_vm2, %v11109_v10  ;;  %v13065_v26 = vld [vmem:[%s13240_s23 + $0x90] sm:$0xff]  }
 0x33e   : > { %v7009_v63 = vpop.f32.mrf.mxu0  ;;  %v16652_v45 = vadd.f32 %v6996_v7, %v6663_v16  ;;  %v6668_v17 = vadd.f32 %v12452_v55, %v16405_v19  ;;  %v11110_v7 = vcombine.low %v13170_v42, %v13171_v62  ;;  %v13173_v10 = vld [vmem:[%s13240_s23 + $0x94] sm:$0xf]  ;;  %v16685_v42 = vld [vmem:[%s13240_s23 + $0x2c] sm:$0xf]  ;;  %v13174_v62 = vld [vmem:[%s13240_s23 + $0x98] sm:$0xf] }
 0x33f   : > { %v6519_v23 = vpop.f32.mrf.mxu1 }
 0x340   : > { %v12495_v38 = vpop.f32.mrf.mxu0  ;;  %v16658_v31 = vadd.f32 %v12494_v5, %v6668_v17  ;;  %v6666_v51 = vadd.f32 %v6519_v23, %v16411_v43  ;;  %v11111_v5 = vcombine.low %v13172_v50, %v13173_v10  ;;  %v13071_v23 = vld [vmem:[%s13240_s23 + $0xa8] sm:$0xff]  }
 0x341   : > { %v12453_v24 = vpop.f32.mrf.mxu1 }
 0x342   : > { %v7012_v13 = vpop.f32.mrf.mxu0  ;;  %v16663_v20 = vadd.f32 %v7009_v63, %v6666_v51  ;;  %v6669_v19 = vadd.f32 %v12453_v24, %v16418_v39  ;;  %v8686_v24 = vld [vmem:[%s13240_s23 + $0x28] sm:$0xf] }
 0x343   : > { %v6522_v32 = vpop.f32.mrf.mxu1 }
 0x344   : > { %v12498_v58 = vpop.f32.mrf.mxu0  ;;  %12681 = vmatmul.mubr.msk.bf16.gmra.mxu0 %vm484_vm2, %v13065_v26  ;;  %v16670_v43 = vadd.f32 %v12495_v38, %v6669_v19  ;;  %v6667_v59 = vadd.f32 %v6522_v32, %v16426_v37  ;;  %12639 = vmatmul.mubr.msk.bf16.gmra.mxu1 %vm484_vm2, %v11110_v7  ;;  %v13069_v26 = vld [vmem:[%s13240_s23 + $0xa0] sm:$0xff]   ;;  %v13175_v7 = vld [vmem:[%s13240_s23 + $0x9c] sm:$0xf] }
 0x345   : > { %12684 = vmatprep.mubr.msk.bf16.mxu0 %vm484_vm2, %v13067_v57  ;;  %v12456_v39 = vpop.f32.mrf.mxu1  ;;  %12642 = vmatprep.mubr.msk.bf16.mxu1 %vm484_vm2, %v11111_v5  ;;  %v13177_v5 = vld [vmem:[%s13240_s23 + $0xa4] sm:$0xf] }
 0x346   : > { %v7025_v16 = vpop.f32.mrf.mxu0  ;;  %v16674_v63 = vadd.f32 %v7012_v13, %v6667_v59  ;;  %v6672_v55 = vadd.f32 %v12456_v39, %v16439_v33  ;;  %v11112_v33 = vcombine.low %v13174_v62, %v13175_v7  ;;  %v11179_v59 = vcombine.low %v8686_v24, %v16685_v42 }
 0x347   : > { %v6535_v38 = vpop.f32.mrf.mxu1 }
 0x348   : > { %v12499_v17 = vpop.f32.mrf.mxu0  ;;  %v16680_v57 = vadd.f32 %v12498_v58, %v6672_v55  ;;  %v6670_v37 = vadd.f32 %v6535_v38, %v16446_v11  ;;  %v13176_v58 = vld [vmem:[%s13240_s23 + $0xa0] sm:$0xf]  ;;  %v8835_v62 = vshll.u32 %v11179_v59, 16 }
 0x349   : > { %v12457_v13 = vpop.f32.mrf.mxu1  ;;  %v11113_v11 = vcombine.low %v13176_v58, %v13177_v5  ;;  %v13178_v58 = vld [vmem:[%s13240_s23 + $0xa8] sm:$0xf]  ;;  %v13179_v5 = vld [vmem:[%s13240_s23 + $0xac] sm:$0xf] }
 0x34a   : > { %v7028_v51 = vpop.f32.mrf.mxu0  ;;  %v16689_v19 = vadd.f32 %v7025_v16, %v6670_v37  ;;  %v6673_v50 = vadd.f32 %v12457_v13, %v16453_v29 }
 0x34b   : > { %v6538_v32 = vpop.f32.mrf.mxu1 }
 0x34c   : > { %v12502_v10 = vpop.f32.mrf.mxu0  ;;  %12685 = vmatmul.mubr.msk.bf16.gmra.mxu0 %vm484_vm2, %v13069_v26  ;;  %v16697_v39 = vadd.f32 %v12499_v17, %v6673_v50  ;;  %v6671_v16 = vadd.f32 %v6538_v32, %v16457_v27  ;;  %12643 = vmatmul.mubr.msk.bf16.gmra.mxu1 %vm484_vm2, %v11112_v33  ;;  %v9292_v26 = vld [vmem:[%s13240_s23 + $0x28] sm:$0xe]  ;;  %v13075_v17 = vld [vmem:[%s13240_s23 + $0xb8] sm:$0xff]   ;;  %v16709_v27 = vld [vmem:[%s13240_s23 + $0x30] sm:$0xff]  }
 0x34d   : > { %12688 = vmatprep.mubr.msk.bf16.mxu0 %vm484_vm2, %v13071_v23  ;;  %v12460_v29 = vpop.f32.mrf.mxu1  ;;  %12646 = vmatprep.mubr.msk.bf16.mxu1 %vm484_vm2, %v11113_v11  ;;  %v13073_v23 = vld [vmem:[%s13240_s23 + $0xb0] sm:$0xff]   ;;  %v11114_v11 = vcombine.low %v13178_v58, %v13179_v5 }
 0x34e   : > { %v7041_v55 = vpop.f32.mrf.mxu0  ;;  %v16702_v38 = vadd.f32 %v7028_v51, %v6671_v16  ;;  %v6676_v37 = vadd.f32 %v12460_v29, %v16464_v56  ;;  %v16715_v51 = vcombine.low %v9292_v26, %v16685_v42  ;;  %v8837_v26 = vrot.slane %v8835_v62, 1 }
 0x34f   : > { %v6551_v24 = vpop.f32.mrf.mxu1 }
 0x350   : > { %18346 = vst [vmem:[#allocation9_spill] sm:$0xff] %v16702_v38  ;;  %v12503_v13 = vpop.f32.mrf.mxu0  ;;  %v16711_v7 = vadd.f32 %v12502_v10, %v6676_v37  ;;  %v6674_v33 = vadd.f32 %v6551_v24, %v16468_v30  ;;  %v13180_v38 = vld [vmem:[%s13240_s23 + $0xb0] sm:$0xf]  ;;  %v13181_v10 = vld [vmem:[%s13240_s23 + $0xb4] sm:$0xf]  ;;  %v8833_v30 = vshrl.u32 %v11179_v59, 16 }
 0x351   : > { %v12461_v56 = vpop.f32.mrf.mxu1  ;;  %v11115_v37 = vcombine.low %v13180_v38, %v13181_v10  ;;  %v17893_v24 = vshll.u32 %v16709_v27, 16 }
 0x352   : > { %18347 = vst [vmem:[#allocation15_spill] sm:$0xff] %v16711_v7  ;;  %v7044_v50 = vpop.f32.mrf.mxu0  ;;  %v16719_v32 = vadd.f32 %v7041_v55, %v6674_v33  ;;  %v6677_v16 = vadd.f32 %v12461_v56, %v16475_v54  ;;  %v9298_v33 = vrot.slane %v16715_v51, 1  ;;  %v8838_v5 = vor.u32 %v8837_v26, %v8833_v30 }
 0x353   : > { %v6554_v7 = vpop.f32.mrf.mxu1 }
 0x354   : > { %v12506_v29 = vpop.f32.mrf.mxu0  ;;  %12689 = vmatmul.mubr.msk.bf16.gmra.mxu0 %vm484_vm2, %v13073_v23  ;;  %v16727_v58 = vadd.f32 %v12503_v13, %v6677_v16  ;;  %v6675_v55 = vadd.f32 %v6554_v7, %v16479_v61  ;;  %v9299_v23 = vrot.slane %v16709_v27, 1  ;;  %12647 = vmatmul.mubr.msk.bf16.gmra.mxu1 %vm484_vm2, %v11114_v11  ;;  %v13077_v13 = vld [vmem:[%s13240_s23 + $0xc0] sm:$0xff]   ;;  %v8842_v61 = vrot.slane %v17893_v24, 1 }
 0x355   : > { %12692 = vmatprep.mubr.msk.bf16.mxu0 %vm484_vm2, %v13075_v17  ;;  %v12464_v56 = vpop.f32.mrf.mxu1  ;;  %12650 = vmatprep.mubr.msk.bf16.mxu1 %vm484_vm2, %v11115_v37  ;;  %v16741_v7 = vld [vmem:[%s13240_s23 + $0x40] sm:$0xff]   ;;  %v17894_v37 = vshrl.u32 %v16709_v27, 16 }
 0x356   : > { %18348 = vst [vmem:[#allocation3_spill] sm:$0xff] %v16727_v58  ;;  %v7057_v54 = vpop.f32.mrf.mxu0  ;;  %v16733_v38 = vadd.f32 %v7044_v50, %v6675_v55  ;;  %v6680_v59 = vadd.f32 %v12464_v56, %v16486_v34  ;;  %v9300_v50 = vsel %vm984_vm3, %v9298_v33, %v9299_v23  ;;  %v13182_v34 = vld [vmem:[%s13240_s23 + $0xb8] sm:$0xf]  ;;  %v18350_v56 = vld [vmem:[#allocation10_spill] sm:$0xff]  ;;  %v18351_v33 = vld [vmem:[#allocation27_spill] sm:$0xff] }
 0x357   : > { %v6567_v62 = vpop.f32.mrf.mxu1 }
 0x358   : > { %18349 = vst [vmem:[#allocation31_spill] sm:$0xff] %v16733_v38  ;;  %v12507_v17 = vpop.f32.mrf.mxu0  ;;  %v16743_v16 = vadd.f32 %v12506_v29, %v6680_v59  ;;  %v6678_v10 = vadd.f32 %v6567_v62, %v16489_v48  ;;  %v11116_v38 = vcombine.low %v13182_v34, %v18350_v56  ;;  %v8843_v48 = vsel %vm319_vm1, %v8838_v5, %v8842_v61  ;;  %v16768_v56 = vld [vmem:[%s13240_s23 + $0x48] sm:$0xff]  }
 0x359   : > { %v12465_v55 = vpop.f32.mrf.mxu1  ;;  %v9301_v59 = vrot.slane %v18351_v33, 1  ;;  %v18353_v5 = vshll.u32 %v18351_v33, 16 }
 0x35a   : > { %v7060_v11 = vpop.f32.mrf.mxu0  ;;  %v16750_v58 = vadd.f32 %v7057_v54, %v6678_v10  ;;  %v6681_v30 = vadd.f32 %v12465_v55, %v16497_v46  ;;  %v9303_v46 = vrot.slane %v16741_v7, 1 }
 0x35b   : > { %v6570_v29 = vpop.f32.mrf.mxu1 }
 0x35c   : > { %v12510_v26 = vpop.f32.mrf.mxu0  ;;  %12693 = vmatmul.mubr.msk.bf16.gmra.mxu0 %vm484_vm2, %v13077_v13  ;;  %v16758_v34 = vadd.f32 %v12507_v17, %v6681_v30  ;;  %v6679_v54 = vadd.f32 %v6570_v29, %v16501_v41  ;;  %12651 = vmatmul.mubr.msk.bf16.gmra.mxu1 %vm484_vm2, %v11116_v38  ;;  %v8846_v13 = vor.u32 %v17894_v37, %v8842_v61  ;;  %v18355_v38 = vshrl.u32 %v18351_v33, 16 }
 0x35d   : > { %12740 = vmatprep.mubr.msk.bf16.mxu0 %vm484_vm2, %v9300_v50  ;;  %v12468_v55 = vpop.f32.mrf.mxu1  ;;  %v8850_v50 = vrot.slane %v18353_v5, 1  ;;  %12698 = vmatprep.mubr.msk.bf16.mxu1 %vm484_vm2, %v8843_v48  ;;  %v9302_v29 = vsel %vm984_vm3, %v9299_v23, %v9301_v59  ;;  %v18356_v61 = vshll.u32 %v16741_v7, 16  ;;  %v9304_v48 = vsel %vm984_vm3, %v9301_v59, %v9303_v46 }
 0x35e   : > { %18352 = vst [vmem:[#allocation8_spill] sm:$0xff] %v16758_v34  ;;  %v7073_v10 = vpop.f32.mrf.mxu0  ;;  %v16770_v24 = vadd.f32 %v7060_v11, %v6679_v54  ;;  %v6684_v17 = vadd.f32 %v12468_v55, %v16507_v15  ;;  %v16780_v34 = vld [vmem:[%s13240_s23 + $0x50] sm:$0xff]   ;;  %v10138_v15 = vsel %vm545_vm0, %v16515_v28, 0  ;;  %v17895_v33 = vshll.u32 %v16768_v56, 16 }
 0x35f   : > { %v6583_v30 = vpop.f32.mrf.mxu1  ;;  %v8854_v62 = vor.u32 %v18355_v38, %v8850_v50  ;;  %v8858_v37 = vrot.slane %v18356_v61, 1  ;;  %v8851_v23 = vsel %vm319_vm1, %v8846_v13, %v8850_v50  ;;  %v17897_v28 = vshrl.u32 %v16741_v7, 16 }
 0x360   : > { %18354 = vst [vmem:[#allocation11_spill] sm:$0xff] %v16770_v24  ;;  %v12511_v41 = vpop.f32.mrf.mxu0  ;;  %v16782_v5 = vadd.f32 %v12510_v26, %v6684_v17  ;;  %v6682_v11 = vadd.f32 %v6583_v30, %v16517_v40  ;;  %v9795_v40 = vsel %vm545_vm0, %v16532_v22, 0  ;;  %v17896_v13 = vshrl.u32 %v16768_v56, 16 }
 0x361   : > { %v12469_v55 = vpop.f32.mrf.mxu1  ;;  %v8859_v59 = vsel %vm319_vm1, %v8854_v62, %v8858_v37  ;;  %v9307_v30 = vrot.slane %v16780_v34, 1  ;;  %v8866_v62 = vrot.slane %v17895_v33, 1 }
 0x362   : > { %v7076_v54 = vpop.f32.mrf.mxu0  ;;  %v16790_v38 = vadd.f32 %v7073_v10, %v6682_v11  ;;  %v6685_v61 = vadd.f32 %v12469_v55, %v16526_v18  ;;  %v9305_v10 = vrot.slane %v16768_v56, 1  ;;  %v17898_v18 = vshll.u32 %v16780_v34, 16  ;;  %v16810_v11 = vld [vmem:[%s13240_s23 + $0x58] sm:$0xff]  }
 0x363   : > { %v6586_v26 = vpop.f32.mrf.mxu1 }
 0x364   : > { %v12514_v24 = vpop.f32.mrf.mxu0  ;;  %12741 = vmatmul.mubr.msk.bf16.vlgmr.msra.gmra.mxu0 %vm484_vm2, %v9302_v29  ;;  %v16802_v50 = vadd.f32 %v12511_v41, %v6685_v61  ;;  %v6683_v17 = vadd.f32 %v6586_v26, %v16540_v60  ;;  %12699 = vmatmul.mubr.msk.bf16.vlgmr.msra.gmra.mxu1 %vm484_vm2, %v8851_v23  ;;  %v8862_v60 = vor.u32 %v17897_v28, %v8858_v37  ;;  %v8874_v26 = vrot.slane %v17898_v18, 1 }
 0x365   : > { %12823 = vmatpush3.bf16.msra.mxu0 %v10138_v15  ;;  %12744 = vmatprep.mubr.msk.bf16.mxu0 %vm484_vm2, %v9304_v48  ;;  %v12472_v29 = vpop.f32.mrf.mxu1  ;;  %v9306_v61 = vsel %vm984_vm3, %v9303_v46, %v9305_v10  ;;  %v8870_v23 = vor.u32 %v17896_v13, %v8866_v62  ;;  %v9308_v37 = vsel %vm984_vm3, %v9305_v10, %v9307_v30  ;;  %v9309_v10 = vrot.slane %v16810_v11, 1 }
 0x366   : > { %v7089_v22 = vpop.f32.mrf.mxu0  ;;  %v16812_v15 = vadd.f32 %v7076_v54, %v6683_v17  ;;  %v6688_v48 = vadd.f32 %v12472_v29, %v16548_v44  ;;  %12781 = vmatpush3.bf16.msra.mxu1 %v9795_v40  ;;  %12702 = vmatprep.mubr.msk.bf16.mxu1 %vm484_vm2, %v8859_v59  ;;  %v16824_v54 = vld [vmem:[%s13240_s23 + $0x60] sm:$0xff]   ;;  %v17899_v59 = vshll.u32 %v16810_v11, 16  ;;  %v8867_v28 = vsel %vm319_vm1, %v8862_v60, %v8866_v62 }
 0x367   : > { %v6599_v55 = vpop.f32.mrf.mxu1 }
 0x368   : > { %v12515_v41 = vpop.f32.mrf.mxu0  ;;  %v16826_v17 = vadd.f32 %v12514_v24, %v6688_v48  ;;  %v6686_v44 = vadd.f32 %v6599_v55, %v16553_v47  ;;  %v17900_v24 = vshrl.u32 %v16780_v34, 16  ;;  %v8875_v47 = vsel %vm319_vm1, %v8870_v23, %v8874_v26 }
 0x369   : > { %v12473_v29 = vpop.f32.mrf.mxu1  ;;  %v17902_v55 = vshll.u32 %v16824_v54, 16  ;;  %v8882_v23 = vrot.slane %v17899_v59, 1 }
 0x36a   : > { %v7092_v40 = vpop.f32.mrf.mxu0  ;;  %v16831_v33 = vadd.f32 %v7089_v22, %v6686_v44  ;;  %v6689_v46 = vadd.f32 %v12473_v29, %v16560_v36  ;;  %v17901_v22 = vshrl.u32 %v16810_v11, 16 }
 0x36b   : > { %v6602_v48 = vpop.f32.mrf.mxu1  ;;  %v8890_v59 = vrot.slane %v17902_v55, 1 }
 0x36c   : > { %v12518_v13 = vpop.f32.mrf.mxu0  ;;  %12745 = vmatmul.mubr.msk.bf16.gmra.mxu0 %vm484_vm2, %v9306_v61  ;;  %v16842_v36 = vadd.f32 %v12515_v41, %v6689_v46  ;;  %v6687_v62 = vadd.f32 %v6602_v48, %v16564_v12  ;;  %v9311_v61 = vrot.slane %v16824_v54, 1  ;;  %12703 = vmatmul.mubr.msk.bf16.gmra.mxu1 %vm484_vm2, %v8867_v28  ;;  %v8878_v12 = vor.u32 %v17900_v24, %v8874_v26 }
 0x36d   : > { %12748 = vmatprep.mubr.msk.bf16.mxu0 %vm484_vm2, %v9308_v37  ;;  %v12476_v44 = vpop.f32.mrf.mxu1  ;;  %v16850_v37 = vld [vmem:[%s13240_s23 + $0x68] sm:$0xff]   ;;  %12706 = vmatprep.mubr.msk.bf16.mxu1 %vm484_vm2, %v8875_v47  ;;  %v9310_v48 = vsel %vm984_vm3, %v9307_v30, %v9309_v10  ;;  %v8886_v28 = vor.u32 %v17901_v22, %v8882_v23 }
 0x36e   : > { %18357 = vst [vmem:[#allocation12_spill] sm:$0xff] %v16842_v36  ;;  %v7105_v60 = vpop.f32.mrf.mxu0  ;;  %v16852_v29 = vadd.f32 %v7092_v40, %v6687_v62  ;;  %v6692_v18 = vadd.f32 %v12476_v44, %v16570_v2  ;;  %v16864_v36 = vld [vmem:[%s13240_s23 + $0x70] sm:$0xff]   ;;  %v9312_v26 = vsel %vm984_vm3, %v9309_v10, %v9311_v61  ;;  %v17903_v47 = vshll.u32 %v16850_v37, 16 }
 0x36f   : > { %v6615_v46 = vpop.f32.mrf.mxu1  ;;  %v9313_v10 = vrot.slane %v16850_v37, 1 }
 0x370   : > { %18358 = vst [vmem:[#allocation6_spill] sm:$0xff] %v16852_v29  ;;  %v12519_v41 = vpop.f32.mrf.mxu0  ;;  %v16866_v40 = vadd.f32 %v12518_v13, %v6692_v18  ;;  %v6690_v2 = vadd.f32 %v6615_v46, %v16575_v35  ;;  %v8883_v29 = vsel %vm319_vm1, %v8878_v12, %v8882_v23  ;;  %v17904_v13 = vshrl.u32 %v16824_v54, 16 }
 0x371   : > { %v12477_v44 = vpop.f32.mrf.mxu1  ;;  %v8891_v35 = vsel %vm319_vm1, %v8886_v28, %v8890_v59  ;;  %v17906_v46 = vshll.u32 %v16864_v36, 16  ;;  %v8898_v28 = vrot.slane %v17903_v47, 1 }
 0x372   : > { %v7108_v62 = vpop.f32.mrf.mxu0  ;;  %v16871_v24 = vadd.f32 %v7105_v60, %v6690_v2  ;;  %v6693_v30 = vadd.f32 %v12477_v44, %v16582_v25  ;;  %v17905_v60 = vshrl.u32 %v16850_v37, 16 }
 0x373   : > { %v6618_v18 = vpop.f32.mrf.mxu1  ;;  %v8906_v47 = vrot.slane %v17906_v46, 1 }
 0x374   : > { %v12522_v22 = vpop.f32.mrf.mxu0  ;;  %12749 = vmatmul.mubr.msk.bf16.gmra.mxu0 %vm484_vm2, %v9310_v48  ;;  %v16882_v25 = vadd.f32 %v12519_v41, %v6693_v30  ;;  %v6691_v23 = vadd.f32 %v6618_v18, %v16586_v4  ;;  %v9315_v48 = vrot.slane %v16864_v36, 1  ;;  %12707 = vmatmul.mubr.msk.bf16.gmra.mxu1 %vm484_vm2, %v8883_v29  ;;  %v8894_v4 = vor.u32 %v17904_v13, %v8890_v59 }
 0x375   : > { %12752 = vmatprep.mubr.msk.bf16.mxu0 %vm484_vm2, %v9312_v26  ;;  %v12480_v2 = vpop.f32.mrf.mxu1  ;;  %v16890_v26 = vld [vmem:[%s13240_s23 + $0x78] sm:$0xff]   ;;  %12710 = vmatprep.mubr.msk.bf16.mxu1 %vm484_vm2, %v8891_v35  ;;  %v9314_v18 = vsel %vm984_vm3, %v9311_v61, %v9313_v10  ;;  %v8902_v29 = vor.u32 %v17905_v60, %v8898_v28 }
 0x376   : > { %18359 = vst [vmem:[#allocation13_spill] sm:$0xff] %v16882_v25  ;;  %v7121_v12 = vpop.f32.mrf.mxu0  ;;  %v16892_v44 = vadd.f32 %v7108_v62, %v6691_v23  ;;  %v6696_v55 = vadd.f32 %v12480_v2, %v16592_v9  ;;  %v16904_v25 = vld [vmem:[%s13240_s23 + $0x80] sm:$0xff]   ;;  %v9316_v59 = vsel %vm984_vm3, %v9313_v10, %v9315_v48  ;;  %v17907_v35 = vshll.u32 %v16890_v26, 16 }
 0x377   : > { %v6631_v30 = vpop.f32.mrf.mxu1  ;;  %v9317_v10 = vrot.slane %v16890_v26, 1 }
 0x378   : > { %18360 = vst [vmem:[#allocation32_spill] sm:$0xff] %v16892_v44  ;;  %v12523_v41 = vpop.f32.mrf.mxu0  ;;  %v16906_v62 = vadd.f32 %v12522_v22, %v6696_v55  ;;  %v6694_v9 = vadd.f32 %v6631_v30, %v16597_v0  ;;  %v8899_v44 = vsel %vm319_vm1, %v8894_v4, %v8898_v28  ;;  %v17908_v22 = vshrl.u32 %v16864_v36, 16 }
 0x379   : > { %v12481_v2 = vpop.f32.mrf.mxu1  ;;  %v8907_v0 = vsel %vm319_vm1, %v8902_v29, %v8906_v47  ;;  %v17910_v30 = vshll.u32 %v16904_v25, 16  ;;  %v8914_v29 = vrot.slane %v17907_v35, 1 }
 0x37a   : > { %v7124_v23 = vpop.f32.mrf.mxu0  ;;  %v16911_v13 = vadd.f32 %v7121_v12, %v6694_v9  ;;  %v6697_v61 = vadd.f32 %v12481_v2, %v16604_v21  ;;  %v17909_v12 = vshrl.u32 %v16890_v26, 16 }
 0x37b   : > { %v6634_v55 = vpop.f32.mrf.mxu1  ;;  %v8922_v35 = vrot.slane %v17910_v30, 1 }
 0x37c   : > { %v12526_v60 = vpop.f32.mrf.mxu0  ;;  %12753 = vmatmul.mubr.msk.bf16.gmra.mxu0 %vm484_vm2, %v9314_v18  ;;  %v16922_v21 = vadd.f32 %v12523_v41, %v6697_v61  ;;  %v6695_v28 = vadd.f32 %v6634_v55, %v16608_v1  ;;  %v9319_v18 = vrot.slane %v16904_v25, 1  ;;  %12711 = vmatmul.mubr.msk.bf16.gmra.mxu1 %vm484_vm2, %v8899_v44  ;;  %v8910_v1 = vor.u32 %v17908_v22, %v8906_v47 }
 0x37d   : > { %12756 = vmatprep.mubr.msk.bf16.mxu0 %vm484_vm2, %v9316_v59  ;;  %v12484_v9 = vpop.f32.mrf.mxu1  ;;  %v16930_v59 = vld [vmem:[%s13240_s23 + $0x88] sm:$0xff]   ;;  %12714 = vmatprep.mubr.msk.bf16.mxu1 %vm484_vm2, %v8907_v0  ;;  %v9318_v55 = vsel %vm984_vm3, %v9315_v48, %v9317_v10  ;;  %v8918_v44 = vor.u32 %v17909_v12, %v8914_v29 }
 0x37e   : > { %18361 = vst [vmem:[#allocation20_spill] sm:$0xff] %v16922_v21  ;;  %v7137_v4 = vpop.f32.mrf.mxu0  ;;  %v16932_v2 = vadd.f32 %v7124_v23, %v6695_v28  ;;  %v6700_v46 = vadd.f32 %v12484_v9, %v16614_v3  ;;  %v16944_v21 = vld [vmem:[%s13240_s23 + $0x90] sm:$0xff]   ;;  %v9320_v47 = vsel %vm984_vm3, %v9317_v10, %v9319_v18  ;;  %v17911_v0 = vshll.u32 %v16930_v59, 16 }
 0x37f   : > { %v6647_v61 = vpop.f32.mrf.mxu1  ;;  %v9321_v10 = vrot.slane %v16930_v59, 1 }
 0x380   : > { %18362 = vst [vmem:[#allocation14_spill] sm:$0xff] %v16932_v2  ;;  %v12527_v41 = vpop.f32.mrf.mxu0  ;;  %v16946_v23 = vadd.f32 %v12526_v60, %v6700_v46  ;;  %v6698_v3 = vadd.f32 %v6647_v61, %v16619_v52  ;;  %v8915_v2 = vsel %vm319_vm1, %v8910_v1, %v8914_v29  ;;  %v17912_v60 = vshrl.u32 %v16904_v25, 16 }
 0x381   : > { %v12485_v9 = vpop.f32.mrf.mxu1  ;;  %v8923_v52 = vsel %vm319_vm1, %v8918_v44, %v8922_v35  ;;  %v17914_v61 = vshll.u32 %v16944_v21, 16  ;;  %v8930_v44 = vrot.slane %v17911_v0, 1 }
 0x382   : > { %v7140_v28 = vpop.f32.mrf.mxu0  ;;  %v16951_v22 = vadd.f32 %v7137_v4, %v6698_v3  ;;  %v6701_v48 = vadd.f32 %v12485_v9, %v16626_v8  ;;  %v17913_v4 = vshrl.u32 %v16930_v59, 16 }
 0x383   : > { %v6650_v46 = vpop.f32.mrf.mxu1  ;;  %v8938_v0 = vrot.slane %v17914_v61, 1 }
 0x384   : > { %v12574_v12 = vpop.f32.mrf.mxu0  ;;  %12757 = vmatmul.mubr.msk.bf16.gmra.mxu0 %vm484_vm2, %v9318_v55  ;;  %v16962_v8 = vadd.f32 %v12527_v41, %v6701_v48  ;;  %v6699_v29 = vadd.f32 %v6650_v46, %v16630_v6  ;;  %v9323_v55 = vrot.slane %v16944_v21, 1  ;;  %12715 = vmatmul.mubr.msk.bf16.gmra.mxu1 %vm484_vm2, %v8915_v2  ;;  %v8926_v6 = vor.u32 %v17912_v60, %v8922_v35 }
 0x385   : > { %12760 = vmatprep.mubr.msk.bf16.mxu0 %vm484_vm2, %v9320_v47  ;;  %v12532_v3 = vpop.f32.mrf.mxu1  ;;  %v16970_v47 = vld [vmem:[%s13240_s23 + $0x98] sm:$0xff]   ;;  %12718 = vmatprep.mubr.msk.bf16.mxu1 %vm484_vm2, %v8923_v52  ;;  %v9322_v46 = vsel %vm984_vm3, %v9319_v18, %v9321_v10  ;;  %v8934_v2 = vor.u32 %v17913_v4, %v8930_v44 }
 0x386   : > { %18363 = vst [vmem:[#allocation17_spill] sm:$0xff] %v16962_v8  ;;  %v7731_v1 = vpop.f32.mrf.mxu0  ;;  %v16972_v9 = vadd.f32 %v7140_v28, %v6699_v29  ;;  %v7497_v30 = vadd.f32 %v12532_v3, %v16636_v49  ;;  %v16984_v8 = vld [vmem:[%s13240_s23 + $0xa0] sm:$0xff]   ;;  %v9324_v35 = vsel %vm984_vm3, %v9321_v10, %v9323_v55  ;;  %v17915_v52 = vshll.u32 %v16970_v47, 16 }
 0x387   : > { %v7336_v48 = vpop.f32.mrf.mxu1  ;;  %v9325_v10 = vrot.slane %v16970_v47, 1 }
 0x388   : > { %18364 = vst [vmem:[#allocation21_spill] sm:$0xff] %v16972_v9  ;;  %v12575_v41 = vpop.f32.mrf.mxu0  ;;  %v16986_v28 = vadd.f32 %v12574_v12, %v7497_v30  ;;  %v7495_v49 = vadd.f32 %v7336_v48, %v16641_v53  ;;  %v8931_v9 = vsel %vm319_vm1, %v8926_v6, %v8930_v44  ;;  %v17916_v12 = vshrl.u32 %v16944_v21, 16 }
 0x389   : > { %v12533_v3 = vpop.f32.mrf.mxu1  ;;  %v8939_v53 = vsel %vm319_vm1, %v8934_v2, %v8938_v0  ;;  %v17918_v48 = vshll.u32 %v16984_v8, 16  ;;  %v8946_v2 = vrot.slane %v17915_v52, 1 }
 0x38a   : > { %v7734_v29 = vpop.f32.mrf.mxu0  ;;  %v16991_v60 = vadd.f32 %v7731_v1, %v7495_v49  ;;  %v7498_v18 = vadd.f32 %v12533_v3, %v16648_v14  ;;  %v17917_v1 = vshrl.u32 %v16970_v47, 16 }
 0x38b   : > { %v7339_v30 = vpop.f32.mrf.mxu1  ;;  %v8954_v52 = vrot.slane %v17918_v48, 1 }
 0x38c   : > { %v12578_v4 = vpop.f32.mrf.mxu0  ;;  %12761 = vmatmul.mubr.msk.bf16.gmra.mxu0 %vm484_vm2, %v9322_v46  ;;  %v17002_v14 = vadd.f32 %v12575_v41, %v7498_v18  ;;  %v7496_v44 = vadd.f32 %v7339_v30, %v16652_v45  ;;  %v9327_v46 = vrot.slane %v16984_v8, 1  ;;  %12719 = vmatmul.mubr.msk.bf16.gmra.mxu1 %vm484_vm2, %v8931_v9  ;;  %v8942_v45 = vor.u32 %v17916_v12, %v8938_v0 }
 0x38d   : > { %12764 = vmatprep.mubr.msk.bf16.mxu0 %vm484_vm2, %v9324_v35  ;;  %v12536_v49 = vpop.f32.mrf.mxu1  ;;  %v17010_v35 = vld [vmem:[%s13240_s23 + $0xa8] sm:$0xff]   ;;  %12722 = vmatprep.mubr.msk.bf16.mxu1 %vm484_vm2, %v8939_v53  ;;  %v9326_v30 = vsel %vm984_vm3, %v9323_v55, %v9325_v10  ;;  %v8950_v9 = vor.u32 %v17917_v1, %v8946_v2  ;;  %v17919_v53 = vshrl.u32 %v16984_v8, 16 }
 0x38e   : > { %18365 = vst [vmem:[#allocation19_spill] sm:$0xff] %v17002_v14  ;;  %v7747_v6 = vpop.f32.mrf.mxu0  ;;  %18366 = vst [vmem:[#allocation16_spill] sm:$0xff] %v17010_v35  ;;  %v17012_v3 = vadd.f32 %v7734_v29, %v7496_v44  ;;  %v7501_v61 = vadd.f32 %v12536_v49, %v16658_v31  ;;  %v17024_v14 = vld [vmem:[%s13240_s23 + $0xb0] sm:$0xff]   ;;  %v9328_v0 = vsel %vm984_vm3, %v9325_v10, %v9327_v46  ;;  %v17920_v55 = vshll.u32 %v17010_v35, 16 }
 0x38f   : > { %v7352_v18 = vpop.f32.mrf.mxu1  ;;  %18368 = vst [vmem:[#allocation33_spill] sm:$0xff] %v17024_v14  ;;  %v17921_v10 = vshrl.u32 %v17010_v35, 16 }
 0x390   : > { %18367 = vst [vmem:[#allocation22_spill] sm:$0xff] %v17012_v3  ;;  %v12579_v41 = vpop.f32.mrf.mxu0  ;;  %v17026_v29 = vadd.f32 %v12578_v4, %v7501_v61  ;;  %v7499_v31 = vadd.f32 %v7352_v18, %v16663_v20  ;;  %v8947_v3 = vsel %vm319_vm1, %v8942_v45, %v8946_v2  ;;  %v8955_v20 = vsel %vm319_vm1, %v8950_v9, %v8954_v52  ;;  %v17047_v45 = vld [vmem:[%s13240_s23 + $0xb8] sm:$0xff]  }
 0x391   : > { %v12537_v49 = vpop.f32.mrf.mxu1  ;;  %v9329_v61 = vrot.slane %v17010_v35, 1  ;;  %v9331_v2 = vrot.slane %v17024_v14, 1  ;;  %18370 = vst [vmem:[#allocation25_spill] sm:$0xff] %v17047_v45  ;;  %v8958_v9 = vor.u32 %v17919_v53, %v8954_v52  ;;  %v18372_v52 = vshll.u32 %v17024_v14, 16 }
 0x392   : > { %v7750_v44 = vpop.f32.mrf.mxu0  ;;  %v17032_v12 = vadd.f32 %v7747_v6, %v7499_v31  ;;  %v7502_v1 = vadd.f32 %v12537_v49, %v16670_v43 }
 0x393   : > { %v7355_v4 = vpop.f32.mrf.mxu1  ;;  %v9330_v6 = vsel %vm984_vm3, %v9327_v46, %v9329_v61  ;;  %v8970_v53 = vrot.slane %v18372_v52, 1  ;;  %v17925_v46 = vshrl.u32 %v17024_v14, 16 }
 0x394   : > { %v12582_v48 = vpop.f32.mrf.mxu0  ;;  %12765 = vmatmul.mubr.msk.bf16.gmra.mxu0 %vm484_vm2, %v9326_v30  ;;  %v17042_v18 = vadd.f32 %v12579_v41, %v7502_v1  ;;  %v7500_v43 = vadd.f32 %v7355_v4, %v16674_v63  ;;  %12723 = vmatmul.mubr.msk.bf16.gmra.mxu1 %vm484_vm2, %v8947_v3  ;;  %v17059_v63 = vld [vmem:[%s13240_s23 + $0xc0] sm:$0xff]  }
 0x395   : > { %12768 = vmatprep.mubr.msk.bf16.mxu0 %vm484_vm2, %v9328_v0  ;;  %v12540_v30 = vpop.f32.mrf.mxu1  ;;  %v8962_v0 = vrot.slane %v17920_v55, 1  ;;  %12726 = vmatprep.mubr.msk.bf16.mxu1 %vm484_vm2, %v8955_v20  ;;  %v17924_v20 = vshll.u32 %v17047_v45, 16  ;;  %v9335_v52 = vrot.slane %v17059_v63, 1 }
 0x396   : > { %18369 = vst [vmem:[#allocation24_spill] sm:$0xff] %v17042_v18  ;;  %v7763_v31 = vpop.f32.mrf.mxu0  ;;  %v17054_v49 = vadd.f32 %v7750_v44, %v7500_v43  ;;  %v7505_v1 = vadd.f32 %v12540_v30, %v16680_v57  ;;  %v9332_v57 = vsel %vm984_vm3, %v9329_v61, %v9331_v2 }
 0x397   : > { %v7368_v4 = vpop.f32.mrf.mxu1  ;;  %v8966_v3 = vor.u32 %v17921_v10, %v8962_v0  ;;  %v8963_v55 = vsel %vm319_vm1, %v8958_v9, %v8962_v0  ;;  %v9333_v9 = vrot.slane %v17047_v45, 1  ;;  %v18376_v0 = vld [vmem:[#allocation9_spill] sm:$0xff] }
 0x398   : > { %18371 = vst [vmem:[#allocation23_spill] sm:$0xff] %v17054_v49  ;;  %v12583_v41 = vpop.f32.mrf.mxu0  ;;  %v17066_v18 = vadd.f32 %v12582_v48, %v7505_v1  ;;  %v7503_v44 = vadd.f32 %v7368_v4, %v16689_v19 }
 0x399   : > { %v12541_v30 = vpop.f32.mrf.mxu1  ;;  %v8971_v1 = vsel %vm319_vm1, %v8966_v3, %v8970_v53  ;;  %v8974_v3 = vor.u32 %v17925_v46, %v8970_v53  ;;  %v9642_v53 = vshrl.u32 %v16715_v51, 16  ;;  %v9645_v46 = vshll.u32 %v16715_v51, 16 }
 0x39a   : > { %18373 = vst [vmem:[#allocation29_spill] sm:$0xff] %v17066_v18  ;;  %v7766_v43 = vpop.f32.mrf.mxu0  ;;  %v17073_v49 = vadd.f32 %v7763_v31, %v7503_v44  ;;  %v7506_v10 = vadd.f32 %v12541_v30, %v16697_v39  ;;  %v13099_v30 = vld [vmem:[%s13240_s23 + $0xc8] ss:$0 sps:$4 sm:$0x11]  }
 0x39b   : > { %v7371_v61 = vpop.f32.mrf.mxu1  ;;  %v18381_v18 = vld [vmem:[#allocation3_spill] sm:$0xff] }
 0x39c   : > { %18374 = vst [vmem:[#allocation30_spill] sm:$0xff] %v17073_v49  ;;  %v12586_v35 = vpop.f32.mrf.mxu0  ;;  %12769 = vmatmul.mubr.msk.bf16.gmra.mxu0 %vm484_vm2, %v9330_v6  ;;  %v17082_v31 = vadd.f32 %v12583_v41, %v7506_v10  ;;  %v7504_v39 = vadd.f32 %v7371_v61, %v18376_v0  ;;  %v8978_v6 = vrot.slane %v17924_v20, 1  ;;  %12727 = vmatmul.mubr.msk.bf16.gmra.mxu1 %vm484_vm2, %v8963_v55  ;;  %v18378_v10 = vld [vmem:[#allocation15_spill] sm:$0xff]  ;;  %v18379_v61 = vshrl.u32 %v17047_v45, 16 }
 0x39d   : > { %12772 = vmatprep.mubr.msk.bf16.mxu0 %vm484_vm2, %v9332_v57  ;;  %v12544_v44 = vpop.f32.mrf.mxu1  ;;  %v10030_v57 = vld [vmem:[%s13240_s23 + $0x28] sm:$0xc]  ;;  %12730 = vmatprep.mubr.msk.bf16.mxu1 %vm484_vm2, %v8971_v1  ;;  %v18380_v20 = vshll.u32 %v17059_v63, 16  ;;  %v9334_v55 = vsel %vm984_vm3, %v9331_v2, %v9333_v9  ;;  %v9336_v1 = vsel %vm984_vm3, %v9333_v9, %v9335_v52  ;;  %v8992_v45 = vshll.u32 %v13099_v30, 16 }
 0x39e   : > { %18375 = vst [vmem:[#allocation18_spill] sm:$0xff] %v17082_v31  ;;  %v7779_v4 = vpop.f32.mrf.mxu0  ;;  %v17093_v48 = vadd.f32 %v7766_v43, %v7504_v39  ;;  %v7509_v41 = vadd.f32 %v12544_v44, %v18378_v10  ;;  %v8982_v0 = vor.u32 %v18379_v61, %v8978_v6  ;;  %v11265_v10 = vcombine.low %v10030_v57, %v16685_v42 }
 0x39f   : > { %v8986_v31 = vrot.slane %v18380_v20, 1  ;;  %v7384_v49 = vpop.f32.mrf.mxu1  ;;  %v17930_v20 = vshrl.u32 %v17059_v63, 16  ;;  %v9644_v42 = vrot.slane %v9642_v53, 1  ;;  %v9647_v9 = vrot.slane %v9645_v46, 2 }
 0x3a0   : > { %18377 = vst [vmem:[#allocation26_spill] sm:$0xff] %v17093_v48  ;;  %v12587_v19 = vpop.f32.mrf.mxu0  ;;  %v17104_v43 = vadd.f32 %v12586_v35, %v7509_v41  ;;  %v7507_v39 = vadd.f32 %v7384_v49, %v16719_v32  ;;  %v8979_v48 = vsel %vm319_vm1, %v8974_v3, %v8978_v6  ;;  %v9337_v35 = vrot.slane %v13099_v30, 1 }
 0x3a1   : > { %v12545_v61 = vpop.f32.mrf.mxu1  ;;  %v8987_v32 = vsel %vm319_vm1, %v8982_v0, %v8986_v31  ;;  %v18382_v6 = vshrl.u32 %v16709_v27, 16  ;;  %v18383_v57 = vshll.u32 %v16709_v27, 16  ;;  %v10037_v0 = vrot.slane %v16709_v27, 2 }
 0x3a2   : > { %v7782_v44 = vpop.f32.mrf.mxu0  ;;  %v17111_v2 = vadd.f32 %v7779_v4, %v7507_v39  ;;  %v7510_v14 = vadd.f32 %v12545_v61, %v18381_v18  ;;  %v18384_v18 = vld [vmem:[#allocation31_spill] sm:$0xff] }
 0x3a3   : > { %v7387_v49 = vpop.f32.mrf.mxu1  ;;  %v9649_v3 = vrot.slane %v18382_v6, 1  ;;  %v9650_v4 = vrot.slane %v18383_v57, 2  ;;  %v8990_v6 = vor.u32 %v17930_v20, %v8986_v31  ;;  %v18385_v31 = vld [vmem:[#allocation8_spill] sm:$0xff] }
 0x3a4   : > { %v12590_v51 = vpop.f32.mrf.mxu0  ;;  %12773 = vmatmul.mubr.msk.bf16.gmra.mxu0 %vm484_vm2, %v9334_v55  ;;  %v17121_v41 = vadd.f32 %v12587_v19, %v7510_v14  ;;  %v7508_v39 = vadd.f32 %v7387_v49, %v18384_v18  ;;  %v10036_v55 = vrot.slane %v11265_v10, 2  ;;  %12731 = vmatmul.mubr.msk.bf16.gmra.mxu1 %vm484_vm2, %v8979_v48  ;;  %v8994_v14 = vrot.slane %v8992_v45, 1 }
 0x3a5   : > { %12776 = vmatprep.mubr.msk.bf16.mxu0 %vm484_vm2, %v9336_v1  ;;  %v12548_v30 = vpop.f32.mrf.mxu1  ;;  %12734 = vmatprep.mubr.msk.bf16.mxu1 %vm484_vm2, %v8987_v32  ;;  %v9338_v49 = vsel %vm984_vm3, %v9335_v52, %v9337_v35  ;;  %v9648_v10 = vor.u32 %v9647_v9, %v9644_v42  ;;  %v9651_v27 = vor.u32 %v9650_v4, %v9649_v3  ;;  %v18386_v42 = vshrl.u32 %v16741_v7, 16 }
 0x3a6   : > { %v7795_v61 = vpop.f32.mrf.mxu0  ;;  %v17126_v1 = vadd.f32 %v7782_v44, %v7508_v39  ;;  %v7513_v46 = vadd.f32 %v12548_v30, %v16743_v16  ;;  %v10038_v16 = vsel %vm1724_vm5, %v10036_v55, %v10037_v0  ;;  %v8995_v45 = vsel %vm319_vm1, %v8990_v6, %v8994_v14  ;;  %v18388_v55 = vld [vmem:[#allocation11_spill] sm:$0xff] }
 0x3a7   : > { %v7400_v19 = vpop.f32.mrf.mxu1  ;;  %v9652_v35 = vsel %vm1328_vm4, %v9648_v10, %v9651_v27  ;;  %v9657_v9 = vrot.slane %v18386_v42, 1  ;;  %v18387_v3 = vshll.u32 %v16741_v7, 16  ;;  %v10041_v14 = vrot.slane %v16741_v7, 2 }
 0x3a8   : > { %v12591_v53 = vpop.f32.mrf.mxu0  ;;  %v17133_v57 = vadd.f32 %v12590_v51, %v7513_v46  ;;  %v7511_v48 = vadd.f32 %v7400_v19, %v16750_v58  ;;  %v13183_v51 = vld [vmem:[%s13240_s23 + $0x38] sm:$0xff]  }
 0x3a9   : > { %v12549_v18 = vpop.f32.mrf.mxu1  ;;  %v10039_v58 = vrot.slane %v13183_v51, 2  ;;  %v9658_v4 = vrot.slane %v18387_v3, 2  ;;  %v18390_v3 = vld [vmem:[#allocation5_spill] sm:$0xff] }
 0x3aa   : > { %v7798_v44 = vpop.f32.mrf.mxu0  ;;  %v17137_v39 = vadd.f32 %v7795_v61, %v7511_v48  ;;  %v7514_v30 = vadd.f32 %v12549_v18, %v18385_v31 }
 0x3ab   : > { %v7403_v52 = vpop.f32.mrf.mxu1  ;;  %v10040_v18 = vsel %vm1724_vm5, %v10037_v0, %v10039_v58  ;;  %v10042_v7 = vsel %vm1724_vm5, %v10039_v58, %v10041_v14  ;;  %v9656_v0 = vsel %vm1328_vm4, %v9651_v27, %v18390_v3 }
 0x3ac   : > { %v12594_v32 = vpop.f32.mrf.mxu0  ;;  %12777 = vmatmul.mubr.msk.bf16.gmra.mxu0 %vm484_vm2, %v9338_v49  ;;  %v17149_v61 = vadd.f32 %v12591_v53, %v7514_v30  ;;  %v7512_v46 = vadd.f32 %v7403_v52, %v18388_v55  ;;  %12735 = vmatmul.mubr.msk.bf16.gmra.mxu1 %vm484_vm2, %v8995_v45  ;;  %v9659_v53 = vor.u32 %v9658_v4, %v9657_v9  ;;  %v18389_v45 = vshrl.u32 %v16768_v56, 16 }
 0x3ad   : > { %12824 = vmatprep.mubr.msk.bf16.mxu0 %vm484_vm2, %v10038_v16  ;;  %v12552_v19 = vpop.f32.mrf.mxu1  ;;  %12782 = vmatprep.mubr.msk.bf16.mxu1 %vm484_vm2, %v9652_v35  ;;  %v10043_v4 = vrot.slane %v16768_v56, 2  ;;  %v18392_v55 = vshrl.u32 %v16780_v34, 16 }
 0x3ae   : > { %v7811_v6 = vpop.f32.mrf.mxu0  ;;  %v17154_v49 = vadd.f32 %v7798_v44, %v7512_v46  ;;  %v7517_v10 = vadd.f32 %v12552_v19, %v16782_v5  ;;  %v9661_v44 = vrot.slane %v18389_v45, 1  ;;  %v9660_v58 = vsel %vm1328_vm4, %v18390_v3, %v9659_v53 }
 0x3af   : > { %v7416_v16 = vpop.f32.mrf.mxu1  ;;  %v18393_v46 = vshll.u32 %v16780_v34, 16 }
 0x3b0   : > { %v12595_v48 = vpop.f32.mrf.mxu0  ;;  %v17159_v31 = vadd.f32 %v12594_v32, %v7517_v10  ;;  %v7515_v30 = vadd.f32 %v7416_v16, %v16790_v38  ;;  %v18391_v32 = vshll.u32 %v16768_v56, 16  ;;  %v10045_v16 = vrot.slane %v16780_v34, 2 }
 0x3b1   : > { %v12553_v51 = vpop.f32.mrf.mxu1 }
 0x3b2   : > { %v7814_v52 = vpop.f32.mrf.mxu0  ;;  %v17165_v42 = vadd.f32 %v7811_v6, %v7515_v30  ;;  %v7518_v5 = vadd.f32 %v12553_v51, %v16802_v50  ;;  %v9662_v38 = vrot.slane %v18391_v32, 2  ;;  %v9665_v50 = vrot.slane %v18392_v55, 1  ;;  %v18395_v55 = vld [vmem:[#allocation12_spill] sm:$0xff] }
 0x3b3   : > { %v7419_v9 = vpop.f32.mrf.mxu1  ;;  %v9666_v6 = vrot.slane %v18393_v46, 2  ;;  %v10046_v32 = vsel %vm1724_vm5, %v10043_v4, %v10045_v16  ;;  %v18397_v46 = vshrl.u32 %v16824_v54, 16 }
 0x3b4   : > { %v12598_v35 = vpop.f32.mrf.mxu0  ;;  %12825 = vmatmul.mubr.msk.bf16.vlgmr.msra.gmra.mxu0 %vm484_vm2, %v10040_v18  ;;  %v17181_v27 = vadd.f32 %v12595_v48, %v7518_v5  ;;  %v7516_v19 = vadd.f32 %v7419_v9, %v16812_v15  ;;  %12783 = vmatmul.mubr.msk.bf16.vlgmr.msra.gmra.mxu1 %vm484_vm2, %v9656_v0  ;;  %v9663_v45 = vor.u32 %v9662_v38, %v9661_v44 }
 0x3b5   : > { %12828 = vmatprep.mubr.msk.bf16.mxu0 %vm484_vm2, %v10042_v7  ;;  %v12556_v18 = vpop.f32.mrf.mxu1  ;;  %12786 = vmatprep.mubr.msk.bf16.mxu1 %vm484_vm2, %v9660_v58  ;;  %v10044_v48 = vsel %vm1724_vm5, %v10041_v14, %v10043_v4  ;;  %v9667_v5 = vor.u32 %v9666_v6, %v9665_v50  ;;  %v18396_v14 = vshll.u32 %v16810_v11, 16  ;;  %v10047_v4 = vrot.slane %v16810_v11, 2 }
 0x3b6   : > { %v7827_v10 = vpop.f32.mrf.mxu0  ;;  %v17186_v30 = vadd.f32 %v7814_v52, %v7516_v19  ;;  %v7521_v56 = vadd.f32 %v12556_v18, %v16826_v17  ;;  %v18394_v52 = vshrl.u32 %v16810_v11, 16  ;;  %v9664_v38 = vsel %vm1328_vm4, %v9659_v53, %v9663_v45  ;;  %v18399_v53 = vld [vmem:[#allocation6_spill] sm:$0xff] }
 0x3b7   : > { %v7432_v51 = vpop.f32.mrf.mxu1  ;;  %v9668_v50 = vsel %vm1328_vm4, %v9663_v45, %v9667_v5  ;;  %v9673_v6 = vrot.slane %v18397_v46, 1  ;;  %v18398_v19 = vshll.u32 %v16824_v54, 16 }
 0x3b8   : > { %v12599_v7 = vpop.f32.mrf.mxu0  ;;  %v17191_v3 = vadd.f32 %v12598_v35, %v7521_v56  ;;  %v7519_v15 = vadd.f32 %v7432_v51, %v16831_v33  ;;  %v9669_v0 = vrot.slane %v18394_v52, 1  ;;  %v9670_v35 = vrot.slane %v18396_v14, 2 }
 0x3b9   : > { %v12557_v9 = vpop.f32.mrf.mxu1 }
 0x3ba   : > { %v7830_v34 = vpop.f32.mrf.mxu0  ;;  %v17197_v17 = vadd.f32 %v7827_v10, %v7519_v15  ;;  %v7522_v58 = vadd.f32 %v12557_v9, %v18395_v55  ;;  %v9674_v10 = vrot.slane %v18398_v19, 2  ;;  %v9671_v52 = vor.u32 %v9670_v35, %v9669_v0  ;;  %v18401_v19 = vld [vmem:[#allocation13_spill] sm:$0xff] }
 0x3bb   : > { %v7435_v33 = vpop.f32.mrf.mxu1 }
 0x3bc   : > { %v12602_v44 = vpop.f32.mrf.mxu0  ;;  %12829 = vmatmul.mubr.msk.bf16.gmra.mxu0 %vm484_vm2, %v10044_v48  ;;  %v17211_v18 = vadd.f32 %v12599_v7, %v7522_v58  ;;  %v7520_v56 = vadd.f32 %v7435_v33, %v18399_v53  ;;  %v10049_v48 = vrot.slane %v16824_v54, 2  ;;  %12787 = vmatmul.mubr.msk.bf16.gmra.mxu1 %vm484_vm2, %v9664_v38  ;;  %v10048_v7 = vsel %vm1724_vm5, %v10045_v16, %v10047_v4 }
 0x3bd   : > { %12832 = vmatprep.mubr.msk.bf16.mxu0 %vm484_vm2, %v10046_v32  ;;  %v12560_v15 = vpop.f32.mrf.mxu1  ;;  %12790 = vmatprep.mubr.msk.bf16.mxu1 %vm484_vm2, %v9668_v50  ;;  %v9675_v55 = vor.u32 %v9674_v10, %v9673_v6  ;;  %v9672_v35 = vsel %vm1328_vm4, %v9667_v5, %v9671_v52  ;;  %v18402_v16 = vshll.u32 %v16850_v37, 16  ;;  %v18403_v10 = vshrl.u32 %v16864_v36, 16  ;;  %v18405_v5 = vld [vmem:[#allocation32_spill] sm:$0xff] }
 0x3be   : > { %v7843_v51 = vpop.f32.mrf.mxu0  ;;  %v17216_v45 = vadd.f32 %v7830_v34, %v7520_v56  ;;  %v7525_v11 = vadd.f32 %v12560_v15, %v16866_v40  ;;  %v10050_v33 = vsel %vm1724_vm5, %v10047_v4, %v10049_v48  ;;  %v18400_v34 = vshrl.u32 %v16850_v37, 16 }
 0x3bf   : > { %v7448_v9 = vpop.f32.mrf.mxu1  ;;  %v9676_v6 = vsel %vm1328_vm4, %v9671_v52, %v9675_v55  ;;  %v10051_v4 = vrot.slane %v16850_v37, 2  ;;  %v9681_v53 = vrot.slane %v18403_v10, 1  ;;  %v18404_v56 = vshll.u32 %v16864_v36, 16 }
 0x3c0   : > { %v12603_v32 = vpop.f32.mrf.mxu0  ;;  %v17221_v58 = vadd.f32 %v12602_v44, %v7525_v11  ;;  %v7523_v14 = vadd.f32 %v7448_v9, %v16871_v24  ;;  %v9677_v38 = vrot.slane %v18400_v34, 1  ;;  %v9678_v44 = vrot.slane %v18402_v16, 2 }
 0x3c1   : > { %v12561_v46 = vpop.f32.mrf.mxu1 }
 0x3c2   : > { %v7846_v54 = vpop.f32.mrf.mxu0  ;;  %v17227_v40 = vadd.f32 %v7843_v51, %v7523_v14  ;;  %v7526_v50 = vadd.f32 %v12561_v46, %v18401_v19  ;;  %v9682_v51 = vrot.slane %v18404_v56, 2  ;;  %v9679_v34 = vor.u32 %v9678_v44, %v9677_v38  ;;  %v18407_v56 = vld [vmem:[#allocation20_spill] sm:$0xff] }
 0x3c3   : > { %v7451_v24 = vpop.f32.mrf.mxu1 }
 0x3c4   : > { %v12606_v0 = vpop.f32.mrf.mxu0  ;;  %12833 = vmatmul.mubr.msk.bf16.gmra.mxu0 %vm484_vm2, %v10048_v7  ;;  %v17241_v15 = vadd.f32 %v12603_v32, %v7526_v50  ;;  %v7524_v11 = vadd.f32 %v7451_v24, %v18405_v5  ;;  %v10053_v7 = vrot.slane %v16864_v36, 2  ;;  %12791 = vmatmul.mubr.msk.bf16.gmra.mxu1 %vm484_vm2, %v9672_v35  ;;  %v10052_v32 = vsel %vm1724_vm5, %v10049_v48, %v10051_v4 }
 0x3c5   : > { %12836 = vmatprep.mubr.msk.bf16.mxu0 %vm484_vm2, %v10050_v33  ;;  %v12564_v14 = vpop.f32.mrf.mxu1  ;;  %12794 = vmatprep.mubr.msk.bf16.mxu1 %vm484_vm2, %v9676_v6  ;;  %v9683_v19 = vor.u32 %v9682_v51, %v9681_v53  ;;  %v9680_v44 = vsel %vm1328_vm4, %v9675_v55, %v9679_v34  ;;  %v18408_v48 = vshll.u32 %v16890_v26, 16  ;;  %v18409_v51 = vshrl.u32 %v16904_v25, 16  ;;  %v18411_v55 = vld [vmem:[#allocation14_spill] sm:$0xff] }
 0x3c6   : > { %v7859_v9 = vpop.f32.mrf.mxu0  ;;  %v17246_v52 = vadd.f32 %v7846_v54, %v7524_v11  ;;  %v7529_v37 = vadd.f32 %v12564_v14, %v16906_v62  ;;  %v10054_v24 = vsel %vm1724_vm5, %v10051_v4, %v10053_v7  ;;  %v18406_v54 = vshrl.u32 %v16890_v26, 16 }
 0x3c7   : > { %v7464_v46 = vpop.f32.mrf.mxu1  ;;  %v9684_v53 = vsel %vm1328_vm4, %v9679_v34, %v9683_v19  ;;  %v10055_v4 = vrot.slane %v16890_v26, 2  ;;  %v9689_v5 = vrot.slane %v18409_v51, 1  ;;  %v18410_v11 = vshll.u32 %v16904_v25, 16 }
 0x3c8   : > { %v12607_v33 = vpop.f32.mrf.mxu0  ;;  %v17251_v50 = vadd.f32 %v12606_v0, %v7529_v37  ;;  %v7527_v16 = vadd.f32 %v7464_v46, %v16911_v13  ;;  %v9685_v35 = vrot.slane %v18406_v54, 1  ;;  %v9686_v0 = vrot.slane %v18408_v48, 2 }
 0x3c9   : > { %v12565_v10 = vpop.f32.mrf.mxu1 }
 0x3ca   : > { %v7862_v36 = vpop.f32.mrf.mxu0  ;;  %v17257_v62 = vadd.f32 %v7859_v9, %v7527_v16  ;;  %v7530_v6 = vadd.f32 %v12565_v10, %v18407_v56  ;;  %v9690_v9 = vrot.slane %v18410_v11, 2  ;;  %v9687_v54 = vor.u32 %v9686_v0, %v9685_v35  ;;  %v18413_v11 = vld [vmem:[#allocation17_spill] sm:$0xff] }
 0x3cb   : > { %v7467_v13 = vpop.f32.mrf.mxu1 }
 0x3cc   : > { %v12610_v38 = vpop.f32.mrf.mxu0  ;;  %12837 = vmatmul.mubr.msk.bf16.gmra.mxu0 %vm484_vm2, %v10052_v32  ;;  %v17271_v14 = vadd.f32 %v12607_v33, %v7530_v6  ;;  %v7528_v37 = vadd.f32 %v7467_v13, %v18411_v55  ;;  %v10057_v32 = vrot.slane %v16904_v25, 2  ;;  %12795 = vmatmul.mubr.msk.bf16.gmra.mxu1 %vm484_vm2, %v9680_v44  ;;  %v10056_v33 = vsel %vm1724_vm5, %v10053_v7, %v10055_v4 }
 0x3cd   : > { %12840 = vmatprep.mubr.msk.bf16.mxu0 %vm484_vm2, %v10054_v24  ;;  %v12568_v16 = vpop.f32.mrf.mxu1  ;;  %12798 = vmatprep.mubr.msk.bf16.mxu1 %vm484_vm2, %v9684_v53  ;;  %v9691_v56 = vor.u32 %v9690_v9, %v9689_v5  ;;  %v9688_v0 = vsel %vm1328_vm4, %v9683_v19, %v9687_v54  ;;  %v18414_v7 = vshll.u32 %v16930_v59, 16  ;;  %v18415_v9 = vshrl.u32 %v16944_v21, 16  ;;  %v18417_v19 = vld [vmem:[#allocation21_spill] sm:$0xff] }
 0x3ce   : > { %v7875_v46 = vpop.f32.mrf.mxu0  ;;  %v17276_v34 = vadd.f32 %v7862_v36, %v7528_v37  ;;  %v7533_v26 = vadd.f32 %v12568_v16, %v16946_v23  ;;  %v10058_v13 = vsel %vm1724_vm5, %v10055_v4, %v10057_v32  ;;  %v18412_v36 = vshrl.u32 %v16930_v59, 16 }
 0x3cf   : > { %v7480_v10 = vpop.f32.mrf.mxu1  ;;  %v9692_v5 = vsel %vm1328_vm4, %v9687_v54, %v9691_v56  ;;  %v10059_v4 = vrot.slane %v16930_v59, 2  ;;  %v9697_v55 = vrot.slane %v18415_v9, 1  ;;  %v18416_v37 = vshll.u32 %v16944_v21, 16 }
 0x3d0   : > { %v12611_v24 = vpop.f32.mrf.mxu0  ;;  %v17281_v6 = vadd.f32 %v12610_v38, %v7533_v26  ;;  %v7531_v48 = vadd.f32 %v7480_v10, %v16951_v22  ;;  %v9693_v44 = vrot.slane %v18412_v36, 1  ;;  %v9694_v38 = vrot.slane %v18414_v7, 2 }
 0x3d1   : > { %v12569_v51 = vpop.f32.mrf.mxu1 }
 0x3d2   : > { %v7878_v25 = vpop.f32.mrf.mxu0  ;;  %v17287_v23 = vadd.f32 %v7875_v46, %v7531_v48  ;;  %v7534_v53 = vadd.f32 %v12569_v51, %v18413_v11  ;;  %v9698_v46 = vrot.slane %v18416_v37, 2  ;;  %v9695_v36 = vor.u32 %v9694_v38, %v9693_v44  ;;  %v18419_v37 = vld [vmem:[#allocation19_spill] sm:$0xff] }
 0x3d3   : > { %v7483_v22 = vpop.f32.mrf.mxu1 }
 0x3d4   : > { %v12658_v35 = vpop.f32.mrf.mxu0  ;;  %12841 = vmatmul.mubr.msk.bf16.gmra.mxu0 %vm484_vm2, %v10056_v33  ;;  %v17301_v16 = vadd.f32 %v12611_v24, %v7534_v53  ;;  %v7532_v26 = vadd.f32 %v7483_v22, %v18417_v19  ;;  %v10061_v33 = vrot.slane %v16944_v21, 2  ;;  %12799 = vmatmul.mubr.msk.bf16.gmra.mxu1 %vm484_vm2, %v9688_v0  ;;  %v10060_v24 = vsel %vm1724_vm5, %v10057_v32, %v10059_v4 }
 0x3d5   : > { %12844 = vmatprep.mubr.msk.bf16.mxu0 %vm484_vm2, %v10058_v13  ;;  %v12616_v48 = vpop.f32.mrf.mxu1  ;;  %12802 = vmatprep.mubr.msk.bf16.mxu1 %vm484_vm2, %v9692_v5  ;;  %v9699_v11 = vor.u32 %v9698_v46, %v9697_v55  ;;  %v9696_v38 = vsel %vm1328_vm4, %v9691_v56, %v9695_v36  ;;  %v18420_v32 = vshll.u32 %v16970_v47, 16  ;;  %v18421_v46 = vshrl.u32 %v16984_v8, 16  ;;  %v18423_v56 = vld [vmem:[#allocation22_spill] sm:$0xff] }
 0x3d6   : > { %v8487_v10 = vpop.f32.mrf.mxu0  ;;  %v17306_v54 = vadd.f32 %v7878_v25, %v7532_v26  ;;  %v8210_v59 = vadd.f32 %v12616_v48, %v16986_v28  ;;  %v10062_v22 = vsel %vm1724_vm5, %v10059_v4, %v10061_v33  ;;  %v18418_v25 = vshrl.u32 %v16970_v47, 16 }
 0x3d7   : > { %v8049_v51 = vpop.f32.mrf.mxu1  ;;  %v9700_v55 = vsel %vm1328_vm4, %v9695_v36, %v9699_v11  ;;  %v10063_v4 = vrot.slane %v16970_v47, 2  ;;  %v9705_v19 = vrot.slane %v18421_v46, 1  ;;  %v18422_v26 = vshll.u32 %v16984_v8, 16 }
 0x3d8   : > { %v12659_v13 = vpop.f32.mrf.mxu0  ;;  %v17311_v53 = vadd.f32 %v12658_v35, %v8210_v59  ;;  %v8208_v7 = vadd.f32 %v8049_v51, %v16991_v60  ;;  %v9701_v0 = vrot.slane %v18418_v25, 1  ;;  %v9702_v35 = vrot.slane %v18420_v32, 2 }
 0x3d9   : > { %v12617_v9 = vpop.f32.mrf.mxu1 }
 0x3da   : > { %v8490_v21 = vpop.f32.mrf.mxu0  ;;  %v17317_v28 = vadd.f32 %v8487_v10, %v8208_v7  ;;  %v8211_v5 = vadd.f32 %v12617_v9, %v18419_v37  ;;  %v9706_v10 = vrot.slane %v18422_v26, 2  ;;  %v9703_v25 = vor.u32 %v9702_v35, %v9701_v0 }
 0x3db   : > { %v8052_v60 = vpop.f32.mrf.mxu1 }
 0x3dc   : > { %v12662_v44 = vpop.f32.mrf.mxu0  ;;  %12845 = vmatmul.mubr.msk.bf16.gmra.mxu0 %vm484_vm2, %v10060_v24  ;;  %v17331_v48 = vadd.f32 %v12659_v13, %v8211_v5  ;;  %v8209_v59 = vadd.f32 %v8052_v60, %v18423_v56  ;;  %v10065_v24 = vrot.slane %v16984_v8, 2  ;;  %12803 = vmatmul.mubr.msk.bf16.gmra.mxu1 %vm484_vm2, %v9696_v38  ;;  %v10064_v13 = vsel %vm1724_vm5, %v10061_v33, %v10063_v4  ;;  %v18424_v38 = vld [vmem:[#allocation16_spill] sm:$0xff] }
 0x3dd   : > { %12848 = vmatprep.mubr.msk.bf16.mxu0 %vm484_vm2, %v10062_v22  ;;  %v12620_v7 = vpop.f32.mrf.mxu1  ;;  %12806 = vmatprep.mubr.msk.bf16.mxu1 %vm484_vm2, %v9700_v55  ;;  %v9707_v37 = vor.u32 %v9706_v10, %v9705_v19  ;;  %v18426_v56 = vld [vmem:[#allocation24_spill] sm:$0xff]  ;;  %v9704_v35 = vsel %vm1328_vm4, %v9699_v11, %v9703_v25  ;;  %v18427_v33 = vshll.u32 %v18424_v38, 16  ;;  %v18428_v10 = vld [vmem:[#allocation33_spill] sm:$0xff]  ;;  %v18431_v11 = vld [vmem:[#allocation23_spill] sm:$0xff] }
 0x3de   : > { %v8503_v51 = vpop.f32.mrf.mxu0  ;;  %v17336_v36 = vadd.f32 %v8490_v21, %v8209_v59  ;;  %v8214_v47 = vadd.f32 %v12620_v7, %v17026_v29  ;;  %v10066_v60 = vsel %vm1724_vm5, %v10063_v4, %v10065_v24  ;;  %v18425_v21 = vshrl.u32 %v18424_v38, 16 }
 0x3df   : > { %v8065_v9 = vpop.f32.mrf.mxu1  ;;  %v9708_v19 = vsel %vm1328_vm4, %v9703_v25, %v9707_v37  ;;  %v10067_v4 = vrot.slane %v18424_v38, 2  ;;  %v18429_v59 = vshrl.u32 %v18428_v10, 16  ;;  %v18430_v7 = vshll.u32 %v18428_v10, 16 }
 0x3e0   : > { %v12663_v22 = vpop.f32.mrf.mxu0  ;;  %v17341_v5 = vadd.f32 %v12662_v44, %v8214_v47  ;;  %v8212_v32 = vadd.f32 %v8065_v9, %v17032_v12  ;;  %v9709_v46 = vrot.slane %v18425_v21, 1  ;;  %v9710_v44 = vrot.slane %v18427_v33, 2 }
 0x3e1   : > { %v12621_v26 = vpop.f32.mrf.mxu1  ;;  %v9714_v47 = vrot.slane %v18430_v7, 2  ;;  %v10069_v21 = vrot.slane %v18428_v10, 2  ;;  %v18434_v7 = vld [vmem:[#allocation30_spill] sm:$0xff] }
 0x3e2   : > { %v8506_v8 = vpop.f32.mrf.mxu0  ;;  %v17347_v29 = vadd.f32 %v8503_v51, %v8212_v32  ;;  %v8215_v55 = vadd.f32 %v12621_v26, %v18426_v56  ;;  %v9713_v51 = vrot.slane %v18429_v59, 1  ;;  %v9711_v33 = vor.u32 %v9710_v44, %v9709_v46  ;;  %v18439_v44 = vld [vmem:[#allocation18_spill] sm:$0xff] }
 0x3e3   : > { %v8068_v12 = vpop.f32.mrf.mxu1 }
 0x3e4   : > { %v12666_v0 = vpop.f32.mrf.mxu0  ;;  %12849 = vmatmul.mubr.msk.bf16.gmra.mxu0 %vm484_vm2, %v10064_v13  ;;  %v17361_v9 = vadd.f32 %v12663_v22, %v8215_v55  ;;  %v8213_v13 = vadd.f32 %v8068_v12, %v18431_v11  ;;  %12807 = vmatmul.mubr.msk.bf16.gmra.mxu1 %vm484_vm2, %v9704_v35  ;;  %v10068_v22 = vsel %vm1724_vm5, %v10065_v24, %v10067_v4 }
 0x3e5   : > { %12852 = vmatprep.mubr.msk.bf16.mxu0 %vm484_vm2, %v10066_v60  ;;  %v12624_v26 = vpop.f32.mrf.mxu1  ;;  %v18433_v60 = vld [vmem:[#allocation29_spill] sm:$0xff]  ;;  %12810 = vmatprep.mubr.msk.bf16.mxu1 %vm484_vm2, %v9708_v19  ;;  %v9715_v55 = vor.u32 %v9714_v47, %v9713_v51  ;;  %v10070_v35 = vsel %vm1724_vm5, %v10067_v4, %v10069_v21  ;;  %v13101_v51 = vld [vmem:[%s13240_s23 + $0xc8] ss:$0 sps:$4 sm:$0x33]   ;;  %s12893_s23 = smul.u32 320, %s18448_s13 }
 0x3e6   : > { %v8519_v32 = vpop.f32.mrf.mxu0  ;;  %v17366_v25 = vadd.f32 %v8506_v8, %v8213_v13  ;;  %v8218_v38 = vadd.f32 %v12624_v26, %v18433_v60  ;;  %v18435_v8 = vld [vmem:[#allocation25_spill] sm:$0xff] }
 0x3e7   : > { %v8081_v59 = vpop.f32.mrf.mxu1  ;;  %v18436_v13 = vshrl.u32 %v18435_v8, 16  ;;  %v18437_v60 = vshll.u32 %v18435_v8, 16  ;;  %v9716_v4 = vsel %vm1328_vm4, %v9711_v33, %v9715_v55  ;;  %s17629_s13 = scalar_lea.vmem %s17753_s3, %s12893_s23 }
 0x3e8   : > { %18432 = vst [vmem:[#allocation28_spill] sm:$0xff] %v17366_v25  ;;  %v12667_v56 = vpop.f32.mrf.mxu0  ;;  %v17371_v12 = vadd.f32 %v12666_v0, %v8218_v38  ;;  %v8216_v10 = vadd.f32 %v8081_v59, %v18434_v7  ;;  %v9712_v0 = vsel %vm1328_vm4, %v9707_v37, %v9711_v33  ;;  %v10071_v38 = vrot.slane %v18435_v8, 2 }
 0x3e9   : > { %v9717_v20 = vrot.slane %v18436_v13, 1  ;;  %v12625_v26 = vpop.f32.mrf.mxu1  ;;  %v9718_v19 = vrot.slane %v18437_v60, 2  ;;  %v18440_v59 = vshrl.u32 %v17059_v63, 16 }
 0x3ea   : > { %v8522_v11 = vpop.f32.mrf.mxu0  ;;  %v17379_v46 = vadd.f32 %v8519_v32, %v8216_v10  ;;  %v8219_v25 = vadd.f32 %v12625_v26, %v18439_v44  ;;  %v18441_v32 = vshll.u32 %v17059_v63, 16  ;;  %v18443_v26 = vld [vmem:[#allocation26_spill] sm:$0xff] }
 0x3eb   : > { %v8084_v47 = vpop.f32.mrf.mxu1  ;;  %v9721_v7 = vrot.slane %v18440_v59, 1  ;;  %v9719_v33 = vor.u32 %v9718_v19, %v9717_v20  ;;  %v9726_v59 = vshrl.u32 %v13101_v51, 16 }
 0x3ec   : > { %18438 = vst [vmem:[#allocation4_spill] sm:$0xff] %v17379_v46  ;;  %v12670_v24 = vpop.f32.mrf.mxu0  ;;  %12853 = vmatmul.mubr.msk.bf16.gmra.mxu0 %vm484_vm2, %v10068_v22  ;;  %v9722_v10 = vrot.slane %v18441_v32, 2  ;;  %v17392_v13 = vadd.f32 %v12667_v56, %v8219_v25  ;;  %v8217_v37 = vadd.f32 %v8084_v47, %v18443_v26  ;;  %v10073_v22 = vrot.slane %v17059_v63, 2  ;;  %12811 = vmatmul.mubr.msk.bf16.gmra.mxu1 %vm484_vm2, %v9712_v0 }
 0x3ed   : > { %12856 = vmatprep.mubr.msk.bf16.mxu0 %vm484_vm2, %v10070_v35  ;;  %v12628_v44 = vpop.f32.mrf.mxu1  ;;  %12814 = vmatprep.mubr.msk.bf16.mxu1 %vm484_vm2, %v9716_v4  ;;  %v9729_v32 = vshll.u32 %v13101_v51, 16  ;;  %v10072_v56 = vsel %vm1724_vm5, %v10069_v21, %v10071_v38  ;;  %v9720_v19 = vsel %vm1328_vm4, %v9715_v55, %v9719_v33 }
 0x3ee   : > { %18442 = vst [vmem:[#allocation7_spill] sm:$0xff] %v17392_v13  ;;  %v8535_v60 = vpop.f32.mrf.mxu0  ;;  %v17397_v35 = vadd.f32 %v8522_v11, %v8217_v37  ;;  %v8222_v8 = vadd.f32 %v12628_v44, %v17104_v43  ;;  %v9723_v47 = vor.u32 %v9722_v10, %v9721_v7  ;;  %v10074_v20 = vsel %vm1724_vm5, %v10071_v38, %v10073_v22 }
 0x3ef   : > { %v8097_v25 = vpop.f32.mrf.mxu1  ;;  %v9728_v37 = vrot.slane %v9726_v59, 1  ;;  %v9731_v21 = vrot.slane %v9729_v32, 2 }
 0x3f0   : > { %v12671_v46 = vpop.f32.mrf.mxu0  ;;  %v17402_v26 = vadd.f32 %v12670_v24, %v8222_v8  ;;  %v8220_v63 = vadd.f32 %v8097_v25, %v17111_v2  ;;  %v9724_v24 = vsel %vm1328_vm4, %v9719_v33, %v9723_v47  ;;  %v10075_v2 = vrot.slane %v13101_v51, 2 }
 0x3f1   : > { %v12629_v11 = vpop.f32.mrf.mxu1  ;;  %v9732_v59 = vor.u32 %v9731_v21, %v9728_v37 }
 0x3f2   : > { %v8538_v13 = vpop.f32.mrf.mxu0  ;;  %v17407_v43 = vadd.f32 %v8535_v60, %v8220_v63  ;;  %v8223_v0 = vadd.f32 %v12629_v11, %v17121_v41  ;;  %v10076_v32 = vsel %vm1724_vm5, %v10073_v22, %v10075_v2 }
 0x3f3   : > { %v8100_v7 = vpop.f32.mrf.mxu1 }
 0x3f4   : > { %v12674_v4 = vpop.f32.mrf.mxu0  ;;  %12857 = vmatmul.mubr.msk.bf16.gmra.mxu0 %vm484_vm2, %v10072_v56  ;;  %v17413_v10 = vadd.f32 %v12671_v46, %v8223_v0  ;;  %v8221_v38 = vadd.f32 %v8100_v7, %v17126_v1  ;;  %12815 = vmatmul.mubr.msk.bf16.gmra.mxu1 %vm484_vm2, %v9720_v19 }
 0x3f5   : > { %12860 = vmatprep.mubr.msk.bf16.mxu0 %vm484_vm2, %v10074_v20  ;;  %v12632_v60 = vpop.f32.mrf.mxu1  ;;  %12818 = vmatprep.mubr.msk.bf16.mxu1 %vm484_vm2, %v9724_v24 }
 0x3f6   : > { %v8551_v55 = vpop.f32.mrf.mxu0  ;;  %v17417_v41 = vadd.f32 %v8538_v13, %v8221_v38  ;;  %v8226_v44 = vadd.f32 %v12632_v60, %v17133_v57  ;;  %v9733_v57 = vsel %vm1328_vm4, %v9723_v47, %v9732_v59 }
 0x3f7   : > { %v8113_v33 = vpop.f32.mrf.mxu1 }
 0x3f8   : > { %v12675_v8 = vpop.f32.mrf.mxu0  ;;  %v17422_v51 = vadd.f32 %v12674_v4, %v8226_v44  ;;  %v8224_v46 = vadd.f32 %v8113_v33, %v17137_v39 }
 0x3f9   : > { %v12633_v25 = vpop.f32.mrf.mxu1 }
 0x3fa   : > { %v8554_v1 = vpop.f32.mrf.mxu0  ;;  %v17425_v56 = vadd.f32 %v8551_v55, %v8224_v46  ;;  %v8227_v13 = vadd.f32 %v12633_v25, %v17149_v61 }
 0x3fb   : > { %v8116_v20 = vpop.f32.mrf.mxu1 }
 0x3fc   : > { %v12678_v63 = vpop.f32.mrf.mxu0  ;;  %12861 = vmatmul.mubr.msk.bf16.gmra.mxu0 %vm484_vm2, %v10076_v32  ;;  %v17430_v11 = vadd.f32 %v12675_v8, %v8227_v13  ;;  %v8225_v22 = vadd.f32 %v8116_v20, %v17154_v49  ;;  %12819 = vmatmul.mubr.msk.bf16.gmra.mxu1 %vm484_vm2, %v9733_v57 }
 0x3fd   : > { %v12636_v0 = vpop.f32.mrf.mxu1 }
 0x3fe   : > { %v8567_v19 = vpop.f32.mrf.mxu0  ;;  %v17434_v39 = vadd.f32 %v8554_v1, %v8225_v22  ;;  %v8230_v4 = vadd.f32 %v12636_v0, %v17159_v31 }
 0x3ff   : > { %v8129_v61 = vpop.f32.mrf.mxu1 }
 0x400   : > { %v12679_v37 = vpop.f32.mrf.mxu0  ;;  %v17437_v21 = vadd.f32 %v12678_v63, %v8230_v4  ;;  %v8228_v47 = vadd.f32 %v8129_v61, %v17165_v42 }
 0x401   : > { %v12637_v24 = vpop.f32.mrf.mxu1 }
 0x402   : > { %v8570_v7 = vpop.f32.mrf.mxu0  ;;  %v17440_v2 = vadd.f32 %v8567_v19, %v8228_v47  ;;  %v8231_v49 = vadd.f32 %v12637_v24, %v17181_v27 }
 0x403   : > { %v8132_v55 = vpop.f32.mrf.mxu1 }
 0x404   : > { %v12682_v38 = vpop.f32.mrf.mxu0  ;;  %v17443_v60 = vadd.f32 %v12679_v37, %v8231_v49  ;;  %v8229_v44 = vadd.f32 %v8132_v55, %v17186_v30 }
 0x405   : > { %v12640_v31 = vpop.f32.mrf.mxu1 }
 0x406   : > { %v8583_v8 = vpop.f32.mrf.mxu0  ;;  %v17446_v59 = vadd.f32 %v8570_v7, %v8229_v44  ;;  %v8234_v33 = vadd.f32 %v12640_v31, %v17191_v3 }
 0x407   : > { %v8145_v42 = vpop.f32.mrf.mxu1 }
 0x408   : > { %v12683_v32 = vpop.f32.mrf.mxu0  ;;  %v17449_v46 = vadd.f32 %v12682_v38, %v8234_v33  ;;  %v8232_v1 = vadd.f32 %v8145_v42, %v17197_v17 }
 0x409   : > { %v12641_v27 = vpop.f32.mrf.mxu1 }
 0x40a   : > { %v8586_v25 = vpop.f32.mrf.mxu0  ;;  %v17452_v13 = vadd.f32 %v8583_v8, %v8232_v1  ;;  %v8235_v63 = vadd.f32 %v12641_v27, %v17211_v18 }
 0x40b   : > { %v8148_v30 = vpop.f32.mrf.mxu1 }
 0x40c   : > { %v12686_v57 = vpop.f32.mrf.mxu0  ;;  %v17455_v20 = vadd.f32 %v12683_v32, %v8235_v63  ;;  %v8233_v22 = vadd.f32 %v8148_v30, %v17216_v45 }
 0x40d   : > { %v12644_v3 = vpop.f32.mrf.mxu1 }
 0x40e   : > { %v8599_v19 = vpop.f32.mrf.mxu0  ;;  %v17458_v0 = vadd.f32 %v8586_v25, %v8233_v22  ;;  %v8238_v4 = vadd.f32 %v12644_v3, %v17221_v58 }
 0x40f   : > { %v8161_v17 = vpop.f32.mrf.mxu1 }
 0x410   : > { %v12687_v37 = vpop.f32.mrf.mxu0  ;;  %v17461_v61 = vadd.f32 %v12686_v57, %v8238_v4  ;;  %v8236_v47 = vadd.f32 %v8161_v17, %v17227_v40 }
 0x411   : > { %v12645_v18 = vpop.f32.mrf.mxu1 }
 0x412   : > { %v8602_v7 = vpop.f32.mrf.mxu0  ;;  %v17464_v24 = vadd.f32 %v8599_v19, %v8236_v47  ;;  %v8239_v49 = vadd.f32 %v12645_v18, %v17241_v15 }
 0x413   : > { %v8164_v45 = vpop.f32.mrf.mxu1 }
 0x414   : > { %v12690_v38 = vpop.f32.mrf.mxu0  ;;  %v17467_v55 = vadd.f32 %v12687_v37, %v8239_v49  ;;  %v8237_v44 = vadd.f32 %v8164_v45, %v17246_v52 }
 0x415   : > { %v12648_v58 = vpop.f32.mrf.mxu1 }
 0x416   : > { %v8615_v8 = vpop.f32.mrf.mxu0  ;;  %v17470_v31 = vadd.f32 %v8602_v7, %v8237_v44  ;;  %v8242_v33 = vadd.f32 %v12648_v58, %v17251_v50 }
 0x417   : > { %v8177_v40 = vpop.f32.mrf.mxu1 }
 0x418   : > { %v12691_v32 = vpop.f32.mrf.mxu0  ;;  %v17473_v42 = vadd.f32 %v12690_v38, %v8242_v33  ;;  %v8240_v1 = vadd.f32 %v8177_v40, %v17257_v62 }
 0x419   : > { %v12649_v15 = vpop.f32.mrf.mxu1 }
 0x41a   : > { %v8618_v25 = vpop.f32.mrf.mxu0  ;;  %v17476_v27 = vadd.f32 %v8615_v8, %v8240_v1  ;;  %v8243_v63 = vadd.f32 %v12649_v15, %v17271_v14 }
 0x41b   : > { %v8180_v52 = vpop.f32.mrf.mxu1 }
 0x41c   : > { %v12694_v57 = vpop.f32.mrf.mxu0  ;;  %v17479_v30 = vadd.f32 %v12691_v32, %v8243_v63  ;;  %v8241_v22 = vadd.f32 %v8180_v52, %v17276_v34 }
 0x41d   : > { %v12652_v50 = vpop.f32.mrf.mxu1 }
 0x41e   : > { %v8631_v19 = vpop.f32.mrf.mxu0  ;;  %v17482_v3 = vadd.f32 %v8618_v25, %v8241_v22  ;;  %v8246_v4 = vadd.f32 %v12652_v50, %v17281_v6 }
 0x41f   : > { %v8193_v62 = vpop.f32.mrf.mxu1 }
 0x420   : > { %v12695_v37 = vpop.f32.mrf.mxu0  ;;  %v17485_v17 = vadd.f32 %v12694_v57, %v8246_v4  ;;  %v8244_v47 = vadd.f32 %v8193_v62, %v17287_v23 }
 0x421   : > { %v12653_v14 = vpop.f32.mrf.mxu1 }
 0x422   : > { %v8634_v7 = vpop.f32.mrf.mxu0  ;;  %v17488_v18 = vadd.f32 %v8631_v19, %v8244_v47  ;;  %v8247_v49 = vadd.f32 %v12653_v14, %v17301_v16 }
 0x423   : > { %v8196_v34 = vpop.f32.mrf.mxu1 }
 0x424   : > { %v12742_v38 = vpop.f32.mrf.mxu0  ;;  %v17491_v45 = vadd.f32 %v12695_v37, %v8247_v49  ;;  %v8245_v44 = vadd.f32 %v8196_v34, %v17306_v54 }
 0x425   : > { %v12700_v6 = vpop.f32.mrf.mxu1 }
 0x426   : > { %v9436_v8 = vpop.f32.mrf.mxu0  ;;  %v17494_v58 = vadd.f32 %v8634_v7, %v8245_v44  ;;  %v9254_v33 = vadd.f32 %v12700_v6, %v17311_v53  ;;  %v18444_v44 = vld [vmem:[#allocation28_spill] sm:$0xff] }
 0x427   : > { %v9093_v23 = vpop.f32.mrf.mxu1 }
 0x428   : > { %v12743_v32 = vpop.f32.mrf.mxu0  ;;  %v17497_v40 = vadd.f32 %v12742_v38, %v9254_v33  ;;  %v9252_v1 = vadd.f32 %v9093_v23, %v17317_v28 }
 0x429   : > { %v12701_v16 = vpop.f32.mrf.mxu1 }
 0x42a   : > { %v9439_v25 = vpop.f32.mrf.mxu0  ;;  %v17500_v15 = vadd.f32 %v9436_v8, %v9252_v1  ;;  %v9255_v63 = vadd.f32 %v12701_v16, %v17331_v48 }
 0x42b   : > { %v9096_v54 = vpop.f32.mrf.mxu1 }
 0x42c   : > { %v12746_v57 = vpop.f32.mrf.mxu0  ;;  %v17503_v52 = vadd.f32 %v12743_v32, %v9255_v63  ;;  %v9253_v22 = vadd.f32 %v9096_v54, %v17336_v36  ;;  %v18446_v54 = vld [vmem:[#allocation7_spill] sm:$0xff] }
 0x42d   : > { %v12704_v53 = vpop.f32.mrf.mxu1 }
 0x42e   : > { %v9452_v19 = vpop.f32.mrf.mxu0  ;;  %v17506_v50 = vadd.f32 %v9439_v25, %v9253_v22  ;;  %v9258_v4 = vadd.f32 %v12704_v53, %v17341_v5  ;;  %v18445_v25 = vld [vmem:[#allocation4_spill] sm:$0xff] }
 0x42f   : > { %v9109_v28 = vpop.f32.mrf.mxu1 }
 0x430   : > { %v12747_v37 = vpop.f32.mrf.mxu0  ;;  %v17509_v62 = vadd.f32 %v12746_v57, %v9258_v4  ;;  %v9256_v47 = vadd.f32 %v9109_v28, %v17347_v29 }
 0x431   : > { %v12705_v48 = vpop.f32.mrf.mxu1 }
 0x432   : > { %v9455_v7 = vpop.f32.mrf.mxu0  ;;  %v17512_v14 = vadd.f32 %v9452_v19, %v9256_v47  ;;  %v9259_v49 = vadd.f32 %v12705_v48, %v17361_v9 }
 0x433   : > { %v9112_v36 = vpop.f32.mrf.mxu1 }
 0x434   : > { %v12750_v38 = vpop.f32.mrf.mxu0  ;;  %v17515_v34 = vadd.f32 %v12747_v37, %v9259_v49  ;;  %v9257_v8 = vadd.f32 %v9112_v36, %v18444_v44 }
 0x435   : > { %v12708_v5 = vpop.f32.mrf.mxu1 }
 0x436   : > { %v9468_v6 = vpop.f32.mrf.mxu0  ;;  %v17518_v33 = vadd.f32 %v9455_v7, %v9257_v8  ;;  %v9262_v32 = vadd.f32 %v12708_v5, %v17371_v12 }
 0x437   : > { %v9125_v29 = vpop.f32.mrf.mxu1 }
 0x438   : > { %v12751_v23 = vpop.f32.mrf.mxu0  ;;  %v17521_v1 = vadd.f32 %v12750_v38, %v9262_v32  ;;  %v9260_v16 = vadd.f32 %v9125_v29, %v18445_v25 }
 0x439   : > { %v12709_v9 = vpop.f32.mrf.mxu1 }
 0x43a   : > { %v9471_v63 = vpop.f32.mrf.mxu0  ;;  %v17524_v57 = vadd.f32 %v9468_v6, %v9260_v16  ;;  %v9263_v22 = vadd.f32 %v12709_v9, %v18446_v54 }
 0x43b   : > { %v9128_v53 = vpop.f32.mrf.mxu1 }
 0x43c   : > { %v12754_v19 = vpop.f32.mrf.mxu0  ;;  %v17527_v4 = vadd.f32 %v12751_v23, %v9263_v22  ;;  %v9261_v37 = vadd.f32 %v9128_v53, %v17397_v35 }
 0x43d   : > { %v12712_v12 = vpop.f32.mrf.mxu1 }
 0x43e   : > { %v9484_v28 = vpop.f32.mrf.mxu0  ;;  %v17530_v47 = vadd.f32 %v9471_v63, %v9261_v37  ;;  %v9266_v7 = vadd.f32 %v12712_v12, %v17402_v26 }
 0x43f   : > { %v9141_v49 = vpop.f32.mrf.mxu1 }
 0x440   : > { %v12755_v48 = vpop.f32.mrf.mxu0  ;;  %v17533_v38 = vadd.f32 %v12754_v19, %v9266_v7  ;;  %v9264_v36 = vadd.f32 %v9141_v49, %v17407_v43 }
 0x441   : > { %v12713_v8 = vpop.f32.mrf.mxu1 }
 0x442   : > { %v9487_v44 = vpop.f32.mrf.mxu0  ;;  %v17536_v6 = vadd.f32 %v9484_v28, %v9264_v36  ;;  %v9267_v5 = vadd.f32 %v12713_v8, %v17413_v10 }
 0x443   : > { %v9144_v35 = vpop.f32.mrf.mxu1 }
 0x444   : > { %v12758_v32 = vpop.f32.mrf.mxu0  ;;  %v17539_v23 = vadd.f32 %v12755_v48, %v9267_v5  ;;  %v9265_v29 = vadd.f32 %v9144_v35, %v17417_v41 }
 0x445   : > { %v12716_v26 = vpop.f32.mrf.mxu1 }
 0x446   : > { %v9500_v25 = vpop.f32.mrf.mxu0  ;;  %v17542_v16 = vadd.f32 %v9487_v44, %v9265_v29  ;;  %v9270_v63 = vadd.f32 %v12716_v26, %v17422_v51 }
 0x447   : > { %v9157_v43 = vpop.f32.mrf.mxu1 }
 0x448   : > { %v12759_v9 = vpop.f32.mrf.mxu0  ;;  %v17545_v54 = vadd.f32 %v12758_v32, %v9270_v63  ;;  %v9268_v22 = vadd.f32 %v9157_v43, %v17425_v56 }
 0x449   : > { %v12717_v10 = vpop.f32.mrf.mxu1 }
 0x44a   : > { %v9503_v19 = vpop.f32.mrf.mxu0  ;;  %v17548_v53 = vadd.f32 %v9500_v25, %v9268_v22  ;;  %v9271_v37 = vadd.f32 %v12717_v10, %v17430_v11 }
 0x44b   : > { %v9160_v41 = vpop.f32.mrf.mxu1 }
 0x44c   : > { %v12762_v28 = vpop.f32.mrf.mxu0  ;;  %v17551_v12 = vadd.f32 %v12759_v9, %v9271_v37  ;;  %v9269_v7 = vadd.f32 %v9160_v41, %v17434_v39 }
 0x44d   : > { %v12720_v51 = vpop.f32.mrf.mxu1 }
 0x44e   : > { %v9516_v48 = vpop.f32.mrf.mxu0  ;;  %v17554_v49 = vadd.f32 %v9503_v19, %v9269_v7  ;;  %v9274_v36 = vadd.f32 %v12720_v51, %v17437_v21 }
 0x44f   : > { %v9173_v56 = vpop.f32.mrf.mxu1 }
 0x450   : > { %v12763_v44 = vpop.f32.mrf.mxu0  ;;  %v17557_v8 = vadd.f32 %v12762_v28, %v9274_v36  ;;  %v9272_v5 = vadd.f32 %v9173_v56, %v17440_v2 }
 0x451   : > { %v12721_v11 = vpop.f32.mrf.mxu1 }
 0x452   : > { %v9519_v32 = vpop.f32.mrf.mxu0  ;;  %v17560_v35 = vadd.f32 %v9516_v48, %v9272_v5  ;;  %v9275_v29 = vadd.f32 %v12721_v11, %v17443_v60 }
 0x453   : > { %v9176_v39 = vpop.f32.mrf.mxu1 }
 0x454   : > { %v12766_v25 = vpop.f32.mrf.mxu0  ;;  %v17563_v26 = vadd.f32 %v12763_v44, %v9275_v29  ;;  %v9273_v63 = vadd.f32 %v9176_v39, %v17446_v59 }
 0x455   : > { %v12724_v21 = vpop.f32.mrf.mxu1 }
 0x456   : > { %v9532_v9 = vpop.f32.mrf.mxu0  ;;  %v17566_v43 = vadd.f32 %v9519_v32, %v9273_v63  ;;  %v9278_v22 = vadd.f32 %v12724_v21, %v17449_v46 }
 0x457   : > { %v9189_v2 = vpop.f32.mrf.mxu1 }
 0x458   : > { %v12767_v19 = vpop.f32.mrf.mxu0  ;;  %v17569_v10 = vadd.f32 %v12766_v25, %v9278_v22  ;;  %v9276_v37 = vadd.f32 %v9189_v2, %v17452_v13 }
 0x459   : > { %v12725_v60 = vpop.f32.mrf.mxu1 }
 0x45a   : > { %v9535_v28 = vpop.f32.mrf.mxu0  ;;  %v17572_v41 = vadd.f32 %v9532_v9, %v9276_v37  ;;  %v9279_v7 = vadd.f32 %v12725_v60, %v17455_v20 }
 0x45b   : > { %v9192_v59 = vpop.f32.mrf.mxu1 }
 0x45c   : > { %v12770_v48 = vpop.f32.mrf.mxu0  ;;  %v17575_v51 = vadd.f32 %v12767_v19, %v9279_v7  ;;  %v9277_v36 = vadd.f32 %v9192_v59, %v17458_v0 }
 0x45d   : > { %v12728_v46 = vpop.f32.mrf.mxu1 }
 0x45e   : > { %v9548_v44 = vpop.f32.mrf.mxu0  ;;  %v17578_v56 = vadd.f32 %v9535_v28, %v9277_v36  ;;  %v9282_v5 = vadd.f32 %v12728_v46, %v17461_v61 }
 0x45f   : > { %v9205_v13 = vpop.f32.mrf.mxu1 }
 0x460   : > { %v12771_v32 = vpop.f32.mrf.mxu0  ;;  %v17581_v11 = vadd.f32 %v12770_v48, %v9282_v5  ;;  %v9280_v29 = vadd.f32 %v9205_v13, %v17464_v24 }
 0x461   : > { %v12729_v20 = vpop.f32.mrf.mxu1 }
 0x462   : > { %v9551_v25 = vpop.f32.mrf.mxu0  ;;  %v17584_v39 = vadd.f32 %v9548_v44, %v9280_v29  ;;  %v9283_v63 = vadd.f32 %v12729_v20, %v17467_v55 }
 0x463   : > { %v9208_v0 = vpop.f32.mrf.mxu1 }
 0x464   : > { %v12774_v9 = vpop.f32.mrf.mxu0  ;;  %v17587_v21 = vadd.f32 %v12771_v32, %v9283_v63  ;;  %v9281_v22 = vadd.f32 %v9208_v0, %v17470_v31 }
 0x465   : > { %v12732_v61 = vpop.f32.mrf.mxu1 }
 0x466   : > { %v9564_v19 = vpop.f32.mrf.mxu0  ;;  %v17590_v2 = vadd.f32 %v9551_v25, %v9281_v22  ;;  %v9286_v37 = vadd.f32 %v12732_v61, %v17473_v42 }
 0x467   : > { %v9221_v24 = vpop.f32.mrf.mxu1 }
 0x468   : > { %v12775_v28 = vpop.f32.mrf.mxu0  ;;  %v17593_v60 = vadd.f32 %v12774_v9, %v9286_v37  ;;  %v9284_v7 = vadd.f32 %v9221_v24, %v17476_v27 }
 0x469   : > { %v12733_v55 = vpop.f32.mrf.mxu1 }
 0x46a   : > { %v9567_v48 = vpop.f32.mrf.mxu0  ;;  %v17596_v59 = vadd.f32 %v9564_v19, %v9284_v7  ;;  %v9287_v36 = vadd.f32 %v12733_v55, %v17479_v30 }
 0x46b   : > { %v9224_v31 = vpop.f32.mrf.mxu1 }
 0x46c   : > { %v12778_v44 = vpop.f32.mrf.mxu0  ;;  %v17599_v46 = vadd.f32 %v12775_v28, %v9287_v36  ;;  %v9285_v5 = vadd.f32 %v9224_v31, %v17482_v3 }
 0x46d   : > { %v12736_v42 = vpop.f32.mrf.mxu1 }
 0x46e   : > { %v9580_v32 = vpop.f32.mrf.mxu0  ;;  %v17602_v13 = vadd.f32 %v9567_v48, %v9285_v5  ;;  %v9290_v29 = vadd.f32 %v12736_v42, %v17485_v17 }
 0x46f   : > { %v9237_v27 = vpop.f32.mrf.mxu1 }
 0x470   : > { %v12779_v25 = vpop.f32.mrf.mxu0  ;;  %v17605_v20 = vadd.f32 %v12778_v44, %v9290_v29  ;;  %v9288_v63 = vadd.f32 %v9237_v27, %v17488_v18  ;;  %v17621_v18 = vld [vmem:[%s17752_s2] ss:$0 sm:$0xff] }
 0x471   : > { %v12737_v9 = vpop.f32.mrf.mxu1 }
 0x472   : > { %v9583_v30 = vpop.f32.mrf.mxu0  ;;  %v17608_v0 = vadd.f32 %v9580_v32, %v9288_v63  ;;  %v9291_v22 = vadd.f32 %v12737_v9, %v17491_v45 }
 0x473   : > { %v9240_v19 = vpop.f32.mrf.mxu1 }
 0x474   : > { %v12826_v3 = vpop.f32.mrf.mxu0  ;;  %v17611_v61 = vadd.f32 %v12779_v25, %v9291_v22  ;;  %v9289_v37 = vadd.f32 %v9240_v19, %v17494_v58 }
 0x475   : > { %v12784_v28 = vpop.f32.mrf.mxu1 }
 0x476   : > { %v10174_v17 = vpop.f32.mrf.mxu0  ;;  %v17614_v24 = vadd.f32 %v9583_v30, %v9289_v37  ;;  %v9992_v7 = vadd.f32 %v12784_v28, %v17497_v40 }
 0x477   : > { %v9831_v45 = vpop.f32.mrf.mxu1 }
 0x478   : > { %v12827_v48 = vpop.f32.mrf.mxu0  ;;  %v10335_v55 = vadd.f32 %v12826_v3, %v9992_v7  ;;  %v9990_v36 = vadd.f32 %v9831_v45, %v17500_v15 }
 0x479   : > { %v12785_v31 = vpop.f32.mrf.mxu1 }
 0x47a   : > { %v10177_v44 = vpop.f32.mrf.mxu0  ;;  %v10382_v58 = vadd.f32 %v17621_v18, %v10335_v55  ;;  %v10333_v5 = vadd.f32 %v10174_v17, %v9990_v36  ;;  %v9993_v32 = vadd.f32 %v12785_v31, %v17503_v52 }
 0x47b   : > { %v9834_v40 = vpop.f32.mrf.mxu1 }
 0x47c   : > { %v12830_v42 = vpop.f32.mrf.mxu0  ;;  %v10422_v29 = vmax.f32 %v10382_v58, 0.0  ;;  %v10380_v25 = vadd.f32 %v17621_v18, %v10333_v5  ;;  %v10336_v15 = vadd.f32 %v12827_v48, %v9993_v32  ;;  %v9991_v27 = vadd.f32 %v9834_v40, %v17506_v50 }
 0x47d   : > { %v12788_v30 = vpop.f32.mrf.mxu1 }
 0x47e   : > { %v10190_v63 = vpop.f32.mrf.mxu0  ;;  %10462 = vst [vmem:[%s17629_s13 + $0x10] sm:$0xff] %v10422_v29  ;;  %v10420_v52 = vmax.f32 %v10380_v25, 0.0  ;;  %v10383_v9 = vadd.f32 %v17621_v18, %v10336_v15  ;;  %v10334_v22 = vadd.f32 %v10177_v44, %v9991_v27  ;;  %v9996_v3 = vadd.f32 %v12788_v30, %v17509_v62 }
 0x47f   : > { %v9847_v37 = vpop.f32.mrf.mxu1 }
 0x480   : > { %v12831_v19 = vpop.f32.mrf.mxu0  ;;  %10460 = vst [vmem:[%s17629_s13] sm:$0xff] %v10420_v52  ;;  %v10423_v17 = vmax.f32 %v10383_v9, 0.0  ;;  %v10381_v28 = vadd.f32 %v17621_v18, %v10334_v22  ;;  %v10339_v7 = vadd.f32 %v12830_v42, %v9996_v3  ;;  %v9994_v50 = vadd.f32 %v9847_v37, %v17512_v14 }
 0x481   : > { %v12789_v45 = vpop.f32.mrf.mxu1 }
 0x482   : > { %v10193_v48 = vpop.f32.mrf.mxu0  ;;  %10463 = vst [vmem:[%s17629_s13 + $0x18] sm:$0xff] %v10423_v17  ;;  %v10421_v55 = vmax.f32 %v10381_v28, 0.0  ;;  %v10386_v36 = vadd.f32 %v17621_v18, %v10339_v7  ;;  %v10337_v44 = vadd.f32 %v10190_v63, %v9994_v50  ;;  %v9997_v62 = vadd.f32 %v12789_v45, %v17515_v34 }
 0x483   : > { %v9850_v58 = vpop.f32.mrf.mxu1 }
 0x484   : > { %v12834_v31 = vpop.f32.mrf.mxu0  ;;  %10461 = vst [vmem:[%s17629_s13 + $0x8] sm:$0xff] %v10421_v55  ;;  %v10426_v5 = vmax.f32 %v10386_v36, 0.0  ;;  %v10384_v32 = vadd.f32 %v17621_v18, %v10337_v44  ;;  %v10340_v42 = vadd.f32 %v12831_v19, %v9997_v62  ;;  %v9995_v14 = vadd.f32 %v9850_v58, %v17518_v33 }
 0x485   : > { %v12792_v29 = vpop.f32.mrf.mxu1 }
 0x486   : > { %v10206_v40 = vpop.f32.mrf.mxu0  ;;  %10466 = vst [vmem:[%s17629_s13 + $0x30] sm:$0xff] %v10426_v5  ;;  %v10424_v25 = vmax.f32 %v10384_v32, 0.0  ;;  %v10387_v15 = vadd.f32 %v17621_v18, %v10340_v42  ;;  %v10338_v27 = vadd.f32 %v10193_v48, %v9995_v14  ;;  %v10000_v34 = vadd.f32 %v12792_v29, %v17521_v1 }
 0x487   : > { %v9863_v30 = vpop.f32.mrf.mxu1 }
 0x488   : > { %v12835_v63 = vpop.f32.mrf.mxu0  ;;  %10464 = vst [vmem:[%s17629_s13 + $0x20] sm:$0xff] %v10424_v25  ;;  %v10427_v52 = vmax.f32 %v10387_v15, 0.0  ;;  %v10385_v9 = vadd.f32 %v17621_v18, %v10338_v27  ;;  %v10343_v22 = vadd.f32 %v12834_v31, %v10000_v34  ;;  %v9998_v33 = vadd.f32 %v9863_v30, %v17524_v57 }
 0x489   : > { %v12793_v19 = vpop.f32.mrf.mxu1 }
 0x48a   : > { %v10209_v3 = vpop.f32.mrf.mxu0  ;;  %10467 = vst [vmem:[%s17629_s13 + $0x38] sm:$0xff] %v10427_v52  ;;  %v10425_v37 = vmax.f32 %v10385_v9, 0.0  ;;  %v10390_v17 = vadd.f32 %v17621_v18, %v10343_v22  ;;  %v10341_v28 = vadd.f32 %v10206_v40, %v9998_v33  ;;  %v10001_v1 = vadd.f32 %v12793_v19, %v17527_v4 }
 0x48b   : > { %v9866_v50 = vpop.f32.mrf.mxu1 }
 0x48c   : > { %v12838_v7 = vpop.f32.mrf.mxu0  ;;  %10465 = vst [vmem:[%s17629_s13 + $0x28] sm:$0xff] %v10425_v37  ;;  %v10430_v48 = vmax.f32 %v10390_v17, 0.0  ;;  %v10388_v45 = vadd.f32 %v17621_v18, %v10341_v28  ;;  %v10344_v55 = vadd.f32 %v12835_v63, %v10001_v1  ;;  %v9999_v57 = vadd.f32 %v9866_v50, %v17530_v47 }
 0x48d   : > { %v12796_v44 = vpop.f32.mrf.mxu1 }
 0x48e   : > { %v10222_v36 = vpop.f32.mrf.mxu0  ;;  %10470 = vst [vmem:[%s17629_s13 + $0x50] sm:$0xff] %v10430_v48  ;;  %v10428_v62 = vmax.f32 %v10388_v45, 0.0  ;;  %v10391_v31 = vadd.f32 %v17621_v18, %v10344_v55  ;;  %v10342_v58 = vadd.f32 %v10209_v3, %v9999_v57  ;;  %v10004_v4 = vadd.f32 %v12796_v44, %v17533_v38 }
 0x48f   : > { %v9879_v32 = vpop.f32.mrf.mxu1 }
 0x490   : > { %v12839_v5 = vpop.f32.mrf.mxu0  ;;  %10468 = vst [vmem:[%s17629_s13 + $0x40] sm:$0xff] %v10428_v62  ;;  %v10431_v42 = vmax.f32 %v10391_v31, 0.0  ;;  %v10389_v14 = vadd.f32 %v17621_v18, %v10342_v58  ;;  %v10347_v40 = vadd.f32 %v12838_v7, %v10004_v4  ;;  %v10002_v47 = vadd.f32 %v9879_v32, %v17536_v6 }
 0x491   : > { %v12797_v25 = vpop.f32.mrf.mxu1 }
 0x492   : > { %v10225_v29 = vpop.f32.mrf.mxu0  ;;  %10471 = vst [vmem:[%s17629_s13 + $0x58] sm:$0xff] %v10431_v42  ;;  %v10429_v15 = vmax.f32 %v10389_v14, 0.0  ;;  %v10394_v27 = vadd.f32 %v17621_v18, %v10347_v40  ;;  %v10345_v34 = vadd.f32 %v10222_v36, %v10002_v47  ;;  %v10005_v38 = vadd.f32 %v12797_v25, %v17539_v23 }
 0x493   : > { %v9882_v30 = vpop.f32.mrf.mxu1 }
 0x494   : > { %v12842_v63 = vpop.f32.mrf.mxu0  ;;  %10469 = vst [vmem:[%s17629_s13 + $0x48] sm:$0xff] %v10429_v15  ;;  %v10434_v52 = vmax.f32 %v10394_v27, 0.0  ;;  %v10392_v9 = vadd.f32 %v17621_v18, %v10345_v34  ;;  %v10348_v22 = vadd.f32 %v12839_v5, %v10005_v38  ;;  %v10003_v6 = vadd.f32 %v9882_v30, %v17542_v16 }
 0x495   : > { %v12800_v3 = vpop.f32.mrf.mxu1 }
 0x496   : > { %v10238_v33 = vpop.f32.mrf.mxu0  ;;  %10474 = vst [vmem:[%s17629_s13 + $0x70] sm:$0xff] %v10434_v52  ;;  %v10432_v19 = vmax.f32 %v10392_v9, 0.0  ;;  %v10395_v37 = vadd.f32 %v17621_v18, %v10348_v22  ;;  %v10346_v17 = vadd.f32 %v10225_v29, %v10003_v6  ;;  %v10008_v23 = vadd.f32 %v12800_v3, %v17545_v54 }
 0x497   : > { %v9895_v1 = vpop.f32.mrf.mxu1 }
 0x498   : > { %v12843_v28 = vpop.f32.mrf.mxu0  ;;  %10472 = vst [vmem:[%s17629_s13 + $0x60] sm:$0xff] %v10432_v19  ;;  %v10435_v7 = vmax.f32 %v10395_v37, 0.0  ;;  %v10393_v50 = vadd.f32 %v17621_v18, %v10346_v17  ;;  %v10351_v48 = vadd.f32 %v12842_v63, %v10008_v23  ;;  %v10006_v16 = vadd.f32 %v9895_v1, %v17548_v53 }
 0x499   : > { %v12801_v55 = vpop.f32.mrf.mxu1 }
 0x49a   : > { %v10241_v45 = vpop.f32.mrf.mxu0  ;;  %10475 = vst [vmem:[%s17629_s13 + $0x78] sm:$0xff] %v10435_v7  ;;  %v10433_v57 = vmax.f32 %v10393_v50, 0.0  ;;  %v10398_v36 = vadd.f32 %v17621_v18, %v10351_v48  ;;  %v10349_v44 = vadd.f32 %v10238_v33, %v10006_v16  ;;  %v10009_v54 = vadd.f32 %v12801_v55, %v17551_v12 }
 0x49b   : > { %v9898_v31 = vpop.f32.mrf.mxu1 }
 0x49c   : > { %v12846_v62 = vpop.f32.mrf.mxu0  ;;  %10473 = vst [vmem:[%s17629_s13 + $0x68] sm:$0xff] %v10433_v57  ;;  %v10438_v58 = vmax.f32 %v10398_v36, 0.0  ;;  %v10396_v4 = vadd.f32 %v17621_v18, %v10349_v44  ;;  %v10352_v5 = vadd.f32 %v12843_v28, %v10009_v54  ;;  %v10007_v53 = vadd.f32 %v9898_v31, %v17554_v49 }
 0x49d   : > { %v12804_v42 = vpop.f32.mrf.mxu1 }
 0x49e   : > { %v10254_v32 = vpop.f32.mrf.mxu0  ;;  %10478 = vst [vmem:[%s17629_s13 + $0x90] sm:$0xff] %v10438_v58  ;;  %v10436_v14 = vmax.f32 %v10396_v4, 0.0  ;;  %v10399_v40 = vadd.f32 %v17621_v18, %v10352_v5  ;;  %v10350_v47 = vadd.f32 %v10241_v45, %v10007_v53  ;;  %v10012_v12 = vadd.f32 %v12804_v42, %v17557_v8 }
 0x49f   : > { %v9911_v25 = vpop.f32.mrf.mxu1 }
 0x4a0   : > { %v12847_v29 = vpop.f32.mrf.mxu0  ;;  %10476 = vst [vmem:[%s17629_s13 + $0x80] sm:$0xff] %v10436_v14  ;;  %v10439_v15 = vmax.f32 %v10399_v40, 0.0  ;;  %v10397_v27 = vadd.f32 %v17621_v18, %v10350_v47  ;;  %v10355_v34 = vadd.f32 %v12846_v62, %v10012_v12  ;;  %v10010_v49 = vadd.f32 %v9911_v25, %v17560_v35 }
 0x4a1   : > { %v12805_v63 = vpop.f32.mrf.mxu1 }
 0x4a2   : > { %v10257_v38 = vpop.f32.mrf.mxu0  ;;  %10479 = vst [vmem:[%s17629_s13 + $0x98] sm:$0xff] %v10439_v15  ;;  %v10437_v30 = vmax.f32 %v10397_v27, 0.0  ;;  %v10402_v52 = vadd.f32 %v17621_v18, %v10355_v34  ;;  %v10353_v9 = vadd.f32 %v10254_v32, %v10010_v49  ;;  %v10013_v8 = vadd.f32 %v12805_v63, %v17563_v26 }
 0x4a3   : > { %v9914_v6 = vpop.f32.mrf.mxu1 }
 0x4a4   : > { %v12850_v22 = vpop.f32.mrf.mxu0  ;;  %10477 = vst [vmem:[%s17629_s13 + $0x88] sm:$0xff] %v10437_v30  ;;  %v10442_v33 = vmax.f32 %v10402_v52, 0.0  ;;  %v10400_v3 = vadd.f32 %v17621_v18, %v10353_v9  ;;  %v10356_v19 = vadd.f32 %v12847_v29, %v10013_v8  ;;  %v10011_v35 = vadd.f32 %v9914_v6, %v17566_v43 }
 0x4a5   : > { %v12808_v17 = vpop.f32.mrf.mxu1 }
 0x4a6   : > { %v10270_v37 = vpop.f32.mrf.mxu0  ;;  %10482 = vst [vmem:[%s17629_s13 + $0xb0] sm:$0xff] %v10442_v33  ;;  %v10440_v23 = vmax.f32 %v10400_v3, 0.0  ;;  %v10403_v28 = vadd.f32 %v17621_v18, %v10356_v19  ;;  %v10354_v1 = vadd.f32 %v10257_v38, %v10011_v35  ;;  %v10016_v26 = vadd.f32 %v12808_v17, %v17569_v10 }
 0x4a7   : > { %v9927_v50 = vpop.f32.mrf.mxu1 }
 0x4a8   : > { %v12851_v7 = vpop.f32.mrf.mxu0  ;;  %10480 = vst [vmem:[%s17629_s13 + $0xa0] sm:$0xff] %v10440_v23  ;;  %v10443_v48 = vmax.f32 %v10403_v28, 0.0  ;;  %v10401_v16 = vadd.f32 %v17621_v18, %v10354_v1  ;;  %v10359_v45 = vadd.f32 %v12850_v22, %v10016_v26  ;;  %v10014_v43 = vadd.f32 %v9927_v50, %v17572_v41 }
 0x4a9   : > { %v12809_v57 = vpop.f32.mrf.mxu1 }
 0x4aa   : > { %v10273_v55 = vpop.f32.mrf.mxu0  ;;  %10483 = vst [vmem:[%s17629_s13 + $0xb8] sm:$0xff] %v10443_v48  ;;  %v10441_v36 = vmax.f32 %v10401_v16, 0.0  ;;  %v10406_v44 = vadd.f32 %v17621_v18, %v10359_v45  ;;  %v10357_v54 = vadd.f32 %v10270_v37, %v10014_v43  ;;  %v10017_v10 = vadd.f32 %v12809_v57, %v17575_v51 }
 0x4ab   : > { %v9930_v31 = vpop.f32.mrf.mxu1 }
 0x4ac   : > { %v12854_v62 = vpop.f32.mrf.mxu0  ;;  %10481 = vst [vmem:[%s17629_s13 + $0xa8] sm:$0xff] %v10441_v36  ;;  %v10446_v58 = vmax.f32 %v10406_v44, 0.0  ;;  %v10404_v4 = vadd.f32 %v17621_v18, %v10357_v54  ;;  %v10360_v5 = vadd.f32 %v12851_v7, %v10017_v10  ;;  %v10015_v41 = vadd.f32 %v9930_v31, %v17578_v56 }
 0x4ad   : > { %v12812_v32 = vpop.f32.mrf.mxu1 }
 0x4ae   : > { %v10286_v53 = vpop.f32.mrf.mxu0  ;;  %10486 = vst [vmem:[%s17629_s13 + $0xd0] sm:$0xff] %v10446_v58  ;;  %v10444_v42 = vmax.f32 %v10404_v4, 0.0  ;;  %v10407_v14 = vadd.f32 %v17621_v18, %v10360_v5  ;;  %v10358_v40 = vadd.f32 %v10273_v55, %v10015_v41  ;;  %v10020_v51 = vadd.f32 %v12812_v32, %v17581_v11 }
 0x4af   : > { %v9943_v12 = vpop.f32.mrf.mxu1 }
 0x4b0   : > { %v12855_v47 = vpop.f32.mrf.mxu0  ;;  %10484 = vst [vmem:[%s17629_s13 + $0xc0] sm:$0xff] %v10444_v42  ;;  %v10447_v29 = vmax.f32 %v10407_v14, 0.0  ;;  %v10405_v25 = vadd.f32 %v17621_v18, %v10358_v40  ;;  %v10363_v15 = vadd.f32 %v12854_v62, %v10020_v51  ;;  %v10018_v56 = vadd.f32 %v9943_v12, %v17584_v39 }
 0x4b1   : > { %v12813_v34 = vpop.f32.mrf.mxu1 }
 0x4b2   : > { %v10289_v27 = vpop.f32.mrf.mxu0  ;;  %10487 = vst [vmem:[%s17629_s13 + $0xd8] sm:$0xff] %v10447_v29  ;;  %v10445_v49 = vmax.f32 %v10405_v25, 0.0  ;;  %v10410_v38 = vadd.f32 %v17621_v18, %v10363_v15  ;;  %v10361_v63 = vadd.f32 %v10286_v53, %v10018_v56  ;;  %v10021_v11 = vadd.f32 %v12813_v34, %v17587_v21 }
 0x4b3   : > { %v9946_v52 = vpop.f32.mrf.mxu1 }
 0x4b4   : > { %v12858_v30 = vpop.f32.mrf.mxu0  ;;  %10485 = vst [vmem:[%s17629_s13 + $0xc8] sm:$0xff] %v10445_v49  ;;  %v10450_v9 = vmax.f32 %v10410_v38, 0.0  ;;  %v10408_v8 = vadd.f32 %v17621_v18, %v10361_v63  ;;  %v10364_v22 = vadd.f32 %v12855_v47, %v10021_v11  ;;  %v10019_v39 = vadd.f32 %v9946_v52, %v17590_v2 }
 0x4b5   : > { %v12816_v33 = vpop.f32.mrf.mxu1 }
 0x4b6   : > { %v10302_v6 = vpop.f32.mrf.mxu0  ;;  %10490 = vst [vmem:[%s17629_s13 + $0xf0] sm:$0xff] %v10450_v9  ;;  %v10448_v3 = vmax.f32 %v10408_v8, 0.0  ;;  %v10411_v19 = vadd.f32 %v17621_v18, %v10364_v22  ;;  %v10362_v35 = vadd.f32 %v10289_v27, %v10019_v39  ;;  %v10024_v21 = vadd.f32 %v12816_v33, %v17593_v60 }
 0x4b7   : > { %v9959_v17 = vpop.f32.mrf.mxu1 }
 0x4b8   : > { %v12859_v37 = vpop.f32.mrf.mxu0  ;;  %10488 = vst [vmem:[%s17629_s13 + $0xe0] sm:$0xff] %v10448_v3  ;;  %v10451_v23 = vmax.f32 %v10411_v19, 0.0  ;;  %v10409_v28 = vadd.f32 %v17621_v18, %v10362_v35  ;;  %v10367_v1 = vadd.f32 %v12858_v30, %v10024_v21  ;;  %v10022_v2 = vadd.f32 %v9959_v17, %v17596_v59 }
 0x4b9   : > { %v12817_v7 = vpop.f32.mrf.mxu1 }
 0x4ba   : > { %v10305_v26 = vpop.f32.mrf.mxu0  ;;  %10491 = vst [vmem:[%s17629_s13 + $0xf8] sm:$0xff] %v10451_v23  ;;  %v10449_v50 = vmax.f32 %v10409_v28, 0.0  ;;  %v10414_v48 = vadd.f32 %v17621_v18, %v10367_v1  ;;  %v10365_v16 = vadd.f32 %v10302_v6, %v10022_v2  ;;  %v10025_v60 = vadd.f32 %v12817_v7, %v17599_v46 }
 0x4bb   : > { %v9962_v43 = vpop.f32.mrf.mxu1 }
 0x4bc   : > { %v12862_v45 = vpop.f32.mrf.mxu0  ;;  %10489 = vst [vmem:[%s17629_s13 + $0xe8] sm:$0xff] %v10449_v50  ;;  %v10454_v55 = vmax.f32 %v10414_v48, 0.0  ;;  %v10412_v57 = vadd.f32 %v17621_v18, %v10365_v16  ;;  %v10368_v36 = vadd.f32 %v12859_v37, %v10025_v60  ;;  %v10023_v59 = vadd.f32 %v9962_v43, %v17602_v13 }
 0x4bd   : > { %v12820_v54 = vpop.f32.mrf.mxu1 }
 0x4be   : > { %v10318_v44 = vpop.f32.mrf.mxu0  ;;  %10494 = vst [vmem:[%s17629_s13 + $0x110] sm:$0xff] %v10454_v55  ;;  %v10452_v10 = vmax.f32 %v10412_v57, 0.0  ;;  %v10415_v62 = vadd.f32 %v17621_v18, %v10368_v36  ;;  %v10366_v31 = vadd.f32 %v10305_v26, %v10023_v59  ;;  %v10028_v46 = vadd.f32 %v12820_v54, %v17605_v20 }
 0x4bf   : > { %v9975_v58 = vpop.f32.mrf.mxu1 }
 0x4c0   : > { %v12863_v4 = vpop.f32.mrf.mxu0  ;;  %10492 = vst [vmem:[%s17629_s13 + $0x100] sm:$0xff] %v10452_v10  ;;  %v10455_v5 = vmax.f32 %v10415_v62, 0.0  ;;  %v10413_v41 = vadd.f32 %v17621_v18, %v10366_v31  ;;  %v10371_v53 = vadd.f32 %v12862_v45, %v10028_v46  ;;  %v10026_v13 = vadd.f32 %v9975_v58, %v17608_v0 }
 0x4c1   : > { %v12821_v32 = vpop.f32.mrf.mxu1 }
 0x4c2   : > { %10495 = vst [vmem:[%s17629_s13 + $0x118] sm:$0xff] %v10455_v5  ;;  %v10453_v42 = vmax.f32 %v10413_v41, 0.0  ;;  %v10418_v14 = vadd.f32 %v17621_v18, %v10371_v53  ;;  %v10369_v40 = vadd.f32 %v10318_v44, %v10026_v13  ;;  %v10029_v20 = vadd.f32 %v12821_v32, %v17611_v61  ;;  %v10321_v47 = vpop.f32.mrf.mxu0 }
 0x4c3   : > { %v9978_v51 = vpop.f32.mrf.mxu1 }
 0x4c4   : > { %10493 = vst [vmem:[%s17629_s13 + $0x108] sm:$0xff] %v10453_v42  ;;  %v10458_v12 = vmax.f32 %v10418_v14, 0.0  ;;  %v10416_v29 = vadd.f32 %v17621_v18, %v10369_v40  ;;  %v10372_v25 = vadd.f32 %v12863_v4, %v10029_v20  ;;  %v10027_v0 = vadd.f32 %v9978_v51, %v17614_v24 }
 0x4c6   : > { %10498 = vst [vmem:[%s17629_s13 + $0x130] sm:$0xff] %v10458_v12  ;;  %v10456_v15 = vmax.f32 %v10416_v29, 0.0  ;;  %v10419_v56 = vadd.f32 %v17621_v18, %v10372_v25  ;;  %v10370_v27 = vadd.f32 %v10321_v47, %v10027_v0 }
 0x4c8   : > { %10496 = vst [vmem:[%s17629_s13 + $0x120] sm:$0xff] %v10456_v15  ;;  %v10459_v34 = vmax.f32 %v10419_v56, 0.0  ;;  %v10417_v49 = vadd.f32 %v17621_v18, %v10370_v27 }
 0x4ca   : > { %10499 = vst [vmem:[%s17629_s13 + $0x138] sm:$0xff] %v10459_v34  ;;  %v10457_v61 = vmax.f32 %v10417_v49, 0.0 }
 0x4cc   : > { %10497 = vst [vmem:[%s17629_s13 + $0x128] sm:$0xff] %v10457_v61 }
 0x4cd PF: > { %s13_s12 = sadd.s32 1, %s13190_s12  }
 0x4ce   : > { %p10_p4 = scmp.ge.s32.totalorder %s13_s12, 4  }
 0x4d0   :  { %12 = sbr.rel (!%p10_p4) target bundleno = 1 (0x1), region = 86 }

</bundles_post_ra>
